<compile_context>
chip_gen: v7x
topology: tpu7x:2x2x1
jax: 0.10.0
libtpu: 0.0.40
codegen_flags: <defaults>
</compile_context>

<pallas_src>
import math
import functools

import numpy as np
import jax
import jax.numpy as jnp
from jax.experimental import pallas as pl
from jax.experimental.pallas import tpu as pltpu


# ---------------------------------------------------------------------------
# helpers
# ---------------------------------------------------------------------------

def _round_up(x, m):
    return ((x + m - 1) // m) * m


def _row_tile(M, tm_max):
    """Row tile: multiple of 8, and >= 2 grid steps when M allows (v7x dual-TC)."""
    tm = min(tm_max, _round_up(max(1, (M + 1) // 2), 8))
    return max(tm, 8)


def _dft_bases(Nh, l):
    """Truncated real-DFT bases matching rfft/irfft (Im of DC/Nyquist ignored).

    fwd: [2l, Nh], rows interleaved per mode m as (cos, -sin).
    inv: [Nh, 2l], cols interleaved per mode m as (w_m*cos, -w_m*sin)."""
    n = np.arange(Nh, dtype=np.float64)[None, :]
    m = np.arange(l, dtype=np.float64)[:, None]
    ang = 2.0 * np.pi * m * n / Nh
    cos = np.cos(ang)
    sin = np.sin(ang)
    fwd = np.zeros((2 * l, Nh), np.float32)
    fwd[0::2] = cos
    fwd[1::2] = -sin
    w = np.full((l, 1), 2.0 / Nh)
    w[0, 0] = 1.0 / Nh
    if Nh % 2 == 0 and (l - 1) == Nh // 2:
        w[l - 1, 0] = 1.0 / Nh                      # Nyquist term weight
    inv = np.zeros((Nh, 2 * l), np.float32)
    inv[:, 0::2] = (w * cos).T
    inv[:, 1::2] = (-(w * sin)).T                   # zero at DC/Nyquist -> Im ignored
    return jnp.asarray(fwd), jnp.asarray(inv)


# ---------------------------------------------------------------------------
# Pallas kernels
# ---------------------------------------------------------------------------

def _mm_kernel(x_ref, w_ref, o_ref, *, relu):
    acc = jnp.dot(x_ref[...], w_ref[...], preferred_element_type=jnp.float32)
    if relu:
        acc = jnp.maximum(acc, 0.0)
    o_ref[...] = acc.astype(o_ref.dtype)


def _mm_bias_kernel(x_ref, w_ref, b_ref, o_ref, *, relu):
    acc = jnp.dot(x_ref[...], w_ref[...], preferred_element_type=jnp.float32)
    acc = acc + b_ref[...]
    if relu:
        acc = jnp.maximum(acc, 0.0)
    o_ref[...] = acc.astype(o_ref.dtype)


def matmul_bias(x, w, b=None, *, relu=False, out_dtype=jnp.float32, tm_max=1024):
    """x: [M, K] @ w: [K, N] (+ b) (+ relu) -> [M, N] out_dtype.

    bf16 MXU operands, f32 accumulation. Lane-dense N on the hot path. Row tile
    is a multiple of 8 with >= 2 grid steps when M allows (dual-TC on v7x);
    Pallas masks the partial last block."""
    M, K = x.shape
    N = w.shape[1]
    tm = _row_tile(M, tm_max)
    grid = (pl.cdiv(M, tm),)
    x = x.astype(jnp.bfloat16)
    w = w.astype(jnp.bfloat16)
    in_specs = [pl.BlockSpec((tm, K), lambda i: (i, 0)),
                pl.BlockSpec((K, N), lambda i: (0, 0))]
    args = [x, w]
    if b is not None:
        in_specs.append(pl.BlockSpec((1, N), lambda i: (0, 0)))
        args.append(b.reshape(1, N).astype(jnp.float32))
        kern = functools.partial(_mm_bias_kernel, relu=relu)
    else:
        kern = functools.partial(_mm_kernel, relu=relu)
    return pl.pallas_call(
        kern,
        grid=grid,
        in_specs=in_specs,
        out_specs=pl.BlockSpec((tm, N), lambda i: (i, 0)),
        out_shape=jax.ShapeDtypeStruct((M, N), out_dtype),
        compiler_params=pltpu.CompilerParams(dimension_semantics=("parallel",)),
    )(*args)


def _recon_kernel(x_ref, y_ref, wx_ref, wy_ref, o_ref, *, relu):
    acc = jnp.dot(x_ref[...], wx_ref[...], preferred_element_type=jnp.float32)
    acc = acc + jnp.dot(y_ref[...], wy_ref[...], preferred_element_type=jnp.float32)
    if relu:
        acc = jnp.maximum(acc, 0.0)
    o_ref[...] = acc.astype(o_ref.dtype)


def recon_matmul(x, y, wx, wy, *, relu=False, out_dtype=jnp.bfloat16, tm_max=1024):
    """Reconstruction: x @ W_x + y @ W_uds (+relu), concat folded into the kernel."""
    M, Kx = x.shape
    Ky = y.shape[1]
    N = wx.shape[1]
    tm = _row_tile(M, tm_max)
    grid = (pl.cdiv(M, tm),)
    kern = functools.partial(_recon_kernel, relu=relu)
    return pl.pallas_call(
        kern,
        grid=grid,
        in_specs=[pl.BlockSpec((tm, Kx), lambda i: (i, 0)),
                  pl.BlockSpec((tm, Ky), lambda i: (i, 0)),
                  pl.BlockSpec((Kx, N), lambda i: (0, 0)),
                  pl.BlockSpec((Ky, N), lambda i: (0, 0))],
        out_specs=pl.BlockSpec((tm, N), lambda i: (i, 0)),
        out_shape=jax.ShapeDtypeStruct((M, N), out_dtype),
        compiler_params=pltpu.CompilerParams(dimension_semantics=("parallel",)),
    )(x.astype(jnp.bfloat16), y.astype(jnp.bfloat16),
      wx.astype(jnp.bfloat16), wy.astype(jnp.bfloat16))


def _freq_kernel(dx_ref, fwd_ref, inv_ref, wab_ref, wc_ref, o_ref, *, l, ck):
    """Fused per-level frequency path for one batch element.

    dx_ref : [1, Nh, 2ck] bf16, lanes = [d | x]
    fwd_ref: [2l, Nh]  f32, rows interleaved (cos_m, -sin_m)
    inv_ref: [Nh, 2l]  f32, cols interleaved (w_m cos_m, -w_m sin_m)
    wab_ref: [l, 2ck, 2ck] bf16, K rows = [A; B], N cols = [Re | Im]
    wc_ref : [l, ck, 2ck]  bf16, N cols = [Re | Im]
    o_ref  : [1, Nh, 2ck] bf16, lanes = [Ud | Us]
    """
    dxb = dx_ref[0]                                            # [Nh, 2ck] bf16
    Nh = dxb.shape[0]
    if Nh == 1:                                                # degenerate DFT (l == 1)
        ft = jnp.concatenate([dxb, jnp.zeros_like(dxb)], axis=0).astype(jnp.float32)
    else:
        ft = jnp.dot(fwd_ref[...], dxb.astype(jnp.float32),
                     preferred_element_type=jnp.float32)       # [2l, 2ck]
    ftb = ft.astype(jnp.bfloat16)

    rows = []
    for m in range(l):                                         # static unroll over modes
        xm = ftb[2 * m:2 * m + 2, :]                           # [Re; Im] rows, [2, 2ck]
        p = jnp.dot(xm, wab_ref[m], preferred_element_type=jnp.float32)        # [2, 2ck]
        pc = jnp.dot(xm[:, :ck], wc_ref[m], preferred_element_type=jnp.float32)
        ud = jnp.concatenate([p[0:1, :ck] - p[1:2, ck:],
                              p[0:1, ck:] + p[1:2, :ck]], axis=0)              # [2, ck]
        us = jnp.concatenate([pc[0:1, :ck] - pc[1:2, ck:],
                              pc[0:1, ck:] + pc[1:2, :ck]], axis=0)
        rows.append(jnp.concatenate([ud, us], axis=1))          # [2, 2ck] = [Ud | Us]
    ftout = jnp.concatenate(rows, axis=0)                       # [2l, 2ck] f32

    if Nh == 1:
        y = ftout[0:1, :]                                       # inverse basis = [[1, 0]]
    else:
        y = jnp.dot(inv_ref[...], ftout, preferred_element_type=jnp.float32)   # [Nh, 2ck]
    o_ref[0] = y.astype(o_ref.dtype)


def freq_mix(dx, fwd, inv, wab, wc, l):
    """dx: [B, Nh, 2ck] -> [B, Nh, 2ck] bf16 ( [Ud | Us] ), grid over batch.

    Per-mode weights use a constant index_map (streamed to VMEM once); only the
    first l modes of the [alpha, ...] weight arrays are fetched via the block."""
    B, Nh, ck2 = dx.shape
    ck = ck2 // 2
    kern = functools.partial(_freq_kernel, l=l, ck=ck)
    return pl.pallas_call(
        kern,
        grid=(B,),
        in_specs=[pl.BlockSpec((1, Nh, ck2), lambda b: (b, 0, 0)),
                  pl.BlockSpec((2 * l, Nh), lambda b: (0, 0)),
                  pl.BlockSpec((Nh, 2 * l), lambda b: (0, 0)),
                  pl.BlockSpec((l, ck2, ck2), lambda b: (0, 0, 0)),
                  pl.BlockSpec((l, ck, ck2), lambda b: (0, 0, 0))],
        out_specs=pl.BlockSpec((1, Nh, ck2), lambda b: (b, 0, 0)),
        out_shape=jax.ShapeDtypeStruct((B, Nh, ck2), jnp.bfloat16),
        compiler_params=pltpu.CompilerParams(dimension_semantics=("parallel",)),
    )(dx.astype(jnp.bfloat16), fwd, inv, wab, wc)


# ---------------------------------------------------------------------------
# Module forward
# ---------------------------------------------------------------------------

def mwt_cz1d_forward(x, p, c, k, L_level=0, apply_relu=False):
    """MWT_CZ1d.forward — x: [B, N, c*k] (channel-major flat) -> same shape."""
    B, N, ck = x.shape
    ns = int(math.floor(math.log2(N)))
    nl = 2 ** int(math.ceil(math.log2(N)))
    if nl > N:
        x = jnp.concatenate([x, x[:, :nl - N]], axis=1)
    x = x.astype(jnp.bfloat16)
    modes = p["modes"]

    ys = []                                        # per level: [B, Nh, 2ck] = [Ud | Us]
    for _ in range(ns - L_level):
        Ncur = x.shape[1]
        Nh = Ncur // 2
        # fused wavelet analysis: [even|odd] @ blockdiag([ec_d | ec_s]) -> [d | x_next]
        wout = matmul_bias(x.reshape(B * Nh, 2 * ck), p["W_wav"],
                           out_dtype=jnp.bfloat16)             # [B*Nh, 2ck]
        x = wout[:, ck:].reshape(B, Nh, ck)                    # coarse approx, next level
        dx = wout.reshape(B, Nh, 2 * ck)                       # lane-concat [d | x]

        l = min(modes, Nh // 2 + 1)
        fwd, inv = _dft_bases(Nh, l)                           # trace-time constants
        ys.append(freq_mix(dx, fwd, inv, p["Wab"], p["Wc"], l))

    # T0 linear on the coarsest scale (block-diag over channels, lane-dense)
    Nx = x.shape[1]
    x = matmul_bias(x.reshape(B * Nx, ck), p["W_T0"], p["b_T0"],
                    out_dtype=jnp.bfloat16).reshape(B, Nx, ck)

    # reconstruction: x @ W_x + [Ud|Us] @ W_uds -> [x_e | x_o] ("x + Us" folded in W)
    for i in range(ns - 1 - L_level, -1, -1):
        y = ys[i]                                  # [B, Ni, 2ck]
        Ni = y.shape[1]
        relu_here = apply_relu and (i == 0)        # fuse inter-CZ relu into last matmul
        eo = recon_matmul(x.reshape(B * Ni, ck), y.reshape(B * Ni, 2 * ck),
                          p["W_eo_x"], p["W_eo_y"], relu=relu_here)     # [B*Ni, 2ck]
        x = eo.reshape(B, Ni, 2, ck).reshape(B, 2 * Ni, ck)    # interleave even/odd

    if apply_relu and (ns - L_level) <= 0:
        x = jax.nn.relu(x)
    return x[:, :N]


def multi_wavelet_transform(queries, keys, values, attn_mask, params):
    """MultiWaveletTransform.forward — returns (V, None)."""
    B, L, H, E = queries.shape
    _, S, _, D = values.shape
    if L > S:
        zeros = jnp.zeros((B, L - S, H, D), values.dtype)
        values = jnp.concatenate([values, zeros], axis=1)
    else:
        values = values[:, :L]
    c, k = params["c"], params["k"]
    ck = c * k
    V = matmul_bias(values.reshape(B * L, H * D), params["Lk0_w"], params["Lk0_b"],
                    out_dtype=jnp.bfloat16).reshape(B, L, ck)
    nCZ = len(params["cz"])
    for i in range(nCZ):
        V = mwt_cz1d_forward(V, params["cz"][i], c, k, params["L"],
                             apply_relu=(i < nCZ - 1))
    V = matmul_bias(V.reshape(B * L, ck), params["Lk1_w"], params["Lk1_b"],
                    out_dtype=jnp.float32)
    V = V.reshape(B, L, -1, D)
    return V, None


# ---------------------------------------------------------------------------
# Parameter initialization: raw filters -> block-diagonal / packed TPU weights
# ---------------------------------------------------------------------------

def init_params(key, ich, k, alpha, c, nCZ, L_level):
    ck = c * k
    keys = jax.random.split(key, 2 + nCZ)
    params = {
        "c": c, "k": k, "L": L_level,
        "Lk0_w": (jax.random.normal(keys[0], (ich, ck)) / math.sqrt(ich)).astype(jnp.bfloat16),
        "Lk0_b": jnp.zeros((ck,), jnp.float32),
        "Lk1_w": (jax.random.normal(keys[1], (ck, ich)) / math.sqrt(ck)).astype(jnp.bfloat16),
        "Lk1_b": jnp.zeros((ich,), jnp.float32),
        "cz": [],
    }
    eye_c = jnp.eye(c, dtype=jnp.float32)

    def blk(m):
        """[a, b] filter -> [c*a, c*b] block-diagonal (one copy per channel)."""
        a, b = m.shape
        return jnp.einsum('cd,jo->cjdo', eye_c, m).reshape(c * a, c * b)

    for i in range(nCZ):
        kz = jax.random.split(keys[2 + i], 12)
        w_scale = 1.0 / (ck * ck)                  # same scale as sparseKernelFT1d
        f_scale = 1.0 / math.sqrt(2 * k)
        # TODO(synk): get_filter('legendre', k) construction not ported;
        # deterministic synthetic filter banks of identical shapes are used.
        ec_s = jax.random.normal(kz[0], (2 * k, k)) * f_scale
        ec_d = jax.random.normal(kz[1], (2 * k, k)) * f_scale
        rc_e = jax.random.normal(kz[2], (2 * k, k)) * f_scale
        rc_o = jax.random.normal(kz[3], (2 * k, k)) * f_scale
        A_wr = jax.random.uniform(kz[4], (ck, ck, alpha)) * w_scale
        A_wi = jax.random.uniform(kz[5], (ck, ck, alpha)) * w_scale
        B_wr = jax.random.uniform(kz[6], (ck, ck, alpha)) * w_scale
        B_wi = jax.random.uniform(kz[7], (ck, ck, alpha)) * w_scale
        C_wr = jax.random.uniform(kz[8], (ck, ck, alpha)) * w_scale
        C_wi = jax.random.uniform(kz[9], (ck, ck, alpha)) * w_scale
        T0_w = jax.random.normal(kz[10], (k, k)) / math.sqrt(k)
        T0_b = jnp.zeros((k,), jnp.float32)

        # Wavelet analysis: input (parity, ch, j) flat; output [d | s], each ch-major.
        ec_d_r = ec_d.reshape(2, k, k)             # [parity, j, o]
        ec_s_r = ec_s.reshape(2, k, k)
        W_d = jnp.einsum('cd,pjo->pcjdo', eye_c, ec_d_r).reshape(2 * ck, ck)
        W_s = jnp.einsum('cd,pjo->pcjdo', eye_c, ec_s_r).reshape(2 * ck, ck)
        W_wav = jnp.concatenate([W_d, W_s], axis=1)              # [2ck, 2ck]

        # Even/odd reconstruction with the "x + Us" add folded in:
        # input [x | Ud | Us] (3ck), output [x_e | x_o] (2ck); split rows at ck.
        rc_e_r = rc_e.reshape(2, k, k)
        rc_o_r = rc_o.reshape(2, k, k)
        W_e3 = jnp.concatenate([blk(rc_e_r[0]), blk(rc_e_r[1]), blk(rc_e_r[0])], axis=0)
        W_o3 = jnp.concatenate([blk(rc_o_r[0]), blk(rc_o_r[1]), blk(rc_o_r[0])], axis=0)
        W_eo3 = jnp.concatenate([W_e3, W_o3], axis=1)            # [3ck, 2ck]

        # Per-mode frequency weights: [A;B] stacked along K, [Re|Im] merged along N.
        wab = jnp.concatenate(
            [jnp.concatenate([A_wr, B_wr], axis=0),
             jnp.concatenate([A_wi, B_wi], axis=0)], axis=1)     # [2ck, 2ck, alpha]
        wc = jnp.concatenate([C_wr, C_wi], axis=1)               # [ck, 2ck, alpha]

        cz = {
            "modes": alpha,
            "W_wav": W_wav.astype(jnp.bfloat16),
            "W_eo_x": W_eo3[:ck].astype(jnp.bfloat16),           # [ck, 2ck]
            "W_eo_y": W_eo3[ck:].astype(jnp.bfloat16),           # [2ck, 2ck]
            "W_T0": blk(T0_w).astype(jnp.bfloat16),              # [ck, ck]
            "b_T0": jnp.tile(T0_b, c).astype(jnp.float32),       # [ck]
            "Wab": wab.transpose(2, 0, 1).astype(jnp.bfloat16),  # [alpha, 2ck, 2ck]
            "Wc": wc.transpose(2, 0, 1).astype(jnp.bfloat16),    # [alpha, ck, 2ck]
        }
        params["cz"].append(cz)
    return params


# ---------------------------------------------------------------------------
# Main
# ---------------------------------------------------------------------------

if __name__ == "__main__":
    key = jax.random.PRNGKey(0)
    # Small shapes: queries/keys/values [B, L, H, E] with L a power of 2.
    B, L, H, E = 2, 16, 2, 4
    D = E
    ich = H * D            # Lk0 input dim must equal H*D
    k, alpha, c, nCZ, Lw = 8, 16, 16, 1, 0   # c*k = 128 -> lane-dense slabs

    kq, kk_, kv, kp = jax.random.split(key, 4)
    queries = jax.random.normal(kq, (B, L, H, E), jnp.float32)
    keys_ = jax.random.normal(kk_, (B, L, H, E), jnp.float32)
    values = jax.random.normal(kv, (B, L, H, D), jnp.float32)

    params = init_params(kp, ich, k, alpha, c, nCZ, Lw)

    fwd = jax.jit(functools.partial(multi_wavelet_transform, params=params))
    out, attn = fwd(queries, keys_, values, None)
    out = jax.block_until_ready(out)
    assert out.shape == (B, L, H, D), out.shape
    assert attn is None
    print("KERNEL_OK")
</pallas_src>

<mosaic_0001>
module attributes {stable_mosaic.version = 11 : i64} {
  func.func @_mm_kernel(%arg0: i32, %arg1: memref<8x256xbf16, #tpu.memory_space<vmem>>, %arg2: memref<256x256xbf16, #tpu.memory_space<vmem>>, %arg3: memref<8x256xbf16, #tpu.memory_space<vmem>>) attributes {dimension_semantics = [#tpu.dimension_semantics<parallel>], iteration_bounds = array<i64: 1>, scalar_prefetch = 0 : i64, scratch_operands = 0 : i64, tpu.core_type = #tpu.core_type<tc>, window_params = [{transform_indices = @transform_0, window_bounds = array<i64: 8, 256>}, {pipeline_mode = #tpu.pipeline_mode<synchronous>, transform_indices = @transform_1, window_bounds = array<i64: 256, 256>}, {transform_indices = @transform_2, window_bounds = array<i64: 8, 256>}]} {
    %c0 = arith.constant 0 : index
    %c0_0 = arith.constant 0 : index
    %0 = vector.load %arg1[%c0, %c0_0] : memref<8x256xbf16, #tpu.memory_space<vmem>>, vector<8x256xbf16>
    %c0_1 = arith.constant 0 : index
    %c0_2 = arith.constant 0 : index
    %1 = vector.load %arg2[%c0_1, %c0_2] : memref<256x256xbf16, #tpu.memory_space<vmem>>, vector<256x256xbf16>
    %cst = arith.constant dense<0.000000e+00> : vector<8x256xf32>
    %2 = tpu.matmul %0, %1, %cst {dimension_numbers = #tpu.dot_dimension_numbers<[1], [0], [0], [1], [0, 0, 1, 1], [], []>} : vector<8x256xbf16>, vector<256x256xbf16>, vector<8x256xf32> -> vector<8x256xf32>
    %3 = arith.truncf %2 : vector<8x256xf32> to vector<8x256xbf16>
    %c0_3 = arith.constant 0 : index
    %c0_4 = arith.constant 0 : index
    %4 = vector.load %arg3[%c0_3, %c0_4] : memref<8x256xbf16, #tpu.memory_space<vmem>>, vector<8x256xbf16>
    tpu.vector_store %arg3[%c0_3, %c0_4], %3 {strides = array<i32>} : memref<8x256xbf16, #tpu.memory_space<vmem>>, vector<8x256xbf16>,
    return
  }
  func.func @transform_0(%arg0: i32) -> (i32, i32) {
    %c0_i32 = arith.constant 0 : i32
    %c0_i32_0 = arith.constant 0 : i32
    return %arg0, %c0_i32 : i32, i32
  }
  func.func @transform_1(%arg0: i32) -> (i32, i32) {
    %c0_i32 = arith.constant 0 : i32
    %c0_i32_0 = arith.constant 0 : i32
    %c0_i32_1 = arith.constant 0 : i32
    return %c0_i32, %c0_i32_0 : i32, i32
  }
  func.func @transform_2(%arg0: i32) -> (i32, i32) {
    %c0_i32 = arith.constant 0 : i32
    %c0_i32_0 = arith.constant 0 : i32
    return %arg0, %c0_i32 : i32, i32
  }
}

module attributes {stable_mosaic.version = 11 : i64} {
  func.func @_mm_bias_kernel(%arg0: i32, %arg1: memref<16x8xbf16, #tpu.memory_space<vmem>>, %arg2: memref<8x128xbf16, #tpu.memory_space<vmem>>, %arg3: memref<1x128xf32, #tpu.memory_space<vmem>>, %arg4: memref<16x128xbf16, #tpu.memory_space<vmem>>) attributes {dimension_semantics = [#tpu.dimension_semantics<parallel>], iteration_bounds = array<i64: 2>, scalar_prefetch = 0 : i64, scratch_operands = 0 : i64, tpu.core_type = #tpu.core_type<tc>, window_params = [{transform_indices = @transform_0, window_bounds = array<i64: 16, 8>}, {pipeline_mode = #tpu.pipeline_mode<synchronous>, transform_indices = @transform_1, window_bounds = array<i64: 8, 128>}, {pipeline_mode = #tpu.pipeline_mode<synchronous>, transform_indices = @transform_2, window_bounds = array<i64: 1, 128>}, {transform_indices = @transform_3, window_bounds = array<i64: 16, 128>}]} {
    %c0 = arith.constant 0 : index
    %c0_0 = arith.constant 0 : index
    %0 = vector.load %arg1[%c0, %c0_0] : memref<16x8xbf16, #tpu.memory_space<vmem>>, vector<16x8xbf16>
    %c0_1 = arith.constant 0 : index
    %c0_2 = arith.constant 0 : index
    %1 = vector.load %arg2[%c0_1, %c0_2] : memref<8x128xbf16, #tpu.memory_space<vmem>>, vector<8x128xbf16>
    %cst = arith.constant dense<0.000000e+00> : vector<16x128xf32>
    %2 = tpu.matmul %0, %1, %cst {dimension_numbers = #tpu.dot_dimension_numbers<[1], [0], [0], [1], [0, 0, 1, 1], [], []>} : vector<16x8xbf16>, vector<8x128xbf16>, vector<16x128xf32> -> vector<16x128xf32>
    %c0_3 = arith.constant 0 : index
    %c0_4 = arith.constant 0 : index
    %3 = vector.load %arg3[%c0_3, %c0_4] : memref<1x128xf32, #tpu.memory_space<vmem>>, vector<1x128xf32>
    %4 = vector.broadcast %3 : vector<1x128xf32> to vector<16x128xf32>
    %5 = arith.addf %2, %4 : vector<16x128xf32>
    %6 = arith.truncf %5 : vector<16x128xf32> to vector<16x128xbf16>
    %c0_5 = arith.constant 0 : index
    %c0_6 = arith.constant 0 : index
    %7 = vector.load %arg4[%c0_5, %c0_6] : memref<16x128xbf16, #tpu.memory_space<vmem>>, vector<16x128xbf16>
    tpu.vector_store %arg4[%c0_5, %c0_6], %6 {strides = array<i32>} : memref<16x128xbf16, #tpu.memory_space<vmem>>, vector<16x128xbf16>,
    return
  }
  func.func @transform_0(%arg0: i32) -> (i32, i32) {
    %c0_i32 = arith.constant 0 : i32
    %c0_i32_0 = arith.constant 0 : i32
    return %arg0, %c0_i32 : i32, i32
  }
  func.func @transform_1(%arg0: i32) -> (i32, i32) {
    %c0_i32 = arith.constant 0 : i32
    %c0_i32_0 = arith.constant 0 : i32
    %c0_i32_1 = arith.constant 0 : i32
    return %c0_i32, %c0_i32_0 : i32, i32
  }
  func.func @transform_2(%arg0: i32) -> (i32, i32) {
    %c0_i32 = arith.constant 0 : i32
    %c0_i32_0 = arith.constant 0 : i32
    %c0_i32_1 = arith.constant 0 : i32
    return %c0_i32, %c0_i32_0 : i32, i32
  }
  func.func @transform_3(%arg0: i32) -> (i32, i32) {
    %c0_i32 = arith.constant 0 : i32
    %c0_i32_0 = arith.constant 0 : i32
    return %arg0, %c0_i32 : i32, i32
  }
}

module attributes {stable_mosaic.version = 11 : i64} {
  func.func @_mm_kernel(%arg0: i32, %arg1: memref<8x256xbf16, #tpu.memory_space<vmem>>, %arg2: memref<256x256xbf16, #tpu.memory_space<vmem>>, %arg3: memref<8x256xbf16, #tpu.memory_space<vmem>>) attributes {dimension_semantics = [#tpu.dimension_semantics<parallel>], iteration_bounds = array<i64: 2>, scalar_prefetch = 0 : i64, scratch_operands = 0 : i64, tpu.core_type = #tpu.core_type<tc>, window_params = [{transform_indices = @transform_0, window_bounds = array<i64: 8, 256>}, {pipeline_mode = #tpu.pipeline_mode<synchronous>, transform_indices = @transform_1, window_bounds = array<i64: 256, 256>}, {transform_indices = @transform_2, window_bounds = array<i64: 8, 256>}]} {
    %c0 = arith.constant 0 : index
    %c0_0 = arith.constant 0 : index
    %0 = vector.load %arg1[%c0, %c0_0] : memref<8x256xbf16, #tpu.memory_space<vmem>>, vector<8x256xbf16>
    %c0_1 = arith.constant 0 : index
    %c0_2 = arith.constant 0 : index
    %1 = vector.load %arg2[%c0_1, %c0_2] : memref<256x256xbf16, #tpu.memory_space<vmem>>, vector<256x256xbf16>
    %cst = arith.constant dense<0.000000e+00> : vector<8x256xf32>
    %2 = tpu.matmul %0, %1, %cst {dimension_numbers = #tpu.dot_dimension_numbers<[1], [0], [0], [1], [0, 0, 1, 1], [], []>} : vector<8x256xbf16>, vector<256x256xbf16>, vector<8x256xf32> -> vector<8x256xf32>
    %3 = arith.truncf %2 : vector<8x256xf32> to vector<8x256xbf16>
    %c0_3 = arith.constant 0 : index
    %c0_4 = arith.constant 0 : index
    %4 = vector.load %arg3[%c0_3, %c0_4] : memref<8x256xbf16, #tpu.memory_space<vmem>>, vector<8x256xbf16>
    tpu.vector_store %arg3[%c0_3, %c0_4], %3 {strides = array<i32>} : memref<8x256xbf16, #tpu.memory_space<vmem>>, vector<8x256xbf16>,
    return
  }
  func.func @transform_0(%arg0: i32) -> (i32, i32) {
    %c0_i32 = arith.constant 0 : i32
    %c0_i32_0 = arith.constant 0 : i32
    return %arg0, %c0_i32 : i32, i32
  }
  func.func @transform_1(%arg0: i32) -> (i32, i32) {
    %c0_i32 = arith.constant 0 : i32
    %c0_i32_0 = arith.constant 0 : i32
    %c0_i32_1 = arith.constant 0 : i32
    return %c0_i32, %c0_i32_0 : i32, i32
  }
  func.func @transform_2(%arg0: i32) -> (i32, i32) {
    %c0_i32 = arith.constant 0 : i32
    %c0_i32_0 = arith.constant 0 : i32
    return %arg0, %c0_i32 : i32, i32
  }
}

module attributes {stable_mosaic.version = 11 : i64} {
  func.func @_mm_kernel(%arg0: i32, %arg1: memref<8x256xbf16, #tpu.memory_space<vmem>>, %arg2: memref<256x256xbf16, #tpu.memory_space<vmem>>, %arg3: memref<8x256xbf16, #tpu.memory_space<vmem>>) attributes {dimension_semantics = [#tpu.dimension_semantics<parallel>], iteration_bounds = array<i64: 1>, scalar_prefetch = 0 : i64, scratch_operands = 0 : i64, tpu.core_type = #tpu.core_type<tc>, window_params = [{transform_indices = @transform_0, window_bounds = array<i64: 8, 256>}, {pipeline_mode = #tpu.pipeline_mode<synchronous>, transform_indices = @transform_1, window_bounds = array<i64: 256, 256>}, {transform_indices = @transform_2, window_bounds = array<i64: 8, 256>}]} {
    %c0 = arith.constant 0 : index
    %c0_0 = arith.constant 0 : index
    %0 = vector.load %arg1[%c0, %c0_0] : memref<8x256xbf16, #tpu.memory_space<vmem>>, vector<8x256xbf16>
    %c0_1 = arith.constant 0 : index
    %c0_2 = arith.constant 0 : index
    %1 = vector.load %arg2[%c0_1, %c0_2] : memref<256x256xbf16, #tpu.memory_space<vmem>>, vector<256x256xbf16>
    %cst = arith.constant dense<0.000000e+00> : vector<8x256xf32>
    %2 = tpu.matmul %0, %1, %cst {dimension_numbers = #tpu.dot_dimension_numbers<[1], [0], [0], [1], [0, 0, 1, 1], [], []>} : vector<8x256xbf16>, vector<256x256xbf16>, vector<8x256xf32> -> vector<8x256xf32>
    %3 = arith.truncf %2 : vector<8x256xf32> to vector<8x256xbf16>
    %c0_3 = arith.constant 0 : index
    %c0_4 = arith.constant 0 : index
    %4 = vector.load %arg3[%c0_3, %c0_4] : memref<8x256xbf16, #tpu.memory_space<vmem>>, vector<8x256xbf16>
    tpu.vector_store %arg3[%c0_3, %c0_4], %3 {strides = array<i32>} : memref<8x256xbf16, #tpu.memory_space<vmem>>, vector<8x256xbf16>,
    return
  }
  func.func @transform_0(%arg0: i32) -> (i32, i32) {
    %c0_i32 = arith.constant 0 : i32
    %c0_i32_0 = arith.constant 0 : i32
    return %arg0, %c0_i32 : i32, i32
  }
  func.func @transform_1(%arg0: i32) -> (i32, i32) {
    %c0_i32 = arith.constant 0 : i32
    %c0_i32_0 = arith.constant 0 : i32
    %c0_i32_1 = arith.constant 0 : i32
    return %c0_i32, %c0_i32_0 : i32, i32
  }
  func.func @transform_2(%arg0: i32) -> (i32, i32) {
    %c0_i32 = arith.constant 0 : i32
    %c0_i32_0 = arith.constant 0 : i32
    return %arg0, %c0_i32 : i32, i32
  }
}

module attributes {stable_mosaic.version = 11 : i64} {
  func.func @_mm_kernel(%arg0: i32, %arg1: memref<8x256xbf16, #tpu.memory_space<vmem>>, %arg2: memref<256x256xbf16, #tpu.memory_space<vmem>>, %arg3: memref<8x256xbf16, #tpu.memory_space<vmem>>) attributes {dimension_semantics = [#tpu.dimension_semantics<parallel>], iteration_bounds = array<i64: 1>, scalar_prefetch = 0 : i64, scratch_operands = 0 : i64, tpu.core_type = #tpu.core_type<tc>, window_params = [{transform_indices = @transform_0, window_bounds = array<i64: 8, 256>}, {pipeline_mode = #tpu.pipeline_mode<synchronous>, transform_indices = @transform_1, window_bounds = array<i64: 256, 256>}, {transform_indices = @transform_2, window_bounds = array<i64: 8, 256>}]} {
    %c0 = arith.constant 0 : index
    %c0_0 = arith.constant 0 : index
    %0 = vector.load %arg1[%c0, %c0_0] : memref<8x256xbf16, #tpu.memory_space<vmem>>, vector<8x256xbf16>
    %c0_1 = arith.constant 0 : index
    %c0_2 = arith.constant 0 : index
    %1 = vector.load %arg2[%c0_1, %c0_2] : memref<256x256xbf16, #tpu.memory_space<vmem>>, vector<256x256xbf16>
    %cst = arith.constant dense<0.000000e+00> : vector<8x256xf32>
    %2 = tpu.matmul %0, %1, %cst {dimension_numbers = #tpu.dot_dimension_numbers<[1], [0], [0], [1], [0, 0, 1, 1], [], []>} : vector<8x256xbf16>, vector<256x256xbf16>, vector<8x256xf32> -> vector<8x256xf32>
    %3 = arith.truncf %2 : vector<8x256xf32> to vector<8x256xbf16>
    %c0_3 = arith.constant 0 : index
    %c0_4 = arith.constant 0 : index
    %4 = vector.load %arg3[%c0_3, %c0_4] : memref<8x256xbf16, #tpu.memory_space<vmem>>, vector<8x256xbf16>
    tpu.vector_store %arg3[%c0_3, %c0_4], %3 {strides = array<i32>} : memref<8x256xbf16, #tpu.memory_space<vmem>>, vector<8x256xbf16>,
    return
  }
  func.func @transform_0(%arg0: i32) -> (i32, i32) {
    %c0_i32 = arith.constant 0 : i32
    %c0_i32_0 = arith.constant 0 : i32
    return %arg0, %c0_i32 : i32, i32
  }
  func.func @transform_1(%arg0: i32) -> (i32, i32) {
    %c0_i32 = arith.constant 0 : i32
    %c0_i32_0 = arith.constant 0 : i32
    %c0_i32_1 = arith.constant 0 : i32
    return %c0_i32, %c0_i32_0 : i32, i32
  }
  func.func @transform_2(%arg0: i32) -> (i32, i32) {
    %c0_i32 = arith.constant 0 : i32
    %c0_i32_0 = arith.constant 0 : i32
    return %arg0, %c0_i32 : i32, i32
  }
}

module attributes {stable_mosaic.version = 11 : i64} {
  func.func @_freq_kernel(%arg0: i32, %arg1: memref<1x1x256xbf16, #tpu.memory_space<vmem>>, %arg2: memref<2x1xf32, #tpu.memory_space<vmem>>, %arg3: memref<1x2xf32, #tpu.memory_space<vmem>>, %arg4: memref<1x256x256xbf16, #tpu.memory_space<vmem>>, %arg5: memref<1x128x256xbf16, #tpu.memory_space<vmem>>, %arg6: memref<1x1x256xbf16, #tpu.memory_space<vmem>>) attributes {dimension_semantics = [#tpu.dimension_semantics<parallel>], iteration_bounds = array<i64: 2>, scalar_prefetch = 0 : i64, scratch_operands = 0 : i64, tpu.core_type = #tpu.core_type<tc>, window_params = [{transform_indices = @transform_0, window_bounds = array<i64: 1, 1, 256>}, {pipeline_mode = #tpu.pipeline_mode<synchronous>, transform_indices = @transform_1, window_bounds = array<i64: 2, 1>}, {pipeline_mode = #tpu.pipeline_mode<synchronous>, transform_indices = @transform_2, window_bounds = array<i64: 1, 2>}, {transform_indices = @transform_3, window_bounds = array<i64: 1, 256, 256>}, {transform_indices = @transform_4, window_bounds = array<i64: 1, 128, 256>}, {transform_indices = @transform_5, window_bounds = array<i64: 1, 1, 256>}]} {
    %c0 = arith.constant 0 : index
    %c0_0 = arith.constant 0 : index
    %c0_1 = arith.constant 0 : index
    %0 = vector.load %arg1[%c0, %c0_0, %c0_1] : memref<1x1x256xbf16, #tpu.memory_space<vmem>>, vector<1x1x256xbf16>
    %1 = vector.shape_cast %0 : vector<1x1x256xbf16> to vector<1x256xbf16>
    %cst = arith.constant 0.000000e+00 : bf16
    %2 = vector.broadcast %cst : bf16 to vector<1x256xbf16>
    %3 = tpu.concatenate %1, %2 in 0 : vector<1x256xbf16>, vector<1x256xbf16> -> vector<2x256xbf16>
    %4 = arith.extf %3 : vector<2x256xbf16> to vector<2x256xf32>
    %5 = arith.truncf %4 : vector<2x256xf32> to vector<2x256xbf16>
    %c0_2 = arith.constant 0 : index
    %c0_3 = arith.constant 0 : index
    %c0_4 = arith.constant 0 : index
    %6 = vector.load %arg4[%c0_2, %c0_3, %c0_4] : memref<1x256x256xbf16, #tpu.memory_space<vmem>>, vector<1x256x256xbf16>
    %7 = vector.shape_cast %6 : vector<1x256x256xbf16> to vector<256x256xbf16>
    %cst_5 = arith.constant dense<0.000000e+00> : vector<2x256xf32>
    %8 = tpu.matmul %5, %7, %cst_5 {dimension_numbers = #tpu.dot_dimension_numbers<[1], [0], [0], [1], [0, 0, 1, 1], [], []>} : vector<2x256xbf16>, vector<256x256xbf16>, vector<2x256xf32> -> vector<2x256xf32>
    %9 = vector.extract_strided_slice %5 {offsets = [0, 0], sizes = [2, 128], strides = [1, 1]} : vector<2x256xbf16> to vector<2x128xbf16>
    %c0_6 = arith.constant 0 : index
    %c0_7 = arith.constant 0 : index
    %c0_8 = arith.constant 0 : index
    %10 = vector.load %arg5[%c0_6, %c0_7, %c0_8] : memref<1x128x256xbf16, #tpu.memory_space<vmem>>, vector<1x128x256xbf16>
    %11 = vector.shape_cast %10 : vector<1x128x256xbf16> to vector<128x256xbf16>
    %cst_9 = arith.constant dense<0.000000e+00> : vector<2x256xf32>
    %12 = tpu.matmul %9, %11, %cst_9 {dimension_numbers = #tpu.dot_dimension_numbers<[1], [0], [0], [1], [0, 0, 1, 1], [], []>} : vector<2x128xbf16>, vector<128x256xbf16>, vector<2x256xf32> -> vector<2x256xf32>
    %13 = vector.extract_strided_slice %8 {offsets = [0, 0], sizes = [1, 128], strides = [1, 1]} : vector<2x256xf32> to vector<1x128xf32>
    %14 = vector.extract_strided_slice %8 {offsets = [1, 128], sizes = [1, 128], strides = [1, 1]} : vector<2x256xf32> to vector<1x128xf32>
    %15 = arith.subf %13, %14 : vector<1x128xf32>
    %16 = vector.extract_strided_slice %8 {offsets = [0, 128], sizes = [1, 128], strides = [1, 1]} : vector<2x256xf32> to vector<1x128xf32>
    %17 = vector.extract_strided_slice %8 {offsets = [1, 0], sizes = [1, 128], strides = [1, 1]} : vector<2x256xf32> to vector<1x128xf32>
    %18 = arith.addf %16, %17 : vector<1x128xf32>
    %19 = tpu.concatenate %15, %18 in 0 : vector<1x128xf32>, vector<1x128xf32> -> vector<2x128xf32>
    %20 = vector.extract_strided_slice %12 {offsets = [0, 0], sizes = [1, 128], strides = [1, 1]} : vector<2x256xf32> to vector<1x128xf32>
    %21 = vector.extract_strided_slice %12 {offsets = [1, 128], sizes = [1, 128], strides = [1, 1]} : vector<2x256xf32> to vector<1x128xf32>
    %22 = arith.subf %20, %21 : vector<1x128xf32>
    %23 = vector.extract_strided_slice %12 {offsets = [0, 128], sizes = [1, 128], strides = [1, 1]} : vector<2x256xf32> to vector<1x128xf32>
    %24 = vector.extract_strided_slice %12 {offsets = [1, 0], sizes = [1, 128], strides = [1, 1]} : vector<2x256xf32> to vector<1x128xf32>
    %25 = arith.addf %23, %24 : vector<1x128xf32>
    %26 = tpu.concatenate %22, %25 in 0 : vector<1x128xf32>, vector<1x128xf32> -> vector<2x128xf32>
    %27 = tpu.concatenate %19, %26 in 1 : vector<2x128xf32>, vector<2x128xf32> -> vector<2x256xf32>
    %28 = vector.extract_strided_slice %27 {offsets = [0, 0], sizes = [1, 256], strides = [1, 1]} : vector<2x256xf32> to vector<1x256xf32>
    %29 = arith.truncf %28 : vector<1x256xf32> to vector<1x256xbf16>
    %c0_10 = arith.constant 0 : index
    %c0_11 = arith.constant 0 : index
    %c0_12 = arith.constant 0 : index
    %30 = vector.load %arg6[%c0_10, %c0_11, %c0_12] : memref<1x1x256xbf16, #tpu.memory_space<vmem>>, vector<1x1x256xbf16>
    %31 = vector.shape_cast %30 : vector<1x1x256xbf16> to vector<1x256xbf16>
    %32 = vector.shape_cast %29 : vector<1x256xbf16> to vector<1x1x256xbf16>
    tpu.vector_store %arg6[%c0_10, %c0_11, %c0_12], %32 {strides = array<i32>} : memref<1x1x256xbf16, #tpu.memory_space<vmem>>, vector<1x1x256xbf16>,
    return
  }
  func.func @transform_0(%arg0: i32) -> (i32, i32, i32) {
    %c0_i32 = arith.constant 0 : i32
    %c0_i32_0 = arith.constant 0 : i32
    %c0_i32_1 = arith.constant 0 : i32
    return %arg0, %c0_i32, %c0_i32_0 : i32, i32, i32
  }
  func.func @transform_1(%arg0: i32) -> (i32, i32) {
    %c0_i32 = arith.constant 0 : i32
    %c0_i32_0 = arith.constant 0 : i32
    %c0_i32_1 = arith.constant 0 : i32
    return %c0_i32, %c0_i32_0 : i32, i32
  }
  func.func @transform_2(%arg0: i32) -> (i32, i32) {
    %c0_i32 = arith.constant 0 : i32
    %c0_i32_0 = arith.constant 0 : i32
    %c0_i32_1 = arith.constant 0 : i32
    return %c0_i32, %c0_i32_0 : i32, i32
  }
  func.func @transform_3(%arg0: i32) -> (i32, i32, i32) {
    %c0_i32 = arith.constant 0 : i32
    %c0_i32_0 = arith.constant 0 : i32
    %c0_i32_1 = arith.constant 0 : i32
    %c0_i32_2 = arith.constant 0 : i32
    return %c0_i32, %c0_i32_0, %c0_i32_1 : i32, i32, i32
  }
  func.func @transform_4(%arg0: i32) -> (i32, i32, i32) {
    %c0_i32 = arith.constant 0 : i32
    %c0_i32_0 = arith.constant 0 : i32
    %c0_i32_1 = arith.constant 0 : i32
    %c0_i32_2 = arith.constant 0 : i32
    return %c0_i32, %c0_i32_0, %c0_i32_1 : i32, i32, i32
  }
  func.func @transform_5(%arg0: i32) -> (i32, i32, i32) {
    %c0_i32 = arith.constant 0 : i32
    %c0_i32_0 = arith.constant 0 : i32
    %c0_i32_1 = arith.constant 0 : i32
    return %arg0, %c0_i32, %c0_i32_0 : i32, i32, i32
  }
}

module attributes {stable_mosaic.version = 11 : i64} {
  func.func @_mm_bias_kernel(%arg0: i32, %arg1: memref<8x128xbf16, #tpu.memory_space<vmem>>, %arg2: memref<128x128xbf16, #tpu.memory_space<vmem>>, %arg3: memref<1x128xf32, #tpu.memory_space<vmem>>, %arg4: memref<8x128xbf16, #tpu.memory_space<vmem>>) attributes {dimension_semantics = [#tpu.dimension_semantics<parallel>], iteration_bounds = array<i64: 1>, scalar_prefetch = 0 : i64, scratch_operands = 0 : i64, tpu.core_type = #tpu.core_type<tc>, window_params = [{transform_indices = @transform_0, window_bounds = array<i64: 8, 128>}, {pipeline_mode = #tpu.pipeline_mode<synchronous>, transform_indices = @transform_1, window_bounds = array<i64: 128, 128>}, {pipeline_mode = #tpu.pipeline_mode<synchronous>, transform_indices = @transform_2, window_bounds = array<i64: 1, 128>}, {transform_indices = @transform_3, window_bounds = array<i64: 8, 128>}]} {
    %c0 = arith.constant 0 : index
    %c0_0 = arith.constant 0 : index
    %0 = vector.load %arg1[%c0, %c0_0] : memref<8x128xbf16, #tpu.memory_space<vmem>>, vector<8x128xbf16>
    %c0_1 = arith.constant 0 : index
    %c0_2 = arith.constant 0 : index
    %1 = vector.load %arg2[%c0_1, %c0_2] : memref<128x128xbf16, #tpu.memory_space<vmem>>, vector<128x128xbf16>
    %cst = arith.constant dense<0.000000e+00> : vector<8x128xf32>
    %2 = tpu.matmul %0, %1, %cst {dimension_numbers = #tpu.dot_dimension_numbers<[1], [0], [0], [1], [0, 0, 1, 1], [], []>} : vector<8x128xbf16>, vector<128x128xbf16>, vector<8x128xf32> -> vector<8x128xf32>
    %c0_3 = arith.constant 0 : index
    %c0_4 = arith.constant 0 : index
    %3 = vector.load %arg3[%c0_3, %c0_4] : memref<1x128xf32, #tpu.memory_space<vmem>>, vector<1x128xf32>
    %4 = vector.broadcast %3 : vector<1x128xf32> to vector<8x128xf32>
    %5 = arith.addf %2, %4 : vector<8x128xf32>
    %6 = arith.truncf %5 : vector<8x128xf32> to vector<8x128xbf16>
    %c0_5 = arith.constant 0 : index
    %c0_6 = arith.constant 0 : index
    %7 = vector.load %arg4[%c0_5, %c0_6] : memref<8x128xbf16, #tpu.memory_space<vmem>>, vector<8x128xbf16>
    tpu.vector_store %arg4[%c0_5, %c0_6], %6 {strides = array<i32>} : memref<8x128xbf16, #tpu.memory_space<vmem>>, vector<8x128xbf16>,
    return
  }
  func.func @transform_0(%arg0: i32) -> (i32, i32) {
    %c0_i32 = arith.constant 0 : i32
    %c0_i32_0 = arith.constant 0 : i32
    return %arg0, %c0_i32 : i32, i32
  }
  func.func @transform_1(%arg0: i32) -> (i32, i32) {
    %c0_i32 = arith.constant 0 : i32
    %c0_i32_0 = arith.constant 0 : i32
    %c0_i32_1 = arith.constant 0 : i32
    return %c0_i32, %c0_i32_0 : i32, i32
  }
  func.func @transform_2(%arg0: i32) -> (i32, i32) {
    %c0_i32 = arith.constant 0 : i32
    %c0_i32_0 = arith.constant 0 : i32
    %c0_i32_1 = arith.constant 0 : i32
    return %c0_i32, %c0_i32_0 : i32, i32
  }
  func.func @transform_3(%arg0: i32) -> (i32, i32) {
    %c0_i32 = arith.constant 0 : i32
    %c0_i32_0 = arith.constant 0 : i32
    return %arg0, %c0_i32 : i32, i32
  }
}

module attributes {stable_mosaic.version = 11 : i64} {
  func.func @_recon_kernel(%arg0: i32, %arg1: memref<8x128xbf16, #tpu.memory_space<vmem>>, %arg2: memref<8x256xbf16, #tpu.memory_space<vmem>>, %arg3: memref<128x256xbf16, #tpu.memory_space<vmem>>, %arg4: memref<256x256xbf16, #tpu.memory_space<vmem>>, %arg5: memref<8x256xbf16, #tpu.memory_space<vmem>>) attributes {dimension_semantics = [#tpu.dimension_semantics<parallel>], iteration_bounds = array<i64: 1>, scalar_prefetch = 0 : i64, scratch_operands = 0 : i64, tpu.core_type = #tpu.core_type<tc>, window_params = [{transform_indices = @transform_0, window_bounds = array<i64: 8, 128>}, {transform_indices = @transform_1, window_bounds = array<i64: 8, 256>}, {pipeline_mode = #tpu.pipeline_mode<synchronous>, transform_indices = @transform_2, window_bounds = array<i64: 128, 256>}, {pipeline_mode = #tpu.pipeline_mode<synchronous>, transform_indices = @transform_3, window_bounds = array<i64: 256, 256>}, {transform_indices = @transform_4, window_bounds = array<i64: 8, 256>}]} {
    %c0 = arith.constant 0 : index
    %c0_0 = arith.constant 0 : index
    %0 = vector.load %arg1[%c0, %c0_0] : memref<8x128xbf16, #tpu.memory_space<vmem>>, vector<8x128xbf16>
    %c0_1 = arith.constant 0 : index
    %c0_2 = arith.constant 0 : index
    %1 = vector.load %arg3[%c0_1, %c0_2] : memref<128x256xbf16, #tpu.memory_space<vmem>>, vector<128x256xbf16>
    %cst = arith.constant dense<0.000000e+00> : vector<8x256xf32>
    %2 = tpu.matmul %0, %1, %cst {dimension_numbers = #tpu.dot_dimension_numbers<[1], [0], [0], [1], [0, 0, 1, 1], [], []>} : vector<8x128xbf16>, vector<128x256xbf16>, vector<8x256xf32> -> vector<8x256xf32>
    %c0_3 = arith.constant 0 : index
    %c0_4 = arith.constant 0 : index
    %3 = vector.load %arg2[%c0_3, %c0_4] : memref<8x256xbf16, #tpu.memory_space<vmem>>, vector<8x256xbf16>
    %c0_5 = arith.constant 0 : index
    %c0_6 = arith.constant 0 : index
    %4 = vector.load %arg4[%c0_5, %c0_6] : memref<256x256xbf16, #tpu.memory_space<vmem>>, vector<256x256xbf16>
    %cst_7 = arith.constant dense<0.000000e+00> : vector<8x256xf32>
    %5 = tpu.matmul %3, %4, %cst_7 {dimension_numbers = #tpu.dot_dimension_numbers<[1], [0], [0], [1], [0, 0, 1, 1], [], []>} : vector<8x256xbf16>, vector<256x256xbf16>, vector<8x256xf32> -> vector<8x256xf32>
    %6 = arith.addf %2, %5 : vector<8x256xf32>
    %7 = arith.truncf %6 : vector<8x256xf32> to vector<8x256xbf16>
    %c0_8 = arith.constant 0 : index
    %c0_9 = arith.constant 0 : index
    %8 = vector.load %arg5[%c0_8, %c0_9] : memref<8x256xbf16, #tpu.memory_space<vmem>>, vector<8x256xbf16>
    tpu.vector_store %arg5[%c0_8, %c0_9], %7 {strides = array<i32>} : memref<8x256xbf16, #tpu.memory_space<vmem>>, vector<8x256xbf16>,
    return
  }
  func.func @transform_0(%arg0: i32) -> (i32, i32) {
    %c0_i32 = arith.constant 0 : i32
    %c0_i32_0 = arith.constant 0 : i32
    return %arg0, %c0_i32 : i32, i32
  }
  func.func @transform_1(%arg0: i32) -> (i32, i32) {
    %c0_i32 = arith.constant 0 : i32
    %c0_i32_0 = arith.constant 0 : i32
    return %arg0, %c0_i32 : i32, i32
  }
  func.func @transform_2(%arg0: i32) -> (i32, i32) {
    %c0_i32 = arith.constant 0 : i32
    %c0_i32_0 = arith.constant 0 : i32
    %c0_i32_1 = arith.constant 0 : i32
    return %c0_i32, %c0_i32_0 : i32, i32
  }
  func.func @transform_3(%arg0: i32) -> (i32, i32) {
    %c0_i32 = arith.constant 0 : i32
    %c0_i32_0 = arith.constant 0 : i32
    %c0_i32_1 = arith.constant 0 : i32
    return %c0_i32, %c0_i32_0 : i32, i32
  }
  func.func @transform_4(%arg0: i32) -> (i32, i32) {
    %c0_i32 = arith.constant 0 : i32
    %c0_i32_0 = arith.constant 0 : i32
    return %arg0, %c0_i32 : i32, i32
  }
}

module attributes {stable_mosaic.version = 11 : i64} {
  func.func @_freq_kernel(%arg0: i32, %arg1: memref<1x2x256xbf16, #tpu.memory_space<vmem>>, %arg2: memref<4x2xf32, #tpu.memory_space<vmem>>, %arg3: memref<2x4xf32, #tpu.memory_space<vmem>>, %arg4: memref<2x256x256xbf16, #tpu.memory_space<vmem>>, %arg5: memref<2x128x256xbf16, #tpu.memory_space<vmem>>, %arg6: memref<1x2x256xbf16, #tpu.memory_space<vmem>>) attributes {dimension_semantics = [#tpu.dimension_semantics<parallel>], iteration_bounds = array<i64: 2>, scalar_prefetch = 0 : i64, scratch_operands = 0 : i64, tpu.core_type = #tpu.core_type<tc>, window_params = [{transform_indices = @transform_0, window_bounds = array<i64: 1, 2, 256>}, {pipeline_mode = #tpu.pipeline_mode<synchronous>, transform_indices = @transform_1, window_bounds = array<i64: 4, 2>}, {pipeline_mode = #tpu.pipeline_mode<synchronous>, transform_indices = @transform_2, window_bounds = array<i64: 2, 4>}, {transform_indices = @transform_3, window_bounds = array<i64: 2, 256, 256>}, {transform_indices = @transform_4, window_bounds = array<i64: 2, 128, 256>}, {transform_indices = @transform_5, window_bounds = array<i64: 1, 2, 256>}]} {
    %c0 = arith.constant 0 : index
    %c0_0 = arith.constant 0 : index
    %c0_1 = arith.constant 0 : index
    %0 = vector.load %arg1[%c0, %c0_0, %c0_1] : memref<1x2x256xbf16, #tpu.memory_space<vmem>>, vector<1x2x256xbf16>
    %1 = vector.shape_cast %0 : vector<1x2x256xbf16> to vector<2x256xbf16>
    %c0_2 = arith.constant 0 : index
    %c0_3 = arith.constant 0 : index
    %2 = vector.load %arg2[%c0_2, %c0_3] : memref<4x2xf32, #tpu.memory_space<vmem>>, vector<4x2xf32>
    %3 = arith.extf %1 : vector<2x256xbf16> to vector<2x256xf32>
    %cst = arith.constant dense<0.000000e+00> : vector<4x256xf32>
    %4 = tpu.matmul %2, %3, %cst {dimension_numbers = #tpu.dot_dimension_numbers<[1], [0], [0], [1], [0, 0, 1, 1], [], []>} : vector<4x2xf32>, vector<2x256xf32>, vector<4x256xf32> -> vector<4x256xf32>
    %5 = arith.truncf %4 : vector<4x256xf32> to vector<4x256xbf16>
    %6 = vector.extract_strided_slice %5 {offsets = [0, 0], sizes = [2, 256], strides = [1, 1]} : vector<4x256xbf16> to vector<2x256xbf16>
    %c0_4 = arith.constant 0 : index
    %c0_5 = arith.constant 0 : index
    %c0_6 = arith.constant 0 : index
    %7 = vector.load %arg4[%c0_4, %c0_5, %c0_6] : memref<2x256x256xbf16, #tpu.memory_space<vmem>>, vector<1x256x256xbf16>
    %8 = vector.shape_cast %7 : vector<1x256x256xbf16> to vector<256x256xbf16>
    %cst_7 = arith.constant dense<0.000000e+00> : vector<2x256xf32>
    %9 = tpu.matmul %6, %8, %cst_7 {dimension_numbers = #tpu.dot_dimension_numbers<[1], [0], [0], [1], [0, 0, 1, 1], [], []>} : vector<2x256xbf16>, vector<256x256xbf16>, vector<2x256xf32> -> vector<2x256xf32>
    %10 = vector.extract_strided_slice %6 {offsets = [0, 0], sizes = [2, 128], strides = [1, 1]} : vector<2x256xbf16> to vector<2x128xbf16>
    %c0_8 = arith.constant 0 : index
    %c0_9 = arith.constant 0 : index
    %c0_10 = arith.constant 0 : index
    %11 = vector.load %arg5[%c0_8, %c0_9, %c0_10] : memref<2x128x256xbf16, #tpu.memory_space<vmem>>, vector<1x128x256xbf16>
    %12 = vector.shape_cast %11 : vector<1x128x256xbf16> to vector<128x256xbf16>
    %cst_11 = arith.constant dense<0.000000e+00> : vector<2x256xf32>
    %13 = tpu.matmul %10, %12, %cst_11 {dimension_numbers = #tpu.dot_dimension_numbers<[1], [0], [0], [1], [0, 0, 1, 1], [], []>} : vector<2x128xbf16>, vector<128x256xbf16>, vector<2x256xf32> -> vector<2x256xf32>
    %14 = vector.extract_strided_slice %9 {offsets = [0, 0], sizes = [1, 128], strides = [1, 1]} : vector<2x256xf32> to vector<1x128xf32>
    %15 = vector.extract_strided_slice %9 {offsets = [1, 128], sizes = [1, 128], strides = [1, 1]} : vector<2x256xf32> to vector<1x128xf32>
    %16 = arith.subf %14, %15 : vector<1x128xf32>
    %17 = vector.extract_strided_slice %9 {offsets = [0, 128], sizes = [1, 128], strides = [1, 1]} : vector<2x256xf32> to vector<1x128xf32>
    %18 = vector.extract_strided_slice %9 {offsets = [1, 0], sizes = [1, 128], strides = [1, 1]} : vector<2x256xf32> to vector<1x128xf32>
    %19 = arith.addf %17, %18 : vector<1x128xf32>
    %20 = tpu.concatenate %16, %19 in 0 : vector<1x128xf32>, vector<1x128xf32> -> vector<2x128xf32>
    %21 = vector.extract_strided_slice %13 {offsets = [0, 0], sizes = [1, 128], strides = [1, 1]} : vector<2x256xf32> to vector<1x128xf32>
    %22 = vector.extract_strided_slice %13 {offsets = [1, 128], sizes = [1, 128], strides = [1, 1]} : vector<2x256xf32> to vector<1x128xf32>
    %23 = arith.subf %21, %22 : vector<1x128xf32>
    %24 = vector.extract_strided_slice %13 {offsets = [0, 128], sizes = [1, 128], strides = [1, 1]} : vector<2x256xf32> to vector<1x128xf32>
    %25 = vector.extract_strided_slice %13 {offsets = [1, 0], sizes = [1, 128], strides = [1, 1]} : vector<2x256xf32> to vector<1x128xf32>
    %26 = arith.addf %24, %25 : vector<1x128xf32>
    %27 = tpu.concatenate %23, %26 in 0 : vector<1x128xf32>, vector<1x128xf32> -> vector<2x128xf32>
    %28 = tpu.concatenate %20, %27 in 1 : vector<2x128xf32>, vector<2x128xf32> -> vector<2x256xf32>
    %29 = vector.extract_strided_slice %5 {offsets = [2, 0], sizes = [2, 256], strides = [1, 1]} : vector<4x256xbf16> to vector<2x256xbf16>
    %c1 = arith.constant 1 : index
    %c0_12 = arith.constant 0 : index
    %c0_13 = arith.constant 0 : index
    %30 = vector.load %arg4[%c1, %c0_12, %c0_13] : memref<2x256x256xbf16, #tpu.memory_space<vmem>>, vector<1x256x256xbf16>
    %31 = vector.shape_cast %30 : vector<1x256x256xbf16> to vector<256x256xbf16>
    %cst_14 = arith.constant dense<0.000000e+00> : vector<2x256xf32>
    %32 = tpu.matmul %29, %31, %cst_14 {dimension_numbers = #tpu.dot_dimension_numbers<[1], [0], [0], [1], [0, 0, 1, 1], [], []>} : vector<2x256xbf16>, vector<256x256xbf16>, vector<2x256xf32> -> vector<2x256xf32>
    %33 = vector.extract_strided_slice %29 {offsets = [0, 0], sizes = [2, 128], strides = [1, 1]} : vector<2x256xbf16> to vector<2x128xbf16>
    %c1_15 = arith.constant 1 : index
    %c0_16 = arith.constant 0 : index
    %c0_17 = arith.constant 0 : index
    %34 = vector.load %arg5[%c1_15, %c0_16, %c0_17] : memref<2x128x256xbf16, #tpu.memory_space<vmem>>, vector<1x128x256xbf16>
    %35 = vector.shape_cast %34 : vector<1x128x256xbf16> to vector<128x256xbf16>
    %cst_18 = arith.constant dense<0.000000e+00> : vector<2x256xf32>
    %36 = tpu.matmul %33, %35, %cst_18 {dimension_numbers = #tpu.dot_dimension_numbers<[1], [0], [0], [1], [0, 0, 1, 1], [], []>} : vector<2x128xbf16>, vector<128x256xbf16>, vector<2x256xf32> -> vector<2x256xf32>
    %37 = vector.extract_strided_slice %32 {offsets = [0, 0], sizes = [1, 128], strides = [1, 1]} : vector<2x256xf32> to vector<1x128xf32>
    %38 = vector.extract_strided_slice %32 {offsets = [1, 128], sizes = [1, 128], strides = [1, 1]} : vector<2x256xf32> to vector<1x128xf32>
    %39 = arith.subf %37, %38 : vector<1x128xf32>
    %40 = vector.extract_strided_slice %32 {offsets = [0, 128], sizes = [1, 128], strides = [1, 1]} : vector<2x256xf32> to vector<1x128xf32>
    %41 = vector.extract_strided_slice %32 {offsets = [1, 0], sizes = [1, 128], strides = [1, 1]} : vector<2x256xf32> to vector<1x128xf32>
    %42 = arith.addf %40, %41 : vector<1x128xf32>
    %43 = tpu.concatenate %39, %42 in 0 : vector<1x128xf32>, vector<1x128xf32> -> vector<2x128xf32>
    %44 = vector.extract_strided_slice %36 {offsets = [0, 0], sizes = [1, 128], strides = [1, 1]} : vector<2x256xf32> to vector<1x128xf32>
    %45 = vector.extract_strided_slice %36 {offsets = [1, 128], sizes = [1, 128], strides = [1, 1]} : vector<2x256xf32> to vector<1x128xf32>
    %46 = arith.subf %44, %45 : vector<1x128xf32>
    %47 = vector.extract_strided_slice %36 {offsets = [0, 128], sizes = [1, 128], strides = [1, 1]} : vector<2x256xf32> to vector<1x128xf32>
    %48 = vector.extract_strided_slice %36 {offsets = [1, 0], sizes = [1, 128], strides = [1, 1]} : vector<2x256xf32> to vector<1x128xf32>
    %49 = arith.addf %47, %48 : vector<1x128xf32>
    %50 = tpu.concatenate %46, %49 in 0 : vector<1x128xf32>, vector<1x128xf32> -> vector<2x128xf32>
    %51 = tpu.concatenate %43, %50 in 1 : vector<2x128xf32>, vector<2x128xf32> -> vector<2x256xf32>
    %52 = tpu.concatenate %28, %51 in 0 : vector<2x256xf32>, vector<2x256xf32> -> vector<4x256xf32>
    %c0_19 = arith.constant 0 : index
    %c0_20 = arith.constant 0 : index
    %53 = vector.load %arg3[%c0_19, %c0_20] : memref<2x4xf32, #tpu.memory_space<vmem>>, vector<2x4xf32>
    %cst_21 = arith.constant dense<0.000000e+00> : vector<2x256xf32>
    %54 = tpu.matmul %53, %52, %cst_21 {dimension_numbers = #tpu.dot_dimension_numbers<[1], [0], [0], [1], [0, 0, 1, 1], [], []>} : vector<2x4xf32>, vector<4x256xf32>, vector<2x256xf32> -> vector<2x256xf32>
    %55 = arith.truncf %54 : vector<2x256xf32> to vector<2x256xbf16>
    %c0_22 = arith.constant 0 : index
    %c0_23 = arith.constant 0 : index
    %c0_24 = arith.constant 0 : index
    %56 = vector.load %arg6[%c0_22, %c0_23, %c0_24] : memref<1x2x256xbf16, #tpu.memory_space<vmem>>, vector<1x2x256xbf16>
    %57 = vector.shape_cast %56 : vector<1x2x256xbf16> to vector<2x256xbf16>
    %58 = vector.shape_cast %55 : vector<2x256xbf16> to vector<1x2x256xbf16>
    tpu.vector_store %arg6[%c0_22, %c0_23, %c0_24], %58 {strides = array<i32>} : memref<1x2x256xbf16, #tpu.memory_space<vmem>>, vector<1x2x256xbf16>,
    return
  }
  func.func @transform_0(%arg0: i32) -> (i32, i32, i32) {
    %c0_i32 = arith.constant 0 : i32
    %c0_i32_0 = arith.constant 0 : i32
    %c0_i32_1 = arith.constant 0 : i32
    return %arg0, %c0_i32, %c0_i32_0 : i32, i32, i32
  }
  func.func @transform_1(%arg0: i32) -> (i32, i32) {
    %c0_i32 = arith.constant 0 : i32
    %c0_i32_0 = arith.constant 0 : i32
    %c0_i32_1 = arith.constant 0 : i32
    return %c0_i32, %c0_i32_0 : i32, i32
  }
  func.func @transform_2(%arg0: i32) -> (i32, i32) {
    %c0_i32 = arith.constant 0 : i32
    %c0_i32_0 = arith.constant 0 : i32
    %c0_i32_1 = arith.constant 0 : i32
    return %c0_i32, %c0_i32_0 : i32, i32
  }
  func.func @transform_3(%arg0: i32) -> (i32, i32, i32) {
    %c0_i32 = arith.constant 0 : i32
    %c0_i32_0 = arith.constant 0 : i32
    %c0_i32_1 = arith.constant 0 : i32
    %c0_i32_2 = arith.constant 0 : i32
    return %c0_i32, %c0_i32_0, %c0_i32_1 : i32, i32, i32
  }
  func.func @transform_4(%arg0: i32) -> (i32, i32, i32) {
    %c0_i32 = arith.constant 0 : i32
    %c0_i32_0 = arith.constant 0 : i32
    %c0_i32_1 = arith.constant 0 : i32
    %c0_i32_2 = arith.constant 0 : i32
    return %c0_i32, %c0_i32_0, %c0_i32_1 : i32, i32, i32
  }
  func.func @transform_5(%arg0: i32) -> (i32, i32, i32) {
    %c0_i32 = arith.constant 0 : i32
    %c0_i32_0 = arith.constant 0 : i32
    %c0_i32_1 = arith.constant 0 : i32
    return %arg0, %c0_i32, %c0_i32_0 : i32, i32, i32
  }
}

module attributes {stable_mosaic.version = 11 : i64} {
  func.func @_recon_kernel(%arg0: i32, %arg1: memref<8x128xbf16, #tpu.memory_space<vmem>>, %arg2: memref<8x256xbf16, #tpu.memory_space<vmem>>, %arg3: memref<128x256xbf16, #tpu.memory_space<vmem>>, %arg4: memref<256x256xbf16, #tpu.memory_space<vmem>>, %arg5: memref<8x256xbf16, #tpu.memory_space<vmem>>) attributes {dimension_semantics = [#tpu.dimension_semantics<parallel>], iteration_bounds = array<i64: 1>, scalar_prefetch = 0 : i64, scratch_operands = 0 : i64, tpu.core_type = #tpu.core_type<tc>, window_params = [{transform_indices = @transform_0, window_bounds = array<i64: 8, 128>}, {transform_indices = @transform_1, window_bounds = array<i64: 8, 256>}, {pipeline_mode = #tpu.pipeline_mode<synchronous>, transform_indices = @transform_2, window_bounds = array<i64: 128, 256>}, {pipeline_mode = #tpu.pipeline_mode<synchronous>, transform_indices = @transform_3, window_bounds = array<i64: 256, 256>}, {transform_indices = @transform_4, window_bounds = array<i64: 8, 256>}]} {
    %c0 = arith.constant 0 : index
    %c0_0 = arith.constant 0 : index
    %0 = vector.load %arg1[%c0, %c0_0] : memref<8x128xbf16, #tpu.memory_space<vmem>>, vector<8x128xbf16>
    %c0_1 = arith.constant 0 : index
    %c0_2 = arith.constant 0 : index
    %1 = vector.load %arg3[%c0_1, %c0_2] : memref<128x256xbf16, #tpu.memory_space<vmem>>, vector<128x256xbf16>
    %cst = arith.constant dense<0.000000e+00> : vector<8x256xf32>
    %2 = tpu.matmul %0, %1, %cst {dimension_numbers = #tpu.dot_dimension_numbers<[1], [0], [0], [1], [0, 0, 1, 1], [], []>} : vector<8x128xbf16>, vector<128x256xbf16>, vector<8x256xf32> -> vector<8x256xf32>
    %c0_3 = arith.constant 0 : index
    %c0_4 = arith.constant 0 : index
    %3 = vector.load %arg2[%c0_3, %c0_4] : memref<8x256xbf16, #tpu.memory_space<vmem>>, vector<8x256xbf16>
    %c0_5 = arith.constant 0 : index
    %c0_6 = arith.constant 0 : index
    %4 = vector.load %arg4[%c0_5, %c0_6] : memref<256x256xbf16, #tpu.memory_space<vmem>>, vector<256x256xbf16>
    %cst_7 = arith.constant dense<0.000000e+00> : vector<8x256xf32>
    %5 = tpu.matmul %3, %4, %cst_7 {dimension_numbers = #tpu.dot_dimension_numbers<[1], [0], [0], [1], [0, 0, 1, 1], [], []>} : vector<8x256xbf16>, vector<256x256xbf16>, vector<8x256xf32> -> vector<8x256xf32>
    %6 = arith.addf %2, %5 : vector<8x256xf32>
    %7 = arith.truncf %6 : vector<8x256xf32> to vector<8x256xbf16>
    %c0_8 = arith.constant 0 : index
    %c0_9 = arith.constant 0 : index
    %8 = vector.load %arg5[%c0_8, %c0_9] : memref<8x256xbf16, #tpu.memory_space<vmem>>, vector<8x256xbf16>
    tpu.vector_store %arg5[%c0_8, %c0_9], %7 {strides = array<i32>} : memref<8x256xbf16, #tpu.memory_space<vmem>>, vector<8x256xbf16>,
    return
  }
  func.func @transform_0(%arg0: i32) -> (i32, i32) {
    %c0_i32 = arith.constant 0 : i32
    %c0_i32_0 = arith.constant 0 : i32
    return %arg0, %c0_i32 : i32, i32
  }
  func.func @transform_1(%arg0: i32) -> (i32, i32) {
    %c0_i32 = arith.constant 0 : i32
    %c0_i32_0 = arith.constant 0 : i32
    return %arg0, %c0_i32 : i32, i32
  }
  func.func @transform_2(%arg0: i32) -> (i32, i32) {
    %c0_i32 = arith.constant 0 : i32
    %c0_i32_0 = arith.constant 0 : i32
    %c0_i32_1 = arith.constant 0 : i32
    return %c0_i32, %c0_i32_0 : i32, i32
  }
  func.func @transform_3(%arg0: i32) -> (i32, i32) {
    %c0_i32 = arith.constant 0 : i32
    %c0_i32_0 = arith.constant 0 : i32
    %c0_i32_1 = arith.constant 0 : i32
    return %c0_i32, %c0_i32_0 : i32, i32
  }
  func.func @transform_4(%arg0: i32) -> (i32, i32) {
    %c0_i32 = arith.constant 0 : i32
    %c0_i32_0 = arith.constant 0 : i32
    return %arg0, %c0_i32 : i32, i32
  }
}

module attributes {stable_mosaic.version = 11 : i64} {
  func.func @_freq_kernel(%arg0: i32, %arg1: memref<1x4x256xbf16, #tpu.memory_space<vmem>>, %arg2: memref<6x4xf32, #tpu.memory_space<vmem>>, %arg3: memref<4x6xf32, #tpu.memory_space<vmem>>, %arg4: memref<3x256x256xbf16, #tpu.memory_space<vmem>>, %arg5: memref<3x128x256xbf16, #tpu.memory_space<vmem>>, %arg6: memref<1x4x256xbf16, #tpu.memory_space<vmem>>) attributes {dimension_semantics = [#tpu.dimension_semantics<parallel>], iteration_bounds = array<i64: 2>, scalar_prefetch = 0 : i64, scratch_operands = 0 : i64, tpu.core_type = #tpu.core_type<tc>, window_params = [{transform_indices = @transform_0, window_bounds = array<i64: 1, 4, 256>}, {pipeline_mode = #tpu.pipeline_mode<synchronous>, transform_indices = @transform_1, window_bounds = array<i64: 6, 4>}, {pipeline_mode = #tpu.pipeline_mode<synchronous>, transform_indices = @transform_2, window_bounds = array<i64: 4, 6>}, {transform_indices = @transform_3, window_bounds = array<i64: 3, 256, 256>}, {transform_indices = @transform_4, window_bounds = array<i64: 3, 128, 256>}, {transform_indices = @transform_5, window_bounds = array<i64: 1, 4, 256>}]} {
    %c0 = arith.constant 0 : index
    %c0_0 = arith.constant 0 : index
    %c0_1 = arith.constant 0 : index
    %0 = vector.load %arg1[%c0, %c0_0, %c0_1] : memref<1x4x256xbf16, #tpu.memory_space<vmem>>, vector<1x4x256xbf16>
    %1 = vector.shape_cast %0 : vector<1x4x256xbf16> to vector<4x256xbf16>
    %c0_2 = arith.constant 0 : index
    %c0_3 = arith.constant 0 : index
    %2 = vector.load %arg2[%c0_2, %c0_3] : memref<6x4xf32, #tpu.memory_space<vmem>>, vector<6x4xf32>
    %3 = arith.extf %1 : vector<4x256xbf16> to vector<4x256xf32>
    %cst = arith.constant dense<0.000000e+00> : vector<6x256xf32>
    %4 = tpu.matmul %2, %3, %cst {dimension_numbers = #tpu.dot_dimension_numbers<[1], [0], [0], [1], [0, 0, 1, 1], [], []>} : vector<6x4xf32>, vector<4x256xf32>, vector<6x256xf32> -> vector<6x256xf32>
    %5 = arith.truncf %4 : vector<6x256xf32> to vector<6x256xbf16>
    %6 = vector.extract_strided_slice %5 {offsets = [0, 0], sizes = [2, 256], strides = [1, 1]} : vector<6x256xbf16> to vector<2x256xbf16>
    %c0_4 = arith.constant 0 : index
    %c0_5 = arith.constant 0 : index
    %c0_6 = arith.constant 0 : index
    %7 = vector.load %arg4[%c0_4, %c0_5, %c0_6] : memref<3x256x256xbf16, #tpu.memory_space<vmem>>, vector<1x256x256xbf16>
    %8 = vector.shape_cast %7 : vector<1x256x256xbf16> to vector<256x256xbf16>
    %cst_7 = arith.constant dense<0.000000e+00> : vector<2x256xf32>
    %9 = tpu.matmul %6, %8, %cst_7 {dimension_numbers = #tpu.dot_dimension_numbers<[1], [0], [0], [1], [0, 0, 1, 1], [], []>} : vector<2x256xbf16>, vector<256x256xbf16>, vector<2x256xf32> -> vector<2x256xf32>
    %10 = vector.extract_strided_slice %6 {offsets = [0, 0], sizes = [2, 128], strides = [1, 1]} : vector<2x256xbf16> to vector<2x128xbf16>
    %c0_8 = arith.constant 0 : index
    %c0_9 = arith.constant 0 : index
    %c0_10 = arith.constant 0 : index
    %11 = vector.load %arg5[%c0_8, %c0_9, %c0_10] : memref<3x128x256xbf16, #tpu.memory_space<vmem>>, vector<1x128x256xbf16>
    %12 = vector.shape_cast %11 : vector<1x128x256xbf16> to vector<128x256xbf16>
    %cst_11 = arith.constant dense<0.000000e+00> : vector<2x256xf32>
    %13 = tpu.matmul %10, %12, %cst_11 {dimension_numbers = #tpu.dot_dimension_numbers<[1], [0], [0], [1], [0, 0, 1, 1], [], []>} : vector<2x128xbf16>, vector<128x256xbf16>, vector<2x256xf32> -> vector<2x256xf32>
    %14 = vector.extract_strided_slice %9 {offsets = [0, 0], sizes = [1, 128], strides = [1, 1]} : vector<2x256xf32> to vector<1x128xf32>
    %15 = vector.extract_strided_slice %9 {offsets = [1, 128], sizes = [1, 128], strides = [1, 1]} : vector<2x256xf32> to vector<1x128xf32>
    %16 = arith.subf %14, %15 : vector<1x128xf32>
    %17 = vector.extract_strided_slice %9 {offsets = [0, 128], sizes = [1, 128], strides = [1, 1]} : vector<2x256xf32> to vector<1x128xf32>
    %18 = vector.extract_strided_slice %9 {offsets = [1, 0], sizes = [1, 128], strides = [1, 1]} : vector<2x256xf32> to vector<1x128xf32>
    %19 = arith.addf %17, %18 : vector<1x128xf32>
    %20 = tpu.concatenate %16, %19 in 0 : vector<1x128xf32>, vector<1x128xf32> -> vector<2x128xf32>
    %21 = vector.extract_strided_slice %13 {offsets = [0, 0], sizes = [1, 128], strides = [1, 1]} : vector<2x256xf32> to vector<1x128xf32>
    %22 = vector.extract_strided_slice %13 {offsets = [1, 128], sizes = [1, 128], strides = [1, 1]} : vector<2x256xf32> to vector<1x128xf32>
    %23 = arith.subf %21, %22 : vector<1x128xf32>
    %24 = vector.extract_strided_slice %13 {offsets = [0, 128], sizes = [1, 128], strides = [1, 1]} : vector<2x256xf32> to vector<1x128xf32>
    %25 = vector.extract_strided_slice %13 {offsets = [1, 0], sizes = [1, 128], strides = [1, 1]} : vector<2x256xf32> to vector<1x128xf32>
    %26 = arith.addf %24, %25 : vector<1x128xf32>
    %27 = tpu.concatenate %23, %26 in 0 : vector<1x128xf32>, vector<1x128xf32> -> vector<2x128xf32>
    %28 = tpu.concatenate %20, %27 in 1 : vector<2x128xf32>, vector<2x128xf32> -> vector<2x256xf32>
    %29 = vector.extract_strided_slice %5 {offsets = [2, 0], sizes = [2, 256], strides = [1, 1]} : vector<6x256xbf16> to vector<2x256xbf16>
    %c1 = arith.constant 1 : index
    %c0_12 = arith.constant 0 : index
    %c0_13 = arith.constant 0 : index
    %30 = vector.load %arg4[%c1, %c0_12, %c0_13] : memref<3x256x256xbf16, #tpu.memory_space<vmem>>, vector<1x256x256xbf16>
    %31 = vector.shape_cast %30 : vector<1x256x256xbf16> to vector<256x256xbf16>
    %cst_14 = arith.constant dense<0.000000e+00> : vector<2x256xf32>
    %32 = tpu.matmul %29, %31, %cst_14 {dimension_numbers = #tpu.dot_dimension_numbers<[1], [0], [0], [1], [0, 0, 1, 1], [], []>} : vector<2x256xbf16>, vector<256x256xbf16>, vector<2x256xf32> -> vector<2x256xf32>
    %33 = vector.extract_strided_slice %29 {offsets = [0, 0], sizes = [2, 128], strides = [1, 1]} : vector<2x256xbf16> to vector<2x128xbf16>
    %c1_15 = arith.constant 1 : index
    %c0_16 = arith.constant 0 : index
    %c0_17 = arith.constant 0 : index
    %34 = vector.load %arg5[%c1_15, %c0_16, %c0_17] : memref<3x128x256xbf16, #tpu.memory_space<vmem>>, vector<1x128x256xbf16>
    %35 = vector.shape_cast %34 : vector<1x128x256xbf16> to vector<128x256xbf16>
    %cst_18 = arith.constant dense<0.000000e+00> : vector<2x256xf32>
    %36 = tpu.matmul %33, %35, %cst_18 {dimension_numbers = #tpu.dot_dimension_numbers<[1], [0], [0], [1], [0, 0, 1, 1], [], []>} : vector<2x128xbf16>, vector<128x256xbf16>, vector<2x256xf32> -> vector<2x256xf32>
    %37 = vector.extract_strided_slice %32 {offsets = [0, 0], sizes = [1, 128], strides = [1, 1]} : vector<2x256xf32> to vector<1x128xf32>
    %38 = vector.extract_strided_slice %32 {offsets = [1, 128], sizes = [1, 128], strides = [1, 1]} : vector<2x256xf32> to vector<1x128xf32>
    %39 = arith.subf %37, %38 : vector<1x128xf32>
    %40 = vector.extract_strided_slice %32 {offsets = [0, 128], sizes = [1, 128], strides = [1, 1]} : vector<2x256xf32> to vector<1x128xf32>
    %41 = vector.extract_strided_slice %32 {offsets = [1, 0], sizes = [1, 128], strides = [1, 1]} : vector<2x256xf32> to vector<1x128xf32>
    %42 = arith.addf %40, %41 : vector<1x128xf32>
    %43 = tpu.concatenate %39, %42 in 0 : vector<1x128xf32>, vector<1x128xf32> -> vector<2x128xf32>
    %44 = vector.extract_strided_slice %36 {offsets = [0, 0], sizes = [1, 128], strides = [1, 1]} : vector<2x256xf32> to vector<1x128xf32>
    %45 = vector.extract_strided_slice %36 {offsets = [1, 128], sizes = [1, 128], strides = [1, 1]} : vector<2x256xf32> to vector<1x128xf32>
    %46 = arith.subf %44, %45 : vector<1x128xf32>
    %47 = vector.extract_strided_slice %36 {offsets = [0, 128], sizes = [1, 128], strides = [1, 1]} : vector<2x256xf32> to vector<1x128xf32>
    %48 = vector.extract_strided_slice %36 {offsets = [1, 0], sizes = [1, 128], strides = [1, 1]} : vector<2x256xf32> to vector<1x128xf32>
    %49 = arith.addf %47, %48 : vector<1x128xf32>
    %50 = tpu.concatenate %46, %49 in 0 : vector<1x128xf32>, vector<1x128xf32> -> vector<2x128xf32>
    %51 = tpu.concatenate %43, %50 in 1 : vector<2x128xf32>, vector<2x128xf32> -> vector<2x256xf32>
    %52 = vector.extract_strided_slice %5 {offsets = [4, 0], sizes = [2, 256], strides = [1, 1]} : vector<6x256xbf16> to vector<2x256xbf16>
    %c2 = arith.constant 2 : index
    %c0_19 = arith.constant 0 : index
    %c0_20 = arith.constant 0 : index
    %53 = vector.load %arg4[%c2, %c0_19, %c0_20] : memref<3x256x256xbf16, #tpu.memory_space<vmem>>, vector<1x256x256xbf16>
    %54 = vector.shape_cast %53 : vector<1x256x256xbf16> to vector<256x256xbf16>
    %cst_21 = arith.constant dense<0.000000e+00> : vector<2x256xf32>
    %55 = tpu.matmul %52, %54, %cst_21 {dimension_numbers = #tpu.dot_dimension_numbers<[1], [0], [0], [1], [0, 0, 1, 1], [], []>} : vector<2x256xbf16>, vector<256x256xbf16>, vector<2x256xf32> -> vector<2x256xf32>
    %56 = vector.extract_strided_slice %52 {offsets = [0, 0], sizes = [2, 128], strides = [1, 1]} : vector<2x256xbf16> to vector<2x128xbf16>
    %c2_22 = arith.constant 2 : index
    %c0_23 = arith.constant 0 : index
    %c0_24 = arith.constant 0 : index
    %57 = vector.load %arg5[%c2_22, %c0_23, %c0_24] : memref<3x128x256xbf16, #tpu.memory_space<vmem>>, vector<1x128x256xbf16>
    %58 = vector.shape_cast %57 : vector<1x128x256xbf16> to vector<128x256xbf16>
    %cst_25 = arith.constant dense<0.000000e+00> : vector<2x256xf32>
    %59 = tpu.matmul %56, %58, %cst_25 {dimension_numbers = #tpu.dot_dimension_numbers<[1], [0], [0], [1], [0, 0, 1, 1], [], []>} : vector<2x128xbf16>, vector<128x256xbf16>, vector<2x256xf32> -> vector<2x256xf32>
    %60 = vector.extract_strided_slice %55 {offsets = [0, 0], sizes = [1, 128], strides = [1, 1]} : vector<2x256xf32> to vector<1x128xf32>
    %61 = vector.extract_strided_slice %55 {offsets = [1, 128], sizes = [1, 128], strides = [1, 1]} : vector<2x256xf32> to vector<1x128xf32>
    %62 = arith.subf %60, %61 : vector<1x128xf32>
    %63 = vector.extract_strided_slice %55 {offsets = [0, 128], sizes = [1, 128], strides = [1, 1]} : vector<2x256xf32> to vector<1x128xf32>
    %64 = vector.extract_strided_slice %55 {offsets = [1, 0], sizes = [1, 128], strides = [1, 1]} : vector<2x256xf32> to vector<1x128xf32>
    %65 = arith.addf %63, %64 : vector<1x128xf32>
    %66 = tpu.concatenate %62, %65 in 0 : vector<1x128xf32>, vector<1x128xf32> -> vector<2x128xf32>
    %67 = vector.extract_strided_slice %59 {offsets = [0, 0], sizes = [1, 128], strides = [1, 1]} : vector<2x256xf32> to vector<1x128xf32>
    %68 = vector.extract_strided_slice %59 {offsets = [1, 128], sizes = [1, 128], strides = [1, 1]} : vector<2x256xf32> to vector<1x128xf32>
    %69 = arith.subf %67, %68 : vector<1x128xf32>
    %70 = vector.extract_strided_slice %59 {offsets = [0, 128], sizes = [1, 128], strides = [1, 1]} : vector<2x256xf32> to vector<1x128xf32>
    %71 = vector.extract_strided_slice %59 {offsets = [1, 0], sizes = [1, 128], strides = [1, 1]} : vector<2x256xf32> to vector<1x128xf32>
    %72 = arith.addf %70, %71 : vector<1x128xf32>
    %73 = tpu.concatenate %69, %72 in 0 : vector<1x128xf32>, vector<1x128xf32> -> vector<2x128xf32>
    %74 = tpu.concatenate %66, %73 in 1 : vector<2x128xf32>, vector<2x128xf32> -> vector<2x256xf32>
    %75 = tpu.concatenate %28, %51, %74 in 0 : vector<2x256xf32>, vector<2x256xf32>, vector<2x256xf32> -> vector<6x256xf32>
    %c0_26 = arith.constant 0 : index
    %c0_27 = arith.constant 0 : index
    %76 = vector.load %arg3[%c0_26, %c0_27] : memref<4x6xf32, #tpu.memory_space<vmem>>, vector<4x6xf32>
    %cst_28 = arith.constant dense<0.000000e+00> : vector<4x256xf32>
    %77 = tpu.matmul %76, %75, %cst_28 {dimension_numbers = #tpu.dot_dimension_numbers<[1], [0], [0], [1], [0, 0, 1, 1], [], []>} : vector<4x6xf32>, vector<6x256xf32>, vector<4x256xf32> -> vector<4x256xf32>
    %78 = arith.truncf %77 : vector<4x256xf32> to vector<4x256xbf16>
    %c0_29 = arith.constant 0 : index
    %c0_30 = arith.constant 0 : index
    %c0_31 = arith.constant 0 : index
    %79 = vector.load %arg6[%c0_29, %c0_30, %c0_31] : memref<1x4x256xbf16, #tpu.memory_space<vmem>>, vector<1x4x256xbf16>
    %80 = vector.shape_cast %79 : vector<1x4x256xbf16> to vector<4x256xbf16>
    %81 = vector.shape_cast %78 : vector<4x256xbf16> to vector<1x4x256xbf16>
    tpu.vector_store %arg6[%c0_29, %c0_30, %c0_31], %81 {strides = array<i32>} : memref<1x4x256xbf16, #tpu.memory_space<vmem>>, vector<1x4x256xbf16>,
    return
  }
  func.func @transform_0(%arg0: i32) -> (i32, i32, i32) {
    %c0_i32 = arith.constant 0 : i32
    %c0_i32_0 = arith.constant 0 : i32
    %c0_i32_1 = arith.constant 0 : i32
    return %arg0, %c0_i32, %c0_i32_0 : i32, i32, i32
  }
  func.func @transform_1(%arg0: i32) -> (i32, i32) {
    %c0_i32 = arith.constant 0 : i32
    %c0_i32_0 = arith.constant 0 : i32
    %c0_i32_1 = arith.constant 0 : i32
    return %c0_i32, %c0_i32_0 : i32, i32
  }
  func.func @transform_2(%arg0: i32) -> (i32, i32) {
    %c0_i32 = arith.constant 0 : i32
    %c0_i32_0 = arith.constant 0 : i32
    %c0_i32_1 = arith.constant 0 : i32
    return %c0_i32, %c0_i32_0 : i32, i32
  }
  func.func @transform_3(%arg0: i32) -> (i32, i32, i32) {
    %c0_i32 = arith.constant 0 : i32
    %c0_i32_0 = arith.constant 0 : i32
    %c0_i32_1 = arith.constant 0 : i32
    %c0_i32_2 = arith.constant 0 : i32
    return %c0_i32, %c0_i32_0, %c0_i32_1 : i32, i32, i32
  }
  func.func @transform_4(%arg0: i32) -> (i32, i32, i32) {
    %c0_i32 = arith.constant 0 : i32
    %c0_i32_0 = arith.constant 0 : i32
    %c0_i32_1 = arith.constant 0 : i32
    %c0_i32_2 = arith.constant 0 : i32
    return %c0_i32, %c0_i32_0, %c0_i32_1 : i32, i32, i32
  }
  func.func @transform_5(%arg0: i32) -> (i32, i32, i32) {
    %c0_i32 = arith.constant 0 : i32
    %c0_i32_0 = arith.constant 0 : i32
    %c0_i32_1 = arith.constant 0 : i32
    return %arg0, %c0_i32, %c0_i32_0 : i32, i32, i32
  }
}

module attributes {stable_mosaic.version = 11 : i64} {
  func.func @_recon_kernel(%arg0: i32, %arg1: memref<8x128xbf16, #tpu.memory_space<vmem>>, %arg2: memref<8x256xbf16, #tpu.memory_space<vmem>>, %arg3: memref<128x256xbf16, #tpu.memory_space<vmem>>, %arg4: memref<256x256xbf16, #tpu.memory_space<vmem>>, %arg5: memref<8x256xbf16, #tpu.memory_space<vmem>>) attributes {dimension_semantics = [#tpu.dimension_semantics<parallel>], iteration_bounds = array<i64: 1>, scalar_prefetch = 0 : i64, scratch_operands = 0 : i64, tpu.core_type = #tpu.core_type<tc>, window_params = [{transform_indices = @transform_0, window_bounds = array<i64: 8, 128>}, {transform_indices = @transform_1, window_bounds = array<i64: 8, 256>}, {pipeline_mode = #tpu.pipeline_mode<synchronous>, transform_indices = @transform_2, window_bounds = array<i64: 128, 256>}, {pipeline_mode = #tpu.pipeline_mode<synchronous>, transform_indices = @transform_3, window_bounds = array<i64: 256, 256>}, {transform_indices = @transform_4, window_bounds = array<i64: 8, 256>}]} {
    %c0 = arith.constant 0 : index
    %c0_0 = arith.constant 0 : index
    %0 = vector.load %arg1[%c0, %c0_0] : memref<8x128xbf16, #tpu.memory_space<vmem>>, vector<8x128xbf16>
    %c0_1 = arith.constant 0 : index
    %c0_2 = arith.constant 0 : index
    %1 = vector.load %arg3[%c0_1, %c0_2] : memref<128x256xbf16, #tpu.memory_space<vmem>>, vector<128x256xbf16>
    %cst = arith.constant dense<0.000000e+00> : vector<8x256xf32>
    %2 = tpu.matmul %0, %1, %cst {dimension_numbers = #tpu.dot_dimension_numbers<[1], [0], [0], [1], [0, 0, 1, 1], [], []>} : vector<8x128xbf16>, vector<128x256xbf16>, vector<8x256xf32> -> vector<8x256xf32>
    %c0_3 = arith.constant 0 : index
    %c0_4 = arith.constant 0 : index
    %3 = vector.load %arg2[%c0_3, %c0_4] : memref<8x256xbf16, #tpu.memory_space<vmem>>, vector<8x256xbf16>
    %c0_5 = arith.constant 0 : index
    %c0_6 = arith.constant 0 : index
    %4 = vector.load %arg4[%c0_5, %c0_6] : memref<256x256xbf16, #tpu.memory_space<vmem>>, vector<256x256xbf16>
    %cst_7 = arith.constant dense<0.000000e+00> : vector<8x256xf32>
    %5 = tpu.matmul %3, %4, %cst_7 {dimension_numbers = #tpu.dot_dimension_numbers<[1], [0], [0], [1], [0, 0, 1, 1], [], []>} : vector<8x256xbf16>, vector<256x256xbf16>, vector<8x256xf32> -> vector<8x256xf32>
    %6 = arith.addf %2, %5 : vector<8x256xf32>
    %7 = arith.truncf %6 : vector<8x256xf32> to vector<8x256xbf16>
    %c0_8 = arith.constant 0 : index
    %c0_9 = arith.constant 0 : index
    %8 = vector.load %arg5[%c0_8, %c0_9] : memref<8x256xbf16, #tpu.memory_space<vmem>>, vector<8x256xbf16>
    tpu.vector_store %arg5[%c0_8, %c0_9], %7 {strides = array<i32>} : memref<8x256xbf16, #tpu.memory_space<vmem>>, vector<8x256xbf16>,
    return
  }
  func.func @transform_0(%arg0: i32) -> (i32, i32) {
    %c0_i32 = arith.constant 0 : i32
    %c0_i32_0 = arith.constant 0 : i32
    return %arg0, %c0_i32 : i32, i32
  }
  func.func @transform_1(%arg0: i32) -> (i32, i32) {
    %c0_i32 = arith.constant 0 : i32
    %c0_i32_0 = arith.constant 0 : i32
    return %arg0, %c0_i32 : i32, i32
  }
  func.func @transform_2(%arg0: i32) -> (i32, i32) {
    %c0_i32 = arith.constant 0 : i32
    %c0_i32_0 = arith.constant 0 : i32
    %c0_i32_1 = arith.constant 0 : i32
    return %c0_i32, %c0_i32_0 : i32, i32
  }
  func.func @transform_3(%arg0: i32) -> (i32, i32) {
    %c0_i32 = arith.constant 0 : i32
    %c0_i32_0 = arith.constant 0 : i32
    %c0_i32_1 = arith.constant 0 : i32
    return %c0_i32, %c0_i32_0 : i32, i32
  }
  func.func @transform_4(%arg0: i32) -> (i32, i32) {
    %c0_i32 = arith.constant 0 : i32
    %c0_i32_0 = arith.constant 0 : i32
    return %arg0, %c0_i32 : i32, i32
  }
}

module attributes {stable_mosaic.version = 11 : i64} {
  func.func @_freq_kernel(%arg0: i32, %arg1: memref<1x8x256xbf16, #tpu.memory_space<vmem>>, %arg2: memref<10x8xf32, #tpu.memory_space<vmem>>, %arg3: memref<8x10xf32, #tpu.memory_space<vmem>>, %arg4: memref<5x256x256xbf16, #tpu.memory_space<vmem>>, %arg5: memref<5x128x256xbf16, #tpu.memory_space<vmem>>, %arg6: memref<1x8x256xbf16, #tpu.memory_space<vmem>>) attributes {dimension_semantics = [#tpu.dimension_semantics<parallel>], iteration_bounds = array<i64: 2>, scalar_prefetch = 0 : i64, scratch_operands = 0 : i64, tpu.core_type = #tpu.core_type<tc>, window_params = [{transform_indices = @transform_0, window_bounds = array<i64: 1, 8, 256>}, {pipeline_mode = #tpu.pipeline_mode<synchronous>, transform_indices = @transform_1, window_bounds = array<i64: 10, 8>}, {pipeline_mode = #tpu.pipeline_mode<synchronous>, transform_indices = @transform_2, window_bounds = array<i64: 8, 10>}, {transform_indices = @transform_3, window_bounds = array<i64: 5, 256, 256>}, {transform_indices = @transform_4, window_bounds = array<i64: 5, 128, 256>}, {transform_indices = @transform_5, window_bounds = array<i64: 1, 8, 256>}]} {
    %c0 = arith.constant 0 : index
    %c0_0 = arith.constant 0 : index
    %c0_1 = arith.constant 0 : index
    %0 = vector.load %arg1[%c0, %c0_0, %c0_1] : memref<1x8x256xbf16, #tpu.memory_space<vmem>>, vector<1x8x256xbf16>
    %1 = vector.shape_cast %0 : vector<1x8x256xbf16> to vector<8x256xbf16>
    %c0_2 = arith.constant 0 : index
    %c0_3 = arith.constant 0 : index
    %2 = vector.load %arg2[%c0_2, %c0_3] : memref<10x8xf32, #tpu.memory_space<vmem>>, vector<10x8xf32>
    %3 = arith.extf %1 : vector<8x256xbf16> to vector<8x256xf32>
    %cst = arith.constant dense<0.000000e+00> : vector<10x256xf32>
    %4 = tpu.matmul %2, %3, %cst {dimension_numbers = #tpu.dot_dimension_numbers<[1], [0], [0], [1], [0, 0, 1, 1], [], []>} : vector<10x8xf32>, vector<8x256xf32>, vector<10x256xf32> -> vector<10x256xf32>
    %5 = arith.truncf %4 : vector<10x256xf32> to vector<10x256xbf16>
    %6 = vector.extract_strided_slice %5 {offsets = [0, 0], sizes = [2, 256], strides = [1, 1]} : vector<10x256xbf16> to vector<2x256xbf16>
    %c0_4 = arith.constant 0 : index
    %c0_5 = arith.constant 0 : index
    %c0_6 = arith.constant 0 : index
    %7 = vector.load %arg4[%c0_4, %c0_5, %c0_6] : memref<5x256x256xbf16, #tpu.memory_space<vmem>>, vector<1x256x256xbf16>
    %8 = vector.shape_cast %7 : vector<1x256x256xbf16> to vector<256x256xbf16>
    %cst_7 = arith.constant dense<0.000000e+00> : vector<2x256xf32>
    %9 = tpu.matmul %6, %8, %cst_7 {dimension_numbers = #tpu.dot_dimension_numbers<[1], [0], [0], [1], [0, 0, 1, 1], [], []>} : vector<2x256xbf16>, vector<256x256xbf16>, vector<2x256xf32> -> vector<2x256xf32>
    %10 = vector.extract_strided_slice %6 {offsets = [0, 0], sizes = [2, 128], strides = [1, 1]} : vector<2x256xbf16> to vector<2x128xbf16>
    %c0_8 = arith.constant 0 : index
    %c0_9 = arith.constant 0 : index
    %c0_10 = arith.constant 0 : index
    %11 = vector.load %arg5[%c0_8, %c0_9, %c0_10] : memref<5x128x256xbf16, #tpu.memory_space<vmem>>, vector<1x128x256xbf16>
    %12 = vector.shape_cast %11 : vector<1x128x256xbf16> to vector<128x256xbf16>
    %cst_11 = arith.constant dense<0.000000e+00> : vector<2x256xf32>
    %13 = tpu.matmul %10, %12, %cst_11 {dimension_numbers = #tpu.dot_dimension_numbers<[1], [0], [0], [1], [0, 0, 1, 1], [], []>} : vector<2x128xbf16>, vector<128x256xbf16>, vector<2x256xf32> -> vector<2x256xf32>
    %14 = vector.extract_strided_slice %9 {offsets = [0, 0], sizes = [1, 128], strides = [1, 1]} : vector<2x256xf32> to vector<1x128xf32>
    %15 = vector.extract_strided_slice %9 {offsets = [1, 128], sizes = [1, 128], strides = [1, 1]} : vector<2x256xf32> to vector<1x128xf32>
    %16 = arith.subf %14, %15 : vector<1x128xf32>
    %17 = vector.extract_strided_slice %9 {offsets = [0, 128], sizes = [1, 128], strides = [1, 1]} : vector<2x256xf32> to vector<1x128xf32>
    %18 = vector.extract_strided_slice %9 {offsets = [1, 0], sizes = [1, 128], strides = [1, 1]} : vector<2x256xf32> to vector<1x128xf32>
    %19 = arith.addf %17, %18 : vector<1x128xf32>
    %20 = tpu.concatenate %16, %19 in 0 : vector<1x128xf32>, vector<1x128xf32> -> vector<2x128xf32>
    %21 = vector.extract_strided_slice %13 {offsets = [0, 0], sizes = [1, 128], strides = [1, 1]} : vector<2x256xf32> to vector<1x128xf32>
    %22 = vector.extract_strided_slice %13 {offsets = [1, 128], sizes = [1, 128], strides = [1, 1]} : vector<2x256xf32> to vector<1x128xf32>
    %23 = arith.subf %21, %22 : vector<1x128xf32>
    %24 = vector.extract_strided_slice %13 {offsets = [0, 128], sizes = [1, 128], strides = [1, 1]} : vector<2x256xf32> to vector<1x128xf32>
    %25 = vector.extract_strided_slice %13 {offsets = [1, 0], sizes = [1, 128], strides = [1, 1]} : vector<2x256xf32> to vector<1x128xf32>
    %26 = arith.addf %24, %25 : vector<1x128xf32>
    %27 = tpu.concatenate %23, %26 in 0 : vector<1x128xf32>, vector<1x128xf32> -> vector<2x128xf32>
    %28 = tpu.concatenate %20, %27 in 1 : vector<2x128xf32>, vector<2x128xf32> -> vector<2x256xf32>
    %29 = vector.extract_strided_slice %5 {offsets = [2, 0], sizes = [2, 256], strides = [1, 1]} : vector<10x256xbf16> to vector<2x256xbf16>
    %c1 = arith.constant 1 : index
    %c0_12 = arith.constant 0 : index
    %c0_13 = arith.constant 0 : index
    %30 = vector.load %arg4[%c1, %c0_12, %c0_13] : memref<5x256x256xbf16, #tpu.memory_space<vmem>>, vector<1x256x256xbf16>
    %31 = vector.shape_cast %30 : vector<1x256x256xbf16> to vector<256x256xbf16>
    %cst_14 = arith.constant dense<0.000000e+00> : vector<2x256xf32>
    %32 = tpu.matmul %29, %31, %cst_14 {dimension_numbers = #tpu.dot_dimension_numbers<[1], [0], [0], [1], [0, 0, 1, 1], [], []>} : vector<2x256xbf16>, vector<256x256xbf16>, vector<2x256xf32> -> vector<2x256xf32>
    %33 = vector.extract_strided_slice %29 {offsets = [0, 0], sizes = [2, 128], strides = [1, 1]} : vector<2x256xbf16> to vector<2x128xbf16>
    %c1_15 = arith.constant 1 : index
    %c0_16 = arith.constant 0 : index
    %c0_17 = arith.constant 0 : index
    %34 = vector.load %arg5[%c1_15, %c0_16, %c0_17] : memref<5x128x256xbf16, #tpu.memory_space<vmem>>, vector<1x128x256xbf16>
    %35 = vector.shape_cast %34 : vector<1x128x256xbf16> to vector<128x256xbf16>
    %cst_18 = arith.constant dense<0.000000e+00> : vector<2x256xf32>
    %36 = tpu.matmul %33, %35, %cst_18 {dimension_numbers = #tpu.dot_dimension_numbers<[1], [0], [0], [1], [0, 0, 1, 1], [], []>} : vector<2x128xbf16>, vector<128x256xbf16>, vector<2x256xf32> -> vector<2x256xf32>
    %37 = vector.extract_strided_slice %32 {offsets = [0, 0], sizes = [1, 128], strides = [1, 1]} : vector<2x256xf32> to vector<1x128xf32>
    %38 = vector.extract_strided_slice %32 {offsets = [1, 128], sizes = [1, 128], strides = [1, 1]} : vector<2x256xf32> to vector<1x128xf32>
    %39 = arith.subf %37, %38 : vector<1x128xf32>
    %40 = vector.extract_strided_slice %32 {offsets = [0, 128], sizes = [1, 128], strides = [1, 1]} : vector<2x256xf32> to vector<1x128xf32>
    %41 = vector.extract_strided_slice %32 {offsets = [1, 0], sizes = [1, 128], strides = [1, 1]} : vector<2x256xf32> to vector<1x128xf32>
    %42 = arith.addf %40, %41 : vector<1x128xf32>
    %43 = tpu.concatenate %39, %42 in 0 : vector<1x128xf32>, vector<1x128xf32> -> vector<2x128xf32>
    %44 = vector.extract_strided_slice %36 {offsets = [0, 0], sizes = [1, 128], strides = [1, 1]} : vector<2x256xf32> to vector<1x128xf32>
    %45 = vector.extract_strided_slice %36 {offsets = [1, 128], sizes = [1, 128], strides = [1, 1]} : vector<2x256xf32> to vector<1x128xf32>
    %46 = arith.subf %44, %45 : vector<1x128xf32>
    %47 = vector.extract_strided_slice %36 {offsets = [0, 128], sizes = [1, 128], strides = [1, 1]} : vector<2x256xf32> to vector<1x128xf32>
    %48 = vector.extract_strided_slice %36 {offsets = [1, 0], sizes = [1, 128], strides = [1, 1]} : vector<2x256xf32> to vector<1x128xf32>
    %49 = arith.addf %47, %48 : vector<1x128xf32>
    %50 = tpu.concatenate %46, %49 in 0 : vector<1x128xf32>, vector<1x128xf32> -> vector<2x128xf32>
    %51 = tpu.concatenate %43, %50 in 1 : vector<2x128xf32>, vector<2x128xf32> -> vector<2x256xf32>
    %52 = vector.extract_strided_slice %5 {offsets = [4, 0], sizes = [2, 256], strides = [1, 1]} : vector<10x256xbf16> to vector<2x256xbf16>
    %c2 = arith.constant 2 : index
    %c0_19 = arith.constant 0 : index
    %c0_20 = arith.constant 0 : index
    %53 = vector.load %arg4[%c2, %c0_19, %c0_20] : memref<5x256x256xbf16, #tpu.memory_space<vmem>>, vector<1x256x256xbf16>
    %54 = vector.shape_cast %53 : vector<1x256x256xbf16> to vector<256x256xbf16>
    %cst_21 = arith.constant dense<0.000000e+00> : vector<2x256xf32>
    %55 = tpu.matmul %52, %54, %cst_21 {dimension_numbers = #tpu.dot_dimension_numbers<[1], [0], [0], [1], [0, 0, 1, 1], [], []>} : vector<2x256xbf16>, vector<256x256xbf16>, vector<2x256xf32> -> vector<2x256xf32>
    %56 = vector.extract_strided_slice %52 {offsets = [0, 0], sizes = [2, 128], strides = [1, 1]} : vector<2x256xbf16> to vector<2x128xbf16>
    %c2_22 = arith.constant 2 : index
    %c0_23 = arith.constant 0 : index
    %c0_24 = arith.constant 0 : index
    %57 = vector.load %arg5[%c2_22, %c0_23, %c0_24] : memref<5x128x256xbf16, #tpu.memory_space<vmem>>, vector<1x128x256xbf16>
    %58 = vector.shape_cast %57 : vector<1x128x256xbf16> to vector<128x256xbf16>
    %cst_25 = arith.constant dense<0.000000e+00> : vector<2x256xf32>
    %59 = tpu.matmul %56, %58, %cst_25 {dimension_numbers = #tpu.dot_dimension_numbers<[1], [0], [0], [1], [0, 0, 1, 1], [], []>} : vector<2x128xbf16>, vector<128x256xbf16>, vector<2x256xf32> -> vector<2x256xf32>
    %60 = vector.extract_strided_slice %55 {offsets = [0, 0], sizes = [1, 128], strides = [1, 1]} : vector<2x256xf32> to vector<1x128xf32>
    %61 = vector.extract_strided_slice %55 {offsets = [1, 128], sizes = [1, 128], strides = [1, 1]} : vector<2x256xf32> to vector<1x128xf32>
    %62 = arith.subf %60, %61 : vector<1x128xf32>
    %63 = vector.extract_strided_slice %55 {offsets = [0, 128], sizes = [1, 128], strides = [1, 1]} : vector<2x256xf32> to vector<1x128xf32>
    %64 = vector.extract_strided_slice %55 {offsets = [1, 0], sizes = [1, 128], strides = [1, 1]} : vector<2x256xf32> to vector<1x128xf32>
    %65 = arith.addf %63, %64 : vector<1x128xf32>
    %66 = tpu.concatenate %62, %65 in 0 : vector<1x128xf32>, vector<1x128xf32> -> vector<2x128xf32>
    %67 = vector.extract_strided_slice %59 {offsets = [0, 0], sizes = [1, 128], strides = [1, 1]} : vector<2x256xf32> to vector<1x128xf32>
    %68 = vector.extract_strided_slice %59 {offsets = [1, 128], sizes = [1, 128], strides = [1, 1]} : vector<2x256xf32> to vector<1x128xf32>
    %69 = arith.subf %67, %68 : vector<1x128xf32>
    %70 = vector.extract_strided_slice %59 {offsets = [0, 128], sizes = [1, 128], strides = [1, 1]} : vector<2x256xf32> to vector<1x128xf32>
    %71 = vector.extract_strided_slice %59 {offsets = [1, 0], sizes = [1, 128], strides = [1, 1]} : vector<2x256xf32> to vector<1x128xf32>
    %72 = arith.addf %70, %71 : vector<1x128xf32>
    %73 = tpu.concatenate %69, %72 in 0 : vector<1x128xf32>, vector<1x128xf32> -> vector<2x128xf32>
    %74 = tpu.concatenate %66, %73 in 1 : vector<2x128xf32>, vector<2x128xf32> -> vector<2x256xf32>
    %75 = vector.extract_strided_slice %5 {offsets = [6, 0], sizes = [2, 256], strides = [1, 1]} : vector<10x256xbf16> to vector<2x256xbf16>
    %c3 = arith.constant 3 : index
    %c0_26 = arith.constant 0 : index
    %c0_27 = arith.constant 0 : index
    %76 = vector.load %arg4[%c3, %c0_26, %c0_27] : memref<5x256x256xbf16, #tpu.memory_space<vmem>>, vector<1x256x256xbf16>
    %77 = vector.shape_cast %76 : vector<1x256x256xbf16> to vector<256x256xbf16>
    %cst_28 = arith.constant dense<0.000000e+00> : vector<2x256xf32>
    %78 = tpu.matmul %75, %77, %cst_28 {dimension_numbers = #tpu.dot_dimension_numbers<[1], [0], [0], [1], [0, 0, 1, 1], [], []>} : vector<2x256xbf16>, vector<256x256xbf16>, vector<2x256xf32> -> vector<2x256xf32>
    %79 = vector.extract_strided_slice %75 {offsets = [0, 0], sizes = [2, 128], strides = [1, 1]} : vector<2x256xbf16> to vector<2x128xbf16>
    %c3_29 = arith.constant 3 : index
    %c0_30 = arith.constant 0 : index
    %c0_31 = arith.constant 0 : index
    %80 = vector.load %arg5[%c3_29, %c0_30, %c0_31] : memref<5x128x256xbf16, #tpu.memory_space<vmem>>, vector<1x128x256xbf16>
    %81 = vector.shape_cast %80 : vector<1x128x256xbf16> to vector<128x256xbf16>
    %cst_32 = arith.constant dense<0.000000e+00> : vector<2x256xf32>
    %82 = tpu.matmul %79, %81, %cst_32 {dimension_numbers = #tpu.dot_dimension_numbers<[1], [0], [0], [1], [0, 0, 1, 1], [], []>} : vector<2x128xbf16>, vector<128x256xbf16>, vector<2x256xf32> -> vector<2x256xf32>
    %83 = vector.extract_strided_slice %78 {offsets = [0, 0], sizes = [1, 128], strides = [1, 1]} : vector<2x256xf32> to vector<1x128xf32>
    %84 = vector.extract_strided_slice %78 {offsets = [1, 128], sizes = [1, 128], strides = [1, 1]} : vector<2x256xf32> to vector<1x128xf32>
    %85 = arith.subf %83, %84 : vector<1x128xf32>
    %86 = vector.extract_strided_slice %78 {offsets = [0, 128], sizes = [1, 128], strides = [1, 1]} : vector<2x256xf32> to vector<1x128xf32>
    %87 = vector.extract_strided_slice %78 {offsets = [1, 0], sizes = [1, 128], strides = [1, 1]} : vector<2x256xf32> to vector<1x128xf32>
    %88 = arith.addf %86, %87 : vector<1x128xf32>
    %89 = tpu.concatenate %85, %88 in 0 : vector<1x128xf32>, vector<1x128xf32> -> vector<2x128xf32>
    %90 = vector.extract_strided_slice %82 {offsets = [0, 0], sizes = [1, 128], strides = [1, 1]} : vector<2x256xf32> to vector<1x128xf32>
    %91 = vector.extract_strided_slice %82 {offsets = [1, 128], sizes = [1, 128], strides = [1, 1]} : vector<2x256xf32> to vector<1x128xf32>
    %92 = arith.subf %90, %91 : vector<1x128xf32>
    %93 = vector.extract_strided_slice %82 {offsets = [0, 128], sizes = [1, 128], strides = [1, 1]} : vector<2x256xf32> to vector<1x128xf32>
    %94 = vector.extract_strided_slice %82 {offsets = [1, 0], sizes = [1, 128], strides = [1, 1]} : vector<2x256xf32> to vector<1x128xf32>
    %95 = arith.addf %93, %94 : vector<1x128xf32>
    %96 = tpu.concatenate %92, %95 in 0 : vector<1x128xf32>, vector<1x128xf32> -> vector<2x128xf32>
    %97 = tpu.concatenate %89, %96 in 1 : vector<2x128xf32>, vector<2x128xf32> -> vector<2x256xf32>
    %98 = vector.extract_strided_slice %5 {offsets = [8, 0], sizes = [2, 256], strides = [1, 1]} : vector<10x256xbf16> to vector<2x256xbf16>
    %c4 = arith.constant 4 : index
    %c0_33 = arith.constant 0 : index
    %c0_34 = arith.constant 0 : index
    %99 = vector.load %arg4[%c4, %c0_33, %c0_34] : memref<5x256x256xbf16, #tpu.memory_space<vmem>>, vector<1x256x256xbf16>
    %100 = vector.shape_cast %99 : vector<1x256x256xbf16> to vector<256x256xbf16>
    %cst_35 = arith.constant dense<0.000000e+00> : vector<2x256xf32>
    %101 = tpu.matmul %98, %100, %cst_35 {dimension_numbers = #tpu.dot_dimension_numbers<[1], [0], [0], [1], [0, 0, 1, 1], [], []>} : vector<2x256xbf16>, vector<256x256xbf16>, vector<2x256xf32> -> vector<2x256xf32>
    %102 = vector.extract_strided_slice %98 {offsets = [0, 0], sizes = [2, 128], strides = [1, 1]} : vector<2x256xbf16> to vector<2x128xbf16>
    %c4_36 = arith.constant 4 : index
    %c0_37 = arith.constant 0 : index
    %c0_38 = arith.constant 0 : index
    %103 = vector.load %arg5[%c4_36, %c0_37, %c0_38] : memref<5x128x256xbf16, #tpu.memory_space<vmem>>, vector<1x128x256xbf16>
    %104 = vector.shape_cast %103 : vector<1x128x256xbf16> to vector<128x256xbf16>
    %cst_39 = arith.constant dense<0.000000e+00> : vector<2x256xf32>
    %105 = tpu.matmul %102, %104, %cst_39 {dimension_numbers = #tpu.dot_dimension_numbers<[1], [0], [0], [1], [0, 0, 1, 1], [], []>} : vector<2x128xbf16>, vector<128x256xbf16>, vector<2x256xf32> -> vector<2x256xf32>
    %106 = vector.extract_strided_slice %101 {offsets = [0, 0], sizes = [1, 128], strides = [1, 1]} : vector<2x256xf32> to vector<1x128xf32>
    %107 = vector.extract_strided_slice %101 {offsets = [1, 128], sizes = [1, 128], strides = [1, 1]} : vector<2x256xf32> to vector<1x128xf32>
    %108 = arith.subf %106, %107 : vector<1x128xf32>
    %109 = vector.extract_strided_slice %101 {offsets = [0, 128], sizes = [1, 128], strides = [1, 1]} : vector<2x256xf32> to vector<1x128xf32>
    %110 = vector.extract_strided_slice %101 {offsets = [1, 0], sizes = [1, 128], strides = [1, 1]} : vector<2x256xf32> to vector<1x128xf32>
    %111 = arith.addf %109, %110 : vector<1x128xf32>
    %112 = tpu.concatenate %108, %111 in 0 : vector<1x128xf32>, vector<1x128xf32> -> vector<2x128xf32>
    %113 = vector.extract_strided_slice %105 {offsets = [0, 0], sizes = [1, 128], strides = [1, 1]} : vector<2x256xf32> to vector<1x128xf32>
    %114 = vector.extract_strided_slice %105 {offsets = [1, 128], sizes = [1, 128], strides = [1, 1]} : vector<2x256xf32> to vector<1x128xf32>
    %115 = arith.subf %113, %114 : vector<1x128xf32>
    %116 = vector.extract_strided_slice %105 {offsets = [0, 128], sizes = [1, 128], strides = [1, 1]} : vector<2x256xf32> to vector<1x128xf32>
    %117 = vector.extract_strided_slice %105 {offsets = [1, 0], sizes = [1, 128], strides = [1, 1]} : vector<2x256xf32> to vector<1x128xf32>
    %118 = arith.addf %116, %117 : vector<1x128xf32>
    %119 = tpu.concatenate %115, %118 in 0 : vector<1x128xf32>, vector<1x128xf32> -> vector<2x128xf32>
    %120 = tpu.concatenate %112, %119 in 1 : vector<2x128xf32>, vector<2x128xf32> -> vector<2x256xf32>
    %121 = tpu.concatenate %28, %51, %74, %97, %120 in 0 : vector<2x256xf32>, vector<2x256xf32>, vector<2x256xf32>, vector<2x256xf32>, vector<2x256xf32> -> vector<10x256xf32>
    %c0_40 = arith.constant 0 : index
    %c0_41 = arith.constant 0 : index
    %122 = vector.load %arg3[%c0_40, %c0_41] : memref<8x10xf32, #tpu.memory_space<vmem>>, vector<8x10xf32>
    %cst_42 = arith.constant dense<0.000000e+00> : vector<8x256xf32>
    %123 = tpu.matmul %122, %121, %cst_42 {dimension_numbers = #tpu.dot_dimension_numbers<[1], [0], [0], [1], [0, 0, 1, 1], [], []>} : vector<8x10xf32>, vector<10x256xf32>, vector<8x256xf32> -> vector<8x256xf32>
    %124 = arith.truncf %123 : vector<8x256xf32> to vector<8x256xbf16>
    %c0_43 = arith.constant 0 : index
    %c0_44 = arith.constant 0 : index
    %c0_45 = arith.constant 0 : index
    %125 = vector.load %arg6[%c0_43, %c0_44, %c0_45] : memref<1x8x256xbf16, #tpu.memory_space<vmem>>, vector<1x8x256xbf16>
    %126 = vector.shape_cast %125 : vector<1x8x256xbf16> to vector<8x256xbf16>
    %127 = vector.shape_cast %124 : vector<8x256xbf16> to vector<1x8x256xbf16>
    tpu.vector_store %arg6[%c0_43, %c0_44, %c0_45], %127 {strides = array<i32>} : memref<1x8x256xbf16, #tpu.memory_space<vmem>>, vector<1x8x256xbf16>,
    return
  }
  func.func @transform_0(%arg0: i32) -> (i32, i32, i32) {
    %c0_i32 = arith.constant 0 : i32
    %c0_i32_0 = arith.constant 0 : i32
    %c0_i32_1 = arith.constant 0 : i32
    return %arg0, %c0_i32, %c0_i32_0 : i32, i32, i32
  }
  func.func @transform_1(%arg0: i32) -> (i32, i32) {
    %c0_i32 = arith.constant 0 : i32
    %c0_i32_0 = arith.constant 0 : i32
    %c0_i32_1 = arith.constant 0 : i32
    return %c0_i32, %c0_i32_0 : i32, i32
  }
  func.func @transform_2(%arg0: i32) -> (i32, i32) {
    %c0_i32 = arith.constant 0 : i32
    %c0_i32_0 = arith.constant 0 : i32
    %c0_i32_1 = arith.constant 0 : i32
    return %c0_i32, %c0_i32_0 : i32, i32
  }
  func.func @transform_3(%arg0: i32) -> (i32, i32, i32) {
    %c0_i32 = arith.constant 0 : i32
    %c0_i32_0 = arith.constant 0 : i32
    %c0_i32_1 = arith.constant 0 : i32
    %c0_i32_2 = arith.constant 0 : i32
    return %c0_i32, %c0_i32_0, %c0_i32_1 : i32, i32, i32
  }
  func.func @transform_4(%arg0: i32) -> (i32, i32, i32) {
    %c0_i32 = arith.constant 0 : i32
    %c0_i32_0 = arith.constant 0 : i32
    %c0_i32_1 = arith.constant 0 : i32
    %c0_i32_2 = arith.constant 0 : i32
    return %c0_i32, %c0_i32_0, %c0_i32_1 : i32, i32, i32
  }
  func.func @transform_5(%arg0: i32) -> (i32, i32, i32) {
    %c0_i32 = arith.constant 0 : i32
    %c0_i32_0 = arith.constant 0 : i32
    %c0_i32_1 = arith.constant 0 : i32
    return %arg0, %c0_i32, %c0_i32_0 : i32, i32, i32
  }
}

module attributes {stable_mosaic.version = 11 : i64} {
  func.func @_recon_kernel(%arg0: i32, %arg1: memref<8x128xbf16, #tpu.memory_space<vmem>>, %arg2: memref<8x256xbf16, #tpu.memory_space<vmem>>, %arg3: memref<128x256xbf16, #tpu.memory_space<vmem>>, %arg4: memref<256x256xbf16, #tpu.memory_space<vmem>>, %arg5: memref<8x256xbf16, #tpu.memory_space<vmem>>) attributes {dimension_semantics = [#tpu.dimension_semantics<parallel>], iteration_bounds = array<i64: 2>, scalar_prefetch = 0 : i64, scratch_operands = 0 : i64, tpu.core_type = #tpu.core_type<tc>, window_params = [{transform_indices = @transform_0, window_bounds = array<i64: 8, 128>}, {transform_indices = @transform_1, window_bounds = array<i64: 8, 256>}, {pipeline_mode = #tpu.pipeline_mode<synchronous>, transform_indices = @transform_2, window_bounds = array<i64: 128, 256>}, {pipeline_mode = #tpu.pipeline_mode<synchronous>, transform_indices = @transform_3, window_bounds = array<i64: 256, 256>}, {transform_indices = @transform_4, window_bounds = array<i64: 8, 256>}]} {
    %c0 = arith.constant 0 : index
    %c0_0 = arith.constant 0 : index
    %0 = vector.load %arg1[%c0, %c0_0] : memref<8x128xbf16, #tpu.memory_space<vmem>>, vector<8x128xbf16>
    %c0_1 = arith.constant 0 : index
    %c0_2 = arith.constant 0 : index
    %1 = vector.load %arg3[%c0_1, %c0_2] : memref<128x256xbf16, #tpu.memory_space<vmem>>, vector<128x256xbf16>
    %cst = arith.constant dense<0.000000e+00> : vector<8x256xf32>
    %2 = tpu.matmul %0, %1, %cst {dimension_numbers = #tpu.dot_dimension_numbers<[1], [0], [0], [1], [0, 0, 1, 1], [], []>} : vector<8x128xbf16>, vector<128x256xbf16>, vector<8x256xf32> -> vector<8x256xf32>
    %c0_3 = arith.constant 0 : index
    %c0_4 = arith.constant 0 : index
    %3 = vector.load %arg2[%c0_3, %c0_4] : memref<8x256xbf16, #tpu.memory_space<vmem>>, vector<8x256xbf16>
    %c0_5 = arith.constant 0 : index
    %c0_6 = arith.constant 0 : index
    %4 = vector.load %arg4[%c0_5, %c0_6] : memref<256x256xbf16, #tpu.memory_space<vmem>>, vector<256x256xbf16>
    %cst_7 = arith.constant dense<0.000000e+00> : vector<8x256xf32>
    %5 = tpu.matmul %3, %4, %cst_7 {dimension_numbers = #tpu.dot_dimension_numbers<[1], [0], [0], [1], [0, 0, 1, 1], [], []>} : vector<8x256xbf16>, vector<256x256xbf16>, vector<8x256xf32> -> vector<8x256xf32>
    %6 = arith.addf %2, %5 : vector<8x256xf32>
    %7 = arith.truncf %6 : vector<8x256xf32> to vector<8x256xbf16>
    %c0_8 = arith.constant 0 : index
    %c0_9 = arith.constant 0 : index
    %8 = vector.load %arg5[%c0_8, %c0_9] : memref<8x256xbf16, #tpu.memory_space<vmem>>, vector<8x256xbf16>
    tpu.vector_store %arg5[%c0_8, %c0_9], %7 {strides = array<i32>} : memref<8x256xbf16, #tpu.memory_space<vmem>>, vector<8x256xbf16>,
    return
  }
  func.func @transform_0(%arg0: i32) -> (i32, i32) {
    %c0_i32 = arith.constant 0 : i32
    %c0_i32_0 = arith.constant 0 : i32
    return %arg0, %c0_i32 : i32, i32
  }
  func.func @transform_1(%arg0: i32) -> (i32, i32) {
    %c0_i32 = arith.constant 0 : i32
    %c0_i32_0 = arith.constant 0 : i32
    return %arg0, %c0_i32 : i32, i32
  }
  func.func @transform_2(%arg0: i32) -> (i32, i32) {
    %c0_i32 = arith.constant 0 : i32
    %c0_i32_0 = arith.constant 0 : i32
    %c0_i32_1 = arith.constant 0 : i32
    return %c0_i32, %c0_i32_0 : i32, i32
  }
  func.func @transform_3(%arg0: i32) -> (i32, i32) {
    %c0_i32 = arith.constant 0 : i32
    %c0_i32_0 = arith.constant 0 : i32
    %c0_i32_1 = arith.constant 0 : i32
    return %c0_i32, %c0_i32_0 : i32, i32
  }
  func.func @transform_4(%arg0: i32) -> (i32, i32) {
    %c0_i32 = arith.constant 0 : i32
    %c0_i32_0 = arith.constant 0 : i32
    return %arg0, %c0_i32 : i32, i32
  }
}

module attributes {stable_mosaic.version = 11 : i64} {
  func.func @_mm_bias_kernel(%arg0: i32, %arg1: memref<16x128xbf16, #tpu.memory_space<vmem>>, %arg2: memref<128x8xbf16, #tpu.memory_space<vmem>>, %arg3: memref<1x8xf32, #tpu.memory_space<vmem>>, %arg4: memref<16x8xf32, #tpu.memory_space<vmem>>) attributes {dimension_semantics = [#tpu.dimension_semantics<parallel>], iteration_bounds = array<i64: 2>, scalar_prefetch = 0 : i64, scratch_operands = 0 : i64, tpu.core_type = #tpu.core_type<tc>, window_params = [{transform_indices = @transform_0, window_bounds = array<i64: 16, 128>}, {pipeline_mode = #tpu.pipeline_mode<synchronous>, transform_indices = @transform_1, window_bounds = array<i64: 128, 8>}, {pipeline_mode = #tpu.pipeline_mode<synchronous>, transform_indices = @transform_2, window_bounds = array<i64: 1, 8>}, {transform_indices = @transform_3, window_bounds = array<i64: 16, 8>}]} {
    %c0 = arith.constant 0 : index
    %c0_0 = arith.constant 0 : index
    %0 = vector.load %arg1[%c0, %c0_0] : memref<16x128xbf16, #tpu.memory_space<vmem>>, vector<16x128xbf16>
    %c0_1 = arith.constant 0 : index
    %c0_2 = arith.constant 0 : index
    %1 = vector.load %arg2[%c0_1, %c0_2] : memref<128x8xbf16, #tpu.memory_space<vmem>>, vector<128x8xbf16>
    %cst = arith.constant dense<0.000000e+00> : vector<16x8xf32>
    %2 = tpu.matmul %0, %1, %cst {dimension_numbers = #tpu.dot_dimension_numbers<[1], [0], [0], [1], [0, 0, 1, 1], [], []>} : vector<16x128xbf16>, vector<128x8xbf16>, vector<16x8xf32> -> vector<16x8xf32>
    %c0_3 = arith.constant 0 : index
    %c0_4 = arith.constant 0 : index
    %3 = vector.load %arg3[%c0_3, %c0_4] : memref<1x8xf32, #tpu.memory_space<vmem>>, vector<1x8xf32>
    %4 = vector.broadcast %3 : vector<1x8xf32> to vector<16x8xf32>
    %5 = arith.addf %2, %4 : vector<16x8xf32>
    %c0_5 = arith.constant 0 : index
    %c0_6 = arith.constant 0 : index
    %6 = vector.load %arg4[%c0_5, %c0_6] : memref<16x8xf32, #tpu.memory_space<vmem>>, vector<16x8xf32>
    tpu.vector_store %arg4[%c0_5, %c0_6], %5 {strides = array<i32>} : memref<16x8xf32, #tpu.memory_space<vmem>>, vector<16x8xf32>,
    return
  }
  func.func @transform_0(%arg0: i32) -> (i32, i32) {
    %c0_i32 = arith.constant 0 : i32
    %c0_i32_0 = arith.constant 0 : i32
    return %arg0, %c0_i32 : i32, i32
  }
  func.func @transform_1(%arg0: i32) -> (i32, i32) {
    %c0_i32 = arith.constant 0 : i32
    %c0_i32_0 = arith.constant 0 : i32
    %c0_i32_1 = arith.constant 0 : i32
    return %c0_i32, %c0_i32_0 : i32, i32
  }
  func.func @transform_2(%arg0: i32) -> (i32, i32) {
    %c0_i32 = arith.constant 0 : i32
    %c0_i32_0 = arith.constant 0 : i32
    %c0_i32_1 = arith.constant 0 : i32
    return %c0_i32, %c0_i32_0 : i32, i32
  }
  func.func @transform_3(%arg0: i32) -> (i32, i32) {
    %c0_i32 = arith.constant 0 : i32
    %c0_i32_0 = arith.constant 0 : i32
    return %arg0, %c0_i32 : i32, i32
  }
}

</mosaic_0001>

<bundles_post_ra>
// kernel: multi_wavelet_transform.15
= control target key start
LH: loop header
LB: loop body
LE: loop exit
PB: predicated region body
PF: predicated region fallthrough
CT: control target
= control target key end

     0   :  { %8 = vsyncpa [#allocation3], 0  ;;  %s448_s12 = smov 0   ;;  %s510_s0 = inlined_call_operand.vmem [shape: bf16[32,8], index: 0, kind: input, shape index: {}]   ;;  %s511_s1 = inlined_call_operand.hbm [shape: bf16[8,128], index: 1, kind: input, shape index: {}]   ;;  %s512_s2 = inlined_call_operand.vmem [shape: f32[1,128], index: 2, kind: input, shape index: {}]   ;;  %s513_s3 = inlined_call_operand.vmem [shape: bf16[32,128], index: 3, kind: output, shape index: {}]  }
   0x1 LB: > { %s330_s13 = sadd.s32 4294967295, %s423_s12   ;;  %p332_p0 = scmp.ge.s32.totalorder %s423_s12, 1  ;;  %s423_s12 = sphi %s448_s12, %s14_s12  }
   0x2   : > { %p113_p1 = scmp.lt.s32.totalorder %s423_s12, 3  ;;  %p462_p3 = scmp.eq.s32.totalorder %s330_s13, 0 }
   0x3   : > { %s425_s16 = smov [#allocation2]   ;;  %s385_s21 = scalar_lea.hbm %s511_s1, 64 }
   0x4   : > { %p456_p2 = pnand %p332_p0, %p113_p1  ;;  %s126_s17 = sshll.u32 %s425_s16, 4  ;;  %s127_s17 = int_to_ptr.vmem [resolvable:$true] %s126_s17 }
   0x5   : > { %s518_s15 = scalar_select %p462_p3, 1, 0 }
   0x6   : > { %s517_s14 = scalar_select %p456_p2, 1, 0 }
   0x7   : > { %p367_p4 = pneg %p456_p2  ;;  %p386_p6 = scmp.ne.s32.totalorder %s511_s1, %s385_s21 }
   0x8   : > { %p392_p10 = scmp.lt.u32.totalorder %s385_s21, %s511_s1 }
   0x9   : > { %p470_p5 = pnand %p462_p3, %p367_p4 }
   0xb   : > { %p387_p7 = pneg %p470_p5 }
   0xd   : > { %p388_p8 = pnand %p387_p7, %p386_p6 }
   0xf   : > { %p389_p9 = pneg %p388_p8 }
  0x11   : > { %p394_p11 = pnand %p392_p10, %p389_p9 }
  0x13   : > { %397 = shalt.err (!%p394_p11)
}
  0x14   : > { %s398_s26 = scalar_lea.vmem %s127_s17, 64  ;;  %p406_p1 = scmp.lt.s32.totalorder %s127_s17, %s127_s17 }
  0x15   : > { %p399_p12 = scmp.ne.s32.totalorder %s127_s17, %s398_s26  ;;  %p407_p4 = scmp.lt.s32.totalorder %s398_s26, %s398_s26 }
  0x17   : > { %p401_p13 = pnand %p399_p12, %p387_p7  ;;  %p408_p3 = por %p407_p4, %p406_p1 }
  0x19   : > { %p402_p0 = pneg %p401_p13 }
  0x1b   : > { %p409_p2 = pnand %p408_p3, %p402_p0 }
  0x1d   : > { %412 = shalt.err (!%p409_p2)
}
  0x1e   : > { %370 = dma.hbm_to_vmem [thread:$0]  (!%p470_p5), %s511_s1, 64, %s127_s17, [#allocation3]  }
  0x1f   : > { %p520_p6 = scmp.ne.s32.totalorder %s517_s14, 0 }
  0x20   : > { %p521_p8 = scmp.ne.s32.totalorder (!%p520_p6), %s518_s15, 0 }
  0x21   : > { %151 = sbr.rel (%p520_p6) target bundleno = 267 (0x10b), region = 32 }
  0x28   : > { %418 = dma.done.wait (%p521_p8), [#allocation3], 64  }
  0x29   : > { %420 = vsyncadd (%p521_p8), [#allocation3], 4294967232  ;;  %s337_s29 = sshll.u32 %s330_s13, 1  ;;  %v426_v0 = vmov 0.0   ;;  %vm427_vm0 = vmmov 0   ;;  %vm207_vm1 = vcmask 1043456  }
  0x2a   : > { %357 = vmatprep.subr.bf16.mxu0 %v426_v0  ;;  %359 = vmatprep.mubr.msk.bf16.mxu0 %vm427_vm0, %v426_v0  ;;  %p176_p2 = scmp.lt.s32.totalorder %s337_s29, 3  ;;  %v190_v1 = vld [vmem:[#allocation2] sm:$0xf]  ;;  %vm203_vm2 = vcmask 64512  }
  0x2b   : > { %v209_v2 = vsel %vm207_vm1, %v190_v1, 0  ;;  %v341_v4 = vld [vmem:[%s512_s2] ss:$0 sm:$0xff] }
  0x2c   : > { %s523_s29 = smov (!%p176_p2, %s337_s29), 3  ;;  %358 = vmatpush3.bf16.msra.mxu0 %v209_v2 }
  0x2d   : > { %s338_s30 = sshll.u32 %s523_s29, 2 }
  0x2e   : > { %s179_s6 = scalar_lea.vmem %s510_s0, %s338_s30  ;;  %s185_s11 = scalar_lea.vmem %s513_s3, %s338_s30 }
  0x2f   : > { %v384_v3 = vld [vmem:[%s179_s6] sm:$0xff]  }
  0x30   : > { %360 = vmatmul.mubr.msk.bf16.vlgmr.msra.gmra.mrb[0].mxu0 %vm203_vm2, %v384_v3 }
 0x103   : > { %v245_v5 = vpop.f32.mrb[0].mxu0 }
 0x104   : > { %v361_v6 = vpop.f32.mrb[1].mxu0  ;;  %v246_v8 = vadd.f32 %v341_v4, %v245_v5 }
 0x105   : > { %v248_v7 = vpop.f32.mrb[2].mxu0 }
 0x106   : > { %v249_v9 = vadd.f32 %v341_v4, %v248_v7  ;;  %v362_v10 = vpop.f32.mrb[3].mxu0 }
 0x108   : > { %v353_v11 = vpack.c.bf16 %v249_v9, %v246_v8 }
 0x10a   : > { %354 = vst [vmem:[%s185_s11] sm:$0xff] %v353_v11  }
 0x10b PF: > { %s14_s12 = sadd.s32 1, %s423_s12  }
 0x10c   : > { %p11_p3 = scmp.ge.s32.totalorder %s14_s12, 4  }
 0x10e   :  { %13 = sbr.rel (!%p11_p3) target bundleno = 1 (0x1), region = 67 }
 0x115   :  { %284 = vsyncpa [#allocation3], 1 }
 0x116   :  { %286 = vsyncpa [#allocation3 + $0x1], 1 }

// kernel: multi_wavelet_transform.16
= control target key start
LH: loop header
LB: loop body
LE: loop exit
PB: predicated region body
PF: predicated region fallthrough
CT: control target
= control target key end

     0   :  { %s579_s9 = smov 0   ;;  %s699_s0 = inlined_call_operand.vmem [shape: bf16[16,256], index: 0, kind: input, shape index: {}]   ;;  %s700_s1 = inlined_call_operand.vmem [shape: bf16[256,256], index: 1, kind: input, shape index: {}]   ;;  %s701_s2 = inlined_call_operand.vmem [shape: bf16[16,256], index: 2, kind: output, shape index: {}]  }
   0x1 LB: > { %s449_s10 = sadd.s32 4294967295, %s562_s9   ;;  %p453_p0 = scmp.ge.s32.totalorder %s562_s9, 1  ;;  %s562_s9 = sphi %s579_s9, %s12_s9  }
   0x2   : > { %p112_p1 = scmp.lt.s32.totalorder %s562_s9, 3 }
   0x4   : > { %p113_p2 = pnand %p453_p0, %p112_p1 }
   0x5   : > { %v506_v0 = vld [vmem:[%s700_s1 + $0x4] ss:$8 sps:$4 sm:$0xff] (!%p113_p2)   ;;  %v508_v1 = vld [vmem:[%s700_s1] ss:$8 sps:$4 sm:$0xff] (!%p113_p2)   ;;  %v509_v2 = vld [vmem:[%s700_s1 + $0x14] ss:$8 sps:$4 sm:$0xff] (!%p113_p2)  }
   0x6   : > { %116 = sbr.rel (%p113_p2) target bundleno = 286 (0x11e), region = 28  ;;  %344 = vmatprep.subr.bf16.mxu0 (!%p113_p2), %v506_v0  ;;  %v511_v3 = vld [vmem:[%s700_s1 + $0x10] ss:$8 sps:$4 sm:$0xff] (!%p113_p2)   ;;  %v512_v4 = vld [vmem:[%s700_s1 + $0x24] ss:$8 sps:$4 sm:$0xff] (!%p113_p2)   ;;  %p134_p3 = scmp.lt.s32.totalorder (!%p113_p2), %s449_s10, 1 }
   0x7   : > { %345 = vmatpush1.bf16.msra.mxu0 (!%p113_p2), %v508_v1  ;;  %v514_v5 = vld [vmem:[%s700_s1 + $0x20] ss:$8 sps:$4 sm:$0xff] (!%p113_p2)   ;;  %v515_v6 = vld [vmem:[%s700_s1 + $0x34] ss:$8 sps:$4 sm:$0xff] (!%p113_p2)   ;;  %v517_v7 = vld [vmem:[%s700_s1 + $0x30] ss:$8 sps:$4 sm:$0xff] (!%p113_p2)  }
   0x8   : > { %346 = vmatprep.subr.bf16.mxu0 (!%p113_p2), %v509_v2  ;;  %v518_v8 = vld [vmem:[%s700_s1 + $0x44] ss:$8 sps:$4 sm:$0xff] (!%p113_p2)   ;;  %v520_v9 = vld [vmem:[%s700_s1 + $0x40] ss:$8 sps:$4 sm:$0xff] (!%p113_p2)   ;;  %v521_v10 = vld [vmem:[%s700_s1 + $0x54] ss:$8 sps:$4 sm:$0xff] (!%p113_p2)  }
   0x9   : > { %v523_v11 = vld [vmem:[%s700_s1 + $0x50] ss:$8 sps:$4 sm:$0xff] (!%p113_p2)   ;;  %v524_v12 = vld [vmem:[%s700_s1 + $0x64] ss:$8 sps:$4 sm:$0xff] (!%p113_p2)   ;;  %v526_v15 = vld [vmem:[%s700_s1 + $0x60] ss:$8 sps:$4 sm:$0xff] (!%p113_p2)  }
   0xa   : > { %v527_v16 = vld [vmem:[%s700_s1 + $0x74] ss:$8 sps:$4 sm:$0xff] (!%p113_p2)   ;;  %v529_v17 = vld [vmem:[%s700_s1 + $0x70] ss:$8 sps:$4 sm:$0xff] (!%p113_p2)   ;;  %v530_v18 = vld [vmem:[%s700_s1 + $0x84] ss:$8 sps:$4 sm:$0xff] (!%p113_p2)  }
   0xb   : > { %347 = vmatpush1.bf16.msra.mxu0 (!%p113_p2), %v511_v3  ;;  %v532_v19 = vld [vmem:[%s700_s1 + $0x80] ss:$8 sps:$4 sm:$0xff] (!%p113_p2)   ;;  %v533_v20 = vld [vmem:[%s700_s1 + $0x94] ss:$8 sps:$4 sm:$0xff] (!%p113_p2)   ;;  %v535_v21 = vld [vmem:[%s700_s1 + $0x90] ss:$8 sps:$4 sm:$0xff] (!%p113_p2)  }
   0xc   : > { %348 = vmatprep.subr.bf16.mxu0 (!%p113_p2), %v512_v4  ;;  %v536_v22 = vld [vmem:[%s700_s1 + $0xa4] ss:$8 sps:$4 sm:$0xff] (!%p113_p2)   ;;  %v538_v23 = vld [vmem:[%s700_s1 + $0xa0] ss:$8 sps:$4 sm:$0xff] (!%p113_p2)   ;;  %v539_v24 = vld [vmem:[%s700_s1 + $0xb4] ss:$8 sps:$4 sm:$0xff] (!%p113_p2)  }
   0xd   : > { %s703_s10 = smov (!%p134_p3, %s449_s10), 1  ;;  %v541_v25 = vld [vmem:[%s700_s1 + $0xb0] ss:$8 sps:$4 sm:$0xff]   ;;  %v542_v26 = vld [vmem:[%s700_s1 + $0xc4] ss:$8 sps:$4 sm:$0xff]  }
   0xe   : > { %s495_s3 = sshll.u32 %s703_s10, 3  ;;  %v544_v27 = vld [vmem:[%s700_s1 + $0xc0] ss:$8 sps:$4 sm:$0xff]   ;;  %v545_v28 = vld [vmem:[%s700_s1 + $0xd4] ss:$8 sps:$4 sm:$0xff]  }
   0xf   : > { %349 = vmatpush1.bf16.msra.mxu0 %v514_v5  ;;  %s138_s8 = scalar_lea.vmem %s699_s0, %s495_s3  ;;  %v547_v29 = vld [vmem:[%s700_s1 + $0xd0] ss:$8 sps:$4 sm:$0xff]   ;;  %v548_v30 = vld [vmem:[%s700_s1 + $0xe4] ss:$8 sps:$4 sm:$0xff]   ;;  %v550_v31 = vld [vmem:[%s700_s1 + $0xe0] ss:$8 sps:$4 sm:$0xff]   ;;  %s143_s30 = scalar_lea.vmem %s701_s2, %s495_s3 }
  0x10   : > { %350 = vmatprep.subr.bf16.mxu0 %v515_v6  ;;  %v144_v13 = vld [vmem:[%s138_s8] sm:$0xff]  ;;  %v551_v32 = vld [vmem:[%s700_s1 + $0xf4] ss:$8 sps:$4 sm:$0xff]   ;;  %v553_v33 = vld [vmem:[%s700_s1 + $0xf0] ss:$8 sps:$4 sm:$0xff]  }
  0x11   : > { %v459_v14 = vcombine.high %v144_v13, %v144_v13  ;;  %v458_v34 = vcombine.low %v144_v13, %v144_v13 }
  0x13   : > { %351 = vmatpush1.bf16.msra.mxu0 %v517_v7  ;;  %376 = vmatprep.mubr.bf16.mxu0 %v459_v14 }
  0x14   : > { %352 = vmatprep.subr.bf16.mxu0 %v518_v8 }
  0x17   : > { %353 = vmatpush1.bf16.msra.mxu0 %v520_v9 }
  0x18   : > { %354 = vmatprep.subr.bf16.mxu0 %v521_v10 }
  0x1b   : > { %355 = vmatpush1.bf16.msra.mxu0 %v523_v11 }
  0x1c   : > { %356 = vmatprep.subr.bf16.mxu0 %v524_v12 }
  0x1f   : > { %357 = vmatpush1.bf16.msra.mxu0 %v526_v15 }
  0x20   : > { %358 = vmatprep.subr.bf16.mxu0 %v527_v16 }
  0x23   : > { %359 = vmatpush1.bf16.msra.mxu0 %v529_v17 }
  0x24   : > { %360 = vmatprep.subr.bf16.mxu0 %v530_v18 }
  0x27   : > { %361 = vmatpush1.bf16.msra.mxu0 %v532_v19 }
  0x28   : > { %362 = vmatprep.subr.bf16.mxu0 %v533_v20 }
  0x2b   : > { %363 = vmatpush1.bf16.msra.mxu0 %v535_v21 }
  0x2c   : > { %364 = vmatprep.subr.bf16.mxu0 %v536_v22 }
  0x2f   : > { %365 = vmatpush1.bf16.msra.mxu0 %v538_v23 }
  0x30   : > { %366 = vmatprep.subr.bf16.mxu0 %v539_v24 }
  0x33   : > { %367 = vmatpush1.bf16.msra.mxu0 %v541_v25 }
  0x34   : > { %368 = vmatprep.subr.bf16.mxu0 %v542_v26 }
  0x37   : > { %369 = vmatpush1.bf16.msra.mxu0 %v544_v27 }
  0x38   : > { %370 = vmatprep.subr.bf16.mxu0 %v545_v28 }
  0x3b   : > { %371 = vmatpush1.bf16.msra.mxu0 %v547_v29 }
  0x3c   : > { %372 = vmatprep.subr.bf16.mxu0 %v548_v30 }
  0x3f   : > { %373 = vmatpush1.bf16.msra.mxu0 %v550_v31 }
  0x40   : > { %374 = vmatprep.subr.bf16.mxu0 %v551_v32 }
  0x43   : > { %375 = vmatpush1.bf16.msra.mxu0 %v553_v33 }
  0x46   : > { %377 = vmatmul.mubr.bf16.vlgmr.msra.gmra.mrb[0].mxu0 %v458_v34 }
 0x119   : > { %v378_v35 = vpop.f32.mrb[0].mxu0 }
 0x11a   : > { %v380_v36 = vpop.f32.mrb[1].mxu0 }
 0x11b   : > { %v497_v37 = vpack.c.bf16 %v380_v36, %v378_v35  ;;  %v382_v38 = vpop.f32.mrb[2].mxu0 }
 0x11c   : > { %v383_v39 = vpop.f32.mrb[3].mxu0 }
 0x11d   : > { %393 = vst [vmem:[%s143_s30] sm:$0xff] %v497_v37 }
 0x11e PF: > { %s12_s9 = sadd.s32 1, %s562_s9  }
 0x11f   : > { %p9_p4 = scmp.ge.s32.totalorder %s12_s9, 4  }
 0x121   :  { %11 = sbr.rel (!%p9_p4) target bundleno = 1 (0x1), region = 58 }

// kernel: multi_wavelet_transform.18
= control target key start
LH: loop header
LB: loop body
LE: loop exit
PB: predicated region body
PF: predicated region fallthrough
CT: control target
= control target key end

     0   :  { %s468_s1 = inlined_call_operand.vmem [shape: bf16[256,256], index: 1, kind: input, shape index: {}]   ;;  %s469_s0 = inlined_call_operand.vmem [shape: bf16[8,256], index: 0, kind: input, shape index: {}]   ;;  %s470_s2 = inlined_call_operand.vmem [shape: bf16[8,256], index: 2, kind: output, shape index: {}]  }
   0x1   :  { %v301_v0 = vld [vmem:[%s468_s1 + $0x4] ss:$8 sps:$4 sm:$0xff]   ;;  %v303_v1 = vld [vmem:[%s468_s1] ss:$8 sps:$4 sm:$0xff]   ;;  %v304_v2 = vld [vmem:[%s468_s1 + $0x14] ss:$8 sps:$4 sm:$0xff]  }
   0x2   :  { %211 = vmatprep.subr.bf16.mxu0 %v301_v0  ;;  %v306_v3 = vld [vmem:[%s468_s1 + $0x10] ss:$8 sps:$4 sm:$0xff]   ;;  %v307_v4 = vld [vmem:[%s468_s1 + $0x24] ss:$8 sps:$4 sm:$0xff]   ;;  %v309_v5 = vld [vmem:[%s468_s1 + $0x20] ss:$8 sps:$4 sm:$0xff]  }
   0x3   :  { %212 = vmatpush1.bf16.msra.mxu0 %v303_v1  ;;  %v310_v6 = vld [vmem:[%s468_s1 + $0x34] ss:$8 sps:$4 sm:$0xff]   ;;  %v312_v7 = vld [vmem:[%s468_s1 + $0x30] ss:$8 sps:$4 sm:$0xff]   ;;  %v313_v8 = vld [vmem:[%s468_s1 + $0x44] ss:$8 sps:$4 sm:$0xff]  }
   0x4   :  { %213 = vmatprep.subr.bf16.mxu0 %v304_v2  ;;  %v315_v9 = vld [vmem:[%s468_s1 + $0x40] ss:$8 sps:$4 sm:$0xff]   ;;  %v316_v10 = vld [vmem:[%s468_s1 + $0x54] ss:$8 sps:$4 sm:$0xff]   ;;  %v318_v11 = vld [vmem:[%s468_s1 + $0x50] ss:$8 sps:$4 sm:$0xff]  }
   0x5   :  { %v319_v12 = vld [vmem:[%s468_s1 + $0x64] ss:$8 sps:$4 sm:$0xff]   ;;  %v321_v15 = vld [vmem:[%s468_s1 + $0x60] ss:$8 sps:$4 sm:$0xff]   ;;  %v322_v16 = vld [vmem:[%s468_s1 + $0x74] ss:$8 sps:$4 sm:$0xff]  }
   0x6   :  { %v11_v13 = vld [vmem:[%s469_s0] sm:$0xff]  ;;  %v324_v17 = vld [vmem:[%s468_s1 + $0x70] ss:$8 sps:$4 sm:$0xff]   ;;  %v328_v20 = vld [vmem:[%s468_s1 + $0x94] ss:$8 sps:$4 sm:$0xff]  }
   0x7   :  { %214 = vmatpush1.bf16.msra.mxu0 %v306_v3  ;;  %v266_v14 = vcombine.high %v11_v13, %v11_v13  ;;  %v325_v18 = vld [vmem:[%s468_s1 + $0x84] ss:$8 sps:$4 sm:$0xff]   ;;  %v327_v19 = vld [vmem:[%s468_s1 + $0x80] ss:$8 sps:$4 sm:$0xff]   ;;  %v330_v21 = vld [vmem:[%s468_s1 + $0x90] ss:$8 sps:$4 sm:$0xff]   ;;  %v265_v34 = vcombine.low %v11_v13, %v11_v13 }
   0x8   :  { %215 = vmatprep.subr.bf16.mxu0 %v307_v4  ;;  %v331_v22 = vld [vmem:[%s468_s1 + $0xa4] ss:$8 sps:$4 sm:$0xff]   ;;  %v333_v23 = vld [vmem:[%s468_s1 + $0xa0] ss:$8 sps:$4 sm:$0xff]   ;;  %v334_v24 = vld [vmem:[%s468_s1 + $0xb4] ss:$8 sps:$4 sm:$0xff]  }
   0x9   :  { %243 = vmatprep.mubr.bf16.mxu0 %v266_v14  ;;  %v336_v25 = vld [vmem:[%s468_s1 + $0xb0] ss:$8 sps:$4 sm:$0xff]   ;;  %v337_v26 = vld [vmem:[%s468_s1 + $0xc4] ss:$8 sps:$4 sm:$0xff]   ;;  %v339_v27 = vld [vmem:[%s468_s1 + $0xc0] ss:$8 sps:$4 sm:$0xff]  }
   0xa   :  { %v340_v28 = vld [vmem:[%s468_s1 + $0xd4] ss:$8 sps:$4 sm:$0xff]   ;;  %v342_v29 = vld [vmem:[%s468_s1 + $0xd0] ss:$8 sps:$4 sm:$0xff]   ;;  %v343_v30 = vld [vmem:[%s468_s1 + $0xe4] ss:$8 sps:$4 sm:$0xff]  }
   0xb   :  { %216 = vmatpush1.bf16.msra.mxu0 %v309_v5  ;;  %v345_v31 = vld [vmem:[%s468_s1 + $0xe0] ss:$8 sps:$4 sm:$0xff]   ;;  %v346_v32 = vld [vmem:[%s468_s1 + $0xf4] ss:$8 sps:$4 sm:$0xff]   ;;  %v348_v33 = vld [vmem:[%s468_s1 + $0xf0] ss:$8 sps:$4 sm:$0xff]  }
   0xc   :  { %217 = vmatprep.subr.bf16.mxu0 %v310_v6 }
   0xf   :  { %218 = vmatpush1.bf16.msra.mxu0 %v312_v7 }
  0x10   :  { %219 = vmatprep.subr.bf16.mxu0 %v313_v8 }
  0x13   :  { %220 = vmatpush1.bf16.msra.mxu0 %v315_v9 }
  0x14   :  { %221 = vmatprep.subr.bf16.mxu0 %v316_v10 }
  0x17   :  { %222 = vmatpush1.bf16.msra.mxu0 %v318_v11 }
  0x18   :  { %223 = vmatprep.subr.bf16.mxu0 %v319_v12 }
  0x1b   :  { %224 = vmatpush1.bf16.msra.mxu0 %v321_v15 }
  0x1c   :  { %225 = vmatprep.subr.bf16.mxu0 %v322_v16 }
  0x1f   :  { %226 = vmatpush1.bf16.msra.mxu0 %v324_v17 }
  0x20   :  { %227 = vmatprep.subr.bf16.mxu0 %v325_v18 }
  0x23   :  { %228 = vmatpush1.bf16.msra.mxu0 %v327_v19 }
  0x24   :  { %229 = vmatprep.subr.bf16.mxu0 %v328_v20 }
  0x27   :  { %230 = vmatpush1.bf16.msra.mxu0 %v330_v21 }
  0x28   :  { %231 = vmatprep.subr.bf16.mxu0 %v331_v22 }
  0x2b   :  { %232 = vmatpush1.bf16.msra.mxu0 %v333_v23 }
  0x2c   :  { %233 = vmatprep.subr.bf16.mxu0 %v334_v24 }
  0x2f   :  { %234 = vmatpush1.bf16.msra.mxu0 %v336_v25 }
  0x30   :  { %235 = vmatprep.subr.bf16.mxu0 %v337_v26 }
  0x33   :  { %236 = vmatpush1.bf16.msra.mxu0 %v339_v27 }
  0x34   :  { %237 = vmatprep.subr.bf16.mxu0 %v340_v28 }
  0x37   :  { %238 = vmatpush1.bf16.msra.mxu0 %v342_v29 }
  0x38   :  { %239 = vmatprep.subr.bf16.mxu0 %v343_v30 }
  0x3b   :  { %240 = vmatpush1.bf16.msra.mxu0 %v345_v31 }
  0x3c   :  { %241 = vmatprep.subr.bf16.mxu0 %v346_v32 }
  0x3f   :  { %242 = vmatpush1.bf16.msra.mxu0 %v348_v33 }
  0x42   :  { %244 = vmatmul.mubr.bf16.vlgmr.msra.gmra.mrb[0].mxu0 %v265_v34 }
 0x115   :  { %v245_v35 = vpop.f32.mrb[0].mxu0 }
 0x116   :  { %v247_v36 = vpop.f32.mrb[1].mxu0 }
 0x117   :  { %v300_v37 = vpack.c.bf16 %v247_v36, %v245_v35  ;;  %v249_v38 = vpop.f32.mrb[2].mxu0 }
 0x118   :  { %v250_v39 = vpop.f32.mrb[3].mxu0 }
 0x119   :  { %260 = vst [vmem:[%s470_s2] sm:$0xff] %v300_v37 }

// kernel: multi_wavelet_transform.20
= control target key start
LH: loop header
LB: loop body
LE: loop exit
PB: predicated region body
PF: predicated region fallthrough
CT: control target
= control target key end

     0   :  { %s517_s0 = inlined_call_operand.vmem [shape: bf16[4,256], index: 0, kind: input, shape index: {}]   ;;  %s518_s1 = inlined_call_operand.vmem [shape: bf16[256,256], index: 1, kind: input, shape index: {}]   ;;  %s519_s2 = inlined_call_operand.vmem [shape: bf16[4,256], index: 2, kind: output, shape index: {}]  }
   0x1   :  { %v350_v0 = vld [vmem:[%s518_s1 + $0x4] ss:$8 sps:$4 sm:$0xff]   ;;  %v352_v1 = vld [vmem:[%s518_s1] ss:$8 sps:$4 sm:$0xff]   ;;  %v353_v2 = vld [vmem:[%s518_s1 + $0x14] ss:$8 sps:$4 sm:$0xff]  }
   0x2   :  { %218 = vmatprep.subr.bf16.mxu0 %v350_v0  ;;  %v355_v3 = vld [vmem:[%s518_s1 + $0x10] ss:$8 sps:$4 sm:$0xff]   ;;  %v356_v4 = vld [vmem:[%s518_s1 + $0x24] ss:$8 sps:$4 sm:$0xff]   ;;  %v358_v5 = vld [vmem:[%s518_s1 + $0x20] ss:$8 sps:$4 sm:$0xff]  }
   0x3   :  { %219 = vmatpush1.bf16.msra.mxu0 %v352_v1  ;;  %v359_v6 = vld [vmem:[%s518_s1 + $0x34] ss:$8 sps:$4 sm:$0xff]   ;;  %v361_v7 = vld [vmem:[%s518_s1 + $0x30] ss:$8 sps:$4 sm:$0xff]   ;;  %v362_v8 = vld [vmem:[%s518_s1 + $0x44] ss:$8 sps:$4 sm:$0xff]  }
   0x4   :  { %220 = vmatprep.subr.bf16.mxu0 %v353_v2  ;;  %v364_v9 = vld [vmem:[%s518_s1 + $0x40] ss:$8 sps:$4 sm:$0xff]   ;;  %v365_v10 = vld [vmem:[%s518_s1 + $0x54] ss:$8 sps:$4 sm:$0xff]   ;;  %v367_v11 = vld [vmem:[%s518_s1 + $0x50] ss:$8 sps:$4 sm:$0xff]  }
   0x5   :  { %v368_v12 = vld [vmem:[%s518_s1 + $0x64] ss:$8 sps:$4 sm:$0xff]   ;;  %v370_v14 = vld [vmem:[%s518_s1 + $0x60] ss:$8 sps:$4 sm:$0xff]   ;;  %v371_v15 = vld [vmem:[%s518_s1 + $0x74] ss:$8 sps:$4 sm:$0xff]  }
   0x6   :  { %v399_v13 = vld.sshfl [vmem:[%s517_s0] sm:$0xff pattern:$0x76325410]  ;;  %v373_v17 = vld [vmem:[%s518_s1 + $0x70] ss:$8 sps:$4 sm:$0xff]  }
   0x7   :  { %221 = vmatpush1.bf16.msra.mxu0 %v355_v3  ;;  %v55_v16 = vcombine.high %v399_v13, %v399_v13  ;;  %v374_v18 = vld [vmem:[%s518_s1 + $0x84] ss:$8 sps:$4 sm:$0xff]   ;;  %v376_v19 = vld [vmem:[%s518_s1 + $0x80] ss:$8 sps:$4 sm:$0xff]   ;;  %v377_v20 = vld [vmem:[%s518_s1 + $0x94] ss:$8 sps:$4 sm:$0xff]  }
   0x8   :  { %222 = vmatprep.subr.bf16.mxu0 %v356_v4  ;;  %v379_v21 = vld [vmem:[%s518_s1 + $0x90] ss:$8 sps:$4 sm:$0xff]   ;;  %v380_v22 = vld [vmem:[%s518_s1 + $0xa4] ss:$8 sps:$4 sm:$0xff]   ;;  %v382_v23 = vld [vmem:[%s518_s1 + $0xa0] ss:$8 sps:$4 sm:$0xff]  }
   0x9   :  { %250 = vmatprep.mubr.bf16.mxu0 %v55_v16  ;;  %v383_v24 = vld [vmem:[%s518_s1 + $0xb4] ss:$8 sps:$4 sm:$0xff]   ;;  %v385_v25 = vld [vmem:[%s518_s1 + $0xb0] ss:$8 sps:$4 sm:$0xff]   ;;  %v386_v26 = vld [vmem:[%s518_s1 + $0xc4] ss:$8 sps:$4 sm:$0xff]  }
   0xa   :  { %v388_v27 = vld [vmem:[%s518_s1 + $0xc0] ss:$8 sps:$4 sm:$0xff]   ;;  %v389_v28 = vld [vmem:[%s518_s1 + $0xd4] ss:$8 sps:$4 sm:$0xff]   ;;  %v391_v29 = vld [vmem:[%s518_s1 + $0xd0] ss:$8 sps:$4 sm:$0xff]  }
   0xb   :  { %223 = vmatpush1.bf16.msra.mxu0 %v358_v5  ;;  %v392_v30 = vld [vmem:[%s518_s1 + $0xe4] ss:$8 sps:$4 sm:$0xff]   ;;  %v394_v31 = vld [vmem:[%s518_s1 + $0xe0] ss:$8 sps:$4 sm:$0xff]   ;;  %v395_v32 = vld [vmem:[%s518_s1 + $0xf4] ss:$8 sps:$4 sm:$0xff]  }
   0xc   :  { %224 = vmatprep.subr.bf16.mxu0 %v359_v6  ;;  %v397_v33 = vld [vmem:[%s518_s1 + $0xf0] ss:$8 sps:$4 sm:$0xff]  }
   0xf   :  { %225 = vmatpush1.bf16.msra.mxu0 %v361_v7 }
  0x10   :  { %226 = vmatprep.subr.bf16.mxu0 %v362_v8 }
  0x13   :  { %227 = vmatpush1.bf16.msra.mxu0 %v364_v9 }
  0x14   :  { %228 = vmatprep.subr.bf16.mxu0 %v365_v10 }
  0x17   :  { %229 = vmatpush1.bf16.msra.mxu0 %v367_v11 }
  0x18   :  { %230 = vmatprep.subr.bf16.mxu0 %v368_v12 }
  0x1b   :  { %231 = vmatpush1.bf16.msra.mxu0 %v370_v14 }
  0x1c   :  { %232 = vmatprep.subr.bf16.mxu0 %v371_v15 }
  0x1f   :  { %233 = vmatpush1.bf16.msra.mxu0 %v373_v17 }
  0x20   :  { %234 = vmatprep.subr.bf16.mxu0 %v374_v18 }
  0x23   :  { %235 = vmatpush1.bf16.msra.mxu0 %v376_v19 }
  0x24   :  { %236 = vmatprep.subr.bf16.mxu0 %v377_v20 }
  0x27   :  { %237 = vmatpush1.bf16.msra.mxu0 %v379_v21 }
  0x28   :  { %238 = vmatprep.subr.bf16.mxu0 %v380_v22 }
  0x2b   :  { %239 = vmatpush1.bf16.msra.mxu0 %v382_v23 }
  0x2c   :  { %240 = vmatprep.subr.bf16.mxu0 %v383_v24 }
  0x2f   :  { %241 = vmatpush1.bf16.msra.mxu0 %v385_v25 }
  0x30   :  { %242 = vmatprep.subr.bf16.mxu0 %v386_v26 }
  0x33   :  { %243 = vmatpush1.bf16.msra.mxu0 %v388_v27 }
  0x34   :  { %244 = vmatprep.subr.bf16.mxu0 %v389_v28 }
  0x37   :  { %245 = vmatpush1.bf16.msra.mxu0 %v391_v29 }
  0x38   :  { %246 = vmatprep.subr.bf16.mxu0 %v392_v30 }
  0x3b   :  { %247 = vmatpush1.bf16.msra.mxu0 %v394_v31 }
  0x3c   :  { %248 = vmatprep.subr.bf16.mxu0 %v395_v32 }
  0x3f   :  { %249 = vmatpush1.bf16.msra.mxu0 %v397_v33 }
  0x42   :  { %251 = vmatmul.mubr.bf16.vlgmr.msra.gmra.mrb[0].mxu0 %v399_v13 }
 0x115   :  { %v252_v34 = vpop.f32.mrb[0].mxu0 }
 0x116   :  { %v254_v35 = vpop.f32.mrb[1].mxu0 }
 0x117   :  { %v347_v36 = vpack.c.bf16 %v254_v35, %v252_v34  ;;  %v256_v37 = vpop.f32.mrb[2].mxu0 }
 0x118   :  { %v257_v38 = vpop.f32.mrb[3].mxu0 }
 0x119   :  { %348 = vst.sshfl [vmem:[#allocation2] sm:$0x33 pattern:$0x76325410] %v347_v36 }
 0x120   :  { %v293_v39 = vld [vmem:[#allocation2] sm:$0xf] }
 0x121   :  { %294 = vst [vmem:[%s519_s2] sm:$0xf] %v293_v39 }

// kernel: multi_wavelet_transform.22
= control target key start
LH: loop header
LB: loop body
LE: loop exit
PB: predicated region body
PF: predicated region fallthrough
CT: control target
= control target key end

     0   :  { %v446_v9 = vmov 1966171168   ;;  %v56_v11 = vlaneseq  ;;  %s573_s0 = inlined_call_operand.vmem [shape: bf16[2,256], index: 0, kind: input, shape index: {}]   ;;  %s574_s1 = inlined_call_operand.vmem [shape: bf16[256,256], index: 1, kind: input, shape index: {}]   ;;  %s575_s2 = inlined_call_operand.vmem [shape: bf16[2,256], index: 2, kind: output, shape index: {}]  }
   0x1   :  { %v398_v0 = vld [vmem:[%s574_s1 + $0x4] ss:$8 sps:$4 sm:$0xff]   ;;  %v400_v1 = vld [vmem:[%s574_s1] ss:$8 sps:$4 sm:$0xff]   ;;  %v401_v2 = vld [vmem:[%s574_s1 + $0x14] ss:$8 sps:$4 sm:$0xff]   ;;  %v54_v10 = vunpack.c.l.s4 %v446_v9 }
   0x2   :  { %245 = vmatprep.subr.bf16.mxu0 %v398_v0  ;;  %v403_v3 = vld [vmem:[%s574_s1 + $0x10] ss:$8 sps:$4 sm:$0xff]   ;;  %v404_v4 = vld [vmem:[%s574_s1 + $0x24] ss:$8 sps:$4 sm:$0xff]   ;;  %v406_v5 = vld [vmem:[%s574_s1 + $0x20] ss:$8 sps:$4 sm:$0xff]  }
   0x3   :  { %246 = vmatpush1.bf16.msra.mxu0 %v400_v1  ;;  %v407_v6 = vld [vmem:[%s574_s1 + $0x34] ss:$8 sps:$4 sm:$0xff]   ;;  %v409_v7 = vld [vmem:[%s574_s1 + $0x30] ss:$8 sps:$4 sm:$0xff]   ;;  %v410_v8 = vld [vmem:[%s574_s1 + $0x44] ss:$8 sps:$4 sm:$0xff]   ;;  %v55_v14 = vunpack.c.0.s8 %v54_v10 }
   0x4   :  { %247 = vmatprep.subr.bf16.mxu0 %v401_v2  ;;  %v412_v12 = vld [vmem:[%s574_s1 + $0x40] ss:$8 sps:$4 sm:$0xff]   ;;  %v413_v13 = vld [vmem:[%s574_s1 + $0x54] ss:$8 sps:$4 sm:$0xff]   ;;  %v57_v15 = vshrl.u32 %v56_v11, 7 }
   0x5   :  { %v415_v16 = vld [vmem:[%s574_s1 + $0x50] ss:$8 sps:$4 sm:$0xff]   ;;  %v416_v17 = vld [vmem:[%s574_s1 + $0x64] ss:$8 sps:$4 sm:$0xff]   ;;  %v11_v19 = vld [vmem:[%s573_s0] sm:$0x3] }
   0x6   :  { %v58_v18 = vsub.s32 %v55_v14, %v57_v15  ;;  %v12_v20 = vld [vmem:[%s573_s0 + $0x2] sm:$0x3]  ;;  %v13_v21 = vld [vmem:[%s573_s0 + $0x4] sm:$0x3]  ;;  %v14_v22 = vld [vmem:[%s573_s0 + $0x6] sm:$0x3] }
   0x7   :  { %248 = vmatpush1.bf16.msra.mxu0 %v403_v3  ;;  %v51_v23 = vcombine.low %v11_v19, %v12_v20  ;;  %v418_v24 = vld [vmem:[%s574_s1 + $0x60] ss:$8 sps:$4 sm:$0xff]   ;;  %v52_v25 = vcombine.low %v13_v21, %v14_v22  ;;  %v419_v26 = vld [vmem:[%s574_s1 + $0x74] ss:$8 sps:$4 sm:$0xff]   ;;  %v421_v29 = vld [vmem:[%s574_s1 + $0x70] ss:$8 sps:$4 sm:$0xff]  }
   0x8   :  { %249 = vmatprep.subr.bf16.mxu0 %v404_v4  ;;  %v422_v31 = vld [vmem:[%s574_s1 + $0x84] ss:$8 sps:$4 sm:$0xff]   ;;  %v424_v33 = vld [vmem:[%s574_s1 + $0x80] ss:$8 sps:$4 sm:$0xff]   ;;  %v425_v34 = vld [vmem:[%s574_s1 + $0x94] ss:$8 sps:$4 sm:$0xff]  }
   0x9   :  { %v59_v27 = vrot.slane %v51_v23, %v58_v18  ;;  %v66_v28 = vrot.slane %v52_v25, %v58_v18  ;;  %v427_v35 = vld [vmem:[%s574_s1 + $0x90] ss:$8 sps:$4 sm:$0xff]   ;;  %v428_v36 = vld [vmem:[%s574_s1 + $0xa4] ss:$8 sps:$4 sm:$0xff]   ;;  %v430_v37 = vld [vmem:[%s574_s1 + $0xa0] ss:$8 sps:$4 sm:$0xff]  }
   0xa   :  { %v431_v38 = vld [vmem:[%s574_s1 + $0xb4] ss:$8 sps:$4 sm:$0xff]   ;;  %v433_v39 = vld [vmem:[%s574_s1 + $0xb0] ss:$8 sps:$4 sm:$0xff]   ;;  %v434_v40 = vld [vmem:[%s574_s1 + $0xc4] ss:$8 sps:$4 sm:$0xff]  }
   0xb   :  { %250 = vmatpush1.bf16.msra.mxu0 %v406_v5  ;;  %v68_v30 = vcombine.high %v59_v27, %v66_v28  ;;  %v436_v41 = vld [vmem:[%s574_s1 + $0xc0] ss:$8 sps:$4 sm:$0xff]   ;;  %v437_v42 = vld [vmem:[%s574_s1 + $0xd4] ss:$8 sps:$4 sm:$0xff]   ;;  %v439_v43 = vld [vmem:[%s574_s1 + $0xd0] ss:$8 sps:$4 sm:$0xff]   ;;  %v67_v47 = vcombine.low %v59_v27, %v66_v28 }
   0xc   :  { %251 = vmatprep.subr.bf16.mxu0 %v407_v6  ;;  %v440_v44 = vld [vmem:[%s574_s1 + $0xe4] ss:$8 sps:$4 sm:$0xff]   ;;  %v442_v45 = vld [vmem:[%s574_s1 + $0xe0] ss:$8 sps:$4 sm:$0xff]   ;;  %v443_v46 = vld [vmem:[%s574_s1 + $0xf4] ss:$8 sps:$4 sm:$0xff]  }
   0xd   :  { %v82_v32 = vrot.slane %v68_v30, %v58_v18  ;;  %v445_v48 = vld [vmem:[%s574_s1 + $0xf0] ss:$8 sps:$4 sm:$0xff]   ;;  %v75_v49 = vrot.slane %v67_v47, %v58_v18 }
   0xf   :  { %252 = vmatpush1.bf16.msra.mxu0 %v409_v7  ;;  %277 = vmatprep.mubr.bf16.mxu0 %v82_v32 }
  0x10   :  { %253 = vmatprep.subr.bf16.mxu0 %v410_v8 }
  0x13   :  { %254 = vmatpush1.bf16.msra.mxu0 %v412_v12 }
  0x14   :  { %255 = vmatprep.subr.bf16.mxu0 %v413_v13 }
  0x17   :  { %256 = vmatpush1.bf16.msra.mxu0 %v415_v16 }
  0x18   :  { %257 = vmatprep.subr.bf16.mxu0 %v416_v17 }
  0x1b   :  { %258 = vmatpush1.bf16.msra.mxu0 %v418_v24 }
  0x1c   :  { %259 = vmatprep.subr.bf16.mxu0 %v419_v26 }
  0x1f   :  { %260 = vmatpush1.bf16.msra.mxu0 %v421_v29 }
  0x20   :  { %261 = vmatprep.subr.bf16.mxu0 %v422_v31 }
  0x23   :  { %262 = vmatpush1.bf16.msra.mxu0 %v424_v33 }
  0x24   :  { %263 = vmatprep.subr.bf16.mxu0 %v425_v34 }
  0x27   :  { %264 = vmatpush1.bf16.msra.mxu0 %v427_v35 }
  0x28   :  { %265 = vmatprep.subr.bf16.mxu0 %v428_v36 }
  0x2b   :  { %266 = vmatpush1.bf16.msra.mxu0 %v430_v37 }
  0x2c   :  { %267 = vmatprep.subr.bf16.mxu0 %v431_v38 }
  0x2f   :  { %268 = vmatpush1.bf16.msra.mxu0 %v433_v39 }
  0x30   :  { %269 = vmatprep.subr.bf16.mxu0 %v434_v40 }
  0x33   :  { %270 = vmatpush1.bf16.msra.mxu0 %v436_v41 }
  0x34   :  { %271 = vmatprep.subr.bf16.mxu0 %v437_v42 }
  0x37   :  { %272 = vmatpush1.bf16.msra.mxu0 %v439_v43 }
  0x38   :  { %273 = vmatprep.subr.bf16.mxu0 %v440_v44 }
  0x3b   :  { %274 = vmatpush1.bf16.msra.mxu0 %v442_v45 }
  0x3c   :  { %275 = vmatprep.subr.bf16.mxu0 %v443_v46 }
  0x3f   :  { %276 = vmatpush1.bf16.msra.mxu0 %v445_v48 }
  0x42   :  { %278 = vmatmul.mubr.bf16.vlgmr.msra.gmra.mrb[0].mxu0 %v75_v49 }
 0x115   :  { %v279_v50 = vpop.f32.mrb[0].mxu0 }
 0x116   :  { %v281_v51 = vpop.f32.mrb[1].mxu0 }
 0x117   :  { %v394_v52 = vpack.c.bf16 %v281_v51, %v279_v50  ;;  %v283_v53 = vpop.f32.mrb[2].mxu0 }
 0x118   :  { %v284_v54 = vpop.f32.mrb[3].mxu0 }
 0x119   :  { %v297_v55 = vrot.slane %v394_v52, %v58_v18 }
 0x11b   :  { %395 = vst.sshfl [vmem:[#allocation2] sm:$0x5 pattern:$0x73625140] %v297_v55 }
 0x122   :  { %v340_v56 = vld [vmem:[#allocation2] sm:$0x3] }
 0x123   :  { %341 = vst [vmem:[%s575_s2] sm:$0x3] %v340_v56 }

// kernel: multi_wavelet_transform.23
= control target key start
LH: loop header
LB: loop body
LE: loop exit
PB: predicated region body
PF: predicated region fallthrough
CT: control target
= control target key end

     0   :  { %s908_s18 = smov 0   ;;  %s1099_s0 = inlined_call_operand.vmem [shape: bf16[2,1,256], index: 0, kind: input, shape index: {}]   ;;  %s1100_s1 = inlined_call_operand.vmem [shape: f32[2,1], index: 1, kind: input, shape index: {}]   ;;  %s1101_s2 = inlined_call_operand.vmem [shape: f32[1,2], index: 2, kind: input, shape index: {}]   ;;  %s1102_s3 = inlined_call_operand.vmem [shape: bf16[16,256,256], index: 3, kind: input, shape index: {}]   ;;  %s1103_s4 = inlined_call_operand.vmem [shape: bf16[16,128,256], index: 4, kind: input, shape index: {}]   ;;  %s1104_s5 = inlined_call_operand.vmem [shape: bf16[2,1,256], index: 5, kind: output, shape index: {}]  }
   0x1 LB: > { %s727_s1 = sadd.s32 4294967295, %s874_s18   ;;  %p731_p0 = scmp.ge.s32.totalorder %s874_s18, 1  ;;  %s874_s18 = sphi %s908_s18, %s15_s18  }
   0x2   : > { %p186_p1 = scmp.lt.s32.totalorder %s874_s18, 3 }
   0x4   : > { %p187_p2 = pnand %p731_p0, %p186_p1 }
   0x5   : > { %v796_v0 = vld [vmem:[%s1102_s3 + $0x4] ss:$8 sps:$4 sm:$0xff] (!%p187_p2)   ;;  %v798_v1 = vld [vmem:[%s1102_s3] ss:$8 sps:$4 sm:$0xff] (!%p187_p2)   ;;  %v876_v2 = vmov (!%p187_p2), 0   ;;  %p212_p3 = scmp.lt.s32.totalorder (!%p187_p2), %s727_s1, 1  ;;  %v234_v27 = vlaneseq (!%p187_p2) }
   0x6   : > { %190 = sbr.rel (%p187_p2) target bundleno = 297 (0x129), region = 40  ;;  %613 = vmatprep.mubr.bf16.mxu1 (!%p187_p2), %v876_v2  ;;  %444 = vmatprep.subr.bf16.mxu0 (!%p187_p2), %v796_v0  ;;  %v799_v3 = vld [vmem:[%s1102_s3 + $0x14] ss:$8 sps:$4 sm:$0xff] (!%p187_p2)   ;;  %v801_v4 = vld [vmem:[%s1102_s3 + $0x10] ss:$8 sps:$4 sm:$0xff] (!%p187_p2)   ;;  %vm247_vm0 = vcmask (!%p187_p2), 1040384  }
   0x7   : > { %445 = vmatpush1.bf16.msra.mxu0 (!%p187_p2), %v798_v1  ;;  %v802_v5 = vld [vmem:[%s1102_s3 + $0x24] ss:$8 sps:$4 sm:$0xff] (!%p187_p2)   ;;  %v804_v6 = vld [vmem:[%s1102_s3 + $0x20] ss:$8 sps:$4 sm:$0xff] (!%p187_p2)   ;;  %v805_v7 = vld [vmem:[%s1102_s3 + $0x34] ss:$8 sps:$4 sm:$0xff] (!%p187_p2)  }
   0x8   : > { %446 = vmatprep.subr.bf16.mxu0 (!%p187_p2), %v799_v3  ;;  %v807_v8 = vld [vmem:[%s1102_s3 + $0x30] ss:$8 sps:$4 sm:$0xff] (!%p187_p2)   ;;  %v819_v9 = vld [vmem:[%s1103_s4 + $0x4] ss:$8 sps:$4 sm:$0xff] (!%p187_p2)   ;;  %v822_v10 = vld [vmem:[%s1103_s4] ss:$8 sps:$4 sm:$0xff] (!%p187_p2)  }
   0x9   : > { %v808_v11 = vld [vmem:[%s1102_s3 + $0x44] ss:$8 sps:$4 sm:$0xff] (!%p187_p2)   ;;  %581 = vmatprep.subr.bf16.mxu1 (!%p187_p2), %v819_v9  ;;  %v825_v12 = vld [vmem:[%s1103_s4 + $0x14] ss:$8 sps:$4 sm:$0xff] (!%p187_p2)   ;;  %v828_v13 = vld [vmem:[%s1103_s4 + $0x10] ss:$8 sps:$4 sm:$0xff] (!%p187_p2)  }
   0xa   : > { %582 = vmatpush1.bf16.msra.mxu1 (!%p187_p2), %v822_v10  ;;  %v810_v14 = vld [vmem:[%s1102_s3 + $0x40] ss:$8 sps:$4 sm:$0xff] (!%p187_p2)   ;;  %v811_v15 = vld [vmem:[%s1102_s3 + $0x54] ss:$8 sps:$4 sm:$0xff] (!%p187_p2)   ;;  %v831_v16 = vld [vmem:[%s1103_s4 + $0x24] ss:$8 sps:$4 sm:$0xff] (!%p187_p2)  }
   0xb   : > { %447 = vmatpush1.bf16.msra.mxu0 (!%p187_p2), %v801_v4  ;;  %583 = vmatprep.subr.bf16.mxu1 (!%p187_p2), %v825_v12  ;;  %v834_v17 = vld [vmem:[%s1103_s4 + $0x20] ss:$8 sps:$4 sm:$0xff] (!%p187_p2)   ;;  %v813_v18 = vld [vmem:[%s1102_s3 + $0x50] ss:$8 sps:$4 sm:$0xff] (!%p187_p2)   ;;  %v837_v19 = vld [vmem:[%s1103_s4 + $0x34] ss:$8 sps:$4 sm:$0xff] (!%p187_p2)  }
   0xc   : > { %448 = vmatprep.subr.bf16.mxu0 (!%p187_p2), %v802_v5  ;;  %v814_v20 = vld [vmem:[%s1102_s3 + $0x64] ss:$8 sps:$4 sm:$0xff] (!%p187_p2)   ;;  %v816_v21 = vld [vmem:[%s1102_s3 + $0x60] ss:$8 sps:$4 sm:$0xff] (!%p187_p2)   ;;  %v840_v22 = vld [vmem:[%s1103_s4 + $0x30] ss:$8 sps:$4 sm:$0xff] (!%p187_p2)  }
   0xd   : > { %s1108_s1 = smov (!%p212_p3, %s727_s1), 1  ;;  %v843_v23 = vld [vmem:[%s1103_s4 + $0x44] ss:$8 sps:$4 sm:$0xff]   ;;  %v817_v24 = vld [vmem:[%s1102_s3 + $0x74] ss:$8 sps:$4 sm:$0xff]   ;;  %v235_v33 = vshrl.u32 %v234_v27, 7 }
   0xe   : > { %584 = vmatpush1.bf16.msra.mxu1 %v828_v13  ;;  %v877_v25 = vmov 1966171168   ;;  %v846_v28 = vld [vmem:[%s1103_s4 + $0x40] ss:$8 sps:$4 sm:$0xff]   ;;  %s732_s2 = sshll.u32 %s1108_s1, 1  ;;  %vm667_vm3 = vcmask 1041409  }
   0xf   : > { %449 = vmatpush1.bf16.msra.mxu0 %v804_v6  ;;  %585 = vmatprep.subr.bf16.mxu1 %v831_v16  ;;  %v232_v26 = vunpack.c.l.s4 %v877_v25  ;;  %v821_v29 = vld [vmem:[%s1102_s3 + $0x70] ss:$8 sps:$4 sm:$0xff]   ;;  %v849_v30 = vld [vmem:[%s1103_s4 + $0x54] ss:$8 sps:$4 sm:$0xff]   ;;  %v823_v31 = vld [vmem:[%s1102_s3 + $0x84] ss:$8 sps:$4 sm:$0xff]   ;;  %s215_s27 = scalar_lea.vmem %s1099_s0, %s732_s2  ;;  %s219_s22 = scalar_lea.vmem %s1104_s5, %s732_s2 }
  0x10   : > { %450 = vmatprep.subr.bf16.mxu0 %v805_v7  ;;  %v852_v34 = vld [vmem:[%s1103_s4 + $0x50] ss:$8 sps:$4 sm:$0xff]   ;;  %v827_v35 = vld [vmem:[%s1102_s3 + $0x80] ss:$8 sps:$4 sm:$0xff]   ;;  %v855_v36 = vld [vmem:[%s1103_s4 + $0x64] ss:$8 sps:$4 sm:$0xff]  }
  0x11   : > { %v233_v32 = vunpack.c.0.s8 %v232_v26  ;;  %v829_v37 = vld [vmem:[%s1102_s3 + $0x94] ss:$8 sps:$4 sm:$0xff]   ;;  %v734_v38 = vld.sshfl [vmem:[%s215_s27] sm:$0x11 pattern:$0x75316420] }
  0x12   : > { %586 = vmatpush1.bf16.msra.mxu1 %v834_v17  ;;  %vm248_vm1 = vsmask.f32 256  ;;  %v230_v40 = vcombine.high %v734_v38, %v734_v38  ;;  %v858_v41 = vld [vmem:[%s1103_s4 + $0x60] ss:$8 sps:$4 sm:$0xff]   ;;  %v833_v42 = vld [vmem:[%s1102_s3 + $0x90] ss:$8 sps:$4 sm:$0xff]  }
  0x13   : > { %451 = vmatpush1.bf16.msra.mxu0 %v807_v8  ;;  %587 = vmatprep.subr.bf16.mxu1 %v837_v19  ;;  %v1024_v39 = vsub.s32 %v233_v32, %v235_v33  ;;  %v861_v43 = vld [vmem:[%s1103_s4 + $0x74] ss:$8 sps:$4 sm:$0xff]   ;;  %v835_v45 = vld [vmem:[%s1102_s3 + $0xa4] ss:$8 sps:$4 sm:$0xff]   ;;  %vm1040_vm2 = vmand %vm247_vm0, %vm248_vm1  ;;  %vm668_vm4 = vsmask.f32 1280 }
  0x14   : > { %452 = vmatprep.subr.bf16.mxu0 %v808_v11  ;;  %v864_v48 = vld [vmem:[%s1103_s4 + $0x70] ss:$8 sps:$4 sm:$0xff]   ;;  %v839_v50 = vld [vmem:[%s1102_s3 + $0xa0] ss:$8 sps:$4 sm:$0xff]   ;;  %v841_v51 = vld [vmem:[%s1102_s3 + $0xb4] ss:$8 sps:$4 sm:$0xff]  }
  0x15   : > { %v244_v44 = vrot.slane %v230_v40, %v1024_v39  ;;  %v237_v49 = vrot.slane %v734_v38, %v1024_v39  ;;  %v845_v53 = vld [vmem:[%s1102_s3 + $0xb0] ss:$8 sps:$4 sm:$0xff]   ;;  %v847_v54 = vld [vmem:[%s1102_s3 + $0xc4] ss:$8 sps:$4 sm:$0xff]   ;;  %v851_v55 = vld [vmem:[%s1102_s3 + $0xc0] ss:$8 sps:$4 sm:$0xff]  }
  0x16   : > { %588 = vmatpush1.bf16.msra.mxu1 %v840_v22  ;;  %v853_v56 = vld [vmem:[%s1102_s3 + $0xd4] ss:$8 sps:$4 sm:$0xff]   ;;  %v857_v57 = vld [vmem:[%s1102_s3 + $0xd0] ss:$8 sps:$4 sm:$0xff]   ;;  %v859_v58 = vld [vmem:[%s1102_s3 + $0xe4] ss:$8 sps:$4 sm:$0xff]  }
  0x17   : > { %453 = vmatpush1.bf16.msra.mxu0 %v810_v14  ;;  %589 = vmatprep.subr.bf16.mxu1 %v843_v23  ;;  %v251_v47 = vsel %vm1040_vm2, %v244_v44, 0  ;;  %v250_v52 = vsel %vm1040_vm2, %v237_v49, 0  ;;  %v863_v59 = vld [vmem:[%s1102_s3 + $0xe0] ss:$8 sps:$4 sm:$0xff]   ;;  %v865_v60 = vld [vmem:[%s1102_s3 + $0xf4] ss:$8 sps:$4 sm:$0xff]   ;;  %vm669_vm5 = vmand %vm667_vm3, %vm668_vm4 }
  0x18   : > { %454 = vmatprep.subr.bf16.mxu0 %v811_v15  ;;  %476 = vmatprep.mubr.bf16.mxu0 %v251_v47  ;;  %v867_v61 = vld [vmem:[%s1102_s3 + $0xf0] ss:$8 sps:$4 sm:$0xff]   ;;  %vm670_vm6 = vmor %vm669_vm5, %vm1040_vm2 }
  0x1a   : > { %590 = vmatpush1.bf16.msra.mxu1 %v846_v28 }
  0x1b   : > { %455 = vmatpush1.bf16.msra.mxu0 %v813_v18  ;;  %591 = vmatprep.subr.bf16.mxu1 %v849_v30 }
  0x1c   : > { %456 = vmatprep.subr.bf16.mxu0 %v814_v20  ;;  %v671_v20 = vld [vmem:[%s219_s22] sm:$0x3] }
  0x1e   : > { %592 = vmatpush1.bf16.msra.mxu1 %v852_v34 }
  0x1f   : > { %457 = vmatpush1.bf16.msra.mxu0 %v816_v21  ;;  %593 = vmatprep.subr.bf16.mxu1 %v855_v36 }
  0x20   : > { %458 = vmatprep.subr.bf16.mxu0 %v817_v24 }
  0x22   : > { %594 = vmatpush1.bf16.msra.mxu1 %v858_v41 }
  0x23   : > { %459 = vmatpush1.bf16.msra.mxu0 %v821_v29  ;;  %595 = vmatprep.subr.bf16.mxu1 %v861_v43 }
  0x24   : > { %460 = vmatprep.subr.bf16.mxu0 %v823_v31 }
  0x26   : > { %596 = vmatpush1.bf16.msra.mxu1 %v864_v48 }
  0x27   : > { %461 = vmatpush1.bf16.msra.mxu0 %v827_v35 }
  0x28   : > { %462 = vmatprep.subr.bf16.mxu0 %v829_v37 }
  0x29   : > { %614 = vmatmul.mubr.bf16.vlgmr.msra.gmra.mrb[0].mxu1 %v250_v52 }
  0x2b   : > { %463 = vmatpush1.bf16.msra.mxu0 %v833_v42 }
  0x2c   : > { %464 = vmatprep.subr.bf16.mxu0 %v835_v45 }
  0x2f   : > { %465 = vmatpush1.bf16.msra.mxu0 %v839_v50 }
  0x30   : > { %466 = vmatprep.subr.bf16.mxu0 %v841_v51 }
  0x33   : > { %467 = vmatpush1.bf16.msra.mxu0 %v845_v53 }
  0x34   : > { %468 = vmatprep.subr.bf16.mxu0 %v847_v54 }
  0x37   : > { %469 = vmatpush1.bf16.msra.mxu0 %v851_v55 }
  0x38   : > { %470 = vmatprep.subr.bf16.mxu0 %v853_v56 }
  0x3b   : > { %471 = vmatpush1.bf16.msra.mxu0 %v857_v57 }
  0x3c   : > { %472 = vmatprep.subr.bf16.mxu0 %v859_v58 }
  0x3f   : > { %473 = vmatpush1.bf16.msra.mxu0 %v863_v59 }
  0x40   : > { %474 = vmatprep.subr.bf16.mxu0 %v865_v60 }
  0x43   : > { %475 = vmatpush1.bf16.msra.mxu0 %v867_v61 }
  0x46   : > { %477 = vmatmul.mubr.bf16.vlgmr.msra.gmra.mrb[0].mxu0 %v250_v52 }
  0xfc   : > { %v615_v62 = vpop.f32.mrb[0].mxu1 }
  0xfd   : > { %v640_v63 = vrot.slane %v615_v62, 1  ;;  %v617_v0 = vpop.f32.mrb[1].mxu1 }
  0xfe   : > { %v636_v1 = vrot.slane %v617_v0, 1  ;;  %v619_v2 = vpop.f32.mrb[2].mxu1 }
  0xff   : > { %v642_v3 = vadd.f32 %v640_v63, %v617_v0  ;;  %v620_v4 = vpop.f32.mrb[3].mxu1 }
 0x100   : > { %v638_v5 = vsub.f32 %v615_v62, %v636_v1 }
 0x101   : > { %v644_v6 = vrot.slane %v642_v3, 7 }
 0x103   : > { %v646_v7 = vsel %vm247_vm0, %v638_v5, %v644_v6 }
 0x119   : > { %v478_v8 = vpop.f32.mrb[0].mxu0 }
 0x11a   : > { %v627_v9 = vrot.slane %v478_v8, 1  ;;  %v480_v10 = vpop.f32.mrb[1].mxu0 }
 0x11b   : > { %v623_v11 = vrot.slane %v480_v10, 1  ;;  %v482_v12 = vpop.f32.mrb[2].mxu0 }
 0x11c   : > { %v629_v13 = vadd.f32 %v627_v9, %v480_v10  ;;  %v483_v14 = vpop.f32.mrb[3].mxu0 }
 0x11d   : > { %v625_v15 = vsub.f32 %v478_v8, %v623_v11 }
 0x11e   : > { %v631_v16 = vrot.slane %v629_v13, 7 }
 0x120   : > { %v634_v17 = vsel %vm247_vm0, %v625_v15, %v631_v16 }
 0x121   : > { %v783_v18 = vpack.c.bf16 %v646_v7, %v634_v17 }
 0x123   : > { %v658_v19 = vrot.slane %v783_v18, %v1024_v39 }
 0x125   : > { %v665_v21 = vrot.slane %v658_v19, %v1024_v39 }
 0x127   : > { %v672_v22 = vsel %vm670_vm6, %v665_v21, %v671_v20 }
 0x128   : > { %673 = vst [vmem:[%s219_s22] sm:$0x3] %v672_v22 }
 0x129 PF: > { %s15_s18 = sadd.s32 1, %s874_s18  }
 0x12a   : > { %p12_p4 = scmp.ge.s32.totalorder %s15_s18, 4  }
 0x12c   :  { %14 = sbr.rel (!%p12_p4) target bundleno = 1 (0x1), region = 70 }

// kernel: multi_wavelet_transform.24
= control target key start
LH: loop header
LB: loop body
LE: loop exit
PB: predicated region body
PF: predicated region fallthrough
CT: control target
= control target key end

     0   :  { %v283_v1 = vmov 0.0   ;;  %vm284_vm0 = vmmov 0   ;;  %v51_v4 = vlaneseq  ;;  %v285_v6 = vmov 1966171168   ;;  %s348_s0 = inlined_call_operand.vmem [shape: bf16[2,128], index: 0, kind: input, shape index: {}]   ;;  %s349_s1 = inlined_call_operand.vmem [shape: bf16[128,128], index: 1, kind: input, shape index: {}]   ;;  %s350_s2 = inlined_call_operand.vmem [shape: f32[1,128], index: 2, kind: input, shape index: {}]   ;;  %s351_s3 = inlined_call_operand.vmem [shape: bf16[2,128], index: 3, kind: output, shape index: {}]  }
   0x1   :  { %v275_v0 = vld [vmem:[%s349_s1] sm:$0xff]   ;;  %252 = vmatprep.subr.bf16.mxu0 %v283_v1  ;;  %v276_v2 = vld [vmem:[%s349_s1 + $0x8] sm:$0xff]   ;;  %268 = vmatprep.mubr.msk.bf16.mxu0 %vm284_vm0, %v283_v1  ;;  %v277_v3 = vld [vmem:[%s349_s1 + $0x10] sm:$0xff]   ;;  %v49_v7 = vunpack.c.l.s4 %v285_v6 }
   0x2   :  { %253 = vmatpush3.bf16.msra.mxu0 %v275_v0  ;;  %v278_v5 = vld [vmem:[%s349_s1 + $0x18] sm:$0xff]   ;;  %v279_v8 = vld [vmem:[%s349_s1 + $0x20] sm:$0xff]   ;;  %v52_v11 = vshrl.u32 %v51_v4, 7  ;;  %v280_v18 = vld [vmem:[%s349_s1 + $0x28] sm:$0xff]  }
   0x3   :  { %254 = vmatprep.subr.bf16.mxu0 %v283_v1  ;;  %v15_v9 = vld [vmem:[%s348_s0] sm:$0x1]  ;;  %v50_v10 = vunpack.c.0.s8 %v49_v7  ;;  %v16_v12 = vld [vmem:[%s348_s0 + $0x1] sm:$0x1]  ;;  %v17_v13 = vld [vmem:[%s348_s0 + $0x2] sm:$0x1] }
   0x4   :  { %v18_v14 = vld [vmem:[%s348_s0 + $0x3] sm:$0x1]  ;;  %v46_v15 = vcombine.low %v15_v9, %v16_v12  ;;  %v281_v21 = vld [vmem:[%s349_s1 + $0x30] sm:$0xff]   ;;  %v282_v23 = vld [vmem:[%s349_s1 + $0x38] sm:$0xff]  }
   0x5   :  { %v47_v16 = vcombine.low %v17_v13, %v18_v14  ;;  %v53_v17 = vsub.s32 %v50_v10, %v52_v11  ;;  %v232_v25 = vld [vmem:[%s350_s2] ss:$0 sm:$0xff] }
   0x6   :  { %255 = vmatpush3.bf16.msra.mxu0 %v276_v2 }
   0x7   :  { %256 = vmatprep.subr.bf16.mxu0 %v283_v1  ;;  %v54_v19 = vrot.slane %v46_v15, %v53_v17  ;;  %v61_v20 = vrot.slane %v47_v16, %v53_v17 }
   0x9   :  { %v62_v22 = vcombine.low %v54_v19, %v61_v20 }
   0xa   :  { %257 = vmatpush3.bf16.msra.mxu0 %v277_v3 }
   0xb   :  { %258 = vmatprep.subr.bf16.mxu0 %v283_v1  ;;  %v69_v24 = vrot.slane %v62_v22, %v53_v17 }
   0xe   :  { %259 = vmatpush3.bf16.msra.mxu0 %v278_v5 }
   0xf   :  { %260 = vmatprep.subr.bf16.mxu0 %v283_v1 }
  0x12   :  { %261 = vmatpush3.bf16.msra.mxu0 %v279_v8 }
  0x13   :  { %262 = vmatprep.subr.bf16.mxu0 %v283_v1 }
  0x16   :  { %263 = vmatpush3.bf16.msra.mxu0 %v280_v18 }
  0x17   :  { %264 = vmatprep.subr.bf16.mxu0 %v283_v1 }
  0x1a   :  { %265 = vmatpush3.bf16.msra.mxu0 %v281_v21 }
  0x1b   :  { %266 = vmatprep.subr.bf16.mxu0 %v283_v1 }
  0x1e   :  { %267 = vmatpush3.bf16.msra.mxu0 %v282_v23 }
  0x21   :  { %269 = vmatmul.mubr.bf16.vlgmr.msra.gmra.mrb[0].mxu0 %v69_v24 }
  0xf4   :  { %v153_v26 = vpop.f32.mrb[0].mxu0 }
  0xf5   :  { %v154_v27 = vadd.f32 %v232_v25, %v153_v26  ;;  %v270_v28 = vpop.f32.mrb[1].mxu0 }
  0xf6   :  { %v156_v29 = vpop.f32.mrb[2].mxu0 }
  0xf7   :  { %v159_v30 = vpack.c.bf16 %v154_v27, %v154_v27  ;;  %v271_v31 = vpop.f32.mrb[3].mxu0 }
  0xf9   :  { %v167_v32 = vrot.slane %v159_v30, %v53_v17 }
  0xfb   :  { %241 = vst.sshfl [vmem:[#allocation2] sm:$0x1 pattern:$0x73625140] %v167_v32 }
 0x102   :  { %v210_v33 = vld [vmem:[#allocation2] sm:$0x1] }
 0x103   :  { %211 = vst [vmem:[%s351_s3] sm:$0x1] %v210_v33 }

// kernel: multi_wavelet_transform.25
= control target key start
LH: loop header
LB: loop body
LE: loop exit
PB: predicated region body
PF: predicated region fallthrough
CT: control target
= control target key end

     0   :  { %v666_v2 = vmov 0   ;;  %v667_v24 = vmov 1966171168   ;;  %v83_v26 = vlaneseq  ;;  %s874_s0 = inlined_call_operand.vmem [shape: bf16[2,128], index: 0, kind: input, shape index: {}]   ;;  %s875_s1 = inlined_call_operand.vmem [shape: bf16[2,256], index: 1, kind: input, shape index: {}]   ;;  %s876_s2 = inlined_call_operand.vmem [shape: bf16[128,256], index: 2, kind: input, shape index: {}]   ;;  %s877_s3 = inlined_call_operand.vmem [shape: bf16[256,256], index: 3, kind: input, shape index: {}]   ;;  %s878_s4 = inlined_call_operand.vmem [shape: bf16[2,256], index: 4, kind: output, shape index: {}]  }
   0x1   :  { %v594_v0 = vld [vmem:[%s877_s3 + $0x4] ss:$8 sps:$4 sm:$0xff]   ;;  %v596_v1 = vld [vmem:[%s877_s3] ss:$8 sps:$4 sm:$0xff]   ;;  %454 = vmatprep.mubr.bf16.mxu0 %v666_v2  ;;  %v597_v3 = vld [vmem:[%s877_s3 + $0x14] ss:$8 sps:$4 sm:$0xff]   ;;  %v81_v25 = vunpack.c.l.s4 %v667_v24 }
   0x2   :  { %272 = vmatprep.subr.bf16.mxu1 %v594_v0  ;;  %v599_v4 = vld [vmem:[%s877_s3 + $0x10] ss:$8 sps:$4 sm:$0xff]   ;;  %v600_v5 = vld [vmem:[%s877_s3 + $0x24] ss:$8 sps:$4 sm:$0xff]   ;;  %v602_v6 = vld [vmem:[%s877_s3 + $0x20] ss:$8 sps:$4 sm:$0xff]  }
   0x3   :  { %273 = vmatpush1.bf16.msra.mxu1 %v596_v1  ;;  %v603_v7 = vld [vmem:[%s877_s3 + $0x34] ss:$8 sps:$4 sm:$0xff]   ;;  %v605_v8 = vld [vmem:[%s877_s3 + $0x30] ss:$8 sps:$4 sm:$0xff]   ;;  %v618_v9 = vld [vmem:[%s876_s2 + $0x4] ss:$8 sps:$4 sm:$0xff]   ;;  %v82_v31 = vunpack.c.0.s8 %v81_v25 }
   0x4   :  { %274 = vmatprep.subr.bf16.mxu1 %v597_v3  ;;  %v620_v10 = vld [vmem:[%s876_s2] ss:$8 sps:$4 sm:$0xff]   ;;  %v606_v11 = vld [vmem:[%s877_s3 + $0x44] ss:$8 sps:$4 sm:$0xff]   ;;  %422 = vmatprep.subr.bf16.mxu0 %v618_v9  ;;  %v624_v12 = vld [vmem:[%s876_s2 + $0x14] ss:$8 sps:$4 sm:$0xff]  }
   0x5   :  { %423 = vmatpush1.bf16.msra.mxu0 %v620_v10  ;;  %v626_v13 = vld [vmem:[%s876_s2 + $0x10] ss:$8 sps:$4 sm:$0xff]   ;;  %v608_v14 = vld [vmem:[%s877_s3 + $0x40] ss:$8 sps:$4 sm:$0xff]   ;;  %v609_v15 = vld [vmem:[%s877_s3 + $0x54] ss:$8 sps:$4 sm:$0xff]  }
   0x6   :  { %424 = vmatprep.subr.bf16.mxu0 %v624_v12  ;;  %v630_v16 = vld [vmem:[%s876_s2 + $0x24] ss:$8 sps:$4 sm:$0xff]   ;;  %v632_v17 = vld [vmem:[%s876_s2 + $0x20] ss:$8 sps:$4 sm:$0xff]   ;;  %v611_v18 = vld [vmem:[%s877_s3 + $0x50] ss:$8 sps:$4 sm:$0xff]  }
   0x7   :  { %275 = vmatpush1.bf16.msra.mxu1 %v599_v4  ;;  %v636_v19 = vld [vmem:[%s876_s2 + $0x34] ss:$8 sps:$4 sm:$0xff]   ;;  %v612_v20 = vld [vmem:[%s877_s3 + $0x64] ss:$8 sps:$4 sm:$0xff]   ;;  %v638_v21 = vld [vmem:[%s876_s2 + $0x30] ss:$8 sps:$4 sm:$0xff]  }
   0x8   :  { %276 = vmatprep.subr.bf16.mxu1 %v600_v5  ;;  %v614_v22 = vld [vmem:[%s877_s3 + $0x60] ss:$8 sps:$4 sm:$0xff]   ;;  %v642_v23 = vld [vmem:[%s876_s2 + $0x44] ss:$8 sps:$4 sm:$0xff]   ;;  %v615_v27 = vld [vmem:[%s877_s3 + $0x74] ss:$8 sps:$4 sm:$0xff]  }
   0x9   :  { %425 = vmatpush1.bf16.msra.mxu0 %v626_v13  ;;  %v644_v28 = vld [vmem:[%s876_s2 + $0x40] ss:$8 sps:$4 sm:$0xff]   ;;  %v617_v29 = vld [vmem:[%s877_s3 + $0x70] ss:$8 sps:$4 sm:$0xff]   ;;  %v648_v30 = vld [vmem:[%s876_s2 + $0x54] ss:$8 sps:$4 sm:$0xff]  }
   0xa   :  { %426 = vmatprep.subr.bf16.mxu0 %v630_v16  ;;  %v84_v32 = vshrl.u32 %v83_v26, 7  ;;  %v621_v33 = vld [vmem:[%s877_s3 + $0x84] ss:$8 sps:$4 sm:$0xff]   ;;  %v623_v34 = vld [vmem:[%s877_s3 + $0x80] ss:$8 sps:$4 sm:$0xff]  }
   0xb   :  { %277 = vmatpush1.bf16.msra.mxu1 %v602_v6  ;;  %v650_v35 = vld [vmem:[%s876_s2 + $0x50] ss:$8 sps:$4 sm:$0xff]   ;;  %v627_v36 = vld [vmem:[%s877_s3 + $0x94] ss:$8 sps:$4 sm:$0xff]   ;;  %v654_v37 = vld [vmem:[%s876_s2 + $0x64] ss:$8 sps:$4 sm:$0xff]  }
   0xc   :  { %278 = vmatprep.subr.bf16.mxu1 %v603_v7  ;;  %v789_v38 = vsub.s32 %v82_v31, %v84_v32  ;;  %v18_v39 = vld [vmem:[%s874_s0] sm:$0x1]  ;;  %v19_v40 = vld [vmem:[%s874_s0 + $0x1] sm:$0x1]  ;;  %v20_v41 = vld [vmem:[%s874_s0 + $0x2] sm:$0x1] }
   0xd   :  { %427 = vmatpush1.bf16.msra.mxu0 %v632_v17  ;;  %v21_v42 = vld [vmem:[%s874_s0 + $0x3] sm:$0x1]  ;;  %v317_v43 = vcombine.low %v18_v39, %v19_v40  ;;  %v38_v44 = vld [vmem:[%s875_s1] sm:$0x3]  ;;  %v40_v48 = vld [vmem:[%s875_s1 + $0x4] sm:$0x3] }
   0xe   :  { %428 = vmatprep.subr.bf16.mxu0 %v636_v19  ;;  %v39_v45 = vld [vmem:[%s875_s1 + $0x2] sm:$0x3]  ;;  %v318_v47 = vcombine.low %v20_v41, %v21_v42  ;;  %v41_v49 = vld [vmem:[%s875_s1 + $0x6] sm:$0x3]  ;;  %v629_v51 = vld [vmem:[%s877_s3 + $0x90] ss:$8 sps:$4 sm:$0xff]  }
   0xf   :  { %279 = vmatpush1.bf16.msra.mxu1 %v605_v8  ;;  %v656_v46 = vld [vmem:[%s876_s2 + $0x60] ss:$8 sps:$4 sm:$0xff]   ;;  %v78_v50 = vcombine.low %v38_v44, %v39_v45  ;;  %v660_v52 = vld [vmem:[%s876_s2 + $0x74] ss:$8 sps:$4 sm:$0xff]   ;;  %v325_v53 = vrot.slane %v317_v43, %v789_v38  ;;  %v79_v54 = vcombine.low %v40_v48, %v41_v49  ;;  %v633_v55 = vld [vmem:[%s877_s3 + $0xa4] ss:$8 sps:$4 sm:$0xff]  }
  0x10   :  { %280 = vmatprep.subr.bf16.mxu1 %v606_v11  ;;  %v332_v56 = vrot.slane %v318_v47, %v789_v38  ;;  %v662_v59 = vld [vmem:[%s876_s2 + $0x70] ss:$8 sps:$4 sm:$0xff]   ;;  %v635_v61 = vld [vmem:[%s877_s3 + $0xa0] ss:$8 sps:$4 sm:$0xff]   ;;  %v639_v63 = vld [vmem:[%s877_s3 + $0xb4] ss:$8 sps:$4 sm:$0xff]  }
  0x11   :  { %429 = vmatpush1.bf16.msra.mxu0 %v638_v21  ;;  %v86_v57 = vrot.slane %v78_v50, %v789_v38  ;;  %v93_v58 = vrot.slane %v79_v54, %v789_v38  ;;  %v641_v2 = vld [vmem:[%s877_s3 + $0xb0] ss:$8 sps:$4 sm:$0xff]   ;;  %v645_v3 = vld [vmem:[%s877_s3 + $0xc4] ss:$8 sps:$4 sm:$0xff]   ;;  %v647_v4 = vld [vmem:[%s877_s3 + $0xc0] ss:$8 sps:$4 sm:$0xff]  }
  0x12   :  { %430 = vmatprep.subr.bf16.mxu0 %v642_v23  ;;  %v333_v60 = vcombine.low %v325_v53, %v332_v56  ;;  %v651_v5 = vld [vmem:[%s877_s3 + $0xd4] ss:$8 sps:$4 sm:$0xff]   ;;  %v653_v6 = vld [vmem:[%s877_s3 + $0xd0] ss:$8 sps:$4 sm:$0xff]   ;;  %v657_v7 = vld [vmem:[%s877_s3 + $0xe4] ss:$8 sps:$4 sm:$0xff]  }
  0x13   :  { %281 = vmatpush1.bf16.msra.mxu1 %v608_v14  ;;  %v95_v62 = vcombine.high %v86_v57, %v93_v58  ;;  %v659_v8 = vld [vmem:[%s877_s3 + $0xe0] ss:$8 sps:$4 sm:$0xff]   ;;  %v663_v9 = vld [vmem:[%s877_s3 + $0xf4] ss:$8 sps:$4 sm:$0xff]   ;;  %v94_v10 = vcombine.low %v86_v57, %v93_v58  ;;  %v665_v11 = vld [vmem:[%s877_s3 + $0xf0] ss:$8 sps:$4 sm:$0xff]  }
  0x14   :  { %282 = vmatprep.subr.bf16.mxu1 %v609_v15  ;;  %v340_v0 = vrot.slane %v333_v60, %v789_v38 }
  0x15   :  { %431 = vmatpush1.bf16.msra.mxu0 %v644_v28  ;;  %v109_v1 = vrot.slane %v95_v62, %v789_v38  ;;  %v102_v12 = vrot.slane %v94_v10, %v789_v38 }
  0x16   :  { %432 = vmatprep.subr.bf16.mxu0 %v648_v30 }
  0x17   :  { %283 = vmatpush1.bf16.msra.mxu1 %v611_v18  ;;  %304 = vmatprep.mubr.bf16.mxu1 %v109_v1 }
  0x18   :  { %284 = vmatprep.subr.bf16.mxu1 %v612_v20 }
  0x19   :  { %433 = vmatpush1.bf16.msra.mxu0 %v650_v35 }
  0x1a   :  { %434 = vmatprep.subr.bf16.mxu0 %v654_v37 }
  0x1b   :  { %285 = vmatpush1.bf16.msra.mxu1 %v614_v22 }
  0x1c   :  { %286 = vmatprep.subr.bf16.mxu1 %v615_v27 }
  0x1d   :  { %435 = vmatpush1.bf16.msra.mxu0 %v656_v46 }
  0x1e   :  { %436 = vmatprep.subr.bf16.mxu0 %v660_v52 }
  0x1f   :  { %287 = vmatpush1.bf16.msra.mxu1 %v617_v29 }
  0x20   :  { %288 = vmatprep.subr.bf16.mxu1 %v621_v33 }
  0x21   :  { %437 = vmatpush1.bf16.msra.mxu0 %v662_v59 }
  0x23   :  { %289 = vmatpush1.bf16.msra.mxu1 %v623_v34 }
  0x24   :  { %290 = vmatprep.subr.bf16.mxu1 %v627_v36  ;;  %455 = vmatmul.mubr.bf16.vlgmr.msra.gmra.mrb[0].mxu0 %v340_v0 }
  0x27   :  { %291 = vmatpush1.bf16.msra.mxu1 %v629_v51 }
  0x28   :  { %292 = vmatprep.subr.bf16.mxu1 %v633_v55 }
  0x2b   :  { %293 = vmatpush1.bf16.msra.mxu1 %v635_v61 }
  0x2c   :  { %294 = vmatprep.subr.bf16.mxu1 %v639_v63 }
  0x2f   :  { %295 = vmatpush1.bf16.msra.mxu1 %v641_v2 }
  0x30   :  { %296 = vmatprep.subr.bf16.mxu1 %v645_v3 }
  0x33   :  { %297 = vmatpush1.bf16.msra.mxu1 %v647_v4 }
  0x34   :  { %298 = vmatprep.subr.bf16.mxu1 %v651_v5 }
  0x37   :  { %299 = vmatpush1.bf16.msra.mxu1 %v653_v6 }
  0x38   :  { %300 = vmatprep.subr.bf16.mxu1 %v657_v7 }
  0x3b   :  { %301 = vmatpush1.bf16.msra.mxu1 %v659_v8 }
  0x3c   :  { %302 = vmatprep.subr.bf16.mxu1 %v663_v9 }
  0x3f   :  { %303 = vmatpush1.bf16.msra.mxu1 %v665_v11 }
  0x42   :  { %305 = vmatmul.mubr.bf16.vlgmr.msra.gmra.mrb[0].mxu1 %v102_v12 }
  0xf7   :  { %v456_v13 = vpop.f32.mrb[0].mxu0 }
  0xf8   :  { %v458_v14 = vpop.f32.mrb[1].mxu0 }
  0xf9   :  { %v460_v15 = vpop.f32.mrb[2].mxu0 }
  0xfa   :  { %v461_v16 = vpop.f32.mrb[3].mxu0 }
 0x115   :  { %v306_v17 = vpop.f32.mrb[0].mxu1 }
 0x116   :  { %v457_v18 = vadd.f32 %v456_v13, %v306_v17  ;;  %v308_v19 = vpop.f32.mrb[1].mxu1 }
 0x117   :  { %v459_v20 = vadd.f32 %v458_v14, %v308_v19  ;;  %v310_v21 = vpop.f32.mrb[2].mxu1 }
 0x118   :  { %v311_v22 = vpop.f32.mrb[3].mxu1 }
 0x119   :  { %v587_v23 = vpack.c.bf16 %v459_v20, %v457_v18 }
 0x11b   :  { %v474_v24 = vrot.slane %v587_v23, %v789_v38 }
 0x11d   :  { %588 = vst.sshfl [vmem:[#allocation2] sm:$0x5 pattern:$0x73625140] %v474_v24 }
 0x124   :  { %v517_v25 = vld [vmem:[#allocation2] sm:$0x3] }
 0x125   :  { %518 = vst [vmem:[%s878_s4] sm:$0x3] %v517_v25 }

// kernel: multi_wavelet_transform.26
= control target key start
LH: loop header
LB: loop body
LE: loop exit
PB: predicated region body
PF: predicated region fallthrough
CT: control target
= control target key end

     0   :  { %v600_v2 = vmov 0   ;;  %v601_v24 = vmov 1983009808   ;;  %v76_v26 = vlaneseq  ;;  %s783_s0 = inlined_call_operand.vmem [shape: bf16[4,128], index: 0, kind: input, shape index: {}]   ;;  %s784_s1 = inlined_call_operand.vmem [shape: bf16[4,256], index: 1, kind: input, shape index: {}]   ;;  %s785_s2 = inlined_call_operand.vmem [shape: bf16[128,256], index: 2, kind: input, shape index: {}]   ;;  %s786_s3 = inlined_call_operand.vmem [shape: bf16[256,256], index: 3, kind: input, shape index: {}]   ;;  %s787_s4 = inlined_call_operand.vmem [shape: bf16[4,256], index: 4, kind: output, shape index: {}]  }
   0x1   :  { %v526_v0 = vld [vmem:[%s786_s3 + $0x4] ss:$8 sps:$4 sm:$0xff]   ;;  %v528_v1 = vld [vmem:[%s786_s3] ss:$8 sps:$4 sm:$0xff]   ;;  %407 = vmatprep.mubr.bf16.mxu0 %v600_v2  ;;  %v529_v3 = vld [vmem:[%s786_s3 + $0x14] ss:$8 sps:$4 sm:$0xff]   ;;  %v74_v25 = vunpack.c.l.s4 %v601_v24 }
   0x2   :  { %243 = vmatprep.subr.bf16.mxu1 %v526_v0  ;;  %v531_v4 = vld [vmem:[%s786_s3 + $0x10] ss:$8 sps:$4 sm:$0xff]   ;;  %v532_v5 = vld [vmem:[%s786_s3 + $0x24] ss:$8 sps:$4 sm:$0xff]   ;;  %v534_v6 = vld [vmem:[%s786_s3 + $0x20] ss:$8 sps:$4 sm:$0xff]  }
   0x3   :  { %244 = vmatpush1.bf16.msra.mxu1 %v528_v1  ;;  %v535_v7 = vld [vmem:[%s786_s3 + $0x34] ss:$8 sps:$4 sm:$0xff]   ;;  %v537_v8 = vld [vmem:[%s786_s3 + $0x30] ss:$8 sps:$4 sm:$0xff]   ;;  %v550_v9 = vld [vmem:[%s785_s2 + $0x4] ss:$8 sps:$4 sm:$0xff]   ;;  %v75_v31 = vunpack.c.0.s8 %v74_v25 }
   0x4   :  { %245 = vmatprep.subr.bf16.mxu1 %v529_v3  ;;  %v552_v10 = vld [vmem:[%s785_s2] ss:$8 sps:$4 sm:$0xff]   ;;  %v538_v11 = vld [vmem:[%s786_s3 + $0x44] ss:$8 sps:$4 sm:$0xff]   ;;  %375 = vmatprep.subr.bf16.mxu0 %v550_v9  ;;  %v556_v12 = vld [vmem:[%s785_s2 + $0x14] ss:$8 sps:$4 sm:$0xff]  }
   0x5   :  { %376 = vmatpush1.bf16.msra.mxu0 %v552_v10  ;;  %v558_v13 = vld [vmem:[%s785_s2 + $0x10] ss:$8 sps:$4 sm:$0xff]   ;;  %v540_v14 = vld [vmem:[%s786_s3 + $0x40] ss:$8 sps:$4 sm:$0xff]   ;;  %v541_v15 = vld [vmem:[%s786_s3 + $0x54] ss:$8 sps:$4 sm:$0xff]  }
   0x6   :  { %377 = vmatprep.subr.bf16.mxu0 %v556_v12  ;;  %v562_v16 = vld [vmem:[%s785_s2 + $0x24] ss:$8 sps:$4 sm:$0xff]   ;;  %v564_v17 = vld [vmem:[%s785_s2 + $0x20] ss:$8 sps:$4 sm:$0xff]   ;;  %v543_v18 = vld [vmem:[%s786_s3 + $0x50] ss:$8 sps:$4 sm:$0xff]  }
   0x7   :  { %246 = vmatpush1.bf16.msra.mxu1 %v531_v4  ;;  %v568_v19 = vld [vmem:[%s785_s2 + $0x34] ss:$8 sps:$4 sm:$0xff]   ;;  %v544_v20 = vld [vmem:[%s786_s3 + $0x64] ss:$8 sps:$4 sm:$0xff]   ;;  %v570_v21 = vld [vmem:[%s785_s2 + $0x30] ss:$8 sps:$4 sm:$0xff]  }
   0x8   :  { %247 = vmatprep.subr.bf16.mxu1 %v532_v5  ;;  %v546_v22 = vld [vmem:[%s786_s3 + $0x60] ss:$8 sps:$4 sm:$0xff]   ;;  %v574_v23 = vld [vmem:[%s785_s2 + $0x44] ss:$8 sps:$4 sm:$0xff]   ;;  %v547_v27 = vld [vmem:[%s786_s3 + $0x74] ss:$8 sps:$4 sm:$0xff]  }
   0x9   :  { %378 = vmatpush1.bf16.msra.mxu0 %v558_v13  ;;  %v576_v28 = vld [vmem:[%s785_s2 + $0x40] ss:$8 sps:$4 sm:$0xff]   ;;  %v549_v29 = vld [vmem:[%s786_s3 + $0x70] ss:$8 sps:$4 sm:$0xff]   ;;  %v580_v30 = vld [vmem:[%s785_s2 + $0x54] ss:$8 sps:$4 sm:$0xff]  }
   0xa   :  { %379 = vmatprep.subr.bf16.mxu0 %v562_v16  ;;  %v77_v32 = vshrl.u32 %v76_v26, 7  ;;  %v553_v33 = vld [vmem:[%s786_s3 + $0x84] ss:$8 sps:$4 sm:$0xff]   ;;  %v582_v34 = vld [vmem:[%s785_s2 + $0x50] ss:$8 sps:$4 sm:$0xff]  }
   0xb   :  { %248 = vmatpush1.bf16.msra.mxu1 %v534_v6  ;;  %v555_v35 = vld [vmem:[%s786_s3 + $0x80] ss:$8 sps:$4 sm:$0xff]   ;;  %v586_v36 = vld [vmem:[%s785_s2 + $0x64] ss:$8 sps:$4 sm:$0xff]   ;;  %v559_v38 = vld [vmem:[%s786_s3 + $0x94] ss:$8 sps:$4 sm:$0xff]  }
   0xc   :  { %249 = vmatprep.subr.bf16.mxu1 %v535_v7  ;;  %v78_v37 = vsub.s32 %v75_v31, %v77_v32  ;;  %v599_v39 = vld.sshfl [vmem:[%s784_s1] sm:$0xff pattern:$0x76325410]  ;;  %v561_v43 = vld [vmem:[%s786_s3 + $0x90] ss:$8 sps:$4 sm:$0xff]  }
   0xd   :  { %380 = vmatpush1.bf16.msra.mxu0 %v564_v17  ;;  %v588_v40 = vld [vmem:[%s785_s2 + $0x60] ss:$8 sps:$4 sm:$0xff]   ;;  %v592_v44 = vld [vmem:[%s785_s2 + $0x74] ss:$8 sps:$4 sm:$0xff]   ;;  %v565_v45 = vld [vmem:[%s786_s3 + $0xa4] ss:$8 sps:$4 sm:$0xff]   ;;  %v80_v47 = vcombine.high %v599_v39, %v599_v39 }
   0xe   :  { %381 = vmatprep.subr.bf16.mxu0 %v568_v19  ;;  %v18_v41 = vld [vmem:[%s783_s0] sm:$0x3]  ;;  %v19_v42 = vld [vmem:[%s783_s0 + $0x2] sm:$0x3]  ;;  %v594_v48 = vld [vmem:[%s785_s2 + $0x70] ss:$8 sps:$4 sm:$0xff]  }
   0xf   :  { %250 = vmatpush1.bf16.msra.mxu1 %v537_v8  ;;  %v286_v46 = vcombine.low %v18_v41, %v19_v42  ;;  %v567_v49 = vld [vmem:[%s786_s3 + $0xa0] ss:$8 sps:$4 sm:$0xff]   ;;  %v571_v50 = vld [vmem:[%s786_s3 + $0xb4] ss:$8 sps:$4 sm:$0xff]   ;;  %275 = vmatprep.mubr.bf16.mxu1 %v80_v47  ;;  %v573_v52 = vld [vmem:[%s786_s3 + $0xb0] ss:$8 sps:$4 sm:$0xff]  }
  0x10   :  { %251 = vmatprep.subr.bf16.mxu1 %v538_v11  ;;  %v577_v53 = vld [vmem:[%s786_s3 + $0xc4] ss:$8 sps:$4 sm:$0xff]   ;;  %v579_v54 = vld [vmem:[%s786_s3 + $0xc0] ss:$8 sps:$4 sm:$0xff]   ;;  %v583_v55 = vld [vmem:[%s786_s3 + $0xd4] ss:$8 sps:$4 sm:$0xff]  }
  0x11   :  { %382 = vmatpush1.bf16.msra.mxu0 %v570_v21  ;;  %v293_v51 = vrot.slane %v286_v46, %v78_v37  ;;  %v585_v56 = vld [vmem:[%s786_s3 + $0xd0] ss:$8 sps:$4 sm:$0xff]   ;;  %v589_v57 = vld [vmem:[%s786_s3 + $0xe4] ss:$8 sps:$4 sm:$0xff]   ;;  %v591_v58 = vld [vmem:[%s786_s3 + $0xe0] ss:$8 sps:$4 sm:$0xff]  }
  0x12   :  { %383 = vmatprep.subr.bf16.mxu0 %v574_v23  ;;  %v595_v59 = vld [vmem:[%s786_s3 + $0xf4] ss:$8 sps:$4 sm:$0xff]   ;;  %v597_v60 = vld [vmem:[%s786_s3 + $0xf0] ss:$8 sps:$4 sm:$0xff]  }
  0x13   :  { %252 = vmatpush1.bf16.msra.mxu1 %v540_v14 }
  0x14   :  { %253 = vmatprep.subr.bf16.mxu1 %v541_v15 }
  0x15   :  { %384 = vmatpush1.bf16.msra.mxu0 %v576_v28 }
  0x16   :  { %385 = vmatprep.subr.bf16.mxu0 %v580_v30 }
  0x17   :  { %254 = vmatpush1.bf16.msra.mxu1 %v543_v18 }
  0x18   :  { %255 = vmatprep.subr.bf16.mxu1 %v544_v20 }
  0x19   :  { %386 = vmatpush1.bf16.msra.mxu0 %v582_v34 }
  0x1a   :  { %387 = vmatprep.subr.bf16.mxu0 %v586_v36 }
  0x1b   :  { %256 = vmatpush1.bf16.msra.mxu1 %v546_v22 }
  0x1c   :  { %257 = vmatprep.subr.bf16.mxu1 %v547_v27 }
  0x1d   :  { %388 = vmatpush1.bf16.msra.mxu0 %v588_v40 }
  0x1e   :  { %389 = vmatprep.subr.bf16.mxu0 %v592_v44 }
  0x1f   :  { %258 = vmatpush1.bf16.msra.mxu1 %v549_v29 }
  0x20   :  { %259 = vmatprep.subr.bf16.mxu1 %v553_v33 }
  0x21   :  { %390 = vmatpush1.bf16.msra.mxu0 %v594_v48 }
  0x23   :  { %260 = vmatpush1.bf16.msra.mxu1 %v555_v35 }
  0x24   :  { %261 = vmatprep.subr.bf16.mxu1 %v559_v38  ;;  %408 = vmatmul.mubr.bf16.vlgmr.msra.gmra.mrb[0].mxu0 %v293_v51 }
  0x27   :  { %262 = vmatpush1.bf16.msra.mxu1 %v561_v43 }
  0x28   :  { %263 = vmatprep.subr.bf16.mxu1 %v565_v45 }
  0x2b   :  { %264 = vmatpush1.bf16.msra.mxu1 %v567_v49 }
  0x2c   :  { %265 = vmatprep.subr.bf16.mxu1 %v571_v50 }
  0x2f   :  { %266 = vmatpush1.bf16.msra.mxu1 %v573_v52 }
  0x30   :  { %267 = vmatprep.subr.bf16.mxu1 %v577_v53 }
  0x33   :  { %268 = vmatpush1.bf16.msra.mxu1 %v579_v54 }
  0x34   :  { %269 = vmatprep.subr.bf16.mxu1 %v583_v55 }
  0x37   :  { %270 = vmatpush1.bf16.msra.mxu1 %v585_v56 }
  0x38   :  { %271 = vmatprep.subr.bf16.mxu1 %v589_v57 }
  0x3b   :  { %272 = vmatpush1.bf16.msra.mxu1 %v591_v58 }
  0x3c   :  { %273 = vmatprep.subr.bf16.mxu1 %v595_v59 }
  0x3f   :  { %274 = vmatpush1.bf16.msra.mxu1 %v597_v60 }
  0x42   :  { %276 = vmatmul.mubr.bf16.vlgmr.msra.gmra.mrb[0].mxu1 %v599_v39 }
  0xf7   :  { %v409_v61 = vpop.f32.mrb[0].mxu0 }
  0xf8   :  { %v411_v62 = vpop.f32.mrb[1].mxu0 }
  0xf9   :  { %v413_v63 = vpop.f32.mrb[2].mxu0 }
  0xfa   :  { %v414_v0 = vpop.f32.mrb[3].mxu0 }
 0x115   :  { %v277_v1 = vpop.f32.mrb[0].mxu1 }
 0x116   :  { %v410_v2 = vadd.f32 %v409_v61, %v277_v1  ;;  %v279_v3 = vpop.f32.mrb[1].mxu1 }
 0x117   :  { %v412_v4 = vadd.f32 %v411_v62, %v279_v3  ;;  %v281_v5 = vpop.f32.mrb[2].mxu1 }
 0x118   :  { %v282_v6 = vpop.f32.mrb[3].mxu1 }
 0x119   :  { %v520_v7 = vpack.c.bf16 %v412_v4, %v410_v2 }
 0x11b   :  { %521 = vst.sshfl [vmem:[#allocation2] sm:$0x33 pattern:$0x76325410] %v520_v7 }
 0x122   :  { %v450_v8 = vld [vmem:[#allocation2] sm:$0xf] }
 0x123   :  { %451 = vst [vmem:[%s787_s4] sm:$0xf] %v450_v8 }

// kernel: multi_wavelet_transform.21
= control target key start
LH: loop header
LB: loop body
LE: loop exit
PB: predicated region body
PF: predicated region fallthrough
CT: control target
= control target key end

     0   :  { %s1636_s18 = smov 0   ;;  %s1975_s0 = inlined_call_operand.vmem [shape: bf16[2,2,256], index: 0, kind: input, shape index: {}]   ;;  %s1976_s1 = inlined_call_operand.vmem [shape: f32[4,2], index: 1, kind: input, shape index: {}]   ;;  %s1977_s2 = inlined_call_operand.vmem [shape: f32[2,4], index: 2, kind: input, shape index: {}]   ;;  %s1978_s3 = inlined_call_operand.vmem [shape: bf16[16,256,256], index: 3, kind: input, shape index: {}]   ;;  %s1979_s4 = inlined_call_operand.vmem [shape: bf16[16,128,256], index: 4, kind: input, shape index: {}]   ;;  %s1980_s5 = inlined_call_operand.vmem [shape: bf16[2,2,256], index: 5, kind: output, shape index: {}]  }
   0x1 LB: > { %s1277_s19 = sadd.s32 4294967295, %s1600_s18   ;;  %p1281_p0 = scmp.ge.s32.totalorder %s1600_s18, 1  ;;  %s1600_s18 = sphi %s1636_s18, %s15_s18  }
   0x2   : > { %p186_p1 = scmp.lt.s32.totalorder %s1600_s18, 3 }
   0x4   : > { %p187_p2 = pnand %p1281_p0, %p186_p1 }
   0x5   : > { %p212_p3 = scmp.lt.s32.totalorder (!%p187_p2), %s1277_s19, 1  ;;  %v228_v0 = vlaneseq (!%p187_p2)  ;;  %v1602_v1 = vmov (!%p187_p2), 1983009808   ;;  %v1603_v3 = vmov (!%p187_p2), 0.0   ;;  %v1450_v4 = vld [vmem:[%s1978_s3 + $0x4] ss:$8 sps:$4 sm:$0xff] (!%p187_p2)  }
   0x6   : > { %190 = sbr.rel (%p187_p2) target bundleno = 744 (0x2e8), region = 40  ;;  %v226_v2 = vunpack.c.l.s4 (!%p187_p2), %v1602_v1  ;;  %306 = vmatprep.mubr.f32.mxu0 (!%p187_p2), %v1603_v3  ;;  %v1452_v6 = vld [vmem:[%s1978_s3] ss:$8 sps:$4 sm:$0xff] (!%p187_p2)   ;;  %507 = vmatprep.subr.bf16.mxu1 (!%p187_p2), %v1450_v4  ;;  %v1453_v8 = vld [vmem:[%s1978_s3 + $0x14] ss:$8 sps:$4 sm:$0xff] (!%p187_p2)   ;;  %vm237_vm0 = vcmask (!%p187_p2), 1041408  }
   0x7   : > { %v1650_v5 = vshrl.u32 (!%p187_p2), %v228_v0, 7  ;;  %508 = vmatpush1.bf16.msra.mxu1 (!%p187_p2), %v1452_v6  ;;  %v1455_v9 = vld [vmem:[%s1978_s3 + $0x10] ss:$8 sps:$4 sm:$0xff] (!%p187_p2)   ;;  %v1456_v11 = vld [vmem:[%s1978_s3 + $0x24] ss:$8 sps:$4 sm:$0xff] (!%p187_p2)   ;;  %vm233_vm1 = vcmask (!%p187_p2), 15360  }
   0x8   : > { %v227_v7 = vunpack.c.0.s8 (!%p187_p2), %v226_v2  ;;  %509 = vmatprep.subr.bf16.mxu1 (!%p187_p2), %v1453_v8  ;;  %v1458_v14 = vld [vmem:[%s1978_s3 + $0x20] ss:$8 sps:$4 sm:$0xff] (!%p187_p2)   ;;  %v1459_v16 = vld [vmem:[%s1978_s3 + $0x34] ss:$8 sps:$4 sm:$0xff] (!%p187_p2)   ;;  %v1461_v19 = vld [vmem:[%s1978_s3 + $0x30] ss:$8 sps:$4 sm:$0xff] (!%p187_p2)  }
   0x9   : > { %v222_v17 = vld [vmem:[%s1976_s1] sm:$0xf] (!%p187_p2)  ;;  %v1462_v20 = vld [vmem:[%s1978_s3 + $0x44] ss:$8 sps:$4 sm:$0xff] (!%p187_p2)   ;;  %v1482_v24 = vld [vmem:[%s1979_s4 + $0x14] ss:$8 sps:$4 sm:$0xff] (!%p187_p2)  }
   0xa   : > { %v230_v10 = vsub.s32 (!%p187_p2), %v227_v7, %v1650_v5  ;;  %v1474_v21 = vld [vmem:[%s1979_s4] ss:$8 sps:$4 sm:$0xff] (!%p187_p2)   ;;  %v1476_v22 = vld [vmem:[%s1979_s4 + $0x4] ss:$8 sps:$4 sm:$0xff] (!%p187_p2)   ;;  %v1480_v25 = vld [vmem:[%s1979_s4 + $0x10] ss:$8 sps:$4 sm:$0xff] (!%p187_p2)  }
   0xb   : > { %510 = vmatpush1.bf16.msra.mxu1 (!%p187_p2), %v1455_v9  ;;  %v1464_v23 = vld [vmem:[%s1978_s3 + $0x40] ss:$8 sps:$4 sm:$0xff] (!%p187_p2)   ;;  %v1465_v26 = vld [vmem:[%s1978_s3 + $0x54] ss:$8 sps:$4 sm:$0xff] (!%p187_p2)   ;;  %v1488_v27 = vld [vmem:[%s1979_s4 + $0x24] ss:$8 sps:$4 sm:$0xff] (!%p187_p2)  }
   0xc   : > { %511 = vmatprep.subr.bf16.mxu1 (!%p187_p2), %v1456_v11  ;;  %v1467_v28 = vld [vmem:[%s1978_s3 + $0x50] ss:$8 sps:$4 sm:$0xff] (!%p187_p2)   ;;  %v1468_v29 = vld [vmem:[%s1978_s3 + $0x64] ss:$8 sps:$4 sm:$0xff] (!%p187_p2)   ;;  %v1486_v30 = vld [vmem:[%s1979_s4 + $0x20] ss:$8 sps:$4 sm:$0xff] (!%p187_p2)  }
   0xd   : > { %s1982_s19 = smov (!%p212_p3, %s1277_s19), 1  ;;  %v1494_v31 = vld [vmem:[%s1979_s4 + $0x34] ss:$8 sps:$4 sm:$0xff]   ;;  %v1470_v32 = vld [vmem:[%s1978_s3 + $0x60] ss:$8 sps:$4 sm:$0xff]   ;;  %v1604_v61 = vmov 0  }
   0xe   : > { %s1282_s26 = sshll.u32 %s1982_s19, 1  ;;  %v1471_v33 = vld [vmem:[%s1978_s3 + $0x74] ss:$8 sps:$4 sm:$0xff]   ;;  %v1492_v34 = vld [vmem:[%s1979_s4 + $0x30] ss:$8 sps:$4 sm:$0xff]   ;;  %vm696_vm2 = vcmask 1040384  }
   0xf   : > { %s215_s6 = scalar_lea.vmem %s1975_s0, %s1282_s26  ;;  %512 = vmatpush1.bf16.msra.mxu1 %v1458_v14  ;;  %v1500_v35 = vld [vmem:[%s1979_s4 + $0x44] ss:$8 sps:$4 sm:$0xff]   ;;  %v1473_v36 = vld [vmem:[%s1978_s3 + $0x70] ss:$8 sps:$4 sm:$0xff]   ;;  %v1498_v38 = vld [vmem:[%s1979_s4 + $0x40] ss:$8 sps:$4 sm:$0xff]   ;;  %s219_s23 = scalar_lea.vmem %s1980_s5, %s1282_s26 }
  0x10   : > { %v221_v12 = vld [vmem:[%s215_s6] sm:$0x3]  ;;  %513 = vmatprep.subr.bf16.mxu1 %v1459_v16  ;;  %v1477_v37 = vld [vmem:[%s1978_s3 + $0x84] ss:$8 sps:$4 sm:$0xff]   ;;  %v1506_v39 = vld [vmem:[%s1979_s4 + $0x54] ss:$8 sps:$4 sm:$0xff]  }
  0x11   : > { %v223_v13 = vunpack.c.l.bf16 %v221_v12  ;;  %v1479_v40 = vld [vmem:[%s1978_s3 + $0x80] ss:$8 sps:$4 sm:$0xff]   ;;  %v1483_v41 = vld [vmem:[%s1978_s3 + $0x94] ss:$8 sps:$4 sm:$0xff]   ;;  %v1504_v42 = vld [vmem:[%s1979_s4 + $0x50] ss:$8 sps:$4 sm:$0xff]  }
  0x12   : > { %v1512_v43 = vld [vmem:[%s1979_s4 + $0x64] ss:$8 sps:$4 sm:$0xff]   ;;  %v1485_v44 = vld [vmem:[%s1978_s3 + $0x90] ss:$8 sps:$4 sm:$0xff]   ;;  %v1510_v45 = vld [vmem:[%s1979_s4 + $0x60] ss:$8 sps:$4 sm:$0xff]  }
  0x13   : > { %v231_v15 = vrot.slane %v223_v13, %v230_v10  ;;  %514 = vmatpush1.bf16.msra.mxu1 %v1461_v19  ;;  %v1489_v46 = vld [vmem:[%s1978_s3 + $0xa4] ss:$8 sps:$4 sm:$0xff]   ;;  %v1518_v47 = vld [vmem:[%s1979_s4 + $0x74] ss:$8 sps:$4 sm:$0xff]   ;;  %v1491_v48 = vld [vmem:[%s1978_s3 + $0xa0] ss:$8 sps:$4 sm:$0xff]  }
  0x14   : > { %515 = vmatprep.subr.bf16.mxu1 %v1462_v20  ;;  %v1516_v49 = vld [vmem:[%s1979_s4 + $0x70] ss:$8 sps:$4 sm:$0xff]   ;;  %v1495_v50 = vld [vmem:[%s1978_s3 + $0xb4] ss:$8 sps:$4 sm:$0xff]   ;;  %v1501_v52 = vld [vmem:[%s1978_s3 + $0xc4] ss:$8 sps:$4 sm:$0xff]  }
  0x15   : > { %v232_v18 = vcombine.high %v231_v15, %v231_v15  ;;  %v1497_v51 = vld [vmem:[%s1978_s3 + $0xb0] ss:$8 sps:$4 sm:$0xff]   ;;  %v1503_v53 = vld [vmem:[%s1978_s3 + $0xc0] ss:$8 sps:$4 sm:$0xff]   ;;  %v1507_v54 = vld [vmem:[%s1978_s3 + $0xd4] ss:$8 sps:$4 sm:$0xff]  }
  0x16   : > { %v1509_v55 = vld [vmem:[%s1978_s3 + $0xd0] ss:$8 sps:$4 sm:$0xff]   ;;  %v1513_v56 = vld [vmem:[%s1978_s3 + $0xe4] ss:$8 sps:$4 sm:$0xff]   ;;  %v1515_v57 = vld [vmem:[%s1978_s3 + $0xe0] ss:$8 sps:$4 sm:$0xff]  }
  0x17   : > { %1284 = vmatprep.subr.msk.mxu0 %vm237_vm0, %v232_v18  ;;  %516 = vmatpush1.bf16.msra.mxu1 %v1464_v23  ;;  %v1519_v58 = vld [vmem:[%s1978_s3 + $0xf4] ss:$8 sps:$4 sm:$0xff]   ;;  %v1521_v59 = vld [vmem:[%s1978_s3 + $0xf0] ss:$8 sps:$4 sm:$0xff]   ;;  %v1524_v60 = vld [vmem:[%s1978_s3 + $0x104] ss:$8 sps:$4 sm:$0xff]  }
  0x18   : > { %1285 = vmatpush1.msk.msra.mxu0 %vm237_vm0, %v231_v15  ;;  %517 = vmatprep.subr.bf16.mxu1 %v1465_v26  ;;  %v1527_v62 = vld [vmem:[%s1979_s4 + $0x84] ss:$8 sps:$4 sm:$0xff]   ;;  %v1522_v0 = vld [vmem:[%s1978_s3 + $0x100] ss:$8 sps:$4 sm:$0xff]   ;;  %v1530_v4 = vld [vmem:[%s1978_s3 + $0x114] ss:$8 sps:$4 sm:$0xff]  }
  0x19   : > { %1286 = vmatmul.mubr.msk.f32.vlgmr.msra.gmra.mrb[0].mxu0 %vm233_vm1, %v222_v17  ;;  %644 = vmatprep.subr.bf16.mxu0 %v1476_v22  ;;  %v1525_v7 = vld [vmem:[%s1979_s4 + $0x80] ss:$8 sps:$4 sm:$0xff]   ;;  %v1533_v8 = vld [vmem:[%s1979_s4 + $0x94] ss:$8 sps:$4 sm:$0xff]   ;;  %v1528_v10 = vld [vmem:[%s1978_s3 + $0x110] ss:$8 sps:$4 sm:$0xff]  }
  0x1a   : > { %645 = vmatpush1.bf16.msra.mxu0 %v1474_v21  ;;  %676 = vmatprep.mubr.bf16.mxu0 %v1604_v61  ;;  %v1536_v11 = vld [vmem:[%s1978_s3 + $0x124] ss:$8 sps:$4 sm:$0xff]   ;;  %v1531_v12 = vld [vmem:[%s1979_s4 + $0x90] ss:$8 sps:$4 sm:$0xff]   ;;  %v1534_v14 = vld [vmem:[%s1978_s3 + $0x120] ss:$8 sps:$4 sm:$0xff]  }
  0x1b   : > { %646 = vmatprep.subr.bf16.mxu0 %v1482_v24  ;;  %518 = vmatpush1.bf16.msra.mxu1 %v1467_v28  ;;  %v1539_v13 = vld [vmem:[%s1979_s4 + $0xa4] ss:$8 sps:$4 sm:$0xff]   ;;  %v1542_v15 = vld [vmem:[%s1978_s3 + $0x134] ss:$8 sps:$4 sm:$0xff]   ;;  %v1537_v16 = vld [vmem:[%s1979_s4 + $0xa0] ss:$8 sps:$4 sm:$0xff]  }
  0x1c   : > { %519 = vmatprep.subr.bf16.mxu1 %v1468_v29  ;;  %v1545_v17 = vld [vmem:[%s1979_s4 + $0xb4] ss:$8 sps:$4 sm:$0xff]   ;;  %v1540_v18 = vld [vmem:[%s1978_s3 + $0x130] ss:$8 sps:$4 sm:$0xff]   ;;  %v1548_v19 = vld [vmem:[%s1978_s3 + $0x144] ss:$8 sps:$4 sm:$0xff]  }
  0x1d   : > { %v1543_v20 = vld [vmem:[%s1979_s4 + $0xb0] ss:$8 sps:$4 sm:$0xff]   ;;  %v1551_v21 = vld [vmem:[%s1979_s4 + $0xc4] ss:$8 sps:$4 sm:$0xff]   ;;  %v1546_v22 = vld [vmem:[%s1978_s3 + $0x140] ss:$8 sps:$4 sm:$0xff]  }
  0x1e   : > { %647 = vmatpush1.bf16.msra.mxu0 %v1480_v25  ;;  %v1554_v23 = vld [vmem:[%s1978_s3 + $0x154] ss:$8 sps:$4 sm:$0xff]   ;;  %v1549_v24 = vld [vmem:[%s1979_s4 + $0xc0] ss:$8 sps:$4 sm:$0xff]   ;;  %v1552_v26 = vld [vmem:[%s1978_s3 + $0x150] ss:$8 sps:$4 sm:$0xff]  }
  0x1f   : > { %648 = vmatprep.subr.bf16.mxu0 %v1488_v27  ;;  %520 = vmatpush1.bf16.msra.mxu1 %v1470_v32  ;;  %v1557_v25 = vld [vmem:[%s1979_s4 + $0xd4] ss:$8 sps:$4 sm:$0xff]   ;;  %v1560_v27 = vld [vmem:[%s1978_s3 + $0x164] ss:$8 sps:$4 sm:$0xff]   ;;  %v1555_v28 = vld [vmem:[%s1979_s4 + $0xd0] ss:$8 sps:$4 sm:$0xff]  }
  0x20   : > { %521 = vmatprep.subr.bf16.mxu1 %v1471_v33  ;;  %v1563_v29 = vld [vmem:[%s1979_s4 + $0xe4] ss:$8 sps:$4 sm:$0xff]   ;;  %v1561_v32 = vld [vmem:[%s1979_s4 + $0xe0] ss:$8 sps:$4 sm:$0xff]   ;;  %v1569_v33 = vld [vmem:[%s1979_s4 + $0xf4] ss:$8 sps:$4 sm:$0xff]  }
  0x21   : > { %vm1125_vm3 = vcmask 1043456   ;;  %vm1121_vm4 = vcmask 31744  }
  0x22   : > { %649 = vmatpush1.bf16.msra.mxu0 %v1486_v30  ;;  %v1558_v30 = vld [vmem:[%s1978_s3 + $0x160] ss:$8 sps:$4 sm:$0xff]  }
  0x23   : > { %650 = vmatprep.subr.bf16.mxu0 %v1494_v31  ;;  %522 = vmatpush1.bf16.msra.mxu1 %v1473_v36  ;;  %v1566_v31 = vld [vmem:[%s1978_s3 + $0x174] ss:$8 sps:$4 sm:$0xff]   ;;  %v1567_v36 = vld [vmem:[%s1979_s4 + $0xf0] ss:$8 sps:$4 sm:$0xff]  }
  0x24   : > { %523 = vmatprep.subr.bf16.mxu1 %v1477_v37  ;;  %v1570_v37 = vld [vmem:[%s1978_s3 + $0x180] ss:$8 sps:$4 sm:$0xff]  }
  0x26   : > { %651 = vmatpush1.bf16.msra.mxu0 %v1492_v34  ;;  %v1564_v34 = vld [vmem:[%s1978_s3 + $0x170] ss:$8 sps:$4 sm:$0xff]  }
  0x27   : > { %652 = vmatprep.subr.bf16.mxu0 %v1500_v35  ;;  %524 = vmatpush1.bf16.msra.mxu1 %v1479_v40  ;;  %v1572_v35 = vld [vmem:[%s1978_s3 + $0x184] ss:$8 sps:$4 sm:$0xff]   ;;  %v1573_v40 = vld [vmem:[%s1978_s3 + $0x190] ss:$8 sps:$4 sm:$0xff]  }
  0x28   : > { %525 = vmatprep.subr.bf16.mxu1 %v1483_v41  ;;  %v1578_v41 = vld [vmem:[%s1978_s3 + $0x1a4] ss:$8 sps:$4 sm:$0xff]  }
  0x2a   : > { %653 = vmatpush1.bf16.msra.mxu0 %v1498_v38  ;;  %v1575_v38 = vld [vmem:[%s1978_s3 + $0x194] ss:$8 sps:$4 sm:$0xff]  }
  0x2b   : > { %654 = vmatprep.subr.bf16.mxu0 %v1506_v39  ;;  %526 = vmatpush1.bf16.msra.mxu1 %v1485_v44  ;;  %v1579_v44 = vld [vmem:[%s1978_s3 + $0x1b0] ss:$8 sps:$4 sm:$0xff]  }
  0x2c   : > { %527 = vmatprep.subr.bf16.mxu1 %v1489_v46  ;;  %v1587_v46 = vld [vmem:[%s1978_s3 + $0x1d4] ss:$8 sps:$4 sm:$0xff]  }
  0x2e   : > { %655 = vmatpush1.bf16.msra.mxu0 %v1504_v42  ;;  %v1576_v42 = vld [vmem:[%s1978_s3 + $0x1a0] ss:$8 sps:$4 sm:$0xff]  }
  0x2f   : > { %656 = vmatprep.subr.bf16.mxu0 %v1512_v43  ;;  %528 = vmatpush1.bf16.msra.mxu1 %v1491_v48  ;;  %v1581_v43 = vld [vmem:[%s1978_s3 + $0x1b4] ss:$8 sps:$4 sm:$0xff]   ;;  %v1590_v48 = vld [vmem:[%s1978_s3 + $0x1e4] ss:$8 sps:$4 sm:$0xff]  }
  0x30   : > { %529 = vmatprep.subr.bf16.mxu1 %v1495_v50  ;;  %v1593_v50 = vld [vmem:[%s1978_s3 + $0x1f4] ss:$8 sps:$4 sm:$0xff]  }
  0x32   : > { %657 = vmatpush1.bf16.msra.mxu0 %v1510_v45  ;;  %v1582_v45 = vld [vmem:[%s1978_s3 + $0x1c0] ss:$8 sps:$4 sm:$0xff]  }
  0x33   : > { %658 = vmatprep.subr.bf16.mxu0 %v1518_v47  ;;  %530 = vmatpush1.bf16.msra.mxu1 %v1497_v51  ;;  %v1585_v47 = vld [vmem:[%s1978_s3 + $0x1d0] ss:$8 sps:$4 sm:$0xff]  }
  0x34   : > { %531 = vmatprep.subr.bf16.mxu1 %v1501_v52  ;;  %v1591_v51 = vld [vmem:[%s1978_s3 + $0x1f0] ss:$8 sps:$4 sm:$0xff]  }
  0x36   : > { %659 = vmatpush1.bf16.msra.mxu0 %v1516_v49  ;;  %v1588_v49 = vld [vmem:[%s1978_s3 + $0x1e0] ss:$8 sps:$4 sm:$0xff]  }
  0x37   : > { %532 = vmatpush1.bf16.msra.mxu1 %v1503_v53  ;;  %909 = vmatprep.subr.bf16.mxu0 %v1524_v60 }
  0x38   : > { %533 = vmatprep.subr.bf16.mxu1 %v1507_v54 }
  0x3b   : > { %534 = vmatpush1.bf16.msra.mxu1 %v1509_v55 }
  0x3c   : > { %535 = vmatprep.subr.bf16.mxu1 %v1513_v56 }
  0x3f   : > { %536 = vmatpush1.bf16.msra.mxu1 %v1515_v57 }
  0x40   : > { %537 = vmatprep.subr.bf16.mxu1 %v1519_v58 }
  0x43   : > { %538 = vmatpush1.bf16.msra.mxu1 %v1521_v59 }
  0x44   : > { %1047 = vmatprep.subr.bf16.mxu1 %v1527_v62 }
  0xec   : > { %v308_v63 = vpop.f32.mrb[0].mxu0 }
  0xed   : > { %v1814_v1 = vpack.c.bf16 %v308_v63, %v308_v63  ;;  %v310_v2 = vpop.f32.mrb[1].mxu0 }
  0xee   : > { %v314_v6 = vpack.c.bf16 %v310_v2, %v310_v2 }
  0xef   : > { %677 = vmatmul.mubr.bf16.vlgmr.msra.gmra.mrb[4].mxu0 %v1814_v1  ;;  %v745_v39 = vrot.slane %v1814_v1, 1 }
  0xf0   : > { %v746_v9 = vrot.slane %v314_v6, 1  ;;  %910 = vmatpush1.bf16.msra.mxu0 %v1522_v0  ;;  %539 = vmatprep.mubr.bf16.mxu1 %v314_v6 }
  0xf1   : > { %540 = vmatmul.mubr.bf16.vlgmr.msra.gmra.mrb[0].mxu1 %v1814_v1  ;;  %911 = vmatprep.subr.bf16.mxu0 %v1530_v4 }
  0xf2   : > { %1048 = vmatpush1.bf16.msra.mxu1 %v1525_v7  ;;  %941 = vmatprep.mubr.bf16.mxu0 %v746_v9 }
  0xf3   : > { %1049 = vmatprep.subr.bf16.mxu1 %v1533_v8  ;;  %1079 = vmatprep.mubr.bf16.mxu1 %v1604_v61 }
  0xf4   : > { %912 = vmatpush1.bf16.msra.mxu0 %v1528_v10 }
  0xf5   : > { %913 = vmatprep.subr.bf16.mxu0 %v1536_v11 }
  0xf6   : > { %1050 = vmatpush1.bf16.msra.mxu1 %v1531_v12 }
  0xf7   : > { %1051 = vmatprep.subr.bf16.mxu1 %v1539_v13 }
  0xf8   : > { %914 = vmatpush1.bf16.msra.mxu0 %v1534_v14 }
  0xf9   : > { %915 = vmatprep.subr.bf16.mxu0 %v1542_v15 }
  0xfa   : > { %1052 = vmatpush1.bf16.msra.mxu1 %v1537_v16 }
  0xfb   : > { %1053 = vmatprep.subr.bf16.mxu1 %v1545_v17 }
  0xfc   : > { %916 = vmatpush1.bf16.msra.mxu0 %v1540_v18 }
  0xfd   : > { %917 = vmatprep.subr.bf16.mxu0 %v1548_v19 }
  0xfe   : > { %1054 = vmatpush1.bf16.msra.mxu1 %v1543_v20 }
  0xff   : > { %1055 = vmatprep.subr.bf16.mxu1 %v1551_v21 }
 0x100   : > { %918 = vmatpush1.bf16.msra.mxu0 %v1546_v22 }
 0x101   : > { %919 = vmatprep.subr.bf16.mxu0 %v1554_v23 }
 0x102   : > { %1056 = vmatpush1.bf16.msra.mxu1 %v1549_v24 }
 0x103   : > { %1057 = vmatprep.subr.bf16.mxu1 %v1557_v25 }
 0x104   : > { %920 = vmatpush1.bf16.msra.mxu0 %v1552_v26 }
 0x105   : > { %921 = vmatprep.subr.bf16.mxu0 %v1560_v27 }
 0x106   : > { %1058 = vmatpush1.bf16.msra.mxu1 %v1555_v28 }
 0x107   : > { %1059 = vmatprep.subr.bf16.mxu1 %v1563_v29 }
 0x108   : > { %922 = vmatpush1.bf16.msra.mxu0 %v1558_v30 }
 0x109   : > { %923 = vmatprep.subr.bf16.mxu0 %v1566_v31 }
 0x10a   : > { %1060 = vmatpush1.bf16.msra.mxu1 %v1561_v32 }
 0x10b   : > { %1061 = vmatprep.subr.bf16.mxu1 %v1569_v33  ;;  %v1120_v33 = vld [vmem:[%s1977_s2] sm:$0x3] }
 0x10c   : > { %924 = vmatpush1.bf16.msra.mxu0 %v1564_v34 }
 0x10d   : > { %925 = vmatprep.subr.bf16.mxu0 %v1572_v35  ;;  %v1605_v35 = vmov 1966171168  }
 0x10e   : > { %1062 = vmatpush1.bf16.msra.mxu1 %v1567_v36  ;;  %v1209_v36 = vunpack.c.l.s4 %v1605_v35 }
 0x110   : > { %926 = vmatpush1.bf16.msra.mxu0 %v1570_v37  ;;  %v1210_v37 = vunpack.c.0.s8 %v1209_v36 }
 0x111   : > { %1080 = vmatmul.mubr.bf16.vlgmr.msra.gmra.mrb[4].mxu1 %v745_v39  ;;  %927 = vmatprep.subr.bf16.mxu0 %v1575_v38 }
 0x112   : > { %1196 = vmatprep.mubr.f32.mxu1 %v1603_v3  ;;  %v1584_v3 = vld [vmem:[%s1978_s3 + $0x1c4] ss:$8 sps:$4 sm:$0xff]  }
 0x114   : > { %928 = vmatpush1.bf16.msra.mxu0 %v1573_v40 }
 0x115   : > { %929 = vmatprep.subr.bf16.mxu0 %v1578_v41 }
 0x118   : > { %930 = vmatpush1.bf16.msra.mxu0 %v1576_v42 }
 0x119   : > { %931 = vmatprep.subr.bf16.mxu0 %v1581_v43 }
 0x11c   : > { %932 = vmatpush1.bf16.msra.mxu0 %v1579_v44 }
 0x11d   : > { %933 = vmatprep.subr.bf16.mxu0 %v1584_v3 }
 0x120   : > { %934 = vmatpush1.bf16.msra.mxu0 %v1582_v45 }
 0x121   : > { %935 = vmatprep.subr.bf16.mxu0 %v1587_v46 }
 0x124   : > { %936 = vmatpush1.bf16.msra.mxu0 %v1585_v47 }
 0x125   : > { %937 = vmatprep.subr.bf16.mxu0 %v1590_v48 }
 0x128   : > { %938 = vmatpush1.bf16.msra.mxu0 %v1588_v49 }
 0x129   : > { %939 = vmatprep.subr.bf16.mxu0 %v1593_v50 }
 0x12c   : > { %940 = vmatpush1.bf16.msra.mxu0 %v1591_v51 }
 0x12f   : > { %942 = vmatmul.mubr.bf16.vlgmr.msra.gmra.mrb[8].mxu0 %v745_v39  ;;  %v1213_v39 = vsub.s32 %v1210_v37, %v1650_v5 }
 0x1c2   : > { %v678_v52 = vpop.f32.mrb[4].mxu0 }
 0x1c3   : > { %v703_v53 = vrot.slane %v678_v52, 1  ;;  %v680_v54 = vpop.f32.mrb[5].mxu0 }
 0x1c4   : > { %v699_v55 = vrot.slane %v680_v54, 1  ;;  %v541_v56 = vpop.f32.mrb[0].mxu1  ;;  %v682_v57 = vpop.f32.mrb[6].mxu0 }
 0x1c5   : > { %v705_v58 = vadd.f32 %v703_v53, %v680_v54  ;;  %v690_v59 = vrot.slane %v541_v56, 1  ;;  %v543_v60 = vpop.f32.mrb[1].mxu1  ;;  %v683_v61 = vpop.f32.mrb[7].mxu0 }
 0x1c6   : > { %v701_v62 = vsub.f32 %v678_v52, %v699_v55  ;;  %v686_v63 = vrot.slane %v543_v60, 1  ;;  %v545_v0 = vpop.f32.mrb[2].mxu1 }
 0x1c7   : > { %v707_v1 = vrot.slane %v705_v58, 7  ;;  %v692_v2 = vadd.f32 %v690_v59, %v543_v60  ;;  %v546_v4 = vpop.f32.mrb[3].mxu1 }
 0x1c8   : > { %v688_v6 = vsub.f32 %v541_v56, %v686_v63 }
 0x1c9   : > { %v694_v7 = vrot.slane %v692_v2, 7  ;;  %v709_v8 = vsel %vm696_vm2, %v701_v62, %v707_v1 }
 0x1cb   : > { %v697_v9 = vsel %vm696_vm2, %v688_v6, %v694_v7 }
 0x1e4   : > { %v1081_v10 = vpop.f32.mrb[4].mxu1 }
 0x1e5   : > { %v1105_v11 = vrot.slane %v1081_v10, 1  ;;  %v1083_v12 = vpop.f32.mrb[5].mxu1 }
 0x1e6   : > { %v1101_v13 = vrot.slane %v1083_v12, 1  ;;  %v1085_v14 = vpop.f32.mrb[6].mxu1 }
 0x1e7   : > { %v1107_v15 = vadd.f32 %v1105_v11, %v1083_v12  ;;  %v1086_v16 = vpop.f32.mrb[7].mxu1 }
 0x1e8   : > { %v1103_v17 = vsub.f32 %v1081_v10, %v1101_v13 }
 0x1e9   : > { %v1109_v18 = vrot.slane %v1107_v15, 7 }
 0x1eb   : > { %v1111_v19 = vsel %vm696_vm2, %v1103_v17, %v1109_v18 }
 0x1ec   : > { %v1115_v20 = vrot.slane %v1111_v19, 6 }
 0x1ee   : > { %v1119_v21 = vsel %vm237_vm0, %v709_v8, %v1115_v20 }
 0x1ef   : > { %1431 = vmatprep.subr.msk.mxu1 %vm1125_vm3, %v1119_v21 }
 0x202   : > { %v943_v22 = vpop.f32.mrb[8].mxu0 }
 0x203   : > { %v1093_v23 = vrot.slane %v943_v22, 1  ;;  %v945_v24 = vpop.f32.mrb[9].mxu0 }
 0x204   : > { %v1089_v25 = vrot.slane %v945_v24, 1  ;;  %v947_v26 = vpop.f32.mrb[10].mxu0 }
 0x205   : > { %v1095_v27 = vadd.f32 %v1093_v23, %v945_v24  ;;  %v948_v28 = vpop.f32.mrb[11].mxu0 }
 0x206   : > { %v1091_v29 = vsub.f32 %v943_v22, %v1089_v25 }
 0x207   : > { %v1097_v30 = vrot.slane %v1095_v27, 7 }
 0x209   : > { %v1099_v31 = vsel %vm696_vm2, %v1091_v29, %v1097_v30 }
 0x20a   : > { %v1114_v32 = vrot.slane %v1099_v31, 6 }
 0x20c   : > { %v1118_v34 = vsel %vm237_vm0, %v697_v9, %v1114_v32 }
 0x20d   : > { %1432 = vmatpush1.msk.msra.mxu1 %vm1125_vm3, %v1118_v34 }
 0x20e   : > { %1433 = vmatmul.mubr.msk.f32.vlgmr.msra.gmra.mrb[8].mxu1 %vm1121_vm4, %v1120_v33 }
 0x2e1   : > { %v1198_v38 = vpop.f32.mrb[8].mxu1 }
 0x2e2   : > { %v1200_v40 = vpop.f32.mrb[9].mxu1 }
 0x2e3   : > { %v1434_v41 = vpack.c.bf16 %v1200_v40, %v1198_v38 }
 0x2e5   : > { %v1214_v42 = vrot.slane %v1434_v41, %v1213_v39 }
 0x2e7   : > { %1435 = vst.sshfl [vmem:[%s219_s23] sm:$0x5 pattern:$0x73625140] %v1214_v42 }
 0x2e8 PF: > { %s15_s18 = sadd.s32 1, %s1600_s18  }
 0x2e9   : > { %p12_p4 = scmp.ge.s32.totalorder %s15_s18, 4  }
 0x2eb   :  { %14 = sbr.rel (!%p12_p4) target bundleno = 1 (0x1), region = 72 }

// kernel: multi_wavelet_transform.27
= control target key start
LH: loop header
LB: loop body
LE: loop exit
PB: predicated region body
PF: predicated region fallthrough
CT: control target
= control target key end

     0   :  { %v539_v1 = vmov 0   ;;  %s718_s3 = inlined_call_operand.vmem [shape: bf16[256,256], index: 3, kind: input, shape index: {}]   ;;  %s719_s2 = inlined_call_operand.vmem [shape: bf16[128,256], index: 2, kind: input, shape index: {}]   ;;  %s720_s1 = inlined_call_operand.vmem [shape: bf16[8,256], index: 1, kind: input, shape index: {}]   ;;  %s721_s0 = inlined_call_operand.vmem [shape: bf16[8,128], index: 0, kind: input, shape index: {}]   ;;  %s722_s4 = inlined_call_operand.vmem [shape: bf16[8,256], index: 4, kind: output, shape index: {}]  }
   0x1   :  { %v465_v0 = vld [vmem:[%s718_s3 + $0x4] ss:$8 sps:$4 sm:$0xff]   ;;  %388 = vmatprep.mubr.bf16.mxu0 %v539_v1  ;;  %v467_v2 = vld [vmem:[%s718_s3] ss:$8 sps:$4 sm:$0xff]   ;;  %v468_v3 = vld [vmem:[%s718_s3 + $0x14] ss:$8 sps:$4 sm:$0xff]  }
   0x2   :  { %235 = vmatprep.subr.bf16.mxu1 %v465_v0  ;;  %v470_v4 = vld [vmem:[%s718_s3 + $0x10] ss:$8 sps:$4 sm:$0xff]   ;;  %v471_v5 = vld [vmem:[%s718_s3 + $0x24] ss:$8 sps:$4 sm:$0xff]   ;;  %v473_v6 = vld [vmem:[%s718_s3 + $0x20] ss:$8 sps:$4 sm:$0xff]  }
   0x3   :  { %236 = vmatpush1.bf16.msra.mxu1 %v467_v2  ;;  %v474_v7 = vld [vmem:[%s718_s3 + $0x34] ss:$8 sps:$4 sm:$0xff]   ;;  %v476_v8 = vld [vmem:[%s718_s3 + $0x30] ss:$8 sps:$4 sm:$0xff]   ;;  %v489_v9 = vld [vmem:[%s719_s2 + $0x4] ss:$8 sps:$4 sm:$0xff]  }
   0x4   :  { %237 = vmatprep.subr.bf16.mxu1 %v468_v3  ;;  %v491_v10 = vld [vmem:[%s719_s2] ss:$8 sps:$4 sm:$0xff]   ;;  %v477_v11 = vld [vmem:[%s718_s3 + $0x44] ss:$8 sps:$4 sm:$0xff]   ;;  %356 = vmatprep.subr.bf16.mxu0 %v489_v9  ;;  %v495_v12 = vld [vmem:[%s719_s2 + $0x14] ss:$8 sps:$4 sm:$0xff]  }
   0x5   :  { %357 = vmatpush1.bf16.msra.mxu0 %v491_v10  ;;  %v497_v13 = vld [vmem:[%s719_s2 + $0x10] ss:$8 sps:$4 sm:$0xff]   ;;  %v479_v14 = vld [vmem:[%s718_s3 + $0x40] ss:$8 sps:$4 sm:$0xff]   ;;  %v480_v15 = vld [vmem:[%s718_s3 + $0x54] ss:$8 sps:$4 sm:$0xff]  }
   0x6   :  { %358 = vmatprep.subr.bf16.mxu0 %v495_v12  ;;  %v501_v16 = vld [vmem:[%s719_s2 + $0x24] ss:$8 sps:$4 sm:$0xff]   ;;  %v503_v17 = vld [vmem:[%s719_s2 + $0x20] ss:$8 sps:$4 sm:$0xff]   ;;  %v482_v18 = vld [vmem:[%s718_s3 + $0x50] ss:$8 sps:$4 sm:$0xff]  }
   0x7   :  { %238 = vmatpush1.bf16.msra.mxu1 %v470_v4  ;;  %v507_v19 = vld [vmem:[%s719_s2 + $0x34] ss:$8 sps:$4 sm:$0xff]   ;;  %v483_v20 = vld [vmem:[%s718_s3 + $0x64] ss:$8 sps:$4 sm:$0xff]   ;;  %v509_v21 = vld [vmem:[%s719_s2 + $0x30] ss:$8 sps:$4 sm:$0xff]  }
   0x8   :  { %239 = vmatprep.subr.bf16.mxu1 %v471_v5  ;;  %v485_v22 = vld [vmem:[%s718_s3 + $0x60] ss:$8 sps:$4 sm:$0xff]   ;;  %v513_v23 = vld [vmem:[%s719_s2 + $0x44] ss:$8 sps:$4 sm:$0xff]   ;;  %v486_v24 = vld [vmem:[%s718_s3 + $0x74] ss:$8 sps:$4 sm:$0xff]  }
   0x9   :  { %359 = vmatpush1.bf16.msra.mxu0 %v497_v13  ;;  %v515_v25 = vld [vmem:[%s719_s2 + $0x40] ss:$8 sps:$4 sm:$0xff]   ;;  %v488_v26 = vld [vmem:[%s718_s3 + $0x70] ss:$8 sps:$4 sm:$0xff]   ;;  %v519_v27 = vld [vmem:[%s719_s2 + $0x54] ss:$8 sps:$4 sm:$0xff]  }
   0xa   :  { %360 = vmatprep.subr.bf16.mxu0 %v501_v16  ;;  %v492_v28 = vld [vmem:[%s718_s3 + $0x84] ss:$8 sps:$4 sm:$0xff]   ;;  %v521_v29 = vld [vmem:[%s719_s2 + $0x50] ss:$8 sps:$4 sm:$0xff]   ;;  %v494_v30 = vld [vmem:[%s718_s3 + $0x80] ss:$8 sps:$4 sm:$0xff]  }
   0xb   :  { %240 = vmatpush1.bf16.msra.mxu1 %v473_v6  ;;  %v525_v31 = vld [vmem:[%s719_s2 + $0x64] ss:$8 sps:$4 sm:$0xff]   ;;  %v498_v32 = vld [vmem:[%s718_s3 + $0x94] ss:$8 sps:$4 sm:$0xff]   ;;  %v527_v35 = vld [vmem:[%s719_s2 + $0x60] ss:$8 sps:$4 sm:$0xff]  }
   0xc   :  { %241 = vmatprep.subr.bf16.mxu1 %v474_v7  ;;  %v35_v33 = vld [vmem:[%s720_s1] sm:$0xff]  ;;  %v500_v36 = vld [vmem:[%s718_s3 + $0x90] ss:$8 sps:$4 sm:$0xff]   ;;  %v531_v37 = vld [vmem:[%s719_s2 + $0x74] ss:$8 sps:$4 sm:$0xff]  }
   0xd   :  { %361 = vmatpush1.bf16.msra.mxu0 %v503_v17  ;;  %v411_v34 = vcombine.high %v35_v33, %v35_v33  ;;  %v504_v38 = vld [vmem:[%s718_s3 + $0xa4] ss:$8 sps:$4 sm:$0xff]   ;;  %v533_v39 = vld [vmem:[%s719_s2 + $0x70] ss:$8 sps:$4 sm:$0xff]   ;;  %v506_v40 = vld [vmem:[%s718_s3 + $0xa0] ss:$8 sps:$4 sm:$0xff]   ;;  %v410_v52 = vcombine.low %v35_v33, %v35_v33 }
   0xe   :  { %362 = vmatprep.subr.bf16.mxu0 %v507_v19  ;;  %v510_v41 = vld [vmem:[%s718_s3 + $0xb4] ss:$8 sps:$4 sm:$0xff]   ;;  %v18_v42 = vld [vmem:[%s721_s0] sm:$0xf]  ;;  %v512_v43 = vld [vmem:[%s718_s3 + $0xb0] ss:$8 sps:$4 sm:$0xff]  }
   0xf   :  { %242 = vmatpush1.bf16.msra.mxu1 %v476_v8  ;;  %267 = vmatprep.mubr.bf16.mxu1 %v411_v34  ;;  %v516_v44 = vld [vmem:[%s718_s3 + $0xc4] ss:$8 sps:$4 sm:$0xff]   ;;  %v518_v45 = vld [vmem:[%s718_s3 + $0xc0] ss:$8 sps:$4 sm:$0xff]   ;;  %v522_v46 = vld [vmem:[%s718_s3 + $0xd4] ss:$8 sps:$4 sm:$0xff]  }
  0x10   :  { %243 = vmatprep.subr.bf16.mxu1 %v477_v11  ;;  %v524_v47 = vld [vmem:[%s718_s3 + $0xd0] ss:$8 sps:$4 sm:$0xff]   ;;  %v528_v48 = vld [vmem:[%s718_s3 + $0xe4] ss:$8 sps:$4 sm:$0xff]   ;;  %v530_v49 = vld [vmem:[%s718_s3 + $0xe0] ss:$8 sps:$4 sm:$0xff]  }
  0x11   :  { %363 = vmatpush1.bf16.msra.mxu0 %v509_v21  ;;  %v534_v50 = vld [vmem:[%s718_s3 + $0xf4] ss:$8 sps:$4 sm:$0xff]   ;;  %v536_v51 = vld [vmem:[%s718_s3 + $0xf0] ss:$8 sps:$4 sm:$0xff]  }
  0x12   :  { %364 = vmatprep.subr.bf16.mxu0 %v513_v23 }
  0x13   :  { %244 = vmatpush1.bf16.msra.mxu1 %v479_v14 }
  0x14   :  { %245 = vmatprep.subr.bf16.mxu1 %v480_v15 }
  0x15   :  { %365 = vmatpush1.bf16.msra.mxu0 %v515_v25 }
  0x16   :  { %366 = vmatprep.subr.bf16.mxu0 %v519_v27 }
  0x17   :  { %246 = vmatpush1.bf16.msra.mxu1 %v482_v18 }
  0x18   :  { %247 = vmatprep.subr.bf16.mxu1 %v483_v20 }
  0x19   :  { %367 = vmatpush1.bf16.msra.mxu0 %v521_v29 }
  0x1a   :  { %368 = vmatprep.subr.bf16.mxu0 %v525_v31 }
  0x1b   :  { %248 = vmatpush1.bf16.msra.mxu1 %v485_v22 }
  0x1c   :  { %249 = vmatprep.subr.bf16.mxu1 %v486_v24 }
  0x1d   :  { %369 = vmatpush1.bf16.msra.mxu0 %v527_v35 }
  0x1e   :  { %370 = vmatprep.subr.bf16.mxu0 %v531_v37 }
  0x1f   :  { %250 = vmatpush1.bf16.msra.mxu1 %v488_v26 }
  0x20   :  { %251 = vmatprep.subr.bf16.mxu1 %v492_v28 }
  0x21   :  { %371 = vmatpush1.bf16.msra.mxu0 %v533_v39 }
  0x23   :  { %252 = vmatpush1.bf16.msra.mxu1 %v494_v30 }
  0x24   :  { %253 = vmatprep.subr.bf16.mxu1 %v498_v32  ;;  %389 = vmatmul.mubr.bf16.vlgmr.msra.gmra.mrb[0].mxu0 %v18_v42 }
  0x27   :  { %254 = vmatpush1.bf16.msra.mxu1 %v500_v36 }
  0x28   :  { %255 = vmatprep.subr.bf16.mxu1 %v504_v38 }
  0x2b   :  { %256 = vmatpush1.bf16.msra.mxu1 %v506_v40 }
  0x2c   :  { %257 = vmatprep.subr.bf16.mxu1 %v510_v41 }
  0x2f   :  { %258 = vmatpush1.bf16.msra.mxu1 %v512_v43 }
  0x30   :  { %259 = vmatprep.subr.bf16.mxu1 %v516_v44 }
  0x33   :  { %260 = vmatpush1.bf16.msra.mxu1 %v518_v45 }
  0x34   :  { %261 = vmatprep.subr.bf16.mxu1 %v522_v46 }
  0x37   :  { %262 = vmatpush1.bf16.msra.mxu1 %v524_v47 }
  0x38   :  { %263 = vmatprep.subr.bf16.mxu1 %v528_v48 }
  0x3b   :  { %264 = vmatpush1.bf16.msra.mxu1 %v530_v49 }
  0x3c   :  { %265 = vmatprep.subr.bf16.mxu1 %v534_v50 }
  0x3f   :  { %266 = vmatpush1.bf16.msra.mxu1 %v536_v51 }
  0x42   :  { %268 = vmatmul.mubr.bf16.vlgmr.msra.gmra.mrb[0].mxu1 %v410_v52 }
  0xf7   :  { %v390_v53 = vpop.f32.mrb[0].mxu0 }
  0xf8   :  { %v392_v54 = vpop.f32.mrb[1].mxu0 }
  0xf9   :  { %v394_v55 = vpop.f32.mrb[2].mxu0 }
  0xfa   :  { %v395_v56 = vpop.f32.mrb[3].mxu0 }
 0x115   :  { %v269_v57 = vpop.f32.mrb[0].mxu1 }
 0x116   :  { %v391_v58 = vadd.f32 %v390_v53, %v269_v57  ;;  %v271_v59 = vpop.f32.mrb[1].mxu1 }
 0x117   :  { %v393_v60 = vadd.f32 %v392_v54, %v271_v59  ;;  %v273_v61 = vpop.f32.mrb[2].mxu1 }
 0x118   :  { %v274_v62 = vpop.f32.mrb[3].mxu1 }
 0x119   :  { %v461_v63 = vpack.c.bf16 %v393_v60, %v391_v58 }
 0x11b   :  { %405 = vst [vmem:[%s722_s4] sm:$0xff] %v461_v63 }

// kernel: multi_wavelet_transform.19
= control target key start
LH: loop header
LB: loop body
LE: loop exit
PB: predicated region body
PF: predicated region fallthrough
CT: control target
= control target key end

     0   :  { %s2206_s18 = smov 0   ;;  %s2698_s0 = inlined_call_operand.vmem [shape: bf16[2,4,256], index: 0, kind: input, shape index: {}]   ;;  %s2699_s1 = inlined_call_operand.vmem [shape: f32[6,4], index: 1, kind: input, shape index: {}]   ;;  %s2700_s2 = inlined_call_operand.vmem [shape: f32[4,6], index: 2, kind: input, shape index: {}]   ;;  %s2701_s3 = inlined_call_operand.vmem [shape: bf16[16,256,256], index: 3, kind: input, shape index: {}]   ;;  %s2702_s4 = inlined_call_operand.vmem [shape: bf16[16,128,256], index: 4, kind: input, shape index: {}]   ;;  %s2703_s5 = inlined_call_operand.vmem [shape: bf16[2,4,256], index: 5, kind: output, shape index: {}]  }
   0x1 LB: > { %s1679_s19 = sadd.s32 4294967295, %s2172_s18   ;;  %p1683_p0 = scmp.ge.s32.totalorder %s2172_s18, 1  ;;  %s2172_s18 = sphi %s2206_s18, %s15_s18  }
   0x2   : > { %p187_p1 = scmp.lt.s32.totalorder %s2172_s18, 3 }
   0x4   : > { %p188_p2 = pnand %p1683_p0, %p187_p1 }
   0x5   : > { %p215_p3 = scmp.lt.s32.totalorder (!%p188_p2), %s1679_s19, 1  ;;  %v2174_v0 = vmov (!%p188_p2), 0.0   ;;  %v1950_v1 = vld [vmem:[%s2701_s3 + $0x4] ss:$8 sps:$4 sm:$0xff] (!%p188_p2)   ;;  %v1952_v2 = vld [vmem:[%s2701_s3] ss:$8 sps:$4 sm:$0xff] (!%p188_p2)  }
   0x6   : > { %191 = sbr.rel (%p188_p2) target bundleno = 774 (0x306), region = 40  ;;  %304 = vmatprep.mubr.f32.mxu0 (!%p188_p2), %v2174_v0  ;;  %505 = vmatprep.subr.bf16.mxu1 (!%p188_p2), %v1950_v1  ;;  %v1953_v3 = vld [vmem:[%s2701_s3 + $0x14] ss:$8 sps:$4 sm:$0xff] (!%p188_p2)   ;;  %v1955_v4 = vld [vmem:[%s2701_s3 + $0x10] ss:$8 sps:$4 sm:$0xff] (!%p188_p2)   ;;  %vm235_vm0 = vcmask (!%p188_p2), 1043456  }
   0x7   : > { %506 = vmatpush1.bf16.msra.mxu1 (!%p188_p2), %v1952_v2  ;;  %v1956_v5 = vld [vmem:[%s2701_s3 + $0x24] ss:$8 sps:$4 sm:$0xff] (!%p188_p2)   ;;  %v1958_v8 = vld [vmem:[%s2701_s3 + $0x20] ss:$8 sps:$4 sm:$0xff] (!%p188_p2)   ;;  %v1959_v10 = vld [vmem:[%s2701_s3 + $0x34] ss:$8 sps:$4 sm:$0xff] (!%p188_p2)  }
   0x8   : > { %507 = vmatprep.subr.bf16.mxu1 (!%p188_p2), %v1953_v3  ;;  %v227_v11 = vld [vmem:[%s2699_s1] sm:$0x3f] (!%p188_p2)  ;;  %vm231_vm1 = vcmask (!%p188_p2), 31744   ;;  %v1961_v12 = vld [vmem:[%s2701_s3 + $0x30] ss:$8 sps:$4 sm:$0xff] (!%p188_p2)   ;;  %v2175_v54 = vmov (!%p188_p2), 0  }
   0x9   : > { %v1962_v13 = vld [vmem:[%s2701_s3 + $0x44] ss:$8 sps:$4 sm:$0xff] (!%p188_p2)   ;;  %v1974_v14 = vld [vmem:[%s2702_s4] ss:$8 sps:$4 sm:$0xff] (!%p188_p2)   ;;  %v1982_v17 = vld [vmem:[%s2702_s4 + $0x14] ss:$8 sps:$4 sm:$0xff] (!%p188_p2)  }
   0xa   : > { %v1976_v15 = vld [vmem:[%s2702_s4 + $0x4] ss:$8 sps:$4 sm:$0xff] (!%p188_p2)   ;;  %v1964_v16 = vld [vmem:[%s2701_s3 + $0x40] ss:$8 sps:$4 sm:$0xff] (!%p188_p2)   ;;  %v1980_v18 = vld [vmem:[%s2702_s4 + $0x10] ss:$8 sps:$4 sm:$0xff] (!%p188_p2)  }
   0xb   : > { %508 = vmatpush1.bf16.msra.mxu1 (!%p188_p2), %v1955_v4  ;;  %v1965_v19 = vld [vmem:[%s2701_s3 + $0x54] ss:$8 sps:$4 sm:$0xff] (!%p188_p2)   ;;  %v1988_v20 = vld [vmem:[%s2702_s4 + $0x24] ss:$8 sps:$4 sm:$0xff] (!%p188_p2)   ;;  %v1967_v21 = vld [vmem:[%s2701_s3 + $0x50] ss:$8 sps:$4 sm:$0xff] (!%p188_p2)  }
   0xc   : > { %509 = vmatprep.subr.bf16.mxu1 (!%p188_p2), %v1956_v5  ;;  %v1968_v22 = vld [vmem:[%s2701_s3 + $0x64] ss:$8 sps:$4 sm:$0xff] (!%p188_p2)   ;;  %v1986_v23 = vld [vmem:[%s2702_s4 + $0x20] ss:$8 sps:$4 sm:$0xff] (!%p188_p2)   ;;  %v1994_v24 = vld [vmem:[%s2702_s4 + $0x34] ss:$8 sps:$4 sm:$0xff] (!%p188_p2)  }
   0xd   : > { %s2705_s19 = smov (!%p215_p3, %s1679_s19), 1  ;;  %v1970_v25 = vld [vmem:[%s2701_s3 + $0x60] ss:$8 sps:$4 sm:$0xff]   ;;  %v1971_v26 = vld [vmem:[%s2701_s3 + $0x74] ss:$8 sps:$4 sm:$0xff]   ;;  %vm694_vm2 = vcmask 1040384  }
   0xe   : > { %s1938_s26 = sshll.u32 %s2705_s19, 2  ;;  %v1992_v27 = vld [vmem:[%s2702_s4 + $0x30] ss:$8 sps:$4 sm:$0xff]   ;;  %v2000_v28 = vld [vmem:[%s2702_s4 + $0x44] ss:$8 sps:$4 sm:$0xff]   ;;  %vm1522_vm3 = vcmask 1041408  }
   0xf   : > { %s219_s6 = scalar_lea.vmem %s2698_s0, %s1938_s26  ;;  %510 = vmatpush1.bf16.msra.mxu1 %v1958_v8  ;;  %v1973_v29 = vld [vmem:[%s2701_s3 + $0x70] ss:$8 sps:$4 sm:$0xff]   ;;  %v1977_v30 = vld [vmem:[%s2701_s3 + $0x84] ss:$8 sps:$4 sm:$0xff]   ;;  %v1998_v31 = vld [vmem:[%s2702_s4 + $0x40] ss:$8 sps:$4 sm:$0xff]   ;;  %s224_s7 = scalar_lea.vmem %s2703_s5, %s1938_s26 }
  0x10   : > { %v226_v6 = vld [vmem:[%s219_s6] sm:$0xf]  ;;  %511 = vmatprep.subr.bf16.mxu1 %v1959_v10  ;;  %v2006_v32 = vld [vmem:[%s2702_s4 + $0x54] ss:$8 sps:$4 sm:$0xff]   ;;  %v2004_v35 = vld [vmem:[%s2702_s4 + $0x50] ss:$8 sps:$4 sm:$0xff]  }
  0x11   : > { %v228_v7 = vunpack.c.l.bf16 %v226_v6  ;;  %v1979_v33 = vld [vmem:[%s2701_s3 + $0x80] ss:$8 sps:$4 sm:$0xff]   ;;  %v1983_v34 = vld [vmem:[%s2701_s3 + $0x94] ss:$8 sps:$4 sm:$0xff]   ;;  %v2012_v36 = vld [vmem:[%s2702_s4 + $0x64] ss:$8 sps:$4 sm:$0xff]  }
  0x12   : > { %v1985_v37 = vld [vmem:[%s2701_s3 + $0x90] ss:$8 sps:$4 sm:$0xff]   ;;  %v2010_v38 = vld [vmem:[%s2702_s4 + $0x60] ss:$8 sps:$4 sm:$0xff]   ;;  %v1989_v39 = vld [vmem:[%s2701_s3 + $0xa4] ss:$8 sps:$4 sm:$0xff]  }
  0x13   : > { %v230_v9 = vcombine.high %v228_v7, %v228_v7  ;;  %512 = vmatpush1.bf16.msra.mxu1 %v1961_v12  ;;  %v2018_v40 = vld [vmem:[%s2702_s4 + $0x74] ss:$8 sps:$4 sm:$0xff]   ;;  %v1991_v41 = vld [vmem:[%s2701_s3 + $0xa0] ss:$8 sps:$4 sm:$0xff]   ;;  %v2016_v42 = vld [vmem:[%s2702_s4 + $0x70] ss:$8 sps:$4 sm:$0xff]  }
  0x14   : > { %513 = vmatprep.subr.bf16.mxu1 %v1962_v13  ;;  %v1995_v43 = vld [vmem:[%s2701_s3 + $0xb4] ss:$8 sps:$4 sm:$0xff]   ;;  %v1997_v44 = vld [vmem:[%s2701_s3 + $0xb0] ss:$8 sps:$4 sm:$0xff]   ;;  %v2001_v45 = vld [vmem:[%s2701_s3 + $0xc4] ss:$8 sps:$4 sm:$0xff]  }
  0x15   : > { %1688 = vmatprep.subr.msk.mxu0 %vm235_vm0, %v230_v9  ;;  %v2003_v46 = vld [vmem:[%s2701_s3 + $0xc0] ss:$8 sps:$4 sm:$0xff]   ;;  %v2007_v47 = vld [vmem:[%s2701_s3 + $0xd4] ss:$8 sps:$4 sm:$0xff]   ;;  %v2009_v48 = vld [vmem:[%s2701_s3 + $0xd0] ss:$8 sps:$4 sm:$0xff]  }
  0x16   : > { %1689 = vmatpush1.msk.msra.mxu0 %vm235_vm0, %v228_v7  ;;  %v2013_v49 = vld [vmem:[%s2701_s3 + $0xe4] ss:$8 sps:$4 sm:$0xff]   ;;  %v2015_v50 = vld [vmem:[%s2701_s3 + $0xe0] ss:$8 sps:$4 sm:$0xff]   ;;  %v2019_v51 = vld [vmem:[%s2701_s3 + $0xf4] ss:$8 sps:$4 sm:$0xff]  }
  0x17   : > { %1690 = vmatmul.mubr.msk.f32.vlgmr.msra.gmra.mrb[0].mxu0 %vm231_vm1, %v227_v11  ;;  %642 = vmatprep.subr.bf16.mxu0 %v1976_v15  ;;  %v2021_v52 = vld [vmem:[%s2701_s3 + $0xf0] ss:$8 sps:$4 sm:$0xff]   ;;  %v2024_v53 = vld [vmem:[%s2701_s3 + $0x104] ss:$8 sps:$4 sm:$0xff]   ;;  %v2022_v57 = vld [vmem:[%s2701_s3 + $0x100] ss:$8 sps:$4 sm:$0xff]  }
  0x18   : > { %643 = vmatpush1.bf16.msra.mxu0 %v1974_v14  ;;  %514 = vmatpush1.bf16.msra.mxu1 %v1964_v16  ;;  %v2027_v55 = vld [vmem:[%s2702_s4 + $0x84] ss:$8 sps:$4 sm:$0xff]   ;;  %v2030_v60 = vld [vmem:[%s2701_s3 + $0x114] ss:$8 sps:$4 sm:$0xff]   ;;  %v2025_v62 = vld [vmem:[%s2702_s4 + $0x80] ss:$8 sps:$4 sm:$0xff]  }
  0x19   : > { %644 = vmatprep.subr.bf16.mxu0 %v1982_v17  ;;  %515 = vmatprep.subr.bf16.mxu1 %v1965_v19  ;;  %v2033_v63 = vld [vmem:[%s2702_s4 + $0x94] ss:$8 sps:$4 sm:$0xff]   ;;  %v2028_v1 = vld [vmem:[%s2701_s3 + $0x110] ss:$8 sps:$4 sm:$0xff]   ;;  %v2036_v3 = vld [vmem:[%s2701_s3 + $0x124] ss:$8 sps:$4 sm:$0xff]  }
  0x1a   : > { %674 = vmatprep.mubr.bf16.mxu0 %v2175_v54  ;;  %v2031_v4 = vld [vmem:[%s2702_s4 + $0x90] ss:$8 sps:$4 sm:$0xff]   ;;  %v2039_v5 = vld [vmem:[%s2702_s4 + $0xa4] ss:$8 sps:$4 sm:$0xff]   ;;  %v2034_v6 = vld [vmem:[%s2701_s3 + $0x120] ss:$8 sps:$4 sm:$0xff]  }
  0x1b   : > { %v2042_v7 = vld [vmem:[%s2701_s3 + $0x134] ss:$8 sps:$4 sm:$0xff]   ;;  %v2037_v8 = vld [vmem:[%s2702_s4 + $0xa0] ss:$8 sps:$4 sm:$0xff]   ;;  %v2040_v10 = vld [vmem:[%s2701_s3 + $0x130] ss:$8 sps:$4 sm:$0xff]  }
  0x1c   : > { %645 = vmatpush1.bf16.msra.mxu0 %v1980_v18  ;;  %516 = vmatpush1.bf16.msra.mxu1 %v1967_v21  ;;  %v2045_v9 = vld [vmem:[%s2702_s4 + $0xb4] ss:$8 sps:$4 sm:$0xff]   ;;  %v2048_v11 = vld [vmem:[%s2701_s3 + $0x144] ss:$8 sps:$4 sm:$0xff]   ;;  %v2043_v12 = vld [vmem:[%s2702_s4 + $0xb0] ss:$8 sps:$4 sm:$0xff]  }
  0x1d   : > { %646 = vmatprep.subr.bf16.mxu0 %v1988_v20  ;;  %517 = vmatprep.subr.bf16.mxu1 %v1968_v22  ;;  %v2051_v13 = vld [vmem:[%s2702_s4 + $0xc4] ss:$8 sps:$4 sm:$0xff]   ;;  %v2046_v14 = vld [vmem:[%s2701_s3 + $0x140] ss:$8 sps:$4 sm:$0xff]   ;;  %v2054_v15 = vld [vmem:[%s2701_s3 + $0x154] ss:$8 sps:$4 sm:$0xff]  }
  0x1e   : > { %v2049_v16 = vld [vmem:[%s2702_s4 + $0xc0] ss:$8 sps:$4 sm:$0xff]   ;;  %v2057_v17 = vld [vmem:[%s2702_s4 + $0xd4] ss:$8 sps:$4 sm:$0xff]   ;;  %v2052_v18 = vld [vmem:[%s2701_s3 + $0x150] ss:$8 sps:$4 sm:$0xff]  }
  0x1f   : > { %v2060_v19 = vld [vmem:[%s2701_s3 + $0x164] ss:$8 sps:$4 sm:$0xff]   ;;  %v2055_v20 = vld [vmem:[%s2702_s4 + $0xd0] ss:$8 sps:$4 sm:$0xff]   ;;  %v2058_v22 = vld [vmem:[%s2701_s3 + $0x160] ss:$8 sps:$4 sm:$0xff]  }
  0x20   : > { %647 = vmatpush1.bf16.msra.mxu0 %v1986_v23  ;;  %518 = vmatpush1.bf16.msra.mxu1 %v1970_v25  ;;  %v2063_v21 = vld [vmem:[%s2702_s4 + $0xe4] ss:$8 sps:$4 sm:$0xff]   ;;  %v2066_v23 = vld [vmem:[%s2701_s3 + $0x174] ss:$8 sps:$4 sm:$0xff]   ;;  %vm1532_vm4 = vcmask 1045504   ;;  %vm1528_vm5 = vcmask 48128  }
  0x21   : > { %648 = vmatprep.subr.bf16.mxu0 %v1994_v24  ;;  %519 = vmatprep.subr.bf16.mxu1 %v1971_v26  ;;  %v2061_v24 = vld [vmem:[%s2702_s4 + $0xe0] ss:$8 sps:$4 sm:$0xff]   ;;  %v2069_v25 = vld [vmem:[%s2702_s4 + $0xf4] ss:$8 sps:$4 sm:$0xff]   ;;  %v2064_v26 = vld [vmem:[%s2701_s3 + $0x170] ss:$8 sps:$4 sm:$0xff]  }
  0x24   : > { %649 = vmatpush1.bf16.msra.mxu0 %v1992_v27  ;;  %520 = vmatpush1.bf16.msra.mxu1 %v1973_v29  ;;  %v2072_v27 = vld [vmem:[%s2701_s3 + $0x184] ss:$8 sps:$4 sm:$0xff]  }
  0x25   : > { %650 = vmatprep.subr.bf16.mxu0 %v2000_v28  ;;  %521 = vmatprep.subr.bf16.mxu1 %v1977_v30  ;;  %v2067_v28 = vld [vmem:[%s2702_s4 + $0xf0] ss:$8 sps:$4 sm:$0xff]   ;;  %v2075_v29 = vld [vmem:[%s2701_s3 + $0x204] ss:$8 sps:$4 sm:$0xff]   ;;  %v2070_v30 = vld [vmem:[%s2701_s3 + $0x180] ss:$8 sps:$4 sm:$0xff]  }
  0x28   : > { %651 = vmatpush1.bf16.msra.mxu0 %v1998_v31  ;;  %522 = vmatpush1.bf16.msra.mxu1 %v1979_v33  ;;  %v2078_v31 = vld [vmem:[%s2701_s3 + $0x194] ss:$8 sps:$4 sm:$0xff]  }
  0x29   : > { %652 = vmatprep.subr.bf16.mxu0 %v2006_v32  ;;  %523 = vmatprep.subr.bf16.mxu1 %v1983_v34  ;;  %v2073_v32 = vld [vmem:[%s2701_s3 + $0x200] ss:$8 sps:$4 sm:$0xff]   ;;  %v2081_v34 = vld [vmem:[%s2701_s3 + $0x214] ss:$8 sps:$4 sm:$0xff]  }
  0x2c   : > { %653 = vmatpush1.bf16.msra.mxu0 %v2004_v35  ;;  %524 = vmatpush1.bf16.msra.mxu1 %v1985_v37  ;;  %v2084_v37 = vld [vmem:[%s2701_s3 + $0x1a4] ss:$8 sps:$4 sm:$0xff]  }
  0x2d   : > { %654 = vmatprep.subr.bf16.mxu0 %v2012_v36  ;;  %525 = vmatprep.subr.bf16.mxu1 %v1989_v39  ;;  %v2076_v36 = vld [vmem:[%s2701_s3 + $0x190] ss:$8 sps:$4 sm:$0xff]   ;;  %v2087_v39 = vld [vmem:[%s2701_s3 + $0x224] ss:$8 sps:$4 sm:$0xff]  }
  0x30   : > { %655 = vmatpush1.bf16.msra.mxu0 %v2010_v38  ;;  %526 = vmatpush1.bf16.msra.mxu1 %v1991_v41  ;;  %v2079_v38 = vld [vmem:[%s2701_s3 + $0x210] ss:$8 sps:$4 sm:$0xff]   ;;  %v2090_v41 = vld [vmem:[%s2701_s3 + $0x1b4] ss:$8 sps:$4 sm:$0xff]  }
  0x31   : > { %656 = vmatprep.subr.bf16.mxu0 %v2018_v40  ;;  %527 = vmatprep.subr.bf16.mxu1 %v1995_v43  ;;  %v2082_v40 = vld [vmem:[%s2701_s3 + $0x1a0] ss:$8 sps:$4 sm:$0xff]   ;;  %v2093_v43 = vld [vmem:[%s2701_s3 + $0x234] ss:$8 sps:$4 sm:$0xff]  }
  0x34   : > { %657 = vmatpush1.bf16.msra.mxu0 %v2016_v42  ;;  %528 = vmatpush1.bf16.msra.mxu1 %v1997_v44  ;;  %v2085_v42 = vld [vmem:[%s2701_s3 + $0x220] ss:$8 sps:$4 sm:$0xff]   ;;  %v2088_v44 = vld [vmem:[%s2701_s3 + $0x1b0] ss:$8 sps:$4 sm:$0xff]  }
  0x35   : > { %529 = vmatprep.subr.bf16.mxu1 %v2001_v45  ;;  %907 = vmatprep.subr.bf16.mxu0 %v2024_v53  ;;  %v2096_v45 = vld [vmem:[%s2701_s3 + $0x1c4] ss:$8 sps:$4 sm:$0xff]  }
  0x36   : > { %v2108_v53 = vld [vmem:[%s2701_s3 + $0x1e4] ss:$8 sps:$4 sm:$0xff]  }
  0x38   : > { %530 = vmatpush1.bf16.msra.mxu1 %v2003_v46  ;;  %v2091_v46 = vld [vmem:[%s2701_s3 + $0x230] ss:$8 sps:$4 sm:$0xff]  }
  0x39   : > { %531 = vmatprep.subr.bf16.mxu1 %v2007_v47  ;;  %v2099_v47 = vld [vmem:[%s2701_s3 + $0x244] ss:$8 sps:$4 sm:$0xff]  }
  0x3c   : > { %532 = vmatpush1.bf16.msra.mxu1 %v2009_v48  ;;  %v2094_v48 = vld [vmem:[%s2701_s3 + $0x1c0] ss:$8 sps:$4 sm:$0xff]  }
  0x3d   : > { %533 = vmatprep.subr.bf16.mxu1 %v2013_v49  ;;  %v2102_v49 = vld [vmem:[%s2701_s3 + $0x1d4] ss:$8 sps:$4 sm:$0xff]  }
  0x40   : > { %534 = vmatpush1.bf16.msra.mxu1 %v2015_v50  ;;  %v2097_v50 = vld [vmem:[%s2701_s3 + $0x240] ss:$8 sps:$4 sm:$0xff]  }
  0x41   : > { %535 = vmatprep.subr.bf16.mxu1 %v2019_v51  ;;  %v2105_v51 = vld [vmem:[%s2701_s3 + $0x254] ss:$8 sps:$4 sm:$0xff]  }
  0x44   : > { %536 = vmatpush1.bf16.msra.mxu1 %v2021_v52  ;;  %v2100_v52 = vld [vmem:[%s2701_s3 + $0x1d0] ss:$8 sps:$4 sm:$0xff]  }
  0x45   : > { %1045 = vmatprep.subr.bf16.mxu1 %v2027_v55  ;;  %v2103_v55 = vld [vmem:[%s2701_s3 + $0x250] ss:$8 sps:$4 sm:$0xff]  }
  0xea   : > { %v306_v56 = vpop.f32.mrb[0].mxu0 }
  0xeb   : > { %v2382_v58 = vpack.c.bf16 %v306_v56, %v306_v56  ;;  %v308_v59 = vpop.f32.mrb[1].mxu0  ;;  %v2111_v56 = vld [vmem:[%s2701_s3 + $0x264] ss:$8 sps:$4 sm:$0xff]  }
  0xec   : > { %v2387_v61 = vpack.c.bf16 %v308_v59, %v308_v59  ;;  %v2114_v59 = vld [vmem:[%s2701_s3 + $0x1f4] ss:$8 sps:$4 sm:$0xff]  }
  0xed   : > { %675 = vmatmul.mubr.bf16.vlgmr.msra.gmra.mrb[4].mxu0 %v2382_v58  ;;  %v743_v33 = vrot.slane %v2382_v58, 1 }
  0xee   : > { %908 = vmatpush1.bf16.msra.mxu0 %v2022_v57  ;;  %537 = vmatprep.mubr.bf16.mxu1 %v2387_v61  ;;  %v744_v2 = vrot.slane %v2387_v61, 1  ;;  %v1144_v35 = vrot.slane %v2387_v61, 2  ;;  %v2106_v57 = vld [vmem:[%s2701_s3 + $0x1e0] ss:$8 sps:$4 sm:$0xff]   ;;  %v2117_v61 = vld [vmem:[%s2701_s3 + $0x274] ss:$8 sps:$4 sm:$0xff]  }
  0xef   : > { %538 = vmatmul.mubr.bf16.vlgmr.msra.gmra.mrb[0].mxu1 %v2382_v58  ;;  %909 = vmatprep.subr.bf16.mxu0 %v2030_v60  ;;  %v2109_v60 = vld [vmem:[%s2701_s3 + $0x260] ss:$8 sps:$4 sm:$0xff]  }
  0xf0   : > { %1046 = vmatpush1.bf16.msra.mxu1 %v2025_v62  ;;  %939 = vmatprep.mubr.bf16.mxu0 %v744_v2  ;;  %v2112_v62 = vld [vmem:[%s2701_s3 + $0x1f0] ss:$8 sps:$4 sm:$0xff]   ;;  %v2123_v2 = vld [vmem:[%s2701_s3 + $0x284] ss:$8 sps:$4 sm:$0xff]  }
  0xf1   : > { %1047 = vmatprep.subr.bf16.mxu1 %v2033_v63  ;;  %1077 = vmatprep.mubr.bf16.mxu1 %v2175_v54  ;;  %v2120_v63 = vld [vmem:[%s2702_s4 + $0x104] ss:$8 sps:$4 sm:$0xff]  }
  0xf2   : > { %910 = vmatpush1.bf16.msra.mxu0 %v2028_v1  ;;  %v2115_v1 = vld [vmem:[%s2701_s3 + $0x270] ss:$8 sps:$4 sm:$0xff]  }
  0xf3   : > { %911 = vmatprep.subr.bf16.mxu0 %v2036_v3  ;;  %v2118_v3 = vld [vmem:[%s2702_s4 + $0x100] ss:$8 sps:$4 sm:$0xff]  }
  0xf4   : > { %1048 = vmatpush1.bf16.msra.mxu1 %v2031_v4  ;;  %v2126_v4 = vld [vmem:[%s2702_s4 + $0x114] ss:$8 sps:$4 sm:$0xff]  }
  0xf5   : > { %1049 = vmatprep.subr.bf16.mxu1 %v2039_v5  ;;  %v2121_v5 = vld [vmem:[%s2701_s3 + $0x280] ss:$8 sps:$4 sm:$0xff]  }
  0xf6   : > { %912 = vmatpush1.bf16.msra.mxu0 %v2034_v6  ;;  %v2129_v6 = vld [vmem:[%s2701_s3 + $0x294] ss:$8 sps:$4 sm:$0xff]  }
  0xf7   : > { %913 = vmatprep.subr.bf16.mxu0 %v2042_v7  ;;  %v2124_v7 = vld [vmem:[%s2702_s4 + $0x110] ss:$8 sps:$4 sm:$0xff]  }
  0xf8   : > { %1050 = vmatpush1.bf16.msra.mxu1 %v2037_v8  ;;  %v2132_v8 = vld [vmem:[%s2702_s4 + $0x124] ss:$8 sps:$4 sm:$0xff]  }
  0xf9   : > { %1051 = vmatprep.subr.bf16.mxu1 %v2045_v9  ;;  %v2127_v9 = vld [vmem:[%s2701_s3 + $0x290] ss:$8 sps:$4 sm:$0xff]  }
  0xfa   : > { %914 = vmatpush1.bf16.msra.mxu0 %v2040_v10  ;;  %v2135_v10 = vld [vmem:[%s2701_s3 + $0x2a4] ss:$8 sps:$4 sm:$0xff]  }
  0xfb   : > { %915 = vmatprep.subr.bf16.mxu0 %v2048_v11  ;;  %v2138_v11 = vld [vmem:[%s2702_s4 + $0x134] ss:$8 sps:$4 sm:$0xff]  }
  0xfc   : > { %1052 = vmatpush1.bf16.msra.mxu1 %v2043_v12  ;;  %v2133_v12 = vld [vmem:[%s2701_s3 + $0x2a0] ss:$8 sps:$4 sm:$0xff]  }
  0xfd   : > { %1053 = vmatprep.subr.bf16.mxu1 %v2051_v13  ;;  %v2141_v13 = vld [vmem:[%s2701_s3 + $0x2b4] ss:$8 sps:$4 sm:$0xff]  }
  0xfe   : > { %916 = vmatpush1.bf16.msra.mxu0 %v2046_v14  ;;  %v2136_v14 = vld [vmem:[%s2702_s4 + $0x130] ss:$8 sps:$4 sm:$0xff]  }
  0xff   : > { %917 = vmatprep.subr.bf16.mxu0 %v2054_v15  ;;  %v2144_v15 = vld [vmem:[%s2702_s4 + $0x144] ss:$8 sps:$4 sm:$0xff]  }
 0x100   : > { %1054 = vmatpush1.bf16.msra.mxu1 %v2049_v16  ;;  %v2139_v16 = vld [vmem:[%s2701_s3 + $0x2b0] ss:$8 sps:$4 sm:$0xff]  }
 0x101   : > { %1055 = vmatprep.subr.bf16.mxu1 %v2057_v17  ;;  %v2147_v17 = vld [vmem:[%s2701_s3 + $0x2c4] ss:$8 sps:$4 sm:$0xff]  }
 0x102   : > { %918 = vmatpush1.bf16.msra.mxu0 %v2052_v18  ;;  %v2142_v18 = vld [vmem:[%s2702_s4 + $0x140] ss:$8 sps:$4 sm:$0xff]  }
 0x103   : > { %919 = vmatprep.subr.bf16.mxu0 %v2060_v19  ;;  %v2150_v19 = vld [vmem:[%s2702_s4 + $0x154] ss:$8 sps:$4 sm:$0xff]  }
 0x104   : > { %1056 = vmatpush1.bf16.msra.mxu1 %v2055_v20  ;;  %v2145_v20 = vld [vmem:[%s2701_s3 + $0x2c0] ss:$8 sps:$4 sm:$0xff]  }
 0x105   : > { %1057 = vmatprep.subr.bf16.mxu1 %v2063_v21  ;;  %v2153_v21 = vld [vmem:[%s2701_s3 + $0x2d4] ss:$8 sps:$4 sm:$0xff]  }
 0x106   : > { %920 = vmatpush1.bf16.msra.mxu0 %v2058_v22  ;;  %v2148_v22 = vld [vmem:[%s2702_s4 + $0x150] ss:$8 sps:$4 sm:$0xff]  }
 0x107   : > { %921 = vmatprep.subr.bf16.mxu0 %v2066_v23  ;;  %v2156_v23 = vld [vmem:[%s2702_s4 + $0x164] ss:$8 sps:$4 sm:$0xff]  }
 0x108   : > { %1058 = vmatpush1.bf16.msra.mxu1 %v2061_v24  ;;  %v2151_v24 = vld [vmem:[%s2701_s3 + $0x2d0] ss:$8 sps:$4 sm:$0xff]  }
 0x109   : > { %1059 = vmatprep.subr.bf16.mxu1 %v2069_v25  ;;  %v2159_v25 = vld [vmem:[%s2701_s3 + $0x2e4] ss:$8 sps:$4 sm:$0xff]  }
 0x10a   : > { %922 = vmatpush1.bf16.msra.mxu0 %v2064_v26  ;;  %v2154_v26 = vld [vmem:[%s2702_s4 + $0x160] ss:$8 sps:$4 sm:$0xff]  }
 0x10b   : > { %923 = vmatprep.subr.bf16.mxu0 %v2072_v27  ;;  %v2162_v27 = vld [vmem:[%s2702_s4 + $0x174] ss:$8 sps:$4 sm:$0xff]  }
 0x10c   : > { %1060 = vmatpush1.bf16.msra.mxu1 %v2067_v28  ;;  %v2157_v28 = vld [vmem:[%s2701_s3 + $0x2e0] ss:$8 sps:$4 sm:$0xff]  }
 0x10d   : > { %1307 = vmatprep.subr.bf16.mxu1 %v2075_v29  ;;  %v2165_v29 = vld [vmem:[%s2701_s3 + $0x2f4] ss:$8 sps:$4 sm:$0xff]  }
 0x10e   : > { %924 = vmatpush1.bf16.msra.mxu0 %v2070_v30  ;;  %v2160_v30 = vld [vmem:[%s2702_s4 + $0x170] ss:$8 sps:$4 sm:$0xff]  }
 0x10f   : > { %1078 = vmatmul.mubr.bf16.vlgmr.msra.gmra.mrb[4].mxu1 %v743_v33  ;;  %925 = vmatprep.subr.bf16.mxu0 %v2078_v31  ;;  %v2163_v31 = vld [vmem:[%s2701_s3 + $0x2f0] ss:$8 sps:$4 sm:$0xff]  }
 0x110   : > { %1308 = vmatpush1.bf16.msra.mxu1 %v2073_v32  ;;  %1339 = vmatprep.mubr.bf16.mxu1 %v1144_v35  ;;  %v1143_v32 = vrot.slane %v2382_v58, 2 }
 0x111   : > { %1309 = vmatprep.subr.bf16.mxu1 %v2081_v34 }
 0x112   : > { %926 = vmatpush1.bf16.msra.mxu0 %v2076_v36 }
 0x113   : > { %927 = vmatprep.subr.bf16.mxu0 %v2084_v37 }
 0x114   : > { %1310 = vmatpush1.bf16.msra.mxu1 %v2079_v38 }
 0x115   : > { %1311 = vmatprep.subr.bf16.mxu1 %v2087_v39 }
 0x116   : > { %928 = vmatpush1.bf16.msra.mxu0 %v2082_v40 }
 0x117   : > { %929 = vmatprep.subr.bf16.mxu0 %v2090_v41 }
 0x118   : > { %1312 = vmatpush1.bf16.msra.mxu1 %v2085_v42 }
 0x119   : > { %1313 = vmatprep.subr.bf16.mxu1 %v2093_v43 }
 0x11a   : > { %930 = vmatpush1.bf16.msra.mxu0 %v2088_v44 }
 0x11b   : > { %931 = vmatprep.subr.bf16.mxu0 %v2096_v45 }
 0x11c   : > { %1314 = vmatpush1.bf16.msra.mxu1 %v2091_v46 }
 0x11d   : > { %1315 = vmatprep.subr.bf16.mxu1 %v2099_v47 }
 0x11e   : > { %932 = vmatpush1.bf16.msra.mxu0 %v2094_v48 }
 0x11f   : > { %933 = vmatprep.subr.bf16.mxu0 %v2102_v49 }
 0x120   : > { %1316 = vmatpush1.bf16.msra.mxu1 %v2097_v50 }
 0x121   : > { %1317 = vmatprep.subr.bf16.mxu1 %v2105_v51 }
 0x122   : > { %934 = vmatpush1.bf16.msra.mxu0 %v2100_v52 }
 0x123   : > { %935 = vmatprep.subr.bf16.mxu0 %v2108_v53 }
 0x124   : > { %1318 = vmatpush1.bf16.msra.mxu1 %v2103_v55 }
 0x125   : > { %1319 = vmatprep.subr.bf16.mxu1 %v2111_v56 }
 0x126   : > { %936 = vmatpush1.bf16.msra.mxu0 %v2106_v57 }
 0x127   : > { %937 = vmatprep.subr.bf16.mxu0 %v2114_v59 }
 0x128   : > { %1320 = vmatpush1.bf16.msra.mxu1 %v2109_v60 }
 0x129   : > { %1321 = vmatprep.subr.bf16.mxu1 %v2117_v61 }
 0x12a   : > { %938 = vmatpush1.bf16.msra.mxu0 %v2112_v62 }
 0x12b   : > { %1445 = vmatprep.subr.bf16.mxu0 %v2120_v63 }
 0x12c   : > { %1322 = vmatpush1.bf16.msra.mxu1 %v2115_v1 }
 0x12d   : > { %940 = vmatmul.mubr.bf16.vlgmr.msra.gmra.mrb[8].mxu0 %v743_v33  ;;  %1323 = vmatprep.subr.bf16.mxu1 %v2123_v2 }
 0x12e   : > { %1446 = vmatpush1.bf16.msra.mxu0 %v2118_v3  ;;  %1477 = vmatprep.mubr.bf16.mxu0 %v2175_v54  ;;  %v2130_v54 = vld [vmem:[%s2702_s4 + $0x120] ss:$8 sps:$4 sm:$0xff]  }
 0x12f   : > { %1447 = vmatprep.subr.bf16.mxu0 %v2126_v4 }
 0x130   : > { %1324 = vmatpush1.bf16.msra.mxu1 %v2121_v5 }
 0x131   : > { %1325 = vmatprep.subr.bf16.mxu1 %v2129_v6 }
 0x132   : > { %1448 = vmatpush1.bf16.msra.mxu0 %v2124_v7 }
 0x133   : > { %1449 = vmatprep.subr.bf16.mxu0 %v2132_v8 }
 0x134   : > { %1326 = vmatpush1.bf16.msra.mxu1 %v2127_v9 }
 0x135   : > { %1327 = vmatprep.subr.bf16.mxu1 %v2135_v10 }
 0x136   : > { %1450 = vmatpush1.bf16.msra.mxu0 %v2130_v54 }
 0x137   : > { %1451 = vmatprep.subr.bf16.mxu0 %v2138_v11 }
 0x138   : > { %1328 = vmatpush1.bf16.msra.mxu1 %v2133_v12 }
 0x139   : > { %1329 = vmatprep.subr.bf16.mxu1 %v2141_v13 }
 0x13a   : > { %1452 = vmatpush1.bf16.msra.mxu0 %v2136_v14 }
 0x13b   : > { %1453 = vmatprep.subr.bf16.mxu0 %v2144_v15 }
 0x13c   : > { %1330 = vmatpush1.bf16.msra.mxu1 %v2139_v16 }
 0x13d   : > { %1331 = vmatprep.subr.bf16.mxu1 %v2147_v17 }
 0x13e   : > { %1454 = vmatpush1.bf16.msra.mxu0 %v2142_v18 }
 0x13f   : > { %1455 = vmatprep.subr.bf16.mxu0 %v2150_v19 }
 0x140   : > { %1332 = vmatpush1.bf16.msra.mxu1 %v2145_v20 }
 0x141   : > { %1333 = vmatprep.subr.bf16.mxu1 %v2153_v21 }
 0x142   : > { %1456 = vmatpush1.bf16.msra.mxu0 %v2148_v22 }
 0x143   : > { %1457 = vmatprep.subr.bf16.mxu0 %v2156_v23 }
 0x144   : > { %1334 = vmatpush1.bf16.msra.mxu1 %v2151_v24 }
 0x145   : > { %1335 = vmatprep.subr.bf16.mxu1 %v2159_v25 }
 0x146   : > { %1458 = vmatpush1.bf16.msra.mxu0 %v2154_v26 }
 0x147   : > { %1459 = vmatprep.subr.bf16.mxu0 %v2162_v27 }
 0x148   : > { %1336 = vmatpush1.bf16.msra.mxu1 %v2157_v28 }
 0x149   : > { %1337 = vmatprep.subr.bf16.mxu1 %v2165_v29 }
 0x14a   : > { %1460 = vmatpush1.bf16.msra.mxu0 %v2160_v30 }
 0x14c   : > { %1338 = vmatpush1.bf16.msra.mxu1 %v2163_v31 }
 0x14d   : > { %1478 = vmatmul.mubr.bf16.vlgmr.msra.gmra.mrb[12].mxu0 %v1143_v32 }
 0x14e   : > { %1603 = vmatprep.mubr.f32.mxu0 %v2174_v0 }
 0x14f   : > { %1340 = vmatmul.mubr.bf16.vlgmr.msra.gmra.mrb[8].mxu1 %v1143_v32 }
 0x1c0   : > { %v676_v33 = vpop.f32.mrb[4].mxu0 }
 0x1c1   : > { %v701_v34 = vrot.slane %v676_v33, 1  ;;  %v678_v35 = vpop.f32.mrb[5].mxu0 }
 0x1c2   : > { %v697_v36 = vrot.slane %v678_v35, 1  ;;  %v539_v37 = vpop.f32.mrb[0].mxu1  ;;  %v680_v38 = vpop.f32.mrb[6].mxu0 }
 0x1c3   : > { %v703_v39 = vadd.f32 %v701_v34, %v678_v35  ;;  %v688_v40 = vrot.slane %v539_v37, 1  ;;  %v541_v41 = vpop.f32.mrb[1].mxu1  ;;  %v681_v42 = vpop.f32.mrb[7].mxu0 }
 0x1c4   : > { %v699_v43 = vsub.f32 %v676_v33, %v697_v36  ;;  %v684_v44 = vrot.slane %v541_v41, 1  ;;  %v543_v45 = vpop.f32.mrb[2].mxu1  ;;  %v1527_v36 = vld [vmem:[%s2700_s2] sm:$0xf] }
 0x1c5   : > { %v705_v58 = vrot.slane %v703_v39, 7  ;;  %v690_v46 = vadd.f32 %v688_v40, %v541_v41  ;;  %v544_v47 = vpop.f32.mrb[3].mxu1 }
 0x1c6   : > { %v686_v48 = vsub.f32 %v539_v37, %v684_v44 }
 0x1c7   : > { %v707_v0 = vsel %vm694_vm2, %v699_v43, %v705_v58  ;;  %v692_v49 = vrot.slane %v690_v46, 7 }
 0x1c9   : > { %v695_v50 = vsel %vm694_vm2, %v686_v48, %v692_v49 }
 0x1e2   : > { %v1079_v51 = vpop.f32.mrb[4].mxu1 }
 0x1e3   : > { %v1103_v52 = vrot.slane %v1079_v51, 1  ;;  %v1081_v53 = vpop.f32.mrb[5].mxu1 }
 0x1e4   : > { %v1099_v55 = vrot.slane %v1081_v53, 1  ;;  %v1083_v56 = vpop.f32.mrb[6].mxu1 }
 0x1e5   : > { %v1105_v57 = vadd.f32 %v1103_v52, %v1081_v53  ;;  %v1084_v59 = vpop.f32.mrb[7].mxu1 }
 0x1e6   : > { %v1101_v60 = vsub.f32 %v1079_v51, %v1099_v55 }
 0x1e7   : > { %v1107_v61 = vrot.slane %v1105_v57, 7 }
 0x1e9   : > { %v1109_v62 = vsel %vm694_vm2, %v1101_v60, %v1107_v61 }
 0x1ea   : > { %v1513_v63 = vrot.slane %v1109_v62, 6 }
 0x1ec   : > { %v1524_v1 = vsel %vm1522_vm3, %v707_v0, %v1513_v63 }
 0x200   : > { %v941_v2 = vpop.f32.mrb[8].mxu0 }
 0x201   : > { %v1091_v3 = vrot.slane %v941_v2, 1  ;;  %v943_v4 = vpop.f32.mrb[9].mxu0 }
 0x202   : > { %v1087_v5 = vrot.slane %v943_v4, 1  ;;  %v945_v6 = vpop.f32.mrb[10].mxu0 }
 0x203   : > { %v1093_v7 = vadd.f32 %v1091_v3, %v943_v4  ;;  %v946_v8 = vpop.f32.mrb[11].mxu0 }
 0x204   : > { %v1089_v9 = vsub.f32 %v941_v2, %v1087_v5 }
 0x205   : > { %v1095_v10 = vrot.slane %v1093_v7, 7 }
 0x207   : > { %v1097_v54 = vsel %vm694_vm2, %v1089_v9, %v1095_v10 }
 0x208   : > { %v1512_v11 = vrot.slane %v1097_v54, 6 }
 0x20a   : > { %v1523_v12 = vsel %vm1522_vm3, %v695_v50, %v1512_v11 }
 0x220   : > { %v1479_v13 = vpop.f32.mrb[12].mxu0 }
 0x221   : > { %v1503_v14 = vrot.slane %v1479_v13, 1  ;;  %v1481_v15 = vpop.f32.mrb[13].mxu0 }
 0x222   : > { %v1499_v16 = vrot.slane %v1481_v15, 1  ;;  %v1341_v17 = vpop.f32.mrb[8].mxu1  ;;  %v1483_v18 = vpop.f32.mrb[14].mxu0 }
 0x223   : > { %v1505_v19 = vadd.f32 %v1503_v14, %v1481_v15  ;;  %v1491_v20 = vrot.slane %v1341_v17, 1  ;;  %v1343_v21 = vpop.f32.mrb[9].mxu1  ;;  %v1484_v22 = vpop.f32.mrb[15].mxu0 }
 0x224   : > { %v1501_v23 = vsub.f32 %v1479_v13, %v1499_v16  ;;  %v1487_v24 = vrot.slane %v1343_v21, 1  ;;  %v1345_v25 = vpop.f32.mrb[10].mxu1 }
 0x225   : > { %v1507_v26 = vrot.slane %v1505_v19, 7  ;;  %v1493_v27 = vadd.f32 %v1491_v20, %v1343_v21  ;;  %v1346_v28 = vpop.f32.mrb[11].mxu1 }
 0x226   : > { %v1489_v29 = vsub.f32 %v1341_v17, %v1487_v24 }
 0x227   : > { %v1509_v30 = vsel %vm694_vm2, %v1501_v23, %v1507_v26  ;;  %v1495_v31 = vrot.slane %v1493_v27, 7 }
 0x228   : > { %v1519_v32 = vrot.slane %v1509_v30, 4 }
 0x229   : > { %v1497_v33 = vsel %vm694_vm2, %v1489_v29, %v1495_v31 }
 0x22a   : > { %v1518_v34 = vrot.slane %v1497_v33, 4  ;;  %v1526_v35 = vsel %vm235_vm0, %v1524_v1, %v1519_v32 }
 0x22b   : > { %1931 = vmatprep.subr.msk.mxu0 %vm1532_vm4, %v1526_v35 }
 0x22c   : > { %v1525_v37 = vsel %vm235_vm0, %v1523_v12, %v1518_v34 }
 0x22d   : > { %1932 = vmatpush1.msk.msra.mxu0 %vm1532_vm4, %v1525_v37 }
 0x22e   : > { %1933 = vmatmul.mubr.msk.f32.vlgmr.msra.gmra.mrb[2].mxu0 %vm1528_vm5, %v1527_v36 }
 0x301   : > { %v1605_v38 = vpop.f32.mrb[2].mxu0 }
 0x302   : > { %v1607_v39 = vpop.f32.mrb[3].mxu0 }
 0x303   : > { %v1934_v40 = vpack.c.bf16 %v1607_v39, %v1605_v38 }
 0x305   : > { %1935 = vst.sshfl [vmem:[%s224_s7] sm:$0x33 pattern:$0x76325410] %v1934_v40 }
 0x306 PF: > { %s15_s18 = sadd.s32 1, %s2172_s18  }
 0x307   : > { %p12_p4 = scmp.ge.s32.totalorder %s15_s18, 4  }
 0x309   :  { %14 = sbr.rel (!%p12_p4) target bundleno = 1 (0x1), region = 74 }

// kernel: multi_wavelet_transform.28
= control target key start
LH: loop header
LB: loop body
LE: loop exit
PB: predicated region body
PF: predicated region fallthrough
CT: control target
= control target key end

     0   :  { %s856_s15 = smov 0   ;;  %s1032_s0 = inlined_call_operand.vmem [shape: bf16[16,128], index: 0, kind: input, shape index: {}]   ;;  %s1033_s1 = inlined_call_operand.vmem [shape: bf16[16,256], index: 1, kind: input, shape index: {}]   ;;  %s1034_s2 = inlined_call_operand.vmem [shape: bf16[128,256], index: 2, kind: input, shape index: {}]   ;;  %s1035_s3 = inlined_call_operand.vmem [shape: bf16[256,256], index: 3, kind: input, shape index: {}]   ;;  %s1036_s4 = inlined_call_operand.vmem [shape: bf16[16,256], index: 4, kind: output, shape index: {}]  }
   0x1 LB: > { %s671_s16 = sadd.s32 4294967295, %s828_s15   ;;  %p675_p0 = scmp.ge.s32.totalorder %s828_s15, 1  ;;  %s828_s15 = sphi %s856_s15, %s14_s15  }
   0x2   : > { %p171_p1 = scmp.lt.s32.totalorder %s828_s15, 3 }
   0x4   : > { %p172_p2 = pnand %p675_p0, %p171_p1 }
   0x5   : > { %v748_v0 = vld [vmem:[%s1035_s3 + $0x4] ss:$8 sps:$4 sm:$0xff] (!%p172_p2)   ;;  %v750_v1 = vld [vmem:[%s1035_s3] ss:$8 sps:$4 sm:$0xff] (!%p172_p2)   ;;  %v830_v2 = vmov (!%p172_p2), 0   ;;  %p201_p3 = scmp.lt.s32.totalorder (!%p172_p2), %s671_s16, 1 }
   0x6   : > { %175 = sbr.rel (%p172_p2) target bundleno = 288 (0x120), region = 36  ;;  %586 = vmatprep.mubr.bf16.mxu0 (!%p172_p2), %v830_v2  ;;  %433 = vmatprep.subr.bf16.mxu1 (!%p172_p2), %v748_v0  ;;  %v751_v3 = vld [vmem:[%s1035_s3 + $0x14] ss:$8 sps:$4 sm:$0xff] (!%p172_p2)   ;;  %v753_v4 = vld [vmem:[%s1035_s3 + $0x10] ss:$8 sps:$4 sm:$0xff] (!%p172_p2)  }
   0x7   : > { %434 = vmatpush1.bf16.msra.mxu1 (!%p172_p2), %v750_v1  ;;  %v754_v5 = vld [vmem:[%s1035_s3 + $0x24] ss:$8 sps:$4 sm:$0xff] (!%p172_p2)   ;;  %v756_v6 = vld [vmem:[%s1035_s3 + $0x20] ss:$8 sps:$4 sm:$0xff] (!%p172_p2)   ;;  %v757_v7 = vld [vmem:[%s1035_s3 + $0x34] ss:$8 sps:$4 sm:$0xff] (!%p172_p2)  }
   0x8   : > { %435 = vmatprep.subr.bf16.mxu1 (!%p172_p2), %v751_v3  ;;  %v759_v8 = vld [vmem:[%s1035_s3 + $0x30] ss:$8 sps:$4 sm:$0xff] (!%p172_p2)   ;;  %v772_v9 = vld [vmem:[%s1034_s2 + $0x4] ss:$8 sps:$4 sm:$0xff] (!%p172_p2)   ;;  %v774_v10 = vld [vmem:[%s1034_s2] ss:$8 sps:$4 sm:$0xff] (!%p172_p2)  }
   0x9   : > { %v760_v11 = vld [vmem:[%s1035_s3 + $0x44] ss:$8 sps:$4 sm:$0xff] (!%p172_p2)   ;;  %554 = vmatprep.subr.bf16.mxu0 (!%p172_p2), %v772_v9  ;;  %v778_v12 = vld [vmem:[%s1034_s2 + $0x14] ss:$8 sps:$4 sm:$0xff] (!%p172_p2)   ;;  %v780_v13 = vld [vmem:[%s1034_s2 + $0x10] ss:$8 sps:$4 sm:$0xff] (!%p172_p2)  }
   0xa   : > { %555 = vmatpush1.bf16.msra.mxu0 (!%p172_p2), %v774_v10  ;;  %v762_v14 = vld [vmem:[%s1035_s3 + $0x40] ss:$8 sps:$4 sm:$0xff] (!%p172_p2)   ;;  %v763_v15 = vld [vmem:[%s1035_s3 + $0x54] ss:$8 sps:$4 sm:$0xff] (!%p172_p2)   ;;  %v784_v16 = vld [vmem:[%s1034_s2 + $0x24] ss:$8 sps:$4 sm:$0xff] (!%p172_p2)  }
   0xb   : > { %436 = vmatpush1.bf16.msra.mxu1 (!%p172_p2), %v753_v4  ;;  %556 = vmatprep.subr.bf16.mxu0 (!%p172_p2), %v778_v12  ;;  %v786_v17 = vld [vmem:[%s1034_s2 + $0x20] ss:$8 sps:$4 sm:$0xff] (!%p172_p2)   ;;  %v765_v18 = vld [vmem:[%s1035_s3 + $0x50] ss:$8 sps:$4 sm:$0xff] (!%p172_p2)   ;;  %v790_v19 = vld [vmem:[%s1034_s2 + $0x34] ss:$8 sps:$4 sm:$0xff] (!%p172_p2)  }
   0xc   : > { %437 = vmatprep.subr.bf16.mxu1 (!%p172_p2), %v754_v5  ;;  %v766_v20 = vld [vmem:[%s1035_s3 + $0x64] ss:$8 sps:$4 sm:$0xff] (!%p172_p2)   ;;  %v792_v21 = vld [vmem:[%s1034_s2 + $0x30] ss:$8 sps:$4 sm:$0xff] (!%p172_p2)   ;;  %v768_v22 = vld [vmem:[%s1035_s3 + $0x60] ss:$8 sps:$4 sm:$0xff] (!%p172_p2)  }
   0xd   : > { %s1038_s16 = smov (!%p201_p3, %s671_s16), 1  ;;  %v796_v23 = vld [vmem:[%s1034_s2 + $0x44] ss:$8 sps:$4 sm:$0xff]   ;;  %v769_v24 = vld [vmem:[%s1035_s3 + $0x74] ss:$8 sps:$4 sm:$0xff]  }
   0xe   : > { %557 = vmatpush1.bf16.msra.mxu0 %v780_v13  ;;  %v798_v25 = vld [vmem:[%s1034_s2 + $0x40] ss:$8 sps:$4 sm:$0xff]   ;;  %s734_s19 = sshll.u32 %s1038_s16, 3  ;;  %v771_v26 = vld [vmem:[%s1035_s3 + $0x70] ss:$8 sps:$4 sm:$0xff]   ;;  %s676_s22 = sshll.u32 %s1038_s16, 2 }
   0xf   : > { %438 = vmatpush1.bf16.msra.mxu1 %v756_v6  ;;  %558 = vmatprep.subr.bf16.mxu0 %v784_v16  ;;  %v802_v27 = vld [vmem:[%s1034_s2 + $0x54] ss:$8 sps:$4 sm:$0xff]   ;;  %v775_v28 = vld [vmem:[%s1035_s3 + $0x84] ss:$8 sps:$4 sm:$0xff]   ;;  %s209_s28 = scalar_lea.vmem %s1033_s1, %s734_s19  ;;  %v804_v29 = vld [vmem:[%s1034_s2 + $0x50] ss:$8 sps:$4 sm:$0xff]   ;;  %s204_s29 = scalar_lea.vmem %s1032_s0, %s676_s22 }
  0x10   : > { %439 = vmatprep.subr.bf16.mxu1 %v757_v7  ;;  %v777_v30 = vld [vmem:[%s1035_s3 + $0x80] ss:$8 sps:$4 sm:$0xff]   ;;  %v808_v31 = vld [vmem:[%s1034_s2 + $0x64] ss:$8 sps:$4 sm:$0xff]   ;;  %v781_v32 = vld [vmem:[%s1035_s3 + $0x94] ss:$8 sps:$4 sm:$0xff]  }
  0x11   : > { %v233_v33 = vld [vmem:[%s209_s28] sm:$0xff]  ;;  %v783_v36 = vld [vmem:[%s1035_s3 + $0x90] ss:$8 sps:$4 sm:$0xff]   ;;  %v814_v37 = vld [vmem:[%s1034_s2 + $0x74] ss:$8 sps:$4 sm:$0xff]  }
  0x12   : > { %559 = vmatpush1.bf16.msra.mxu0 %v786_v17  ;;  %v682_v34 = vcombine.high %v233_v33, %v233_v33  ;;  %v810_v35 = vld [vmem:[%s1034_s2 + $0x60] ss:$8 sps:$4 sm:$0xff]   ;;  %v787_v38 = vld [vmem:[%s1035_s3 + $0xa4] ss:$8 sps:$4 sm:$0xff]   ;;  %v816_v39 = vld [vmem:[%s1034_s2 + $0x70] ss:$8 sps:$4 sm:$0xff]   ;;  %v681_v52 = vcombine.low %v233_v33, %v233_v33 }
  0x13   : > { %440 = vmatpush1.bf16.msra.mxu1 %v759_v8  ;;  %560 = vmatprep.subr.bf16.mxu0 %v790_v19  ;;  %v789_v40 = vld [vmem:[%s1035_s3 + $0xa0] ss:$8 sps:$4 sm:$0xff]   ;;  %v793_v41 = vld [vmem:[%s1035_s3 + $0xb4] ss:$8 sps:$4 sm:$0xff]   ;;  %v795_v43 = vld [vmem:[%s1035_s3 + $0xb0] ss:$8 sps:$4 sm:$0xff]  }
  0x14   : > { %441 = vmatprep.subr.bf16.mxu1 %v760_v11  ;;  %465 = vmatprep.mubr.bf16.mxu1 %v682_v34  ;;  %v216_v42 = vld [vmem:[%s204_s29] sm:$0xf]  ;;  %v799_v44 = vld [vmem:[%s1035_s3 + $0xc4] ss:$8 sps:$4 sm:$0xff]   ;;  %v805_v46 = vld [vmem:[%s1035_s3 + $0xd4] ss:$8 sps:$4 sm:$0xff]   ;;  %s214_s29 = scalar_lea.vmem %s1036_s4, %s734_s19 }
  0x15   : > { %v801_v45 = vld [vmem:[%s1035_s3 + $0xc0] ss:$8 sps:$4 sm:$0xff]   ;;  %v807_v47 = vld [vmem:[%s1035_s3 + $0xd0] ss:$8 sps:$4 sm:$0xff]   ;;  %v811_v48 = vld [vmem:[%s1035_s3 + $0xe4] ss:$8 sps:$4 sm:$0xff]  }
  0x16   : > { %561 = vmatpush1.bf16.msra.mxu0 %v792_v21  ;;  %v813_v49 = vld [vmem:[%s1035_s3 + $0xe0] ss:$8 sps:$4 sm:$0xff]   ;;  %v817_v50 = vld [vmem:[%s1035_s3 + $0xf4] ss:$8 sps:$4 sm:$0xff]   ;;  %v819_v51 = vld [vmem:[%s1035_s3 + $0xf0] ss:$8 sps:$4 sm:$0xff]  }
  0x17   : > { %442 = vmatpush1.bf16.msra.mxu1 %v762_v14  ;;  %562 = vmatprep.subr.bf16.mxu0 %v796_v23 }
  0x18   : > { %443 = vmatprep.subr.bf16.mxu1 %v763_v15 }
  0x1a   : > { %563 = vmatpush1.bf16.msra.mxu0 %v798_v25 }
  0x1b   : > { %444 = vmatpush1.bf16.msra.mxu1 %v765_v18  ;;  %564 = vmatprep.subr.bf16.mxu0 %v802_v27 }
  0x1c   : > { %445 = vmatprep.subr.bf16.mxu1 %v766_v20 }
  0x1e   : > { %565 = vmatpush1.bf16.msra.mxu0 %v804_v29 }
  0x1f   : > { %446 = vmatpush1.bf16.msra.mxu1 %v768_v22  ;;  %566 = vmatprep.subr.bf16.mxu0 %v808_v31 }
  0x20   : > { %447 = vmatprep.subr.bf16.mxu1 %v769_v24 }
  0x22   : > { %567 = vmatpush1.bf16.msra.mxu0 %v810_v35 }
  0x23   : > { %448 = vmatpush1.bf16.msra.mxu1 %v771_v26  ;;  %568 = vmatprep.subr.bf16.mxu0 %v814_v37 }
  0x24   : > { %449 = vmatprep.subr.bf16.mxu1 %v775_v28 }
  0x26   : > { %569 = vmatpush1.bf16.msra.mxu0 %v816_v39 }
  0x27   : > { %450 = vmatpush1.bf16.msra.mxu1 %v777_v30 }
  0x28   : > { %451 = vmatprep.subr.bf16.mxu1 %v781_v32 }
  0x29   : > { %587 = vmatmul.mubr.bf16.vlgmr.msra.gmra.mrb[0].mxu0 %v216_v42 }
  0x2b   : > { %452 = vmatpush1.bf16.msra.mxu1 %v783_v36 }
  0x2c   : > { %453 = vmatprep.subr.bf16.mxu1 %v787_v38 }
  0x2f   : > { %454 = vmatpush1.bf16.msra.mxu1 %v789_v40 }
  0x30   : > { %455 = vmatprep.subr.bf16.mxu1 %v793_v41 }
  0x33   : > { %456 = vmatpush1.bf16.msra.mxu1 %v795_v43 }
  0x34   : > { %457 = vmatprep.subr.bf16.mxu1 %v799_v44 }
  0x37   : > { %458 = vmatpush1.bf16.msra.mxu1 %v801_v45 }
  0x38   : > { %459 = vmatprep.subr.bf16.mxu1 %v805_v46 }
  0x3b   : > { %460 = vmatpush1.bf16.msra.mxu1 %v807_v47 }
  0x3c   : > { %461 = vmatprep.subr.bf16.mxu1 %v811_v48 }
  0x3f   : > { %462 = vmatpush1.bf16.msra.mxu1 %v813_v49 }
  0x40   : > { %463 = vmatprep.subr.bf16.mxu1 %v817_v50 }
  0x43   : > { %464 = vmatpush1.bf16.msra.mxu1 %v819_v51 }
  0x46   : > { %466 = vmatmul.mubr.bf16.vlgmr.msra.gmra.mrb[0].mxu1 %v681_v52 }
  0xfc   : > { %v588_v53 = vpop.f32.mrb[0].mxu0 }
  0xfd   : > { %v590_v54 = vpop.f32.mrb[1].mxu0 }
  0xfe   : > { %v592_v55 = vpop.f32.mrb[2].mxu0 }
  0xff   : > { %v593_v56 = vpop.f32.mrb[3].mxu0 }
 0x119   : > { %v467_v57 = vpop.f32.mrb[0].mxu1 }
 0x11a   : > { %v589_v58 = vadd.f32 %v588_v53, %v467_v57  ;;  %v469_v59 = vpop.f32.mrb[1].mxu1 }
 0x11b   : > { %v591_v60 = vadd.f32 %v590_v54, %v469_v59  ;;  %v471_v61 = vpop.f32.mrb[2].mxu1 }
 0x11c   : > { %v472_v62 = vpop.f32.mrb[3].mxu1 }
 0x11d   : > { %v736_v63 = vpack.c.bf16 %v591_v60, %v589_v58 }
 0x11f   : > { %603 = vst [vmem:[%s214_s29] sm:$0xff] %v736_v63 }
 0x120 PF: > { %s14_s15 = sadd.s32 1, %s828_s15  }
 0x121   : > { %p11_p4 = scmp.ge.s32.totalorder %s14_s15, 4  }
 0x123   :  { %13 = sbr.rel (!%p11_p4) target bundleno = 1 (0x1), region = 69 }

// kernel: multi_wavelet_transform.29
= control target key start
LH: loop header
LB: loop body
LE: loop exit
PB: predicated region body
PF: predicated region fallthrough
CT: control target
= control target key end

     0   :  { %s453_s12 = smov 0   ;;  %s497_s0 = inlined_call_operand.vmem [shape: bf16[32,128], index: 0, kind: input, shape index: {}]   ;;  %s498_s1 = inlined_call_operand.vmem [shape: bf16[128,8], index: 1, kind: input, shape index: {}]   ;;  %s499_s2 = inlined_call_operand.vmem [shape: f32[1,8], index: 2, kind: input, shape index: {}]   ;;  %s500_s3 = inlined_call_operand.vmem [shape: f32[32,8], index: 3, kind: output, shape index: {}]  }
   0x1 LB: > { %s354_s13 = sadd.s32 4294967295, %s429_s12   ;;  %p358_p0 = scmp.ge.s32.totalorder %s429_s12, 1  ;;  %s429_s12 = sphi %s453_s12, %s13_s12  }
   0x2   : > { %p138_p1 = scmp.lt.s32.totalorder %s429_s12, 3 }
   0x4   : > { %p139_p2 = pnand %p358_p0, %p138_p1 }
   0x5   : > { %v414_v0 = vld [vmem:[%s498_s1] sm:$0xff] (!%p139_p2)   ;;  %v431_v1 = vmov (!%p139_p2), 0.0   ;;  %v415_v2 = vld [vmem:[%s498_s1 + $0x8] sm:$0xff] (!%p139_p2)   ;;  %vm432_vm0 = vmmov (!%p139_p2), 0   ;;  %s359_s18 = sshll.u32 (!%p139_p2), %s354_s13, 1  ;;  %v416_v3 = vld [vmem:[%s498_s1 + $0x10] sm:$0xff] (!%p139_p2)  }
   0x6   : > { %142 = sbr.rel (%p139_p2) target bundleno = 255 (0xff), region = 32  ;;  %384 = vmatprep.subr.bf16.mxu0 (!%p139_p2), %v431_v1  ;;  %400 = vmatprep.mubr.msk.bf16.mxu0 (!%p139_p2), %vm432_vm0, %v431_v1  ;;  %p163_p3 = scmp.lt.s32.totalorder (!%p139_p2), %s359_s18, 3  ;;  %v417_v4 = vld [vmem:[%s498_s1 + $0x18] sm:$0xff] (!%p139_p2)   ;;  %v418_v5 = vld [vmem:[%s498_s1 + $0x20] sm:$0xff] (!%p139_p2)   ;;  %v419_v6 = vld [vmem:[%s498_s1 + $0x28] sm:$0xff] (!%p139_p2)   ;;  %vm295_vm1 = vcmask (!%p139_p2), 64512  }
   0x7   : > { %385 = vmatpush3.bf16.msra.mxu0 (!%p139_p2), %v414_v0  ;;  %v420_v7 = vld [vmem:[%s498_s1 + $0x30] sm:$0xff] (!%p139_p2)   ;;  %v421_v8 = vld [vmem:[%s498_s1 + $0x38] sm:$0xff] (!%p139_p2)   ;;  %v363_v10 = vld [vmem:[%s499_s2] ss:$0 sm:$0xff] (!%p139_p2) }
   0x8   : > { %386 = vmatprep.subr.bf16.mxu0 (!%p139_p2), %v431_v1 }
   0xb   : > { %387 = vmatpush3.bf16.msra.mxu0 (!%p139_p2), %v415_v2 }
   0xc   : > { %388 = vmatprep.subr.bf16.mxu0 (!%p139_p2), %v431_v1 }
   0xd   : > { %s502_s18 = smov (!%p163_p3, %s359_s18), 3 }
   0xe   : > { %s360_s21 = sshll.u32 %s502_s18, 2  ;;  %s362_s8 = sshll.u32 %s502_s18, 3 }
   0xf   : > { %s166_s24 = scalar_lea.vmem %s497_s0, %s360_s21  ;;  %389 = vmatpush3.bf16.msra.mxu0 %v416_v3  ;;  %s172_s14 = scalar_lea.vmem %s500_s3, %s362_s8 }
  0x10   : > { %390 = vmatprep.subr.bf16.mxu0 %v431_v1  ;;  %v422_v9 = vld [vmem:[%s166_s24] sm:$0xff]  }
  0x13   : > { %391 = vmatpush3.bf16.msra.mxu0 %v417_v4 }
  0x14   : > { %392 = vmatprep.subr.bf16.mxu0 %v431_v1 }
  0x17   : > { %393 = vmatpush3.bf16.msra.mxu0 %v418_v5 }
  0x18   : > { %394 = vmatprep.subr.bf16.mxu0 %v431_v1 }
  0x1b   : > { %395 = vmatpush3.bf16.msra.mxu0 %v419_v6 }
  0x1c   : > { %396 = vmatprep.subr.bf16.mxu0 %v431_v1 }
  0x1f   : > { %397 = vmatpush3.bf16.msra.mxu0 %v420_v7 }
  0x20   : > { %398 = vmatprep.subr.bf16.mxu0 %v431_v1 }
  0x23   : > { %399 = vmatpush3.bf16.msra.mxu0 %v421_v8 }
  0x26   : > { %401 = vmatmul.mubr.bf16.vlgmr.msra.gmra.mrb[0].mxu0 %v422_v9 }
  0xf9   : > { %v288_v11 = vpop.f32.mrb[0].mxu0 }
  0xfa   : > { %v289_v12 = vadd.f32 %v363_v10, %v288_v11  ;;  %v402_v13 = vpop.f32.mrb[1].mxu0 }
  0xfb   : > { %v291_v14 = vpop.f32.mrb[2].mxu0 }
  0xfc   : > { %296 = vst.msk [vmem:[%s172_s14] sm:$0xff] %vm295_vm1, %v289_v12  ;;  %v292_v15 = vadd.f32 %v363_v10, %v291_v14  ;;  %v403_v16 = vpop.f32.mrb[3].mxu0 }
  0xfe   : > { %297 = vst.msk [vmem:[%s172_s14 + $0x8] sm:$0xff] %vm295_vm1, %v292_v15 }
  0xff PF: > { %s13_s12 = sadd.s32 1, %s429_s12  }
 0x100   : > { %p10_p4 = scmp.ge.s32.totalorder %s13_s12, 4  }
 0x102   :  { %12 = sbr.rel (!%p10_p4) target bundleno = 1 (0x1), region = 62 }

// kernel: multi_wavelet_transform.17
= control target key start
LH: loop header
LB: loop body
LE: loop exit
PB: predicated region body
PF: predicated region fallthrough
CT: control target
= control target key end

     0   :  { %s3357_s18 = smov 0   ;;  %s4156_s0 = inlined_call_operand.vmem [shape: bf16[2,8,256], index: 0, kind: input, shape index: {}]   ;;  %s4157_s1 = inlined_call_operand.vmem [shape: f32[10,8], index: 1, kind: input, shape index: {}]   ;;  %s4158_s2 = inlined_call_operand.vmem [shape: f32[8,10], index: 2, kind: input, shape index: {}]   ;;  %s4159_s3 = inlined_call_operand.vmem [shape: bf16[16,256,256], index: 3, kind: input, shape index: {}]   ;;  %s4160_s4 = inlined_call_operand.vmem [shape: bf16[16,128,256], index: 4, kind: input, shape index: {}]   ;;  %s4161_s5 = inlined_call_operand.vmem [shape: bf16[2,8,256], index: 5, kind: output, shape index: {}]  }
   0x1 LB: > { %s2487_s19 = sadd.s32 4294967295, %s3322_s18   ;;  %p2491_p0 = scmp.ge.s32.totalorder %s3322_s18, 1  ;;  %s3322_s18 = sphi %s3357_s18, %s15_s18  }
   0x2   : > { %p187_p1 = scmp.lt.s32.totalorder %s3322_s18, 3 }
   0x4   : > { %p188_p2 = pnand %p2491_p0, %p187_p1 }
   0x5   : > { %p215_p3 = scmp.lt.s32.totalorder (!%p188_p2), %s2487_s19, 1  ;;  %v3324_v0 = vmov (!%p188_p2), 0.0   ;;  %v2956_v1 = vld [vmem:[%s4159_s3 + $0x4] ss:$8 sps:$4 sm:$0xff] (!%p188_p2)   ;;  %v2958_v2 = vld [vmem:[%s4159_s3] ss:$8 sps:$4 sm:$0xff] (!%p188_p2)  }
   0x6   : > { %191 = sbr.rel (%p188_p2) target bundleno = 873 (0x369), region = 40  ;;  %302 = vmatprep.mubr.f32.mxu0 (!%p188_p2), %v3324_v0  ;;  %509 = vmatprep.subr.bf16.mxu1 (!%p188_p2), %v2956_v1  ;;  %v2959_v3 = vld [vmem:[%s4159_s3 + $0x14] ss:$8 sps:$4 sm:$0xff] (!%p188_p2)   ;;  %v2961_v4 = vld [vmem:[%s4159_s3 + $0x10] ss:$8 sps:$4 sm:$0xff] (!%p188_p2)   ;;  %v227_v9 = vld [vmem:[%s4157_s1] sm:$0xff] (!%p188_p2) }
   0x7   : > { %510 = vmatpush1.bf16.msra.mxu1 (!%p188_p2), %v2958_v2  ;;  %v2962_v5 = vld [vmem:[%s4159_s3 + $0x24] ss:$8 sps:$4 sm:$0xff] (!%p188_p2)   ;;  %vm231_vm0 = vcmask (!%p188_p2), 64512   ;;  %v2964_v10 = vld [vmem:[%s4159_s3 + $0x20] ss:$8 sps:$4 sm:$0xff] (!%p188_p2)   ;;  %v3325_v55 = vmov (!%p188_p2), 0  }
   0x8   : > { %511 = vmatprep.subr.bf16.mxu1 (!%p188_p2), %v2959_v3  ;;  %v2965_v11 = vld [vmem:[%s4159_s3 + $0x34] ss:$8 sps:$4 sm:$0xff] (!%p188_p2)   ;;  %v228_v12 = vld [vmem:[%s4157_s1 + $0x8] sm:$0x3] (!%p188_p2)  ;;  %v2967_v13 = vld [vmem:[%s4159_s3 + $0x30] ss:$8 sps:$4 sm:$0xff] (!%p188_p2)  }
   0x9   : > { %v2968_v14 = vld [vmem:[%s4159_s3 + $0x44] ss:$8 sps:$4 sm:$0xff] (!%p188_p2)   ;;  %v2980_v15 = vld [vmem:[%s4160_s4] ss:$8 sps:$4 sm:$0xff] (!%p188_p2)   ;;  %v2988_v18 = vld [vmem:[%s4160_s4 + $0x14] ss:$8 sps:$4 sm:$0xff] (!%p188_p2)  }
   0xa   : > { %v2982_v16 = vld [vmem:[%s4160_s4 + $0x4] ss:$8 sps:$4 sm:$0xff] (!%p188_p2)   ;;  %v2970_v17 = vld [vmem:[%s4159_s3 + $0x40] ss:$8 sps:$4 sm:$0xff] (!%p188_p2)   ;;  %v2986_v19 = vld [vmem:[%s4160_s4 + $0x10] ss:$8 sps:$4 sm:$0xff] (!%p188_p2)  }
   0xb   : > { %512 = vmatpush1.bf16.msra.mxu1 (!%p188_p2), %v2961_v4  ;;  %v2971_v20 = vld [vmem:[%s4159_s3 + $0x54] ss:$8 sps:$4 sm:$0xff] (!%p188_p2)   ;;  %v2994_v21 = vld [vmem:[%s4160_s4 + $0x24] ss:$8 sps:$4 sm:$0xff] (!%p188_p2)   ;;  %v2973_v22 = vld [vmem:[%s4159_s3 + $0x50] ss:$8 sps:$4 sm:$0xff] (!%p188_p2)  }
   0xc   : > { %513 = vmatprep.subr.bf16.mxu1 (!%p188_p2), %v2962_v5  ;;  %v2974_v23 = vld [vmem:[%s4159_s3 + $0x64] ss:$8 sps:$4 sm:$0xff] (!%p188_p2)   ;;  %v2992_v24 = vld [vmem:[%s4160_s4 + $0x20] ss:$8 sps:$4 sm:$0xff] (!%p188_p2)   ;;  %v3000_v25 = vld [vmem:[%s4160_s4 + $0x34] ss:$8 sps:$4 sm:$0xff] (!%p188_p2)  }
   0xd   : > { %s4163_s19 = smov (!%p215_p3, %s2487_s19), 1  ;;  %v2976_v26 = vld [vmem:[%s4159_s3 + $0x60] ss:$8 sps:$4 sm:$0xff]   ;;  %v2977_v27 = vld [vmem:[%s4159_s3 + $0x74] ss:$8 sps:$4 sm:$0xff]   ;;  %vm698_vm1 = vcmask 1040384  }
   0xe   : > { %s2936_s26 = sshll.u32 %s4163_s19, 3  ;;  %v2998_v28 = vld [vmem:[%s4160_s4 + $0x30] ss:$8 sps:$4 sm:$0xff]   ;;  %v3006_v29 = vld [vmem:[%s4160_s4 + $0x44] ss:$8 sps:$4 sm:$0xff]   ;;  %vm2332_vm2 = vcmask 1041408  }
   0xf   : > { %s219_s6 = scalar_lea.vmem %s4156_s0, %s2936_s26  ;;  %514 = vmatpush1.bf16.msra.mxu1 %v2964_v10  ;;  %v2979_v30 = vld [vmem:[%s4159_s3 + $0x70] ss:$8 sps:$4 sm:$0xff]   ;;  %v2983_v31 = vld [vmem:[%s4159_s3 + $0x84] ss:$8 sps:$4 sm:$0xff]   ;;  %v3004_v32 = vld [vmem:[%s4160_s4 + $0x40] ss:$8 sps:$4 sm:$0xff]   ;;  %s224_s28 = scalar_lea.vmem %s4161_s5, %s2936_s26 }
  0x10   : > { %v226_v6 = vld [vmem:[%s219_s6] sm:$0xff]  ;;  %515 = vmatprep.subr.bf16.mxu1 %v2965_v11  ;;  %v3012_v33 = vld [vmem:[%s4160_s4 + $0x54] ss:$8 sps:$4 sm:$0xff]   ;;  %v3010_v35 = vld [vmem:[%s4160_s4 + $0x50] ss:$8 sps:$4 sm:$0xff]   ;;  %vm2335_vm3 = vcmask 1043456  }
  0x11   : > { %v230_v7 = vunpack.c.h.bf16 %v226_v6  ;;  %v229_v8 = vunpack.c.l.bf16 %v226_v6  ;;  %v2985_v34 = vld [vmem:[%s4159_s3 + $0x80] ss:$8 sps:$4 sm:$0xff]   ;;  %v2989_v36 = vld [vmem:[%s4159_s3 + $0x94] ss:$8 sps:$4 sm:$0xff]   ;;  %v3018_v37 = vld [vmem:[%s4160_s4 + $0x64] ss:$8 sps:$4 sm:$0xff]  }
  0x12   : > { %v2991_v38 = vld [vmem:[%s4159_s3 + $0x90] ss:$8 sps:$4 sm:$0xff]   ;;  %v3016_v39 = vld [vmem:[%s4160_s4 + $0x60] ss:$8 sps:$4 sm:$0xff]   ;;  %v2995_v40 = vld [vmem:[%s4159_s3 + $0xa4] ss:$8 sps:$4 sm:$0xff]  }
  0x13   : > { %238 = vmatprep.subr.mxu0 %v230_v7  ;;  %516 = vmatpush1.bf16.msra.mxu1 %v2967_v13  ;;  %v2997_v41 = vld [vmem:[%s4159_s3 + $0xa0] ss:$8 sps:$4 sm:$0xff]   ;;  %v3001_v42 = vld [vmem:[%s4159_s3 + $0xb4] ss:$8 sps:$4 sm:$0xff]   ;;  %v3003_v43 = vld [vmem:[%s4159_s3 + $0xb0] ss:$8 sps:$4 sm:$0xff]  }
  0x14   : > { %239 = vmatpush1.msra.mxu0 %v229_v8  ;;  %517 = vmatprep.subr.bf16.mxu1 %v2968_v14  ;;  %v3007_v44 = vld [vmem:[%s4159_s3 + $0xc4] ss:$8 sps:$4 sm:$0xff]   ;;  %v3009_v45 = vld [vmem:[%s4159_s3 + $0xc0] ss:$8 sps:$4 sm:$0xff]   ;;  %v3013_v46 = vld [vmem:[%s4159_s3 + $0xd4] ss:$8 sps:$4 sm:$0xff]  }
  0x15   : > { %2496 = vmatmul.mubr.msk.f32.vlgmr.msra.gmra.mrb[0].mxu0 %vm231_vm0, %v227_v9  ;;  %646 = vmatprep.subr.bf16.mxu0 %v2982_v16  ;;  %v3015_v47 = vld [vmem:[%s4159_s3 + $0xd0] ss:$8 sps:$4 sm:$0xff]   ;;  %v3019_v48 = vld [vmem:[%s4159_s3 + $0xe4] ss:$8 sps:$4 sm:$0xff]   ;;  %v3021_v49 = vld [vmem:[%s4159_s3 + $0xe0] ss:$8 sps:$4 sm:$0xff]  }
  0x16   : > { %308 = vmatprep.mubr.f32.mxu0 %v3324_v0  ;;  %647 = vmatpush1.bf16.msra.mxu0 %v2980_v15  ;;  %v3024_v50 = vld [vmem:[%s4160_s4 + $0x74] ss:$8 sps:$4 sm:$0xff]   ;;  %v3022_v51 = vld [vmem:[%s4160_s4 + $0x70] ss:$8 sps:$4 sm:$0xff]   ;;  %v3030_v54 = vld [vmem:[%s4159_s3 + $0x104] ss:$8 sps:$4 sm:$0xff]  }
  0x17   : > { %648 = vmatprep.subr.bf16.mxu0 %v2988_v18  ;;  %518 = vmatpush1.bf16.msra.mxu1 %v2970_v17  ;;  %v3025_v52 = vld [vmem:[%s4159_s3 + $0xf4] ss:$8 sps:$4 sm:$0xff]   ;;  %v3027_v53 = vld [vmem:[%s4159_s3 + $0xf0] ss:$8 sps:$4 sm:$0xff]   ;;  %v3033_v56 = vld [vmem:[%s4160_s4 + $0x84] ss:$8 sps:$4 sm:$0xff]  }
  0x18   : > { %519 = vmatprep.subr.bf16.mxu1 %v2971_v20  ;;  %v3028_v60 = vld [vmem:[%s4159_s3 + $0x100] ss:$8 sps:$4 sm:$0xff]   ;;  %v3036_v63 = vld [vmem:[%s4159_s3 + $0x114] ss:$8 sps:$4 sm:$0xff]   ;;  %v3034_v4 = vld [vmem:[%s4159_s3 + $0x110] ss:$8 sps:$4 sm:$0xff]  }
  0x19   : > { %2497 = vmatmul.mubr.msk.f32.gmra.mrb[2].mxu0 %vm231_vm0, %v228_v12  ;;  %v3031_v2 = vld [vmem:[%s4160_s4 + $0x80] ss:$8 sps:$4 sm:$0xff]   ;;  %v3039_v3 = vld [vmem:[%s4160_s4 + $0x94] ss:$8 sps:$4 sm:$0xff]   ;;  %v3042_v6 = vld [vmem:[%s4159_s3 + $0x124] ss:$8 sps:$4 sm:$0xff]  }
  0x1a   : > { %649 = vmatpush1.bf16.msra.mxu0 %v2986_v19  ;;  %678 = vmatprep.mubr.bf16.mxu0 %v3325_v55  ;;  %v3037_v7 = vld [vmem:[%s4160_s4 + $0x90] ss:$8 sps:$4 sm:$0xff]   ;;  %v3045_v8 = vld [vmem:[%s4160_s4 + $0xa4] ss:$8 sps:$4 sm:$0xff]   ;;  %v3040_v9 = vld [vmem:[%s4159_s3 + $0x120] ss:$8 sps:$4 sm:$0xff]  }
  0x1b   : > { %650 = vmatprep.subr.bf16.mxu0 %v2994_v21  ;;  %520 = vmatpush1.bf16.msra.mxu1 %v2973_v22  ;;  %v3048_v10 = vld [vmem:[%s4159_s3 + $0x134] ss:$8 sps:$4 sm:$0xff]   ;;  %v3043_v11 = vld [vmem:[%s4160_s4 + $0xa0] ss:$8 sps:$4 sm:$0xff]   ;;  %v3046_v13 = vld [vmem:[%s4159_s3 + $0x130] ss:$8 sps:$4 sm:$0xff]  }
  0x1c   : > { %521 = vmatprep.subr.bf16.mxu1 %v2974_v23  ;;  %v3051_v12 = vld [vmem:[%s4160_s4 + $0xb4] ss:$8 sps:$4 sm:$0xff]   ;;  %v3054_v14 = vld [vmem:[%s4159_s3 + $0x144] ss:$8 sps:$4 sm:$0xff]   ;;  %v3049_v15 = vld [vmem:[%s4160_s4 + $0xb0] ss:$8 sps:$4 sm:$0xff]  }
  0x1d   : > { %v3057_v16 = vld [vmem:[%s4160_s4 + $0xc4] ss:$8 sps:$4 sm:$0xff]   ;;  %v3052_v17 = vld [vmem:[%s4159_s3 + $0x140] ss:$8 sps:$4 sm:$0xff]   ;;  %v3060_v18 = vld [vmem:[%s4159_s3 + $0x154] ss:$8 sps:$4 sm:$0xff]  }
  0x1e   : > { %651 = vmatpush1.bf16.msra.mxu0 %v2992_v24  ;;  %v3055_v19 = vld [vmem:[%s4160_s4 + $0xc0] ss:$8 sps:$4 sm:$0xff]   ;;  %v3063_v20 = vld [vmem:[%s4160_s4 + $0xd4] ss:$8 sps:$4 sm:$0xff]   ;;  %v3058_v21 = vld [vmem:[%s4159_s3 + $0x150] ss:$8 sps:$4 sm:$0xff]  }
  0x1f   : > { %652 = vmatprep.subr.bf16.mxu0 %v3000_v25  ;;  %522 = vmatpush1.bf16.msra.mxu1 %v2976_v26  ;;  %v3066_v22 = vld [vmem:[%s4159_s3 + $0x164] ss:$8 sps:$4 sm:$0xff]   ;;  %v3061_v23 = vld [vmem:[%s4160_s4 + $0xd0] ss:$8 sps:$4 sm:$0xff]   ;;  %v3064_v25 = vld [vmem:[%s4159_s3 + $0x160] ss:$8 sps:$4 sm:$0xff]  }
  0x20   : > { %523 = vmatprep.subr.bf16.mxu1 %v2977_v27  ;;  %v3069_v24 = vld [vmem:[%s4160_s4 + $0xe4] ss:$8 sps:$4 sm:$0xff]   ;;  %v3072_v26 = vld [vmem:[%s4159_s3 + $0x174] ss:$8 sps:$4 sm:$0xff]   ;;  %v3067_v27 = vld [vmem:[%s4160_s4 + $0xe0] ss:$8 sps:$4 sm:$0xff]  }
  0x21   : > { %vm2338_vm4 = vcmask 1045504   ;;  %vm3326_vm5 = vmmov 1   ;;  %vm2342_vm7 = vcmask 80896  }
  0x22   : > { %653 = vmatpush1.bf16.msra.mxu0 %v2998_v28  ;;  %v3075_v28 = vld [vmem:[%s4160_s4 + $0xf4] ss:$8 sps:$4 sm:$0xff]   ;;  %vm2940_vm6 = vmpackc.low %vm2332_vm2, %vm3326_vm5 }
  0x23   : > { %654 = vmatprep.subr.bf16.mxu0 %v3006_v29  ;;  %524 = vmatpush1.bf16.msra.mxu1 %v2979_v30  ;;  %v3070_v29 = vld [vmem:[%s4159_s3 + $0x170] ss:$8 sps:$4 sm:$0xff]   ;;  %v3078_v30 = vld [vmem:[%s4159_s3 + $0x184] ss:$8 sps:$4 sm:$0xff]  }
  0x24   : > { %525 = vmatprep.subr.bf16.mxu1 %v2983_v31  ;;  %v3073_v31 = vld [vmem:[%s4160_s4 + $0xf0] ss:$8 sps:$4 sm:$0xff]  }
  0x26   : > { %655 = vmatpush1.bf16.msra.mxu0 %v3004_v32  ;;  %v3081_v32 = vld [vmem:[%s4159_s3 + $0x204] ss:$8 sps:$4 sm:$0xff]  }
  0x27   : > { %656 = vmatprep.subr.bf16.mxu0 %v3012_v33  ;;  %526 = vmatpush1.bf16.msra.mxu1 %v2985_v34  ;;  %v3076_v33 = vld [vmem:[%s4159_s3 + $0x180] ss:$8 sps:$4 sm:$0xff]   ;;  %v3084_v34 = vld [vmem:[%s4159_s3 + $0x194] ss:$8 sps:$4 sm:$0xff]  }
  0x28   : > { %527 = vmatprep.subr.bf16.mxu1 %v2989_v36 }
  0x2a   : > { %657 = vmatpush1.bf16.msra.mxu0 %v3010_v35  ;;  %v3079_v35 = vld [vmem:[%s4159_s3 + $0x200] ss:$8 sps:$4 sm:$0xff]  }
  0x2b   : > { %658 = vmatprep.subr.bf16.mxu0 %v3018_v37  ;;  %528 = vmatpush1.bf16.msra.mxu1 %v2991_v38  ;;  %v3087_v37 = vld [vmem:[%s4159_s3 + $0x214] ss:$8 sps:$4 sm:$0xff]  }
  0x2c   : > { %529 = vmatprep.subr.bf16.mxu1 %v2995_v40  ;;  %v3090_v40 = vld [vmem:[%s4159_s3 + $0x1a4] ss:$8 sps:$4 sm:$0xff]  }
  0x2e   : > { %659 = vmatpush1.bf16.msra.mxu0 %v3016_v39  ;;  %v3082_v39 = vld [vmem:[%s4159_s3 + $0x190] ss:$8 sps:$4 sm:$0xff]  }
  0x2f   : > { %530 = vmatpush1.bf16.msra.mxu1 %v2997_v41  ;;  %660 = vmatprep.subr.bf16.mxu0 %v3024_v50  ;;  %v3085_v41 = vld [vmem:[%s4159_s3 + $0x210] ss:$8 sps:$4 sm:$0xff]   ;;  %v3105_v50 = vld [vmem:[%s4159_s3 + $0x244] ss:$8 sps:$4 sm:$0xff]  }
  0x30   : > { %531 = vmatprep.subr.bf16.mxu1 %v3001_v42  ;;  %v3093_v42 = vld [vmem:[%s4159_s3 + $0x224] ss:$8 sps:$4 sm:$0xff]  }
  0x32   : > { %661 = vmatpush1.bf16.msra.mxu0 %v3022_v51  ;;  %v3100_v51 = vld [vmem:[%s4159_s3 + $0x1c0] ss:$8 sps:$4 sm:$0xff]  }
  0x33   : > { %532 = vmatpush1.bf16.msra.mxu1 %v3003_v43  ;;  %911 = vmatprep.subr.bf16.mxu0 %v3030_v54  ;;  %v3088_v43 = vld [vmem:[%s4159_s3 + $0x1a0] ss:$8 sps:$4 sm:$0xff]   ;;  %v3111_v54 = vld [vmem:[%s4159_s3 + $0x254] ss:$8 sps:$4 sm:$0xff]  }
  0x34   : > { %533 = vmatprep.subr.bf16.mxu1 %v3007_v44  ;;  %v3096_v44 = vld [vmem:[%s4159_s3 + $0x1b4] ss:$8 sps:$4 sm:$0xff]  }
  0x37   : > { %534 = vmatpush1.bf16.msra.mxu1 %v3009_v45  ;;  %v3091_v45 = vld [vmem:[%s4159_s3 + $0x220] ss:$8 sps:$4 sm:$0xff]  }
  0x38   : > { %535 = vmatprep.subr.bf16.mxu1 %v3013_v46  ;;  %v3099_v46 = vld [vmem:[%s4159_s3 + $0x234] ss:$8 sps:$4 sm:$0xff]  }
  0x3b   : > { %536 = vmatpush1.bf16.msra.mxu1 %v3015_v47  ;;  %v3094_v47 = vld [vmem:[%s4159_s3 + $0x1b0] ss:$8 sps:$4 sm:$0xff]  }
  0x3c   : > { %537 = vmatprep.subr.bf16.mxu1 %v3019_v48  ;;  %v3102_v48 = vld [vmem:[%s4159_s3 + $0x1c4] ss:$8 sps:$4 sm:$0xff]  }
  0x3f   : > { %538 = vmatpush1.bf16.msra.mxu1 %v3021_v49  ;;  %v3097_v49 = vld [vmem:[%s4159_s3 + $0x230] ss:$8 sps:$4 sm:$0xff]  }
  0x40   : > { %539 = vmatprep.subr.bf16.mxu1 %v3025_v52  ;;  %v3108_v52 = vld [vmem:[%s4159_s3 + $0x1d4] ss:$8 sps:$4 sm:$0xff]  }
  0x43   : > { %540 = vmatpush1.bf16.msra.mxu1 %v3027_v53  ;;  %v3103_v53 = vld [vmem:[%s4159_s3 + $0x240] ss:$8 sps:$4 sm:$0xff]  }
  0x44   : > { %1049 = vmatprep.subr.bf16.mxu1 %v3033_v56  ;;  %v3106_v56 = vld [vmem:[%s4159_s3 + $0x1d0] ss:$8 sps:$4 sm:$0xff]  }
  0xe8   : > { %v304_v57 = vpop.f32.mrb[0].mxu0 }
  0xe9   : > { %v306_v58 = vpop.f32.mrb[1].mxu0 }
  0xec   : > { %v310_v59 = vpop.f32.mrb[2].mxu0 }
  0xed   : > { %v3537_v61 = vpack.c.bf16 %v310_v59, %v304_v57  ;;  %v312_v62 = vpop.f32.mrb[3].mxu0  ;;  %v3114_v57 = vld [vmem:[%s4159_s3 + $0x1e4] ss:$8 sps:$4 sm:$0xff]  }
  0xee   : > { %v3542_v1 = vpack.c.bf16 %v312_v62, %v306_v58  ;;  %v3109_v58 = vld [vmem:[%s4159_s3 + $0x250] ss:$8 sps:$4 sm:$0xff]   ;;  %v3117_v59 = vld [vmem:[%s4159_s3 + $0x264] ss:$8 sps:$4 sm:$0xff]   ;;  %v3120_v62 = vld [vmem:[%s4159_s3 + $0x1f4] ss:$8 sps:$4 sm:$0xff]  }
  0xef   : > { %679 = vmatmul.mubr.bf16.vlgmr.msra.gmra.mrb[4].mxu0 %v3537_v61  ;;  %v747_v36 = vrot.slane %v3537_v61, 1 }
  0xf0   : > { %912 = vmatpush1.bf16.msra.mxu0 %v3028_v60  ;;  %541 = vmatprep.mubr.bf16.mxu1 %v3542_v1  ;;  %v748_v5 = vrot.slane %v3542_v1, 1  ;;  %v1148_v38 = vrot.slane %v3542_v1, 2  ;;  %v3112_v60 = vld [vmem:[%s4159_s3 + $0x1e0] ss:$8 sps:$4 sm:$0xff]  }
  0xf1   : > { %542 = vmatmul.mubr.bf16.vlgmr.msra.gmra.mrb[0].mxu1 %v3537_v61  ;;  %913 = vmatprep.subr.bf16.mxu0 %v3036_v63  ;;  %v3115_v63 = vld [vmem:[%s4159_s3 + $0x260] ss:$8 sps:$4 sm:$0xff]  }
  0xf2   : > { %1050 = vmatpush1.bf16.msra.mxu1 %v3031_v2  ;;  %943 = vmatprep.mubr.bf16.mxu0 %v748_v5  ;;  %v3123_v2 = vld [vmem:[%s4159_s3 + $0x274] ss:$8 sps:$4 sm:$0xff]   ;;  %v3121_v5 = vld [vmem:[%s4159_s3 + $0x270] ss:$8 sps:$4 sm:$0xff]  }
  0xf3   : > { %1051 = vmatprep.subr.bf16.mxu1 %v3039_v3  ;;  %1081 = vmatprep.mubr.bf16.mxu1 %v3325_v55  ;;  %v3118_v3 = vld [vmem:[%s4159_s3 + $0x1f0] ss:$8 sps:$4 sm:$0xff]  }
  0xf4   : > { %914 = vmatpush1.bf16.msra.mxu0 %v3034_v4  ;;  %v3126_v4 = vld [vmem:[%s4160_s4 + $0x104] ss:$8 sps:$4 sm:$0xff]  }
  0xf5   : > { %915 = vmatprep.subr.bf16.mxu0 %v3042_v6  ;;  %v3129_v6 = vld [vmem:[%s4159_s3 + $0x284] ss:$8 sps:$4 sm:$0xff]  }
  0xf6   : > { %1052 = vmatpush1.bf16.msra.mxu1 %v3037_v7  ;;  %v3124_v7 = vld [vmem:[%s4160_s4 + $0x100] ss:$8 sps:$4 sm:$0xff]  }
  0xf7   : > { %1053 = vmatprep.subr.bf16.mxu1 %v3045_v8  ;;  %v3132_v8 = vld [vmem:[%s4160_s4 + $0x114] ss:$8 sps:$4 sm:$0xff]  }
  0xf8   : > { %916 = vmatpush1.bf16.msra.mxu0 %v3040_v9  ;;  %v3127_v9 = vld [vmem:[%s4159_s3 + $0x280] ss:$8 sps:$4 sm:$0xff]  }
  0xf9   : > { %917 = vmatprep.subr.bf16.mxu0 %v3048_v10  ;;  %v3135_v10 = vld [vmem:[%s4159_s3 + $0x294] ss:$8 sps:$4 sm:$0xff]  }
  0xfa   : > { %1054 = vmatpush1.bf16.msra.mxu1 %v3043_v11  ;;  %v3130_v11 = vld [vmem:[%s4160_s4 + $0x110] ss:$8 sps:$4 sm:$0xff]  }
  0xfb   : > { %1055 = vmatprep.subr.bf16.mxu1 %v3051_v12  ;;  %v3138_v12 = vld [vmem:[%s4160_s4 + $0x124] ss:$8 sps:$4 sm:$0xff]  }
  0xfc   : > { %918 = vmatpush1.bf16.msra.mxu0 %v3046_v13  ;;  %v3133_v13 = vld [vmem:[%s4159_s3 + $0x290] ss:$8 sps:$4 sm:$0xff]  }
  0xfd   : > { %919 = vmatprep.subr.bf16.mxu0 %v3054_v14  ;;  %v3141_v14 = vld [vmem:[%s4159_s3 + $0x2a4] ss:$8 sps:$4 sm:$0xff]  }
  0xfe   : > { %1056 = vmatpush1.bf16.msra.mxu1 %v3049_v15  ;;  %v3136_v15 = vld [vmem:[%s4160_s4 + $0x120] ss:$8 sps:$4 sm:$0xff]  }
  0xff   : > { %1057 = vmatprep.subr.bf16.mxu1 %v3057_v16  ;;  %v3144_v16 = vld [vmem:[%s4160_s4 + $0x134] ss:$8 sps:$4 sm:$0xff]  }
 0x100   : > { %920 = vmatpush1.bf16.msra.mxu0 %v3052_v17  ;;  %v3139_v17 = vld [vmem:[%s4159_s3 + $0x2a0] ss:$8 sps:$4 sm:$0xff]  }
 0x101   : > { %921 = vmatprep.subr.bf16.mxu0 %v3060_v18  ;;  %v3147_v18 = vld [vmem:[%s4159_s3 + $0x2b4] ss:$8 sps:$4 sm:$0xff]  }
 0x102   : > { %1058 = vmatpush1.bf16.msra.mxu1 %v3055_v19  ;;  %v3142_v19 = vld [vmem:[%s4160_s4 + $0x130] ss:$8 sps:$4 sm:$0xff]  }
 0x103   : > { %1059 = vmatprep.subr.bf16.mxu1 %v3063_v20  ;;  %v3150_v20 = vld [vmem:[%s4160_s4 + $0x144] ss:$8 sps:$4 sm:$0xff]  }
 0x104   : > { %922 = vmatpush1.bf16.msra.mxu0 %v3058_v21  ;;  %v3145_v21 = vld [vmem:[%s4159_s3 + $0x2b0] ss:$8 sps:$4 sm:$0xff]  }
 0x105   : > { %923 = vmatprep.subr.bf16.mxu0 %v3066_v22  ;;  %v3153_v22 = vld [vmem:[%s4159_s3 + $0x2c4] ss:$8 sps:$4 sm:$0xff]  }
 0x106   : > { %1060 = vmatpush1.bf16.msra.mxu1 %v3061_v23  ;;  %v3148_v23 = vld [vmem:[%s4160_s4 + $0x140] ss:$8 sps:$4 sm:$0xff]  }
 0x107   : > { %1061 = vmatprep.subr.bf16.mxu1 %v3069_v24  ;;  %v3156_v24 = vld [vmem:[%s4160_s4 + $0x154] ss:$8 sps:$4 sm:$0xff]  }
 0x108   : > { %924 = vmatpush1.bf16.msra.mxu0 %v3064_v25  ;;  %v3151_v25 = vld [vmem:[%s4159_s3 + $0x2c0] ss:$8 sps:$4 sm:$0xff]  }
 0x109   : > { %925 = vmatprep.subr.bf16.mxu0 %v3072_v26  ;;  %v3159_v26 = vld [vmem:[%s4159_s3 + $0x2d4] ss:$8 sps:$4 sm:$0xff]  }
 0x10a   : > { %1062 = vmatpush1.bf16.msra.mxu1 %v3067_v27  ;;  %v3154_v27 = vld [vmem:[%s4160_s4 + $0x150] ss:$8 sps:$4 sm:$0xff]  }
 0x10b   : > { %1063 = vmatprep.subr.bf16.mxu1 %v3075_v28  ;;  %v3162_v28 = vld [vmem:[%s4160_s4 + $0x164] ss:$8 sps:$4 sm:$0xff]  }
 0x10c   : > { %926 = vmatpush1.bf16.msra.mxu0 %v3070_v29  ;;  %v3157_v29 = vld [vmem:[%s4159_s3 + $0x2d0] ss:$8 sps:$4 sm:$0xff]  }
 0x10d   : > { %927 = vmatprep.subr.bf16.mxu0 %v3078_v30  ;;  %v3165_v30 = vld [vmem:[%s4159_s3 + $0x2e4] ss:$8 sps:$4 sm:$0xff]  }
 0x10e   : > { %1064 = vmatpush1.bf16.msra.mxu1 %v3073_v31  ;;  %v3160_v31 = vld [vmem:[%s4160_s4 + $0x160] ss:$8 sps:$4 sm:$0xff]  }
 0x10f   : > { %1311 = vmatprep.subr.bf16.mxu1 %v3081_v32  ;;  %v3168_v32 = vld [vmem:[%s4160_s4 + $0x174] ss:$8 sps:$4 sm:$0xff]  }
 0x110   : > { %928 = vmatpush1.bf16.msra.mxu0 %v3076_v33  ;;  %v3163_v33 = vld [vmem:[%s4159_s3 + $0x2e0] ss:$8 sps:$4 sm:$0xff]  }
 0x111   : > { %1082 = vmatmul.mubr.bf16.vlgmr.msra.gmra.mrb[4].mxu1 %v747_v36  ;;  %929 = vmatprep.subr.bf16.mxu0 %v3084_v34  ;;  %v3171_v34 = vld [vmem:[%s4159_s3 + $0x2f4] ss:$8 sps:$4 sm:$0xff]  }
 0x112   : > { %1312 = vmatpush1.bf16.msra.mxu1 %v3079_v35  ;;  %1343 = vmatprep.mubr.bf16.mxu1 %v1148_v38  ;;  %v3166_v35 = vld [vmem:[%s4160_s4 + $0x170] ss:$8 sps:$4 sm:$0xff]   ;;  %v3177_v38 = vld [vmem:[%s4160_s4 + $0x184] ss:$8 sps:$4 sm:$0xff]  }
 0x113   : > { %1313 = vmatprep.subr.bf16.mxu1 %v3087_v37  ;;  %v3169_v37 = vld [vmem:[%s4159_s3 + $0x2f0] ss:$8 sps:$4 sm:$0xff]  }
 0x114   : > { %930 = vmatpush1.bf16.msra.mxu0 %v3082_v39  ;;  %v3172_v39 = vld [vmem:[%s4159_s3 + $0x300] ss:$8 sps:$4 sm:$0xff]  }
 0x115   : > { %931 = vmatprep.subr.bf16.mxu0 %v3090_v40  ;;  %v1147_v40 = vrot.slane %v3537_v61, 2 }
 0x116   : > { %1314 = vmatpush1.bf16.msra.mxu1 %v3085_v41  ;;  %v3180_v41 = vld [vmem:[%s4159_s3 + $0x314] ss:$8 sps:$4 sm:$0xff]  }
 0x117   : > { %1315 = vmatprep.subr.bf16.mxu1 %v3093_v42  ;;  %v1548_v42 = vrot.slane %v3542_v1, 3 }
 0x118   : > { %932 = vmatpush1.bf16.msra.mxu0 %v3088_v43  ;;  %v3175_v43 = vld [vmem:[%s4160_s4 + $0x180] ss:$8 sps:$4 sm:$0xff]  }
 0x119   : > { %933 = vmatprep.subr.bf16.mxu0 %v3096_v44  ;;  %v3183_v44 = vld [vmem:[%s4160_s4 + $0x194] ss:$8 sps:$4 sm:$0xff]  }
 0x11a   : > { %1316 = vmatpush1.bf16.msra.mxu1 %v3091_v45  ;;  %v3178_v45 = vld [vmem:[%s4159_s3 + $0x310] ss:$8 sps:$4 sm:$0xff]  }
 0x11b   : > { %1317 = vmatprep.subr.bf16.mxu1 %v3099_v46  ;;  %v3186_v46 = vld [vmem:[%s4159_s3 + $0x324] ss:$8 sps:$4 sm:$0xff]  }
 0x11c   : > { %934 = vmatpush1.bf16.msra.mxu0 %v3094_v47  ;;  %v3181_v47 = vld [vmem:[%s4160_s4 + $0x190] ss:$8 sps:$4 sm:$0xff]  }
 0x11d   : > { %935 = vmatprep.subr.bf16.mxu0 %v3102_v48  ;;  %v3189_v48 = vld [vmem:[%s4160_s4 + $0x1a4] ss:$8 sps:$4 sm:$0xff]  }
 0x11e   : > { %1318 = vmatpush1.bf16.msra.mxu1 %v3097_v49  ;;  %v3184_v49 = vld [vmem:[%s4159_s3 + $0x320] ss:$8 sps:$4 sm:$0xff]  }
 0x11f   : > { %1319 = vmatprep.subr.bf16.mxu1 %v3105_v50  ;;  %v3192_v50 = vld [vmem:[%s4159_s3 + $0x334] ss:$8 sps:$4 sm:$0xff]  }
 0x120   : > { %936 = vmatpush1.bf16.msra.mxu0 %v3100_v51  ;;  %v3187_v51 = vld [vmem:[%s4160_s4 + $0x1a0] ss:$8 sps:$4 sm:$0xff]  }
 0x121   : > { %937 = vmatprep.subr.bf16.mxu0 %v3108_v52  ;;  %v3195_v52 = vld [vmem:[%s4160_s4 + $0x1b4] ss:$8 sps:$4 sm:$0xff]  }
 0x122   : > { %1320 = vmatpush1.bf16.msra.mxu1 %v3103_v53  ;;  %v3190_v53 = vld [vmem:[%s4159_s3 + $0x330] ss:$8 sps:$4 sm:$0xff]  }
 0x123   : > { %1321 = vmatprep.subr.bf16.mxu1 %v3111_v54  ;;  %v3198_v54 = vld [vmem:[%s4159_s3 + $0x344] ss:$8 sps:$4 sm:$0xff]  }
 0x124   : > { %938 = vmatpush1.bf16.msra.mxu0 %v3106_v56  ;;  %v3193_v56 = vld [vmem:[%s4160_s4 + $0x1b0] ss:$8 sps:$4 sm:$0xff]  }
 0x125   : > { %939 = vmatprep.subr.bf16.mxu0 %v3114_v57  ;;  %v3201_v57 = vld [vmem:[%s4160_s4 + $0x1c4] ss:$8 sps:$4 sm:$0xff]  }
 0x126   : > { %1322 = vmatpush1.bf16.msra.mxu1 %v3109_v58  ;;  %v3196_v58 = vld [vmem:[%s4159_s3 + $0x340] ss:$8 sps:$4 sm:$0xff]  }
 0x127   : > { %1323 = vmatprep.subr.bf16.mxu1 %v3117_v59  ;;  %v3204_v59 = vld [vmem:[%s4159_s3 + $0x354] ss:$8 sps:$4 sm:$0xff]  }
 0x128   : > { %940 = vmatpush1.bf16.msra.mxu0 %v3112_v60  ;;  %v3199_v60 = vld [vmem:[%s4160_s4 + $0x1c0] ss:$8 sps:$4 sm:$0xff]  }
 0x129   : > { %941 = vmatprep.subr.bf16.mxu0 %v3120_v62  ;;  %v3207_v62 = vld [vmem:[%s4160_s4 + $0x1d4] ss:$8 sps:$4 sm:$0xff]  }
 0x12a   : > { %1324 = vmatpush1.bf16.msra.mxu1 %v3115_v63  ;;  %v3202_v63 = vld [vmem:[%s4159_s3 + $0x350] ss:$8 sps:$4 sm:$0xff]  }
 0x12b   : > { %1325 = vmatprep.subr.bf16.mxu1 %v3123_v2  ;;  %v3210_v2 = vld [vmem:[%s4159_s3 + $0x364] ss:$8 sps:$4 sm:$0xff]  }
 0x12c   : > { %942 = vmatpush1.bf16.msra.mxu0 %v3118_v3  ;;  %v3205_v3 = vld [vmem:[%s4160_s4 + $0x1d0] ss:$8 sps:$4 sm:$0xff]  }
 0x12d   : > { %1449 = vmatprep.subr.bf16.mxu0 %v3126_v4  ;;  %v3213_v4 = vld [vmem:[%s4160_s4 + $0x1e4] ss:$8 sps:$4 sm:$0xff]  }
 0x12e   : > { %1326 = vmatpush1.bf16.msra.mxu1 %v3121_v5  ;;  %v3208_v5 = vld [vmem:[%s4159_s3 + $0x360] ss:$8 sps:$4 sm:$0xff]  }
 0x12f   : > { %944 = vmatmul.mubr.bf16.vlgmr.msra.gmra.mrb[8].mxu0 %v747_v36  ;;  %1327 = vmatprep.subr.bf16.mxu1 %v3129_v6  ;;  %v3174_v36 = vld [vmem:[%s4159_s3 + $0x304] ss:$8 sps:$4 sm:$0xff]   ;;  %v3216_v6 = vld [vmem:[%s4159_s3 + $0x374] ss:$8 sps:$4 sm:$0xff]  }
 0x130   : > { %1450 = vmatpush1.bf16.msra.mxu0 %v3124_v7  ;;  %1481 = vmatprep.mubr.bf16.mxu0 %v3325_v55  ;;  %v3211_v7 = vld [vmem:[%s4160_s4 + $0x1e0] ss:$8 sps:$4 sm:$0xff]  }
 0x131   : > { %1451 = vmatprep.subr.bf16.mxu0 %v3132_v8  ;;  %v3219_v8 = vld [vmem:[%s4160_s4 + $0x1f4] ss:$8 sps:$4 sm:$0xff]  }
 0x132   : > { %1328 = vmatpush1.bf16.msra.mxu1 %v3127_v9  ;;  %v3214_v9 = vld [vmem:[%s4159_s3 + $0x370] ss:$8 sps:$4 sm:$0xff]  }
 0x133   : > { %1329 = vmatprep.subr.bf16.mxu1 %v3135_v10  ;;  %v3222_v10 = vld [vmem:[%s4159_s3 + $0x384] ss:$8 sps:$4 sm:$0xff]  }
 0x134   : > { %1452 = vmatpush1.bf16.msra.mxu0 %v3130_v11  ;;  %v3217_v11 = vld [vmem:[%s4160_s4 + $0x1f0] ss:$8 sps:$4 sm:$0xff]  }
 0x135   : > { %1453 = vmatprep.subr.bf16.mxu0 %v3138_v12  ;;  %v3225_v12 = vld [vmem:[%s4159_s3 + $0x404] ss:$8 sps:$4 sm:$0xff]  }
 0x136   : > { %1330 = vmatpush1.bf16.msra.mxu1 %v3133_v13  ;;  %v3220_v13 = vld [vmem:[%s4159_s3 + $0x380] ss:$8 sps:$4 sm:$0xff]  }
 0x137   : > { %1331 = vmatprep.subr.bf16.mxu1 %v3141_v14  ;;  %v3228_v14 = vld [vmem:[%s4159_s3 + $0x394] ss:$8 sps:$4 sm:$0xff]  }
 0x138   : > { %1454 = vmatpush1.bf16.msra.mxu0 %v3136_v15  ;;  %v3223_v15 = vld [vmem:[%s4159_s3 + $0x400] ss:$8 sps:$4 sm:$0xff]  }
 0x139   : > { %1455 = vmatprep.subr.bf16.mxu0 %v3144_v16  ;;  %v1547_v16 = vrot.slane %v3537_v61, 3 }
 0x13a   : > { %1332 = vmatpush1.bf16.msra.mxu1 %v3139_v17  ;;  %v3231_v17 = vld [vmem:[%s4159_s3 + $0x414] ss:$8 sps:$4 sm:$0xff]  }
 0x13b   : > { %1333 = vmatprep.subr.bf16.mxu1 %v3147_v18  ;;  %v1948_v18 = vrot.slane %v3542_v1, 4  ;;  %v3237_v1 = vld [vmem:[%s4159_s3 + $0x424] ss:$8 sps:$4 sm:$0xff]  }
 0x13c   : > { %1456 = vmatpush1.bf16.msra.mxu0 %v3142_v19  ;;  %v3226_v19 = vld [vmem:[%s4159_s3 + $0x390] ss:$8 sps:$4 sm:$0xff]  }
 0x13d   : > { %1457 = vmatprep.subr.bf16.mxu0 %v3150_v20  ;;  %v3234_v20 = vld [vmem:[%s4159_s3 + $0x3a4] ss:$8 sps:$4 sm:$0xff]  }
 0x13e   : > { %1334 = vmatpush1.bf16.msra.mxu1 %v3145_v21  ;;  %v3229_v21 = vld [vmem:[%s4159_s3 + $0x410] ss:$8 sps:$4 sm:$0xff]  }
 0x13f   : > { %1335 = vmatprep.subr.bf16.mxu1 %v3153_v22  ;;  %v3232_v22 = vld [vmem:[%s4159_s3 + $0x3a0] ss:$8 sps:$4 sm:$0xff]  }
 0x140   : > { %1458 = vmatpush1.bf16.msra.mxu0 %v3148_v23  ;;  %v3240_v23 = vld [vmem:[%s4159_s3 + $0x3b4] ss:$8 sps:$4 sm:$0xff]  }
 0x141   : > { %1459 = vmatprep.subr.bf16.mxu0 %v3156_v24  ;;  %v3235_v24 = vld [vmem:[%s4159_s3 + $0x420] ss:$8 sps:$4 sm:$0xff]  }
 0x142   : > { %1336 = vmatpush1.bf16.msra.mxu1 %v3151_v25  ;;  %v3243_v25 = vld [vmem:[%s4159_s3 + $0x434] ss:$8 sps:$4 sm:$0xff]  }
 0x143   : > { %1337 = vmatprep.subr.bf16.mxu1 %v3159_v26  ;;  %v3238_v26 = vld [vmem:[%s4159_s3 + $0x3b0] ss:$8 sps:$4 sm:$0xff]  }
 0x144   : > { %1460 = vmatpush1.bf16.msra.mxu0 %v3154_v27  ;;  %v3246_v27 = vld [vmem:[%s4159_s3 + $0x3c4] ss:$8 sps:$4 sm:$0xff]  }
 0x145   : > { %1461 = vmatprep.subr.bf16.mxu0 %v3162_v28  ;;  %v3241_v28 = vld [vmem:[%s4159_s3 + $0x430] ss:$8 sps:$4 sm:$0xff]  }
 0x146   : > { %1338 = vmatpush1.bf16.msra.mxu1 %v3157_v29  ;;  %v3249_v29 = vld [vmem:[%s4159_s3 + $0x444] ss:$8 sps:$4 sm:$0xff]  }
 0x147   : > { %1339 = vmatprep.subr.bf16.mxu1 %v3165_v30  ;;  %v3244_v30 = vld [vmem:[%s4159_s3 + $0x3c0] ss:$8 sps:$4 sm:$0xff]  }
 0x148   : > { %1462 = vmatpush1.bf16.msra.mxu0 %v3160_v31  ;;  %v3252_v31 = vld [vmem:[%s4159_s3 + $0x3d4] ss:$8 sps:$4 sm:$0xff]  }
 0x149   : > { %1463 = vmatprep.subr.bf16.mxu0 %v3168_v32  ;;  %v3247_v32 = vld [vmem:[%s4159_s3 + $0x440] ss:$8 sps:$4 sm:$0xff]  }
 0x14a   : > { %1340 = vmatpush1.bf16.msra.mxu1 %v3163_v33  ;;  %v3255_v33 = vld [vmem:[%s4159_s3 + $0x454] ss:$8 sps:$4 sm:$0xff]  }
 0x14b   : > { %1341 = vmatprep.subr.bf16.mxu1 %v3171_v34  ;;  %v3250_v34 = vld [vmem:[%s4159_s3 + $0x3d0] ss:$8 sps:$4 sm:$0xff]  }
 0x14c   : > { %1464 = vmatpush1.bf16.msra.mxu0 %v3166_v35  ;;  %v3258_v35 = vld [vmem:[%s4159_s3 + $0x3e4] ss:$8 sps:$4 sm:$0xff]  }
 0x14d   : > { %1711 = vmatprep.subr.bf16.mxu0 %v3174_v36  ;;  %v3253_v36 = vld [vmem:[%s4159_s3 + $0x450] ss:$8 sps:$4 sm:$0xff]  }
 0x14e   : > { %1342 = vmatpush1.bf16.msra.mxu1 %v3169_v37  ;;  %v3261_v37 = vld [vmem:[%s4159_s3 + $0x464] ss:$8 sps:$4 sm:$0xff]  }
 0x14f   : > { %1482 = vmatmul.mubr.bf16.vlgmr.msra.gmra.mrb[12].mxu0 %v1147_v40  ;;  %1849 = vmatprep.subr.bf16.mxu1 %v3177_v38  ;;  %v3256_v38 = vld [vmem:[%s4159_s3 + $0x3e0] ss:$8 sps:$4 sm:$0xff]  }
 0x150   : > { %1712 = vmatpush1.bf16.msra.mxu0 %v3172_v39  ;;  %1743 = vmatprep.mubr.bf16.mxu0 %v1548_v42  ;;  %v3264_v39 = vld [vmem:[%s4159_s3 + $0x3f4] ss:$8 sps:$4 sm:$0xff]   ;;  %v3262_v42 = vld [vmem:[%s4159_s3 + $0x3f0] ss:$8 sps:$4 sm:$0xff]  }
 0x151   : > { %1344 = vmatmul.mubr.bf16.vlgmr.msra.gmra.mrb[8].mxu1 %v1147_v40  ;;  %1713 = vmatprep.subr.bf16.mxu0 %v3180_v41  ;;  %v3259_v40 = vld [vmem:[%s4159_s3 + $0x460] ss:$8 sps:$4 sm:$0xff]   ;;  %v3267_v41 = vld [vmem:[%s4159_s3 + $0x474] ss:$8 sps:$4 sm:$0xff]  }
 0x152   : > { %1850 = vmatpush1.bf16.msra.mxu1 %v3175_v43  ;;  %1881 = vmatprep.mubr.bf16.mxu1 %v3325_v55  ;;  %v3270_v43 = vld [vmem:[%s4160_s4 + $0x204] ss:$8 sps:$4 sm:$0xff]  }
 0x153   : > { %1851 = vmatprep.subr.bf16.mxu1 %v3183_v44  ;;  %v3265_v44 = vld [vmem:[%s4159_s3 + $0x470] ss:$8 sps:$4 sm:$0xff]  }
 0x154   : > { %1714 = vmatpush1.bf16.msra.mxu0 %v3178_v45  ;;  %v3273_v45 = vld [vmem:[%s4159_s3 + $0x484] ss:$8 sps:$4 sm:$0xff]  }
 0x155   : > { %1715 = vmatprep.subr.bf16.mxu0 %v3186_v46  ;;  %v3268_v46 = vld [vmem:[%s4160_s4 + $0x200] ss:$8 sps:$4 sm:$0xff]  }
 0x156   : > { %1852 = vmatpush1.bf16.msra.mxu1 %v3181_v47  ;;  %v3276_v47 = vld [vmem:[%s4160_s4 + $0x214] ss:$8 sps:$4 sm:$0xff]  }
 0x157   : > { %1853 = vmatprep.subr.bf16.mxu1 %v3189_v48  ;;  %v3271_v48 = vld [vmem:[%s4159_s3 + $0x480] ss:$8 sps:$4 sm:$0xff]  }
 0x158   : > { %1716 = vmatpush1.bf16.msra.mxu0 %v3184_v49  ;;  %v3279_v49 = vld [vmem:[%s4159_s3 + $0x494] ss:$8 sps:$4 sm:$0xff]  }
 0x159   : > { %1717 = vmatprep.subr.bf16.mxu0 %v3192_v50  ;;  %v3274_v50 = vld [vmem:[%s4160_s4 + $0x210] ss:$8 sps:$4 sm:$0xff]  }
 0x15a   : > { %1854 = vmatpush1.bf16.msra.mxu1 %v3187_v51  ;;  %v3282_v51 = vld [vmem:[%s4160_s4 + $0x224] ss:$8 sps:$4 sm:$0xff]  }
 0x15b   : > { %1855 = vmatprep.subr.bf16.mxu1 %v3195_v52  ;;  %v3277_v52 = vld [vmem:[%s4159_s3 + $0x490] ss:$8 sps:$4 sm:$0xff]  }
 0x15c   : > { %1718 = vmatpush1.bf16.msra.mxu0 %v3190_v53  ;;  %v3285_v53 = vld [vmem:[%s4159_s3 + $0x4a4] ss:$8 sps:$4 sm:$0xff]  }
 0x15d   : > { %1719 = vmatprep.subr.bf16.mxu0 %v3198_v54  ;;  %v3288_v54 = vld [vmem:[%s4160_s4 + $0x234] ss:$8 sps:$4 sm:$0xff]  }
 0x15e   : > { %1856 = vmatpush1.bf16.msra.mxu1 %v3193_v56  ;;  %v3283_v56 = vld [vmem:[%s4159_s3 + $0x4a0] ss:$8 sps:$4 sm:$0xff]  }
 0x15f   : > { %1857 = vmatprep.subr.bf16.mxu1 %v3201_v57  ;;  %v3291_v57 = vld [vmem:[%s4159_s3 + $0x4b4] ss:$8 sps:$4 sm:$0xff]  }
 0x160   : > { %1720 = vmatpush1.bf16.msra.mxu0 %v3196_v58  ;;  %v3286_v58 = vld [vmem:[%s4160_s4 + $0x230] ss:$8 sps:$4 sm:$0xff]  }
 0x161   : > { %1721 = vmatprep.subr.bf16.mxu0 %v3204_v59  ;;  %v3294_v59 = vld [vmem:[%s4160_s4 + $0x244] ss:$8 sps:$4 sm:$0xff]  }
 0x162   : > { %1858 = vmatpush1.bf16.msra.mxu1 %v3199_v60  ;;  %v3289_v60 = vld [vmem:[%s4159_s3 + $0x4b0] ss:$8 sps:$4 sm:$0xff]  }
 0x163   : > { %1859 = vmatprep.subr.bf16.mxu1 %v3207_v62  ;;  %v3297_v62 = vld [vmem:[%s4159_s3 + $0x4c4] ss:$8 sps:$4 sm:$0xff]  }
 0x164   : > { %1722 = vmatpush1.bf16.msra.mxu0 %v3202_v63  ;;  %v3292_v63 = vld [vmem:[%s4160_s4 + $0x240] ss:$8 sps:$4 sm:$0xff]  }
 0x165   : > { %1723 = vmatprep.subr.bf16.mxu0 %v3210_v2  ;;  %v3300_v2 = vld [vmem:[%s4160_s4 + $0x254] ss:$8 sps:$4 sm:$0xff]  }
 0x166   : > { %1860 = vmatpush1.bf16.msra.mxu1 %v3205_v3  ;;  %v3295_v3 = vld [vmem:[%s4159_s3 + $0x4c0] ss:$8 sps:$4 sm:$0xff]  }
 0x167   : > { %1861 = vmatprep.subr.bf16.mxu1 %v3213_v4  ;;  %v3303_v4 = vld [vmem:[%s4159_s3 + $0x4d4] ss:$8 sps:$4 sm:$0xff]  }
 0x168   : > { %1724 = vmatpush1.bf16.msra.mxu0 %v3208_v5  ;;  %v3298_v5 = vld [vmem:[%s4160_s4 + $0x250] ss:$8 sps:$4 sm:$0xff]  }
 0x169   : > { %1725 = vmatprep.subr.bf16.mxu0 %v3216_v6  ;;  %v3306_v6 = vld [vmem:[%s4160_s4 + $0x264] ss:$8 sps:$4 sm:$0xff]  }
 0x16a   : > { %1862 = vmatpush1.bf16.msra.mxu1 %v3211_v7  ;;  %v3301_v7 = vld [vmem:[%s4159_s3 + $0x4d0] ss:$8 sps:$4 sm:$0xff]  }
 0x16b   : > { %1863 = vmatprep.subr.bf16.mxu1 %v3219_v8  ;;  %v3309_v8 = vld [vmem:[%s4159_s3 + $0x4e4] ss:$8 sps:$4 sm:$0xff]  }
 0x16c   : > { %1726 = vmatpush1.bf16.msra.mxu0 %v3214_v9  ;;  %v3304_v9 = vld [vmem:[%s4160_s4 + $0x260] ss:$8 sps:$4 sm:$0xff]  }
 0x16d   : > { %1727 = vmatprep.subr.bf16.mxu0 %v3222_v10  ;;  %v3312_v10 = vld [vmem:[%s4160_s4 + $0x274] ss:$8 sps:$4 sm:$0xff]  }
 0x16e   : > { %1864 = vmatpush1.bf16.msra.mxu1 %v3217_v11  ;;  %v3307_v11 = vld [vmem:[%s4159_s3 + $0x4e0] ss:$8 sps:$4 sm:$0xff]  }
 0x16f   : > { %2111 = vmatprep.subr.bf16.mxu1 %v3225_v12  ;;  %v3315_v12 = vld [vmem:[%s4159_s3 + $0x4f4] ss:$8 sps:$4 sm:$0xff]  }
 0x170   : > { %1728 = vmatpush1.bf16.msra.mxu0 %v3220_v13  ;;  %v3310_v13 = vld [vmem:[%s4160_s4 + $0x270] ss:$8 sps:$4 sm:$0xff]  }
 0x171   : > { %1882 = vmatmul.mubr.bf16.vlgmr.msra.gmra.mrb[12].mxu1 %v1547_v16  ;;  %1729 = vmatprep.subr.bf16.mxu0 %v3228_v14  ;;  %v3313_v14 = vld [vmem:[%s4159_s3 + $0x4f0] ss:$8 sps:$4 sm:$0xff]  }
 0x172   : > { %2112 = vmatpush1.bf16.msra.mxu1 %v3223_v15  ;;  %2143 = vmatprep.mubr.bf16.mxu1 %v1948_v18  ;;  %v1947_v15 = vrot.slane %v3537_v61, 4 }
 0x173   : > { %2113 = vmatprep.subr.bf16.mxu1 %v3231_v17 }
 0x174   : > { %1730 = vmatpush1.bf16.msra.mxu0 %v3226_v19 }
 0x175   : > { %1731 = vmatprep.subr.bf16.mxu0 %v3234_v20 }
 0x176   : > { %2114 = vmatpush1.bf16.msra.mxu1 %v3229_v21 }
 0x177   : > { %2115 = vmatprep.subr.bf16.mxu1 %v3237_v1 }
 0x178   : > { %1732 = vmatpush1.bf16.msra.mxu0 %v3232_v22 }
 0x179   : > { %1733 = vmatprep.subr.bf16.mxu0 %v3240_v23 }
 0x17a   : > { %2116 = vmatpush1.bf16.msra.mxu1 %v3235_v24 }
 0x17b   : > { %2117 = vmatprep.subr.bf16.mxu1 %v3243_v25 }
 0x17c   : > { %1734 = vmatpush1.bf16.msra.mxu0 %v3238_v26 }
 0x17d   : > { %1735 = vmatprep.subr.bf16.mxu0 %v3246_v27 }
 0x17e   : > { %2118 = vmatpush1.bf16.msra.mxu1 %v3241_v28 }
 0x17f   : > { %2119 = vmatprep.subr.bf16.mxu1 %v3249_v29 }
 0x180   : > { %1736 = vmatpush1.bf16.msra.mxu0 %v3244_v30 }
 0x181   : > { %1737 = vmatprep.subr.bf16.mxu0 %v3252_v31 }
 0x182   : > { %2120 = vmatpush1.bf16.msra.mxu1 %v3247_v32 }
 0x183   : > { %2121 = vmatprep.subr.bf16.mxu1 %v3255_v33 }
 0x184   : > { %1738 = vmatpush1.bf16.msra.mxu0 %v3250_v34 }
 0x185   : > { %1739 = vmatprep.subr.bf16.mxu0 %v3258_v35 }
 0x186   : > { %2122 = vmatpush1.bf16.msra.mxu1 %v3253_v36 }
 0x187   : > { %2123 = vmatprep.subr.bf16.mxu1 %v3261_v37 }
 0x188   : > { %1740 = vmatpush1.bf16.msra.mxu0 %v3256_v38 }
 0x189   : > { %1741 = vmatprep.subr.bf16.mxu0 %v3264_v39 }
 0x18a   : > { %2124 = vmatpush1.bf16.msra.mxu1 %v3259_v40 }
 0x18b   : > { %2125 = vmatprep.subr.bf16.mxu1 %v3267_v41 }
 0x18c   : > { %1742 = vmatpush1.bf16.msra.mxu0 %v3262_v42 }
 0x18d   : > { %2249 = vmatprep.subr.bf16.mxu0 %v3270_v43 }
 0x18e   : > { %2126 = vmatpush1.bf16.msra.mxu1 %v3265_v44 }
 0x18f   : > { %1744 = vmatmul.mubr.bf16.vlgmr.msra.gmra.mrb[16].mxu0 %v1547_v16  ;;  %2127 = vmatprep.subr.bf16.mxu1 %v3273_v45 }
 0x190   : > { %2250 = vmatpush1.bf16.msra.mxu0 %v3268_v46  ;;  %2281 = vmatprep.mubr.bf16.mxu0 %v3325_v55  ;;  %v3280_v55 = vld [vmem:[%s4160_s4 + $0x220] ss:$8 sps:$4 sm:$0xff]  }
 0x191   : > { %2251 = vmatprep.subr.bf16.mxu0 %v3276_v47 }
 0x192   : > { %2128 = vmatpush1.bf16.msra.mxu1 %v3271_v48 }
 0x193   : > { %2129 = vmatprep.subr.bf16.mxu1 %v3279_v49 }
 0x194   : > { %2252 = vmatpush1.bf16.msra.mxu0 %v3274_v50 }
 0x195   : > { %2253 = vmatprep.subr.bf16.mxu0 %v3282_v51 }
 0x196   : > { %2130 = vmatpush1.bf16.msra.mxu1 %v3277_v52 }
 0x197   : > { %2131 = vmatprep.subr.bf16.mxu1 %v3285_v53 }
 0x198   : > { %2254 = vmatpush1.bf16.msra.mxu0 %v3280_v55 }
 0x199   : > { %2255 = vmatprep.subr.bf16.mxu0 %v3288_v54 }
 0x19a   : > { %2132 = vmatpush1.bf16.msra.mxu1 %v3283_v56 }
 0x19b   : > { %2133 = vmatprep.subr.bf16.mxu1 %v3291_v57 }
 0x19c   : > { %2256 = vmatpush1.bf16.msra.mxu0 %v3286_v58 }
 0x19d   : > { %2257 = vmatprep.subr.bf16.mxu0 %v3294_v59 }
 0x19e   : > { %2134 = vmatpush1.bf16.msra.mxu1 %v3289_v60 }
 0x19f   : > { %2135 = vmatprep.subr.bf16.mxu1 %v3297_v62 }
 0x1a0   : > { %2258 = vmatpush1.bf16.msra.mxu0 %v3292_v63 }
 0x1a1   : > { %2259 = vmatprep.subr.bf16.mxu0 %v3300_v2 }
 0x1a2   : > { %2136 = vmatpush1.bf16.msra.mxu1 %v3295_v3 }
 0x1a3   : > { %2137 = vmatprep.subr.bf16.mxu1 %v3303_v4 }
 0x1a4   : > { %2260 = vmatpush1.bf16.msra.mxu0 %v3298_v5 }
 0x1a5   : > { %2261 = vmatprep.subr.bf16.mxu0 %v3306_v6 }
 0x1a6   : > { %2138 = vmatpush1.bf16.msra.mxu1 %v3301_v7 }
 0x1a7   : > { %2139 = vmatprep.subr.bf16.mxu1 %v3309_v8 }
 0x1a8   : > { %2262 = vmatpush1.bf16.msra.mxu0 %v3304_v9 }
 0x1a9   : > { %2263 = vmatprep.subr.bf16.mxu0 %v3312_v10 }
 0x1aa   : > { %2140 = vmatpush1.bf16.msra.mxu1 %v3307_v11 }
 0x1ab   : > { %2141 = vmatprep.subr.bf16.mxu1 %v3315_v12 }
 0x1ac   : > { %2264 = vmatpush1.bf16.msra.mxu0 %v3310_v13 }
 0x1ae   : > { %2142 = vmatpush1.bf16.msra.mxu1 %v3313_v14 }
 0x1af   : > { %2282 = vmatmul.mubr.bf16.vlgmr.msra.gmra.mrb[20].mxu0 %v1947_v15 }
 0x1b0   : > { %2416 = vmatprep.mubr.f32.mxu0 %v3324_v0 }
 0x1b1   : > { %2144 = vmatmul.mubr.bf16.vlgmr.msra.gmra.mrb[16].mxu1 %v1947_v15 }
 0x1c2   : > { %v680_v16 = vpop.f32.mrb[4].mxu0 }
 0x1c3   : > { %v705_v17 = vrot.slane %v680_v16, 1  ;;  %v682_v18 = vpop.f32.mrb[5].mxu0 }
 0x1c4   : > { %v701_v19 = vrot.slane %v682_v18, 1  ;;  %v543_v20 = vpop.f32.mrb[0].mxu1  ;;  %v684_v21 = vpop.f32.mrb[6].mxu0 }
 0x1c5   : > { %v707_v1 = vadd.f32 %v705_v17, %v682_v18  ;;  %v692_v22 = vrot.slane %v543_v20, 1  ;;  %v545_v23 = vpop.f32.mrb[1].mxu1  ;;  %v685_v24 = vpop.f32.mrb[7].mxu0 }
 0x1c6   : > { %v703_v25 = vsub.f32 %v680_v16, %v701_v19  ;;  %v688_v26 = vrot.slane %v545_v23, 1  ;;  %v547_v27 = vpop.f32.mrb[2].mxu1 }
 0x1c7   : > { %v709_v61 = vrot.slane %v707_v1, 7  ;;  %v694_v28 = vadd.f32 %v692_v22, %v545_v23  ;;  %v548_v29 = vpop.f32.mrb[3].mxu1 }
 0x1c8   : > { %v690_v30 = vsub.f32 %v543_v20, %v688_v26 }
 0x1c9   : > { %v711_v0 = vsel %vm698_vm1, %v703_v25, %v709_v61  ;;  %v696_v31 = vrot.slane %v694_v28, 7 }
 0x1cb   : > { %v699_v32 = vsel %vm698_vm1, %v690_v30, %v696_v31 }
 0x1e4   : > { %v1083_v33 = vpop.f32.mrb[4].mxu1 }
 0x1e5   : > { %v1107_v34 = vrot.slane %v1083_v33, 1  ;;  %v1085_v35 = vpop.f32.mrb[5].mxu1 }
 0x1e6   : > { %v1103_v36 = vrot.slane %v1085_v35, 1  ;;  %v1087_v37 = vpop.f32.mrb[6].mxu1 }
 0x1e7   : > { %v1109_v38 = vadd.f32 %v1107_v34, %v1085_v35  ;;  %v1088_v39 = vpop.f32.mrb[7].mxu1 }
 0x1e8   : > { %v1105_v40 = vsub.f32 %v1083_v33, %v1103_v36 }
 0x1e9   : > { %v1111_v41 = vrot.slane %v1109_v38, 7 }
 0x1eb   : > { %v1113_v42 = vsel %vm698_vm1, %v1105_v40, %v1111_v41 }
 0x1ec   : > { %v2317_v43 = vrot.slane %v1113_v42, 6 }
 0x1ee   : > { %v2334_v44 = vsel %vm2332_vm2, %v711_v0, %v2317_v43 }
 0x202   : > { %v945_v45 = vpop.f32.mrb[8].mxu0 }
 0x203   : > { %v1095_v46 = vrot.slane %v945_v45, 1  ;;  %v947_v47 = vpop.f32.mrb[9].mxu0 }
 0x204   : > { %v1091_v48 = vrot.slane %v947_v47, 1  ;;  %v949_v49 = vpop.f32.mrb[10].mxu0 }
 0x205   : > { %v1097_v50 = vadd.f32 %v1095_v46, %v947_v47  ;;  %v950_v51 = vpop.f32.mrb[11].mxu0 }
 0x206   : > { %v1093_v52 = vsub.f32 %v945_v45, %v1091_v48 }
 0x207   : > { %v1099_v53 = vrot.slane %v1097_v50, 7 }
 0x209   : > { %v1101_v55 = vsel %vm698_vm1, %v1093_v52, %v1099_v53 }
 0x20a   : > { %v2316_v54 = vrot.slane %v1101_v55, 6 }
 0x20c   : > { %v2333_v56 = vsel %vm2332_vm2, %v699_v32, %v2316_v54 }
 0x222   : > { %v1483_v57 = vpop.f32.mrb[12].mxu0 }
 0x223   : > { %v1507_v58 = vrot.slane %v1483_v57, 1  ;;  %v1485_v59 = vpop.f32.mrb[13].mxu0 }
 0x224   : > { %v1503_v60 = vrot.slane %v1485_v59, 1  ;;  %v1345_v62 = vpop.f32.mrb[8].mxu1  ;;  %v1487_v63 = vpop.f32.mrb[14].mxu0 }
 0x225   : > { %v1509_v2 = vadd.f32 %v1507_v58, %v1485_v59  ;;  %v1495_v3 = vrot.slane %v1345_v62, 1  ;;  %v1347_v4 = vpop.f32.mrb[9].mxu1  ;;  %v1488_v5 = vpop.f32.mrb[15].mxu0 }
 0x226   : > { %v1505_v6 = vsub.f32 %v1483_v57, %v1503_v60  ;;  %v1491_v7 = vrot.slane %v1347_v4, 1  ;;  %v1349_v8 = vpop.f32.mrb[10].mxu1 }
 0x227   : > { %v1511_v9 = vrot.slane %v1509_v2, 7  ;;  %v1497_v10 = vadd.f32 %v1495_v3, %v1347_v4  ;;  %v1350_v11 = vpop.f32.mrb[11].mxu1  ;;  %v2341_v2 = vld [vmem:[%s4158_s2] sm:$0xff] }
 0x228   : > { %v1493_v12 = vsub.f32 %v1345_v62, %v1491_v7 }
 0x229   : > { %v1513_v13 = vsel %vm698_vm1, %v1505_v6, %v1511_v9  ;;  %v1499_v14 = vrot.slane %v1497_v10, 7 }
 0x22a   : > { %v2323_v15 = vrot.slane %v1513_v13, 4 }
 0x22b   : > { %v1501_v16 = vsel %vm698_vm1, %v1493_v12, %v1499_v14 }
 0x22c   : > { %v2322_v17 = vrot.slane %v1501_v16, 4  ;;  %v2337_v18 = vsel %vm2335_vm3, %v2334_v44, %v2323_v15 }
 0x22e   : > { %v2336_v19 = vsel %vm2335_vm3, %v2333_v56, %v2322_v17 }
 0x244   : > { %v1883_v20 = vpop.f32.mrb[12].mxu1 }
 0x245   : > { %v1907_v21 = vrot.slane %v1883_v20, 1  ;;  %v1885_v1 = vpop.f32.mrb[13].mxu1 }
 0x246   : > { %v1903_v22 = vrot.slane %v1885_v1, 1  ;;  %v1887_v23 = vpop.f32.mrb[14].mxu1 }
 0x247   : > { %v1909_v24 = vadd.f32 %v1907_v21, %v1885_v1  ;;  %v1888_v25 = vpop.f32.mrb[15].mxu1 }
 0x248   : > { %v1905_v26 = vsub.f32 %v1883_v20, %v1903_v22 }
 0x249   : > { %v1911_v27 = vrot.slane %v1909_v24, 7 }
 0x24b   : > { %v1913_v61 = vsel %vm698_vm1, %v1905_v26, %v1911_v27 }
 0x24c   : > { %v2329_v28 = vrot.slane %v1913_v61, 2 }
 0x24e   : > { %v2340_v29 = vsel %vm2338_vm4, %v2337_v18, %v2329_v28 }
 0x262   : > { %v1745_v30 = vpop.f32.mrb[16].mxu0 }
 0x263   : > { %v1895_v0 = vrot.slane %v1745_v30, 1  ;;  %v1747_v31 = vpop.f32.mrb[17].mxu0 }
 0x264   : > { %v1891_v32 = vrot.slane %v1747_v31, 1  ;;  %v1749_v33 = vpop.f32.mrb[18].mxu0 }
 0x265   : > { %v1897_v34 = vadd.f32 %v1895_v0, %v1747_v31  ;;  %v1750_v35 = vpop.f32.mrb[19].mxu0 }
 0x266   : > { %v1893_v36 = vsub.f32 %v1745_v30, %v1891_v32 }
 0x267   : > { %v1899_v37 = vrot.slane %v1897_v34, 7 }
 0x269   : > { %v1901_v38 = vsel %vm698_vm1, %v1893_v36, %v1899_v37 }
 0x26a   : > { %v2328_v39 = vrot.slane %v1901_v38, 2 }
 0x26c   : > { %v2339_v40 = vsel %vm2338_vm4, %v2336_v19, %v2328_v39 }
 0x282   : > { %v2283_v41 = vpop.f32.mrb[20].mxu0 }
 0x283   : > { %v2307_v42 = vrot.slane %v2283_v41, 1  ;;  %v2285_v43 = vpop.f32.mrb[21].mxu0 }
 0x284   : > { %v2303_v44 = vrot.slane %v2285_v43, 1  ;;  %v2145_v45 = vpop.f32.mrb[16].mxu1  ;;  %v2287_v46 = vpop.f32.mrb[22].mxu0 }
 0x285   : > { %v2309_v47 = vadd.f32 %v2307_v42, %v2285_v43  ;;  %v2295_v48 = vrot.slane %v2145_v45, 1  ;;  %v2147_v49 = vpop.f32.mrb[17].mxu1  ;;  %v2288_v50 = vpop.f32.mrb[23].mxu0 }
 0x286   : > { %v2305_v51 = vsub.f32 %v2283_v41, %v2303_v44  ;;  %v2291_v52 = vrot.slane %v2147_v49, 1  ;;  %v2149_v53 = vpop.f32.mrb[18].mxu1 }
 0x287   : > { %v2311_v55 = vrot.slane %v2309_v47, 7  ;;  %v2297_v54 = vadd.f32 %v2295_v48, %v2147_v49  ;;  %v2150_v56 = vpop.f32.mrb[19].mxu1 }
 0x288   : > { %v2293_v57 = vsub.f32 %v2145_v45, %v2291_v52 }
 0x289   : > { %v2313_v58 = vsel %vm698_vm1, %v2305_v51, %v2311_v55  ;;  %v2299_v59 = vrot.slane %v2297_v54, 7 }
 0x28a   : > { %v2939_v60 = vpack.c.bf16 %v2313_v58, %v2340_v29 }
 0x28b   : > { %v2301_v62 = vsel %vm698_vm1, %v2293_v57, %v2299_v59 }
 0x28c   : > { %2941 = vmatprep.subr.msk.bf16.mxu0 %vm2940_vm6, %v2939_v60  ;;  %v2942_v63 = vpack.c.bf16 %v2301_v62, %v2339_v40 }
 0x28e   : > { %2944 = vmatpush1.bf16.msk.msra.mxu0 %vm2940_vm6, %v2942_v63 }
 0x291   : > { %2932 = vmatmul.mubr.msk.f32.vlgmr.msra.gmra.mrb[24].mxu0 %vm2342_vm7, %v2341_v2 }
 0x364   : > { %v2418_v3 = vpop.f32.mrb[24].mxu0 }
 0x365   : > { %v2420_v4 = vpop.f32.mrb[25].mxu0 }
 0x366   : > { %v2938_v5 = vpack.c.bf16 %v2420_v4, %v2418_v3 }
 0x368   : > { %2431 = vst [vmem:[%s224_s28] sm:$0xff] %v2938_v5 }
 0x369 PF: > { %s15_s18 = sadd.s32 1, %s3322_s18  }
 0x36a   : > { %p12_p4 = scmp.ge.s32.totalorder %s15_s18, 4  }
 0x36c   :  { %14 = sbr.rel (!%p12_p4) target bundleno = 1 (0x1), region = 78 }

</bundles_post_ra>
